<compile_context>
chip_gen: v5e
topology: v5e:2x2
jax: 0.10.0
libtpu: 0.0.40
codegen_flags: <defaults>
</compile_context>

<pallas_src>
import jax
import jax.numpy as jnp
from jax import lax
from jax.experimental import pallas as pl
from jax.experimental.pallas import tpu as pltpu


# ----------------------------- architecture -------------------------------
IMG, C_IN, K = 32, 3, 5
C1 = 6
H1 = IMG - K + 1          # 28  (conv1 output spatial)
P1 = H1 // 2              # 14  (after pool1)
C2 = 16
H2 = P1 - K + 1           # 10  (conv2 output spatial)
P2 = H2 // 2              # 5   (after pool2)
FC1, FC2, FC3 = 120, 84, 10

# ----------------------------- batch tiling --------------------------------
TB = 8                     # images per grid step (stacked along rows)
R0 = TB * IMG              # 256 stacked input rows per tile
R1 = R0 - (K - 1)          # 252 conv1 accumulator rows
R2 = R1 // 2               # 126 pooled1 rows
R3 = R2 - (K - 1)          # 122 conv2 accumulator rows
R4 = R3 // 2               # 61  pooled2 rows
R5 = R4 - (K - 1)          # 57  fc1 accumulator rows
STRIDE2 = IMG // 4         # 8   per-image row stride in pooled2 / fc1 acc


# ------------------------------ fused kernel ------------------------------

def _lenet_kernel(x_ref, m1_ref, b1_ref, m2_ref, b2_ref,
                  wf1_ref, bf1_ref, sel_ref, wf2_ref, bf2_ref, wf3_ref, bf3_ref,
                  x1_ref, out_ref):
    """Full forward for one tile of TB images stacked along rows.

    x_ref  : (1, TB*32, 96)  input rows, col = w*3 + c; image b owns rows
                             [b*32, b*32+32).
    m1_ref : (5, 96, 168)    conv1 band matrices, out col = parity*84 + w2*6 + co
    m2_ref : (5, 84, 160)    conv2 band matrices, out col = parity*80 + w2*16 + co
    wf1_ref: (5, 80, 120)    fc1 weight, rows permuted to (h, w*16+c) order
    sel_ref: (TB, 57)        row-selection matrix, sel[b, 8*b] = 1
    """
    x = x_ref[0]                                              # (256, 96)

    # conv1 (5x5 valid) + bias + ReLU as 5 banded matmuls (K=96, N=168).
    # Row r of the accumulator only reads input rows r..r+4; the rows we keep
    # (r = b*32 + h, h < 28) never cross an image boundary.
    acc = jnp.dot(x[0:R1, :], m1_ref[0], preferred_element_type=jnp.float32)
    for kh in range(1, K):
        acc = acc + jnp.dot(x[kh:kh + R1, :], m1_ref[kh],
                            preferred_element_type=jnp.float32)
    h = jnp.maximum(acc + b1_ref[...], 0.0)                   # (252, 168)

    # 2x2 maxpool: W via parity-major column halves, H via row-pair max
    h = jnp.maximum(h[:, :P1 * C1], h[:, P1 * C1:])           # (252, 84)
    h = jnp.max(h.reshape(R2, 2, P1 * C1), axis=1)            # (126, 84)

    # conv2 (5x5 valid) + bias + ReLU (K=84, N=160)
    acc2 = jnp.dot(h[0:R3, :], m2_ref[0], preferred_element_type=jnp.float32)
    for kh in range(1, K):
        acc2 = acc2 + jnp.dot(h[kh:kh + R3, :], m2_ref[kh],
                              preferred_element_type=jnp.float32)
    g = jnp.maximum(acc2 + b2_ref[...], 0.0)                  # (122, 160)

    # 2x2 maxpool
    g = jnp.maximum(g[:, :P2 * C2], g[:, P2 * C2:])           # (122, 80)
    g = jnp.max(g.reshape(R4, 2, P2 * C2), axis=1)            # (61, 80)

    # fc1 as 5 banded matmuls over the pooled feature rows; image b's result
    # lands on row 8*b of the accumulator.
    facc = jnp.dot(g[0:R5, :], wf1_ref[0], preferred_element_type=jnp.float32)
    for r in range(1, P2):
        facc = facc + jnp.dot(g[r:r + R5, :], wf1_ref[r],
                              preferred_element_type=jnp.float32)
    # Compact the stride-8 valid rows to (TB, 120) with a tiny selection matmul.
    f = jnp.dot(sel_ref[...], facc, preferred_element_type=jnp.float32)
    f = jnp.maximum(f + bf1_ref[...], 0.0)                    # (TB, 120)

    # fc2 + ReLU (x1) and fc3 (logits), batched over the tile
    x1 = jnp.maximum(jnp.dot(f, wf2_ref[...],
                             preferred_element_type=jnp.float32)
                     + bf2_ref[...], 0.0)                     # (TB, 84)
    out = jnp.dot(x1, wf3_ref[...],
                  preferred_element_type=jnp.float32) + bf3_ref[...]  # (TB, 10)

    x1_ref[0] = x1
    out_ref[0] = out


# --------------------------- parameter plumbing ----------------------------

def band_matrix(w_oihw, w_in, w_out):
    """Turn a 5-tap valid conv along W into KH banded matmul matrices.

    Returns (KH, w_in*Cin, w_out*Cout) with output columns ordered
    parity-major: col = (w % 2)*(w_out//2*Cout) + (w//2)*Cout + co,
    so the 2x2 maxpool along W becomes a max of two contiguous halves.
    """
    cout, cin, kh, kw = w_oihw.shape
    wo = jnp.arange(w_out)
    kk = jnp.arange(kw)
    wi = jnp.arange(w_in)
    sel = (wi[None, None, :] == (wo[:, None, None] + kk[None, :, None])
           ).astype(w_oihw.dtype)                              # (w_out, kw, w_in)
    m = jnp.einsum("oki,cdhk->hidoc", sel, w_oihw)             # (kh, w_in, cin, w_out, cout)
    m = m.reshape(kh, w_in, cin, w_out // 2, 2, cout)
    m = m.transpose(0, 1, 2, 4, 3, 5)                          # (kh, w_in, cin, parity, w2, cout)
    return m.reshape(kh, w_in * cin, w_out * cout)


def prepare_params(p):
    """One-time preprocessing of PyTorch-layout params into kernel layout."""
    wf1k = (p["wf1"].T.reshape(C2, P2, P2, FC1)   # (c, h, w, out)  PyTorch order
            .transpose(1, 2, 0, 3)                # (h, w, c, out)
            .reshape(P2, P2 * C2, FC1))           # (5, 80, 120)
    sel = (jnp.arange(R5)[None, :]
           == (STRIDE2 * jnp.arange(TB))[:, None]).astype(jnp.float32)  # (TB, 57)
    return {
        "m1": band_matrix(p["w1"], IMG, H1),                   # (5, 96, 168)
        "b1t": jnp.tile(p["b1"], H1)[None, :],                 # (1, 168)
        "m2": band_matrix(p["w2"], P1, H2),                    # (5, 84, 160)
        "b2t": jnp.tile(p["b2"], H2)[None, :],                 # (1, 160)
        "wf1k": wf1k, "bf1": p["bf1"][None, :],
        "sel": sel,
        "wf2": p["wf2"].T, "bf2": p["bf2"][None, :],
        "wf3": p["wf3"].T, "bf3": p["bf3"][None, :],
    }


def cnn_svhn_forward(x_nchw, kp):
    """Matches CNN_svhn.forward; returns (x1 = relu(fc2), logits = fc3)."""
    B = x_nchw.shape[0]
    xr = jnp.transpose(x_nchw, (0, 2, 3, 1)).reshape(B, IMG, IMG * C_IN)
    n_tiles = pl.cdiv(B, TB)
    Bp = n_tiles * TB
    xr = jnp.pad(xr, ((0, Bp - B), (0, 0), (0, 0)))            # pad batch to tile
    xt = xr.reshape(n_tiles, R0, IMG * C_IN)

    x1, logits = pl.pallas_call(
        _lenet_kernel,
        out_shape=(jax.ShapeDtypeStruct((n_tiles, TB, FC2), jnp.float32),
                   jax.ShapeDtypeStruct((n_tiles, TB, FC3), jnp.float32)),
        grid=(n_tiles,),
        in_specs=[
            pl.BlockSpec((1, R0, IMG * C_IN), lambda i: (i, 0, 0)),
            pl.BlockSpec((K, IMG * C_IN, H1 * C1), lambda i: (0, 0, 0)),
            pl.BlockSpec((1, H1 * C1), lambda i: (0, 0)),
            pl.BlockSpec((K, P1 * C1, H2 * C2), lambda i: (0, 0, 0)),
            pl.BlockSpec((1, H2 * C2), lambda i: (0, 0)),
            pl.BlockSpec((P2, P2 * C2, FC1), lambda i: (0, 0, 0)),
            pl.BlockSpec((1, FC1), lambda i: (0, 0)),
            pl.BlockSpec((TB, R5), lambda i: (0, 0)),
            pl.BlockSpec((FC1, FC2), lambda i: (0, 0)),
            pl.BlockSpec((1, FC2), lambda i: (0, 0)),
            pl.BlockSpec((FC2, FC3), lambda i: (0, 0)),
            pl.BlockSpec((1, FC3), lambda i: (0, 0)),
        ],
        out_specs=(pl.BlockSpec((1, TB, FC2), lambda i: (i, 0, 0)),
                   pl.BlockSpec((1, TB, FC3), lambda i: (i, 0, 0))),
        compiler_params=pltpu.CompilerParams(
            dimension_semantics=("parallel",)),
    )(xt, kp["m1"], kp["b1t"], kp["m2"], kp["b2t"],
      kp["wf1k"], kp["bf1"], kp["sel"], kp["wf2"], kp["bf2"],
      kp["wf3"], kp["bf3"])
    return x1.reshape(Bp, FC2)[:B], logits.reshape(Bp, FC3)[:B]


# --------------------------- params & reference ----------------------------

def init_params(key):
    ks = jax.random.split(key, 10)
    n = jax.random.normal
    return {
        "w1": 0.10 * n(ks[0], (C1, C_IN, K, K), jnp.float32),
        "b1": 0.01 * n(ks[1], (C1,), jnp.float32),
        "w2": 0.10 * n(ks[2], (C2, C1, K, K), jnp.float32),
        "b2": 0.01 * n(ks[3], (C2,), jnp.float32),
        "wf1": 0.05 * n(ks[4], (FC1, C2 * P2 * P2), jnp.float32),
        "bf1": 0.01 * n(ks[5], (FC1,), jnp.float32),
        "wf2": 0.05 * n(ks[6], (FC2, FC1), jnp.float32),
        "bf2": 0.01 * n(ks[7], (FC2,), jnp.float32),
        "wf3": 0.05 * n(ks[8], (FC3, FC2), jnp.float32),
        "bf3": 0.01 * n(ks[9], (FC3,), jnp.float32),
    }


def reference_forward(x, p):
    def conv(x, w, b):
        y = lax.conv_general_dilated(x, w, (1, 1), "VALID",
                                     dimension_numbers=("NCHW", "OIHW", "NCHW"))
        return jax.nn.relu(y + b[None, :, None, None])

    def pool(x):
        B, C, H, W = x.shape
        return x.reshape(B, C, H // 2, 2, W // 2, 2).max(axis=(3, 5))

    h = pool(conv(x, p["w1"], p["b1"]))
    h = pool(conv(h, p["w2"], p["b2"]))
    flat = h.reshape(h.shape[0], -1)                 # PyTorch (C,H,W) flatten
    f = jax.nn.relu(flat @ p["wf1"].T + p["bf1"])
    x1 = jax.nn.relu(f @ p["wf2"].T + p["bf2"])
    return x1, x1 @ p["wf3"].T + p["bf3"]


# ---------------------------------- main -----------------------------------

if __name__ == "__main__":
    key = jax.random.PRNGKey(0)
    pkey, xkey = jax.random.split(key)
    params = init_params(pkey)
    kparams = prepare_params(params)

    # SVHN-shaped input: NCHW (2, 3, 32, 32)
    x = jax.random.normal(xkey, (2, C_IN, IMG, IMG), jnp.float32)

    fwd = jax.jit(cnn_svhn_forward)
    x1, logits = jax.block_until_ready(fwd(x, kparams))
    assert x1.shape == (2, FC2)
    assert logits.shape == (2, FC3)

    ref_x1, ref_logits = reference_forward(x, params)
    assert jnp.allclose(x1, ref_x1, rtol=1e-3, atol=1e-3)
    assert jnp.allclose(logits, ref_logits, rtol=1e-3, atol=1e-3)
    print("KERNEL_OK")
</pallas_src>

<mosaic_0001>
module attributes {stable_mosaic.version = 11 : i64} {
  func.func @_lenet_kernel(%arg0: i32, %arg1: memref<1x256x96xf32, #tpu.memory_space<vmem>>, %arg2: memref<5x96x168xf32, #tpu.memory_space<vmem>>, %arg3: memref<1x168xf32, #tpu.memory_space<vmem>>, %arg4: memref<5x84x160xf32, #tpu.memory_space<vmem>>, %arg5: memref<1x160xf32, #tpu.memory_space<vmem>>, %arg6: memref<5x80x120xf32, #tpu.memory_space<vmem>>, %arg7: memref<1x120xf32, #tpu.memory_space<vmem>>, %arg8: memref<8x57xf32, #tpu.memory_space<vmem>>, %arg9: memref<120x84xf32, #tpu.memory_space<vmem>>, %arg10: memref<1x84xf32, #tpu.memory_space<vmem>>, %arg11: memref<84x10xf32, #tpu.memory_space<vmem>>, %arg12: memref<1x10xf32, #tpu.memory_space<vmem>>, %arg13: memref<1x8x84xf32, #tpu.memory_space<vmem>>, %arg14: memref<1x8x10xf32, #tpu.memory_space<vmem>>) attributes {dimension_semantics = [#tpu.dimension_semantics<parallel>], iteration_bounds = array<i64: 1>, scalar_prefetch = 0 : i64, scratch_operands = 0 : i64, tpu.core_type = #tpu.core_type<tc>, window_params = [{transform_indices = @transform_0, window_bounds = array<i64: 1, 256, 96>}, {pipeline_mode = #tpu.pipeline_mode<synchronous>, transform_indices = @transform_1, window_bounds = array<i64: 5, 96, 168>}, {pipeline_mode = #tpu.pipeline_mode<synchronous>, transform_indices = @transform_2, window_bounds = array<i64: 1, 168>}, {pipeline_mode = #tpu.pipeline_mode<synchronous>, transform_indices = @transform_3, window_bounds = array<i64: 5, 84, 160>}, {pipeline_mode = #tpu.pipeline_mode<synchronous>, transform_indices = @transform_4, window_bounds = array<i64: 1, 160>}, {pipeline_mode = #tpu.pipeline_mode<synchronous>, transform_indices = @transform_5, window_bounds = array<i64: 5, 80, 120>}, {pipeline_mode = #tpu.pipeline_mode<synchronous>, transform_indices = @transform_6, window_bounds = array<i64: 1, 120>}, {pipeline_mode = #tpu.pipeline_mode<synchronous>, transform_indices = @transform_7, window_bounds = array<i64: 8, 57>}, {pipeline_mode = #tpu.pipeline_mode<synchronous>, transform_indices = @transform_8, window_bounds = array<i64: 120, 84>}, {pipeline_mode = #tpu.pipeline_mode<synchronous>, transform_indices = @transform_9, window_bounds = array<i64: 1, 84>}, {pipeline_mode = #tpu.pipeline_mode<synchronous>, transform_indices = @transform_10, window_bounds = array<i64: 84, 10>}, {pipeline_mode = #tpu.pipeline_mode<synchronous>, transform_indices = @transform_11, window_bounds = array<i64: 1, 10>}, {transform_indices = @transform_12, window_bounds = array<i64: 1, 8, 84>}, {transform_indices = @transform_13, window_bounds = array<i64: 1, 8, 10>}]} {
    %c0 = arith.constant 0 : index
    %c0_0 = arith.constant 0 : index
    %c0_1 = arith.constant 0 : index
    %0 = vector.load %arg1[%c0, %c0_0, %c0_1] : memref<1x256x96xf32, #tpu.memory_space<vmem>>, vector<1x256x96xf32>
    %1 = vector.shape_cast %0 : vector<1x256x96xf32> to vector<256x96xf32>
    %2 = vector.extract_strided_slice %1 {offsets = [0, 0], sizes = [252, 96], strides = [1, 1]} : vector<256x96xf32> to vector<252x96xf32>
    %c0_2 = arith.constant 0 : index
    %c0_3 = arith.constant 0 : index
    %c0_4 = arith.constant 0 : index
    %3 = vector.load %arg2[%c0_2, %c0_3, %c0_4] : memref<5x96x168xf32, #tpu.memory_space<vmem>>, vector<1x96x168xf32>
    %4 = vector.shape_cast %3 : vector<1x96x168xf32> to vector<96x168xf32>
    %cst = arith.constant dense<0.000000e+00> : vector<252x168xf32>
    %5 = tpu.matmul %2, %4, %cst {dimension_numbers = #tpu.dot_dimension_numbers<[1], [0], [0], [1], [0, 0, 1, 1], [], []>} : vector<252x96xf32>, vector<96x168xf32>, vector<252x168xf32> -> vector<252x168xf32>
    %6 = vector.extract_strided_slice %1 {offsets = [1, 0], sizes = [252, 96], strides = [1, 1]} : vector<256x96xf32> to vector<252x96xf32>
    %c1 = arith.constant 1 : index
    %c0_5 = arith.constant 0 : index
    %c0_6 = arith.constant 0 : index
    %7 = vector.load %arg2[%c1, %c0_5, %c0_6] : memref<5x96x168xf32, #tpu.memory_space<vmem>>, vector<1x96x168xf32>
    %8 = vector.shape_cast %7 : vector<1x96x168xf32> to vector<96x168xf32>
    %cst_7 = arith.constant dense<0.000000e+00> : vector<252x168xf32>
    %9 = tpu.matmul %6, %8, %cst_7 {dimension_numbers = #tpu.dot_dimension_numbers<[1], [0], [0], [1], [0, 0, 1, 1], [], []>} : vector<252x96xf32>, vector<96x168xf32>, vector<252x168xf32> -> vector<252x168xf32>
    %10 = arith.addf %5, %9 : vector<252x168xf32>
    %11 = vector.extract_strided_slice %1 {offsets = [2, 0], sizes = [252, 96], strides = [1, 1]} : vector<256x96xf32> to vector<252x96xf32>
    %c2 = arith.constant 2 : index
    %c0_8 = arith.constant 0 : index
    %c0_9 = arith.constant 0 : index
    %12 = vector.load %arg2[%c2, %c0_8, %c0_9] : memref<5x96x168xf32, #tpu.memory_space<vmem>>, vector<1x96x168xf32>
    %13 = vector.shape_cast %12 : vector<1x96x168xf32> to vector<96x168xf32>
    %cst_10 = arith.constant dense<0.000000e+00> : vector<252x168xf32>
    %14 = tpu.matmul %11, %13, %cst_10 {dimension_numbers = #tpu.dot_dimension_numbers<[1], [0], [0], [1], [0, 0, 1, 1], [], []>} : vector<252x96xf32>, vector<96x168xf32>, vector<252x168xf32> -> vector<252x168xf32>
    %15 = arith.addf %10, %14 : vector<252x168xf32>
    %16 = vector.extract_strided_slice %1 {offsets = [3, 0], sizes = [252, 96], strides = [1, 1]} : vector<256x96xf32> to vector<252x96xf32>
    %c3 = arith.constant 3 : index
    %c0_11 = arith.constant 0 : index
    %c0_12 = arith.constant 0 : index
    %17 = vector.load %arg2[%c3, %c0_11, %c0_12] : memref<5x96x168xf32, #tpu.memory_space<vmem>>, vector<1x96x168xf32>
    %18 = vector.shape_cast %17 : vector<1x96x168xf32> to vector<96x168xf32>
    %cst_13 = arith.constant dense<0.000000e+00> : vector<252x168xf32>
    %19 = tpu.matmul %16, %18, %cst_13 {dimension_numbers = #tpu.dot_dimension_numbers<[1], [0], [0], [1], [0, 0, 1, 1], [], []>} : vector<252x96xf32>, vector<96x168xf32>, vector<252x168xf32> -> vector<252x168xf32>
    %20 = arith.addf %15, %19 : vector<252x168xf32>
    %21 = vector.extract_strided_slice %1 {offsets = [4, 0], sizes = [252, 96], strides = [1, 1]} : vector<256x96xf32> to vector<252x96xf32>
    %c4 = arith.constant 4 : index
    %c0_14 = arith.constant 0 : index
    %c0_15 = arith.constant 0 : index
    %22 = vector.load %arg2[%c4, %c0_14, %c0_15] : memref<5x96x168xf32, #tpu.memory_space<vmem>>, vector<1x96x168xf32>
    %23 = vector.shape_cast %22 : vector<1x96x168xf32> to vector<96x168xf32>
    %cst_16 = arith.constant dense<0.000000e+00> : vector<252x168xf32>
    %24 = tpu.matmul %21, %23, %cst_16 {dimension_numbers = #tpu.dot_dimension_numbers<[1], [0], [0], [1], [0, 0, 1, 1], [], []>} : vector<252x96xf32>, vector<96x168xf32>, vector<252x168xf32> -> vector<252x168xf32>
    %25 = arith.addf %20, %24 : vector<252x168xf32>
    %c0_17 = arith.constant 0 : index
    %c0_18 = arith.constant 0 : index
    %26 = vector.load %arg3[%c0_17, %c0_18] : memref<1x168xf32, #tpu.memory_space<vmem>>, vector<1x168xf32>
    %27 = vector.broadcast %26 : vector<1x168xf32> to vector<252x168xf32>
    %28 = arith.addf %25, %27 : vector<252x168xf32>
    %cst_19 = arith.constant 0.000000e+00 : f32
    %29 = vector.broadcast %cst_19 : f32 to vector<252x168xf32>
    %30 = arith.maximumf %28, %29 : vector<252x168xf32>
    %31 = vector.extract_strided_slice %30 {offsets = [0, 0], sizes = [252, 84], strides = [1, 1]} : vector<252x168xf32> to vector<252x84xf32>
    %32 = vector.extract_strided_slice %30 {offsets = [0, 84], sizes = [252, 84], strides = [1, 1]} : vector<252x168xf32> to vector<252x84xf32>
    %33 = arith.maximumf %31, %32 : vector<252x84xf32>
    %34 = vector.shape_cast %33 : vector<252x84xf32> to vector<126x2x84xf32>
    %cst_20 = arith.constant dense<0xFF800000> : vector<126x84xf32>
    %35 = vector.multi_reduction <maximumf>, %34, %cst_20 [1] : vector<126x2x84xf32> to vector<126x84xf32>
    %36 = vector.extract_strided_slice %35 {offsets = [0, 0], sizes = [122, 84], strides = [1, 1]} : vector<126x84xf32> to vector<122x84xf32>
    %c0_21 = arith.constant 0 : index
    %c0_22 = arith.constant 0 : index
    %c0_23 = arith.constant 0 : index
    %37 = vector.load %arg4[%c0_21, %c0_22, %c0_23] : memref<5x84x160xf32, #tpu.memory_space<vmem>>, vector<1x84x160xf32>
    %38 = vector.shape_cast %37 : vector<1x84x160xf32> to vector<84x160xf32>
    %cst_24 = arith.constant dense<0.000000e+00> : vector<122x160xf32>
    %39 = tpu.matmul %36, %38, %cst_24 {dimension_numbers = #tpu.dot_dimension_numbers<[1], [0], [0], [1], [0, 0, 1, 1], [], []>} : vector<122x84xf32>, vector<84x160xf32>, vector<122x160xf32> -> vector<122x160xf32>
    %40 = vector.extract_strided_slice %35 {offsets = [1, 0], sizes = [122, 84], strides = [1, 1]} : vector<126x84xf32> to vector<122x84xf32>
    %c1_25 = arith.constant 1 : index
    %c0_26 = arith.constant 0 : index
    %c0_27 = arith.constant 0 : index
    %41 = vector.load %arg4[%c1_25, %c0_26, %c0_27] : memref<5x84x160xf32, #tpu.memory_space<vmem>>, vector<1x84x160xf32>
    %42 = vector.shape_cast %41 : vector<1x84x160xf32> to vector<84x160xf32>
    %cst_28 = arith.constant dense<0.000000e+00> : vector<122x160xf32>
    %43 = tpu.matmul %40, %42, %cst_28 {dimension_numbers = #tpu.dot_dimension_numbers<[1], [0], [0], [1], [0, 0, 1, 1], [], []>} : vector<122x84xf32>, vector<84x160xf32>, vector<122x160xf32> -> vector<122x160xf32>
    %44 = arith.addf %39, %43 : vector<122x160xf32>
    %45 = vector.extract_strided_slice %35 {offsets = [2, 0], sizes = [122, 84], strides = [1, 1]} : vector<126x84xf32> to vector<122x84xf32>
    %c2_29 = arith.constant 2 : index
    %c0_30 = arith.constant 0 : index
    %c0_31 = arith.constant 0 : index
    %46 = vector.load %arg4[%c2_29, %c0_30, %c0_31] : memref<5x84x160xf32, #tpu.memory_space<vmem>>, vector<1x84x160xf32>
    %47 = vector.shape_cast %46 : vector<1x84x160xf32> to vector<84x160xf32>
    %cst_32 = arith.constant dense<0.000000e+00> : vector<122x160xf32>
    %48 = tpu.matmul %45, %47, %cst_32 {dimension_numbers = #tpu.dot_dimension_numbers<[1], [0], [0], [1], [0, 0, 1, 1], [], []>} : vector<122x84xf32>, vector<84x160xf32>, vector<122x160xf32> -> vector<122x160xf32>
    %49 = arith.addf %44, %48 : vector<122x160xf32>
    %50 = vector.extract_strided_slice %35 {offsets = [3, 0], sizes = [122, 84], strides = [1, 1]} : vector<126x84xf32> to vector<122x84xf32>
    %c3_33 = arith.constant 3 : index
    %c0_34 = arith.constant 0 : index
    %c0_35 = arith.constant 0 : index
    %51 = vector.load %arg4[%c3_33, %c0_34, %c0_35] : memref<5x84x160xf32, #tpu.memory_space<vmem>>, vector<1x84x160xf32>
    %52 = vector.shape_cast %51 : vector<1x84x160xf32> to vector<84x160xf32>
    %cst_36 = arith.constant dense<0.000000e+00> : vector<122x160xf32>
    %53 = tpu.matmul %50, %52, %cst_36 {dimension_numbers = #tpu.dot_dimension_numbers<[1], [0], [0], [1], [0, 0, 1, 1], [], []>} : vector<122x84xf32>, vector<84x160xf32>, vector<122x160xf32> -> vector<122x160xf32>
    %54 = arith.addf %49, %53 : vector<122x160xf32>
    %55 = vector.extract_strided_slice %35 {offsets = [4, 0], sizes = [122, 84], strides = [1, 1]} : vector<126x84xf32> to vector<122x84xf32>
    %c4_37 = arith.constant 4 : index
    %c0_38 = arith.constant 0 : index
    %c0_39 = arith.constant 0 : index
    %56 = vector.load %arg4[%c4_37, %c0_38, %c0_39] : memref<5x84x160xf32, #tpu.memory_space<vmem>>, vector<1x84x160xf32>
    %57 = vector.shape_cast %56 : vector<1x84x160xf32> to vector<84x160xf32>
    %cst_40 = arith.constant dense<0.000000e+00> : vector<122x160xf32>
    %58 = tpu.matmul %55, %57, %cst_40 {dimension_numbers = #tpu.dot_dimension_numbers<[1], [0], [0], [1], [0, 0, 1, 1], [], []>} : vector<122x84xf32>, vector<84x160xf32>, vector<122x160xf32> -> vector<122x160xf32>
    %59 = arith.addf %54, %58 : vector<122x160xf32>
    %c0_41 = arith.constant 0 : index
    %c0_42 = arith.constant 0 : index
    %60 = vector.load %arg5[%c0_41, %c0_42] : memref<1x160xf32, #tpu.memory_space<vmem>>, vector<1x160xf32>
    %61 = vector.broadcast %60 : vector<1x160xf32> to vector<122x160xf32>
    %62 = arith.addf %59, %61 : vector<122x160xf32>
    %cst_43 = arith.constant 0.000000e+00 : f32
    %63 = vector.broadcast %cst_43 : f32 to vector<122x160xf32>
    %64 = arith.maximumf %62, %63 : vector<122x160xf32>
    %65 = vector.extract_strided_slice %64 {offsets = [0, 0], sizes = [122, 80], strides = [1, 1]} : vector<122x160xf32> to vector<122x80xf32>
    %66 = vector.extract_strided_slice %64 {offsets = [0, 80], sizes = [122, 80], strides = [1, 1]} : vector<122x160xf32> to vector<122x80xf32>
    %67 = arith.maximumf %65, %66 : vector<122x80xf32>
    %68 = vector.shape_cast %67 : vector<122x80xf32> to vector<61x2x80xf32>
    %cst_44 = arith.constant dense<0xFF800000> : vector<61x80xf32>
    %69 = vector.multi_reduction <maximumf>, %68, %cst_44 [1] : vector<61x2x80xf32> to vector<61x80xf32>
    %70 = vector.extract_strided_slice %69 {offsets = [0, 0], sizes = [57, 80], strides = [1, 1]} : vector<61x80xf32> to vector<57x80xf32>
    %c0_45 = arith.constant 0 : index
    %c0_46 = arith.constant 0 : index
    %c0_47 = arith.constant 0 : index
    %71 = vector.load %arg6[%c0_45, %c0_46, %c0_47] : memref<5x80x120xf32, #tpu.memory_space<vmem>>, vector<1x80x120xf32>
    %72 = vector.shape_cast %71 : vector<1x80x120xf32> to vector<80x120xf32>
    %cst_48 = arith.constant dense<0.000000e+00> : vector<57x120xf32>
    %73 = tpu.matmul %70, %72, %cst_48 {dimension_numbers = #tpu.dot_dimension_numbers<[1], [0], [0], [1], [0, 0, 1, 1], [], []>} : vector<57x80xf32>, vector<80x120xf32>, vector<57x120xf32> -> vector<57x120xf32>
    %74 = vector.extract_strided_slice %69 {offsets = [1, 0], sizes = [57, 80], strides = [1, 1]} : vector<61x80xf32> to vector<57x80xf32>
    %c1_49 = arith.constant 1 : index
    %c0_50 = arith.constant 0 : index
    %c0_51 = arith.constant 0 : index
    %75 = vector.load %arg6[%c1_49, %c0_50, %c0_51] : memref<5x80x120xf32, #tpu.memory_space<vmem>>, vector<1x80x120xf32>
    %76 = vector.shape_cast %75 : vector<1x80x120xf32> to vector<80x120xf32>
    %cst_52 = arith.constant dense<0.000000e+00> : vector<57x120xf32>
    %77 = tpu.matmul %74, %76, %cst_52 {dimension_numbers = #tpu.dot_dimension_numbers<[1], [0], [0], [1], [0, 0, 1, 1], [], []>} : vector<57x80xf32>, vector<80x120xf32>, vector<57x120xf32> -> vector<57x120xf32>
    %78 = arith.addf %73, %77 : vector<57x120xf32>
    %79 = vector.extract_strided_slice %69 {offsets = [2, 0], sizes = [57, 80], strides = [1, 1]} : vector<61x80xf32> to vector<57x80xf32>
    %c2_53 = arith.constant 2 : index
    %c0_54 = arith.constant 0 : index
    %c0_55 = arith.constant 0 : index
    %80 = vector.load %arg6[%c2_53, %c0_54, %c0_55] : memref<5x80x120xf32, #tpu.memory_space<vmem>>, vector<1x80x120xf32>
    %81 = vector.shape_cast %80 : vector<1x80x120xf32> to vector<80x120xf32>
    %cst_56 = arith.constant dense<0.000000e+00> : vector<57x120xf32>
    %82 = tpu.matmul %79, %81, %cst_56 {dimension_numbers = #tpu.dot_dimension_numbers<[1], [0], [0], [1], [0, 0, 1, 1], [], []>} : vector<57x80xf32>, vector<80x120xf32>, vector<57x120xf32> -> vector<57x120xf32>
    %83 = arith.addf %78, %82 : vector<57x120xf32>
    %84 = vector.extract_strided_slice %69 {offsets = [3, 0], sizes = [57, 80], strides = [1, 1]} : vector<61x80xf32> to vector<57x80xf32>
    %c3_57 = arith.constant 3 : index
    %c0_58 = arith.constant 0 : index
    %c0_59 = arith.constant 0 : index
    %85 = vector.load %arg6[%c3_57, %c0_58, %c0_59] : memref<5x80x120xf32, #tpu.memory_space<vmem>>, vector<1x80x120xf32>
    %86 = vector.shape_cast %85 : vector<1x80x120xf32> to vector<80x120xf32>
    %cst_60 = arith.constant dense<0.000000e+00> : vector<57x120xf32>
    %87 = tpu.matmul %84, %86, %cst_60 {dimension_numbers = #tpu.dot_dimension_numbers<[1], [0], [0], [1], [0, 0, 1, 1], [], []>} : vector<57x80xf32>, vector<80x120xf32>, vector<57x120xf32> -> vector<57x120xf32>
    %88 = arith.addf %83, %87 : vector<57x120xf32>
    %89 = vector.extract_strided_slice %69 {offsets = [4, 0], sizes = [57, 80], strides = [1, 1]} : vector<61x80xf32> to vector<57x80xf32>
    %c4_61 = arith.constant 4 : index
    %c0_62 = arith.constant 0 : index
    %c0_63 = arith.constant 0 : index
    %90 = vector.load %arg6[%c4_61, %c0_62, %c0_63] : memref<5x80x120xf32, #tpu.memory_space<vmem>>, vector<1x80x120xf32>
    %91 = vector.shape_cast %90 : vector<1x80x120xf32> to vector<80x120xf32>
    %cst_64 = arith.constant dense<0.000000e+00> : vector<57x120xf32>
    %92 = tpu.matmul %89, %91, %cst_64 {dimension_numbers = #tpu.dot_dimension_numbers<[1], [0], [0], [1], [0, 0, 1, 1], [], []>} : vector<57x80xf32>, vector<80x120xf32>, vector<57x120xf32> -> vector<57x120xf32>
    %93 = arith.addf %88, %92 : vector<57x120xf32>
    %c0_65 = arith.constant 0 : index
    %c0_66 = arith.constant 0 : index
    %94 = vector.load %arg8[%c0_65, %c0_66] : memref<8x57xf32, #tpu.memory_space<vmem>>, vector<8x57xf32>
    %cst_67 = arith.constant dense<0.000000e+00> : vector<8x120xf32>
    %95 = tpu.matmul %94, %93, %cst_67 {dimension_numbers = #tpu.dot_dimension_numbers<[1], [0], [0], [1], [0, 0, 1, 1], [], []>} : vector<8x57xf32>, vector<57x120xf32>, vector<8x120xf32> -> vector<8x120xf32>
    %c0_68 = arith.constant 0 : index
    %c0_69 = arith.constant 0 : index
    %96 = vector.load %arg7[%c0_68, %c0_69] : memref<1x120xf32, #tpu.memory_space<vmem>>, vector<1x120xf32>
    %97 = vector.broadcast %96 : vector<1x120xf32> to vector<8x120xf32>
    %98 = arith.addf %95, %97 : vector<8x120xf32>
    %cst_70 = arith.constant 0.000000e+00 : f32
    %99 = vector.broadcast %cst_70 : f32 to vector<8x120xf32>
    %100 = arith.maximumf %98, %99 : vector<8x120xf32>
    %c0_71 = arith.constant 0 : index
    %c0_72 = arith.constant 0 : index
    %101 = vector.load %arg9[%c0_71, %c0_72] : memref<120x84xf32, #tpu.memory_space<vmem>>, vector<120x84xf32>
    %cst_73 = arith.constant dense<0.000000e+00> : vector<8x84xf32>
    %102 = tpu.matmul %100, %101, %cst_73 {dimension_numbers = #tpu.dot_dimension_numbers<[1], [0], [0], [1], [0, 0, 1, 1], [], []>} : vector<8x120xf32>, vector<120x84xf32>, vector<8x84xf32> -> vector<8x84xf32>
    %c0_74 = arith.constant 0 : index
    %c0_75 = arith.constant 0 : index
    %103 = vector.load %arg10[%c0_74, %c0_75] : memref<1x84xf32, #tpu.memory_space<vmem>>, vector<1x84xf32>
    %104 = vector.broadcast %103 : vector<1x84xf32> to vector<8x84xf32>
    %105 = arith.addf %102, %104 : vector<8x84xf32>
    %cst_76 = arith.constant 0.000000e+00 : f32
    %106 = vector.broadcast %cst_76 : f32 to vector<8x84xf32>
    %107 = arith.maximumf %105, %106 : vector<8x84xf32>
    %c0_77 = arith.constant 0 : index
    %c0_78 = arith.constant 0 : index
    %108 = vector.load %arg11[%c0_77, %c0_78] : memref<84x10xf32, #tpu.memory_space<vmem>>, vector<84x10xf32>
    %cst_79 = arith.constant dense<0.000000e+00> : vector<8x10xf32>
    %109 = tpu.matmul %107, %108, %cst_79 {dimension_numbers = #tpu.dot_dimension_numbers<[1], [0], [0], [1], [0, 0, 1, 1], [], []>} : vector<8x84xf32>, vector<84x10xf32>, vector<8x10xf32> -> vector<8x10xf32>
    %c0_80 = arith.constant 0 : index
    %c0_81 = arith.constant 0 : index
    %110 = vector.load %arg12[%c0_80, %c0_81] : memref<1x10xf32, #tpu.memory_space<vmem>>, vector<1x10xf32>
    %111 = vector.broadcast %110 : vector<1x10xf32> to vector<8x10xf32>
    %112 = arith.addf %109, %111 : vector<8x10xf32>
    %c0_82 = arith.constant 0 : index
    %c0_83 = arith.constant 0 : index
    %c0_84 = arith.constant 0 : index
    %113 = vector.load %arg13[%c0_82, %c0_83, %c0_84] : memref<1x8x84xf32, #tpu.memory_space<vmem>>, vector<1x8x84xf32>
    %114 = vector.shape_cast %113 : vector<1x8x84xf32> to vector<8x84xf32>
    %115 = vector.shape_cast %107 : vector<8x84xf32> to vector<1x8x84xf32>
    tpu.vector_store %arg13[%c0_82, %c0_83, %c0_84], %115 {strides = array<i32>} : memref<1x8x84xf32, #tpu.memory_space<vmem>>, vector<1x8x84xf32>,
    %c0_85 = arith.constant 0 : index
    %c0_86 = arith.constant 0 : index
    %c0_87 = arith.constant 0 : index
    %116 = vector.load %arg14[%c0_85, %c0_86, %c0_87] : memref<1x8x10xf32, #tpu.memory_space<vmem>>, vector<1x8x10xf32>
    %117 = vector.shape_cast %116 : vector<1x8x10xf32> to vector<8x10xf32>
    %118 = vector.shape_cast %112 : vector<8x10xf32> to vector<1x8x10xf32>
    tpu.vector_store %arg14[%c0_85, %c0_86, %c0_87], %118 {strides = array<i32>} : memref<1x8x10xf32, #tpu.memory_space<vmem>>, vector<1x8x10xf32>,
    return
  }
  func.func @transform_0(%arg0: i32) -> (i32, i32, i32) {
    %c0_i32 = arith.constant 0 : i32
    %c0_i32_0 = arith.constant 0 : i32
    %c0_i32_1 = arith.constant 0 : i32
    return %arg0, %c0_i32, %c0_i32_0 : i32, i32, i32
  }
  func.func @transform_1(%arg0: i32) -> (i32, i32, i32) {
    %c0_i32 = arith.constant 0 : i32
    %c0_i32_0 = arith.constant 0 : i32
    %c0_i32_1 = arith.constant 0 : i32
    %c0_i32_2 = arith.constant 0 : i32
    return %c0_i32, %c0_i32_0, %c0_i32_1 : i32, i32, i32
  }
  func.func @transform_2(%arg0: i32) -> (i32, i32) {
    %c0_i32 = arith.constant 0 : i32
    %c0_i32_0 = arith.constant 0 : i32
    %c0_i32_1 = arith.constant 0 : i32
    return %c0_i32, %c0_i32_0 : i32, i32
  }
  func.func @transform_3(%arg0: i32) -> (i32, i32, i32) {
    %c0_i32 = arith.constant 0 : i32
    %c0_i32_0 = arith.constant 0 : i32
    %c0_i32_1 = arith.constant 0 : i32
    %c0_i32_2 = arith.constant 0 : i32
    return %c0_i32, %c0_i32_0, %c0_i32_1 : i32, i32, i32
  }
  func.func @transform_4(%arg0: i32) -> (i32, i32) {
    %c0_i32 = arith.constant 0 : i32
    %c0_i32_0 = arith.constant 0 : i32
    %c0_i32_1 = arith.constant 0 : i32
    return %c0_i32, %c0_i32_0 : i32, i32
  }
  func.func @transform_5(%arg0: i32) -> (i32, i32, i32) {
    %c0_i32 = arith.constant 0 : i32
    %c0_i32_0 = arith.constant 0 : i32
    %c0_i32_1 = arith.constant 0 : i32
    %c0_i32_2 = arith.constant 0 : i32
    return %c0_i32, %c0_i32_0, %c0_i32_1 : i32, i32, i32
  }
  func.func @transform_6(%arg0: i32) -> (i32, i32) {
    %c0_i32 = arith.constant 0 : i32
    %c0_i32_0 = arith.constant 0 : i32
    %c0_i32_1 = arith.constant 0 : i32
    return %c0_i32, %c0_i32_0 : i32, i32
  }
  func.func @transform_7(%arg0: i32) -> (i32, i32) {
    %c0_i32 = arith.constant 0 : i32
    %c0_i32_0 = arith.constant 0 : i32
    %c0_i32_1 = arith.constant 0 : i32
    return %c0_i32, %c0_i32_0 : i32, i32
  }
  func.func @transform_8(%arg0: i32) -> (i32, i32) {
    %c0_i32 = arith.constant 0 : i32
    %c0_i32_0 = arith.constant 0 : i32
    %c0_i32_1 = arith.constant 0 : i32
    return %c0_i32, %c0_i32_0 : i32, i32
  }
  func.func @transform_9(%arg0: i32) -> (i32, i32) {
    %c0_i32 = arith.constant 0 : i32
    %c0_i32_0 = arith.constant 0 : i32
    %c0_i32_1 = arith.constant 0 : i32
    return %c0_i32, %c0_i32_0 : i32, i32
  }
  func.func @transform_10(%arg0: i32) -> (i32, i32) {
    %c0_i32 = arith.constant 0 : i32
    %c0_i32_0 = arith.constant 0 : i32
    %c0_i32_1 = arith.constant 0 : i32
    return %c0_i32, %c0_i32_0 : i32, i32
  }
  func.func @transform_11(%arg0: i32) -> (i32, i32) {
    %c0_i32 = arith.constant 0 : i32
    %c0_i32_0 = arith.constant 0 : i32
    %c0_i32_1 = arith.constant 0 : i32
    return %c0_i32, %c0_i32_0 : i32, i32
  }
  func.func @transform_12(%arg0: i32) -> (i32, i32, i32) {
    %c0_i32 = arith.constant 0 : i32
    %c0_i32_0 = arith.constant 0 : i32
    %c0_i32_1 = arith.constant 0 : i32
    return %arg0, %c0_i32, %c0_i32_0 : i32, i32, i32
  }
  func.func @transform_13(%arg0: i32) -> (i32, i32, i32) {
    %c0_i32 = arith.constant 0 : i32
    %c0_i32_0 = arith.constant 0 : i32
    %c0_i32_1 = arith.constant 0 : i32
    return %arg0, %c0_i32, %c0_i32_0 : i32, i32, i32
  }
}

</mosaic_0001>

<bundles_post_ra>
// kernel: cnn_svhn_forward.1
= control target key start
LH: loop header
LB: loop body
LE: loop exit
PB: predicated region body
PF: predicated region fallthrough
CT: control target
= control target key end

     0   :  { %vm156_vm0 = vcmask 1046528   ;;  %vm220_vm1 = vcmask 785408   ;;  %vm826_vm2 = vcmask 1045504   ;;  %vm1269_vm3 = vcmask 1044480   ;;  %s7738_s14 = smov 44   ;;  %s14440_s1 = inlined_call_operand.vmem [shape: f32[5,96,168], index: 1, kind: input, shape index: {}]   ;;  %s14441_s0 = inlined_call_operand.vmem [shape: f32[1,256,96], index: 0, kind: input, shape index: {}]   ;;  %s14442_s2 = inlined_call_operand.vmem [shape: f32[1,168], index: 2, kind: input, shape index: {}]   ;;  %s14443_s3 = inlined_call_operand.vmem [shape: f32[5,84,160], index: 3, kind: input, shape index: {}]   ;;  %s14444_s4 = inlined_call_operand.vmem [shape: f32[1,160], index: 4, kind: input, shape index: {}]   ;;  %s14445_s5 = inlined_call_operand.vmem [shape: f32[5,80,120], index: 5, kind: input, shape index: {}]   ;;  %s14446_s6 = inlined_call_operand.vmem [shape: f32[1,120], index: 6, kind: input, shape index: {}]   ;;  %s14447_s8 = inlined_call_operand.vmem [shape: f32[120,84], index: 8, kind: input, shape index: {}]   ;;  %s14448_s7 = inlined_call_operand.vmem [shape: f32[8,57], index: 7, kind: input, shape index: {}]   ;;  %s14449_s9 = inlined_call_operand.vmem [shape: f32[1,84], index: 9, kind: input, shape index: {}]   ;;  %s14450_s10 = inlined_call_operand.vmem [shape: f32[84,10], index: 10, kind: input, shape index: {}]   ;;  %s14451_s11 = inlined_call_operand.vmem [shape: f32[1,10], index: 11, kind: input, shape index: {}]   ;;  %s14452_s12 = inlined_call_operand.vmem [shape: f32[1,8,84], index: 12, kind: output, shape index: {0}]   ;;  %s14453_s13 = inlined_call_operand.vmem [shape: f32[1,8,10], index: 13, kind: output, shape index: {1}]  }
   0x1   :  { %v6940_v0 = vld [vmem:[%s14440_s1 + $0x170] sm:$0xff]  ;;  %v6938_v1 = vld [vmem:[%s14440_s1 + $0x160] sm:$0xff]  ;;  %v98_v3 = vld [vmem:[%s14440_s1 + $0xb8] sm:$0xff]  ;;  %vm1712_vm4 = vcmask 1043456   ;;  %vm2456_vm5 = vcmask 359424   ;;  %vm2773_vm6 = vcmask 680960  }
   0x2   :  { %289 = vmatpush.msra.mxu0 %v6940_v0  ;;  %7677 = vmatpush.msra.mxu1 %v6940_v0  ;;  %v6936_v2 = vld [vmem:[%s14440_s1 + $0x150] sm:$0xff]  ;;  %v6934_v4 = vld [vmem:[%s14440_s1 + $0x140] sm:$0xff]  ;;  %v96_v5 = vld [vmem:[%s14440_s1 + $0xa8] sm:$0xff]  ;;  %vm3823_vm7 = vcmask 1041409   ;;  %vm3825_vm8 = vcmask 1042434   ;;  %vm3827_vm9 = vcmask 1043459  }
   0x3   :  { %7678 = vmatpush.msra.mxu2 %v6940_v0  ;;  %692 = vmatpush.msra.mxu3 %v98_v3  ;;  %v94_v6 = vld [vmem:[%s14440_s1 + $0x98] sm:$0xff]  ;;  %v6932_v7 = vld [vmem:[%s14440_s1 + $0x130] sm:$0xff]  ;;  %v92_v8 = vld [vmem:[%s14440_s1 + $0x88] sm:$0xff]  ;;  %vm3829_vm10 = vcmask 1044484   ;;  %vm3831_vm11 = vcmask 1045509   ;;  %vm3833_vm12 = vcmask 1046534  }
   0x4   :  { %290 = vmatpush.msra.mxu0 %v6938_v1  ;;  %7679 = vmatpush.msra.mxu1 %v6938_v1  ;;  %v6930_v9 = vld [vmem:[%s14440_s1 + $0x120] sm:$0xff]  ;;  %v90_v10 = vld [vmem:[%s14440_s1 + $0x78] sm:$0xff]  ;;  %v6928_v11 = vld [vmem:[%s14440_s1 + $0x110] sm:$0xff]  ;;  %vm3835_vm13 = vcmask 1047559   ;;  %vm3936_vm14 = vcmask 687104   ;;  %vm5536_vm15 = vcmask 392192  }
   0x5   :  { %7680 = vmatpush.msra.mxu2 %v6938_v1  ;;  %693 = vmatpush.msra.mxu3 %v96_v5  ;;  %v88_v12 = vld [vmem:[%s14440_s1 + $0x68] sm:$0xff]  ;;  %v6926_v13 = vld [vmem:[%s14440_s1 + $0x100] sm:$0xff]  ;;  %v86_v14 = vld [vmem:[%s14440_s1 + $0x58] sm:$0xff] }
   0x6   :  { %291 = vmatpush.msra.mxu0 %v6936_v2  ;;  %7681 = vmatpush.msra.mxu1 %v6936_v2  ;;  %v6924_v15 = vld [vmem:[%s14440_s1 + $0xf0] sm:$0xff]  ;;  %v7861_v16 = vld [vmem:[%s14441_s0] sm:$0xff]  ;;  %v7866_v17 = vld [vmem:[%s14441_s0 + $0x8] sm:$0xff] }
   0x7   :  { %7682 = vmatpush.msra.mxu2 %v6936_v2  ;;  %694 = vmatpush.msra.mxu3 %v94_v6  ;;  %v7871_v18 = vld [vmem:[%s14441_s0 + $0xd8] sm:$0xff]  ;;  %v7876_v19 = vld [vmem:[%s14441_s0 + $0xe0] sm:$0xff]  ;;  %v84_v20 = vld [vmem:[%s14440_s1 + $0x48] sm:$0xff]  ;;  %v157_v24 = vrot.slane %v7861_v16, 1  ;;  %v158_v25 = vrot.slane %v7866_v17, 1 }
   0x8   :  { %292 = vmatpush.msra.mxu0 %v6934_v4  ;;  %7683 = vmatpush.msra.mxu1 %v6934_v4  ;;  %v6922_v21 = vld [vmem:[%s14440_s1 + $0xe0] sm:$0xff]  ;;  %v7887_v22 = vld [vmem:[%s14441_s0 + $0xf0] sm:$0xff]  ;;  %v7892_v23 = vld [vmem:[%s14441_s0 + $0xf8] sm:$0xff]  ;;  %v14454_v28 = vrot.slane %v7871_v18, 1  ;;  %v212_v29 = vrot.slane %v7876_v19, 1 }
   0x9   :  { %7684 = vmatpush.msra.mxu2 %v6934_v4  ;;  %695 = vmatpush.msra.mxu3 %v92_v8  ;;  %v82_v26 = vld [vmem:[%s14440_s1 + $0x38] sm:$0xff]  ;;  %v6920_v27 = vld [vmem:[%s14440_s1 + $0xd0] sm:$0xff]  ;;  %v216_v30 = vrot.slane %v7887_v22, 1  ;;  %v7906_v31 = vrot.slane %v7892_v23, 1  ;;  %v80_v32 = vld [vmem:[%s14440_s1 + $0x28] sm:$0xff]  ;;  %v7915_v34 = vsel %vm156_vm0, %v157_v24, %v158_v25 }
   0xa   :  { %293 = vmatpush.msra.mxu0 %v6932_v7  ;;  %7685 = vmatpush.msra.mxu1 %v6932_v7  ;;  %v6918_v33 = vld [vmem:[%s14440_s1 + $0xc0] sm:$0xff]  ;;  %v7920_v35 = vsel %vm156_vm0, %v14454_v28, %v212_v29  ;;  %v97_v36 = vld [vmem:[%s14440_s1 + $0xb0] sm:$0xff]  ;;  %v6941_v38 = vld [vmem:[%s14440_s1 + $0x178] sm:$0xff] }
   0xb   :  { %7686 = vmatpush.msra.mxu2 %v6932_v7  ;;  %696 = vmatpush.msra.mxu3 %v90_v10  ;;  %v7928_v37 = vld [vmem:[%s14441_s0 + $0x10] sm:$0xff]  ;;  %v7937_v39 = vsel %vm156_vm0, %v216_v30, %v7906_v31  ;;  %v7942_v40 = vld [vmem:[%s14441_s0 + $0xe8] sm:$0xff]  ;;  %v95_v41 = vld [vmem:[%s14440_s1 + $0xa0] sm:$0xff] }
   0xc   :  { %294 = vmatpush.msra.mxu0 %v6930_v9  ;;  %7687 = vmatpush.msra.mxu1 %v6930_v9  ;;  %v78_v42 = vld [vmem:[%s14440_s1 + $0x18] sm:$0xff]  ;;  %v6939_v43 = vld [vmem:[%s14440_s1 + $0x168] sm:$0xff]  ;;  %v160_v44 = vrot.slane %v7928_v37, 1  ;;  %v93_v45 = vld [vmem:[%s14440_s1 + $0x90] sm:$0xff]  ;;  %v214_v46 = vrot.slane %v7942_v40, 1 }
   0xd   :  { %7688 = vmatpush.msra.mxu2 %v6930_v9  ;;  %697 = vmatpush.msra.mxu3 %v88_v12  ;;  %v76_v47 = vld [vmem:[%s14440_s1 + $0x8] sm:$0xff]  ;;  %v6937_v48 = vld [vmem:[%s14440_s1 + $0x158] sm:$0xff]  ;;  %v91_v49 = vld [vmem:[%s14440_s1 + $0x80] sm:$0xff] }
   0xe   :  { %295 = vmatpush.msra.mxu0 %v6928_v11  ;;  %7689 = vmatpush.msra.mxu1 %v6928_v11  ;;  %v6935_v50 = vld [vmem:[%s14440_s1 + $0x148] sm:$0xff]  ;;  %v7977_v51 = vsel %vm156_vm0, %v158_v25, %v160_v44  ;;  %v7980_v52 = vsel %vm156_vm0, %v212_v29, %v214_v46  ;;  %v89_v53 = vld [vmem:[%s14440_s1 + $0x70] sm:$0xff]  ;;  %v7988_v54 = vld [vmem:[%s14441_s0 + $0x18] sm:$0xff]  ;;  %v8024_v0 = vsel %vm156_vm0, %v214_v46, %v216_v30 }
   0xf   :  { %7690 = vmatpush.msra.mxu2 %v6928_v11  ;;  %698 = vmatpush.msra.mxu3 %v86_v14  ;;  %v6933_v55 = vld [vmem:[%s14440_s1 + $0x138] sm:$0xff]  ;;  %v87_v56 = vld [vmem:[%s14440_s1 + $0x60] sm:$0xff]  ;;  %v6931_v57 = vld [vmem:[%s14440_s1 + $0x128] sm:$0xff]  ;;  %v162_v58 = vrot.slane %v7988_v54, 1 }
  0x10   :  { %296 = vmatpush.msra.mxu0 %v6926_v13  ;;  %7691 = vmatpush.msra.mxu1 %v6926_v13  ;;  %v85_v59 = vld [vmem:[%s14440_s1 + $0x50] sm:$0xff]  ;;  %v6929_v60 = vld [vmem:[%s14440_s1 + $0x118] sm:$0xff]  ;;  %v83_v61 = vld [vmem:[%s14440_s1 + $0x40] sm:$0xff] }
  0x11   :  { %7692 = vmatpush.msra.mxu2 %v6926_v13  ;;  %699 = vmatpush.msra.mxu3 %v84_v20  ;;  %v6927_v62 = vld [vmem:[%s14440_s1 + $0x108] sm:$0xff]  ;;  %v163_v63 = vsel %vm156_vm0, %v160_v44, %v162_v58  ;;  %v81_v1 = vld [vmem:[%s14440_s1 + $0x30] sm:$0xff]  ;;  %v6925_v2 = vld [vmem:[%s14440_s1 + $0xf8] sm:$0xff] }
  0x12   :  { %297 = vmatpush.msra.mxu0 %v6924_v15  ;;  %7693 = vmatpush.msra.mxu1 %v6924_v15  ;;  %v8037_v3 = vld [vmem:[%s14441_s0 + $0x20] sm:$0xff]  ;;  %v6923_v5 = vld [vmem:[%s14440_s1 + $0xe8] sm:$0xff]  ;;  %v77_v6 = vld [vmem:[%s14440_s1 + $0x10] sm:$0xff] }
  0x13   :  { %7694 = vmatpush.msra.mxu2 %v6924_v15  ;;  %700 = vmatpush.msra.mxu3 %v82_v26  ;;  %v79_v4 = vld [vmem:[%s14440_s1 + $0x20] sm:$0xff]  ;;  %v164_v7 = vrot.slane %v8037_v3, 1  ;;  %v6921_v8 = vld [vmem:[%s14440_s1 + $0xd8] sm:$0xff]  ;;  %v6919_v10 = vld [vmem:[%s14440_s1 + $0xc8] sm:$0xff] }
  0x14   :  { %298 = vmatpush.msra.mxu0 %v6922_v21  ;;  %7695 = vmatpush.msra.mxu1 %v6922_v21  ;;  %v75_v9 = vld [vmem:[%s14440_s1] sm:$0xff]  ;;  %v8067_v12 = vld [vmem:[%s14441_s0 + $0x28] sm:$0xff]  ;;  %v8081_v15 = vld [vmem:[%s14441_s0 + $0x30] sm:$0xff] }
  0x15   :  { %7696 = vmatpush.msra.mxu2 %v6922_v21  ;;  %701 = vmatpush.msra.mxu3 %v80_v32  ;;  %v165_v11 = vsel %vm156_vm0, %v162_v58, %v164_v7  ;;  %v166_v13 = vrot.slane %v8067_v12, 1  ;;  %v168_v20 = vrot.slane %v8081_v15, 1  ;;  %v8095_v24 = vld [vmem:[%s14441_s0 + $0x38] sm:$0xff]  ;;  %v8111_v29 = vld [vmem:[%s14441_s0 + $0x40] sm:$0xff] }
  0x16   :  { %299 = vmatpush.msra.mxu0 %v6920_v27  ;;  %7697 = vmatpush.msra.mxu1 %v6920_v27  ;;  %v7093_v25 = vld [vmem:[%s14440_s1 + $0x238] sm:$0xff]  ;;  %v170_v26 = vrot.slane %v8095_v24, 1  ;;  %v172_v30 = vrot.slane %v8111_v29, 1  ;;  %v7090_v58 = vld [vmem:[%s14440_s1 + $0x220] sm:$0xff] }
  0x17   :  { %7698 = vmatpush.msra.mxu2 %v6920_v27  ;;  %702 = vmatpush.msra.mxu3 %v78_v42  ;;  %v167_v14 = vsel %vm156_vm0, %v164_v7, %v166_v13  ;;  %v169_v21 = vsel %vm156_vm0, %v166_v13, %v168_v20  ;;  %v8153_v44 = vld [vmem:[%s14441_s0 + $0x58] sm:$0xff]  ;;  %v7088_v7 = vld [vmem:[%s14440_s1 + $0x210] sm:$0xff] }
  0x18   :  { %300 = vmatpush.msra.mxu0 %v6918_v33  ;;  %7699 = vmatpush.msra.mxu1 %v6918_v33  ;;  %v171_v27 = vsel %vm156_vm0, %v168_v20, %v170_v26  ;;  %v173_v32 = vsel %vm156_vm0, %v170_v26, %v172_v30  ;;  %v8261_v13 = vld [vmem:[%s14441_s0 + $0x90] sm:$0xff] }
  0x19   :  { %7700 = vmatpush.msra.mxu2 %v6918_v33  ;;  %6942 = vmatmul.msk.f32.vlgmr.msra.gmra.mxu0 %vm220_vm1, %v7915_v34  ;;  %v8124_v33 = vld [vmem:[%s14441_s0 + $0x48] sm:$0xff]  ;;  %v192_v20 = vrot.slane %v8261_v13, 1 }
  0x1a   :  { %6969 = vmatmul.msk.f32.vlgmr.msra.gmra.mxu1 %vm220_vm1, %v7920_v35  ;;  %6972 = vmatmul.msk.f32.vlgmr.msra.gmra.mxu2 %vm220_vm1, %v7937_v39 }
  0x1b   :  { %579 = vmatpush.msrb.mxu2 %v97_v36  ;;  %402 = vmatpush.msrb.mxu1 %v6941_v38  ;;  %v8137_v38 = vld [vmem:[%s14441_s0 + $0x50] sm:$0xff] }
  0x1c   :  { %703 = vmatpush.msra.mxu3 %v76_v47  ;;  %v176_v42 = vrot.slane %v8137_v38, 1  ;;  %v8166_v47 = vld [vmem:[%s14441_s0 + $0x60] sm:$0xff] }
  0x1d   :  { %580 = vmatpush.msrb.mxu2 %v95_v41  ;;  %403 = vmatpush.msrb.mxu1 %v6939_v43  ;;  %v7091_v41 = vld [vmem:[%s14440_s1 + $0x228] sm:$0xff] }
  0x1e   :  { %7038 = vmatmul.msk.f32.vlgmr.msra.gmra.mxu3 %vm220_vm1, %v7861_v16 }
  0x1f   :  { %581 = vmatpush.msrb.mxu2 %v93_v45  ;;  %404 = vmatpush.msrb.mxu1 %v6937_v48  ;;  %v178_v45 = vrot.slane %v8153_v44, 1  ;;  %v7092_v48 = vld [vmem:[%s14440_s1 + $0x230] sm:$0xff] }
  0x20   :  { %958 = vmatpush.msrb.mxu0 %v7092_v48 }
  0x21   :  { %582 = vmatpush.msrb.mxu2 %v91_v49  ;;  %405 = vmatpush.msrb.mxu1 %v6935_v50  ;;  %v179_v46 = vsel %vm156_vm0, %v176_v42, %v178_v45  ;;  %v7089_v49 = vld [vmem:[%s14440_s1 + $0x218] sm:$0xff]  ;;  %v180_v50 = vrot.slane %v8166_v47, 1 }
  0x22   :  { %6943 = vmatmul.msk.f32.gmra.mxu0 %vm220_vm1, %v7977_v51  ;;  %6970 = vmatmul.msk.f32.gmra.mxu1 %vm220_vm1, %v7980_v52 }
  0x23   :  { %583 = vmatpush.msrb.mxu2 %v89_v53  ;;  %406 = vmatpush.msrb.mxu1 %v6933_v55  ;;  %v8185_v53 = vld [vmem:[%s14441_s0 + $0x68] sm:$0xff] }
  0x24   :  { %6973 = vmatmul.msk.f32.gmra.mxu2 %vm220_vm1, %v7906_v31  ;;  %v182_v55 = vrot.slane %v8185_v53, 1  ;;  %959 = vmatpush.msrb.mxu0 %v7090_v58  ;;  %v8323_v58 = vld [vmem:[%s14441_s0 + $0xa8] sm:$0xff] }
  0x25   :  { %584 = vmatpush.msrb.mxu2 %v87_v56  ;;  %407 = vmatpush.msrb.mxu1 %v6931_v57  ;;  %v8198_v57 = vld [vmem:[%s14441_s0 + $0x70] sm:$0xff] }
  0x26   :  { %7039 = vmatmul.msk.f32.gmra.mxu3 %vm220_vm1, %v7866_v17  ;;  %v183_v56 = vsel %vm156_vm0, %v180_v50, %v182_v55  ;;  %960 = vmatpush.msrb.mxu0 %v7088_v7 }
  0x27   :  { %585 = vmatpush.msrb.mxu2 %v85_v59  ;;  %408 = vmatpush.msrb.mxu1 %v6929_v60  ;;  %v184_v59 = vrot.slane %v8198_v57, 1 }
  0x29   :  { %586 = vmatpush.msrb.mxu2 %v83_v61  ;;  %409 = vmatpush.msrb.mxu1 %v6927_v62  ;;  %v185_v60 = vsel %vm156_vm0, %v182_v55, %v184_v59  ;;  %v8214_v61 = vld [vmem:[%s14441_s0 + $0x78] sm:$0xff]  ;;  %v7087_v62 = vld [vmem:[%s14440_s1 + $0x208] sm:$0xff] }
  0x2a   :  { %6944 = vmatmul.msk.f32.gmra.mxu0 %vm220_vm1, %v163_v63  ;;  %6971 = vmatmul.msk.f32.gmra.mxu1 %vm220_vm1, %v8024_v0 }
  0x2b   :  { %587 = vmatpush.msrb.mxu2 %v81_v1  ;;  %410 = vmatpush.msrb.mxu1 %v6925_v2  ;;  %v8230_v2 = vld [vmem:[%s14441_s0 + $0x80] sm:$0xff] }
  0x2d   :  { %588 = vmatpush.msrb.mxu2 %v79_v4  ;;  %411 = vmatpush.msrb.mxu1 %v6923_v5  ;;  %v188_v4 = vrot.slane %v8230_v2, 1 }
  0x2e   :  { %7040 = vmatmul.msk.f32.gmra.mxu3 %vm220_vm1, %v7928_v37 }
  0x2f   :  { %589 = vmatpush.msrb.mxu2 %v77_v6  ;;  %412 = vmatpush.msrb.mxu1 %v6921_v8  ;;  %v8243_v6 = vld [vmem:[%s14441_s0 + $0x88] sm:$0xff] }
  0x30   :  { %v190_v8 = vrot.slane %v8243_v6, 1 }
  0x31   :  { %590 = vmatpush.msrb.mxu2 %v75_v9  ;;  %413 = vmatpush.msrb.mxu1 %v6919_v10 }
  0x32   :  { %7006 = vmatmul.msk.f32.vlgmr.msrb.gmra.mxu2 %vm220_vm1, %v7861_v16  ;;  %6945 = vmatmul.msk.f32.gmra.mxu0 %vm220_vm1, %v165_v11  ;;  %v193_v26 = vsel %vm156_vm0, %v190_v8, %v192_v20 }
  0x33   :  { %6974 = vmatmul.msk.f32.vlgmr.msrb.gmra.mxu1 %vm220_vm1, %v7915_v34  ;;  %v174_v34 = vrot.slane %v8124_v33, 1 }
  0x34   :  { %1071 = vmatpush.msra.mxu1 %v7093_v25 }
  0x35   :  { %v175_v36 = vsel %vm156_vm0, %v172_v30, %v174_v34  ;;  %v177_v43 = vsel %vm156_vm0, %v174_v34, %v176_v42  ;;  %v8281_v30 = vld [vmem:[%s14441_s0 + $0x98] sm:$0xff] }
  0x36   :  { %7041 = vmatmul.msk.f32.gmra.mxu3 %vm220_vm1, %v7988_v54  ;;  %1072 = vmatpush.msra.mxu1 %v7091_v41 }
  0x38   :  { %1073 = vmatpush.msra.mxu1 %v7089_v49 }
  0x3a   :  { %7007 = vmatmul.msk.f32.gmra.mxu2 %vm220_vm1, %v7866_v17  ;;  %6946 = vmatmul.msk.f32.gmra.mxu0 %vm220_vm1, %v167_v14 }
  0x3b   :  { %6975 = vmatmul.msk.f32.gmra.mxu1 %vm220_vm1, %v7977_v51  ;;  %v181_v51 = vsel %vm156_vm0, %v178_v45, %v180_v50  ;;  %v8301_v45 = vld [vmem:[%s14441_s0 + $0xa0] sm:$0xff]  ;;  %v7083_v50 = vld [vmem:[%s14440_s1 + $0x1e8] sm:$0xff] }
  0x3c   :  { %1074 = vmatpush.msra.mxu1 %v7087_v62  ;;  %v196_v49 = vrot.slane %v8301_v45, 1  ;;  %v198_v62 = vrot.slane %v8323_v58, 1 }
  0x3e   :  { %7042 = vmatmul.msk.f32.gmra.mxu3 %vm220_vm1, %v8037_v3  ;;  %v199_v7 = vsel %vm156_vm0, %v196_v49, %v198_v62 }
  0x42   :  { %7008 = vmatmul.msk.f32.gmra.mxu2 %vm220_vm1, %v7928_v37  ;;  %6947 = vmatmul.msk.f32.gmra.mxu0 %vm220_vm1, %v169_v21 }
  0x43   :  { %6976 = vmatmul.msk.f32.gmra.mxu1 %vm220_vm1, %v163_v63  ;;  %v186_v63 = vrot.slane %v8214_v61, 1 }
  0x45   :  { %v187_v1 = vsel %vm156_vm0, %v184_v59, %v186_v63  ;;  %v189_v5 = vsel %vm156_vm0, %v186_v63, %v188_v4 }
  0x46   :  { %7043 = vmatmul.msk.f32.gmra.mxu3 %vm220_vm1, %v8067_v12 }
  0x4a   :  { %7009 = vmatmul.msk.f32.gmra.mxu2 %vm220_vm1, %v7988_v54  ;;  %6948 = vmatmul.msk.f32.gmra.mxu0 %vm220_vm1, %v171_v27 }
  0x4b   :  { %6977 = vmatmul.msk.f32.gmra.mxu1 %vm220_vm1, %v165_v11  ;;  %v191_v11 = vsel %vm156_vm0, %v188_v4, %v190_v8  ;;  %v8347_v8 = vld [vmem:[%s14441_s0 + $0xb0] sm:$0xff] }
  0x4e   :  { %7044 = vmatmul.msk.f32.gmra.mxu3 %vm220_vm1, %v8081_v15 }
  0x52   :  { %7010 = vmatmul.msk.f32.gmra.mxu2 %vm220_vm1, %v8037_v3  ;;  %6949 = vmatmul.msk.f32.gmra.mxu0 %vm220_vm1, %v173_v32 }
  0x53   :  { %6978 = vmatmul.msk.f32.gmra.mxu1 %vm220_vm1, %v167_v14  ;;  %v7085_v14 = vld [vmem:[%s14440_s1 + $0x1f8] sm:$0xff] }
  0x54   :  { %1075 = vmatpush.msra.mxu1 %v7085_v14 }
  0x56   :  { %7045 = vmatmul.msk.f32.gmra.mxu3 %vm220_vm1, %v8095_v24  ;;  %1076 = vmatpush.msra.mxu1 %v7083_v50  ;;  %v7081_v50 = vld [vmem:[%s14440_s1 + $0x1d8] sm:$0xff] }
  0x58   :  { %1077 = vmatpush.msra.mxu1 %v7081_v50  ;;  %v8396_v50 = vld [vmem:[%s14441_s0 + $0xc0] sm:$0xff] }
  0x5a   :  { %7011 = vmatmul.msk.f32.gmra.mxu2 %vm220_vm1, %v8067_v12  ;;  %6950 = vmatmul.msk.f32.gmra.mxu0 %vm220_vm1, %v175_v36 }
  0x5b   :  { %6979 = vmatmul.msk.f32.gmra.mxu1 %vm220_vm1, %v169_v21 }
  0x5e   :  { %7046 = vmatmul.msk.f32.gmra.mxu3 %vm220_vm1, %v8111_v29 }
  0x62   :  { %7012 = vmatmul.msk.f32.gmra.mxu2 %vm220_vm1, %v8081_v15  ;;  %6951 = vmatmul.msk.f32.gmra.mxu0 %vm220_vm1, %v177_v43 }
  0x63   :  { %6980 = vmatmul.msk.f32.gmra.mxu1 %vm220_vm1, %v171_v27 }
  0x66   :  { %7047 = vmatmul.msk.f32.gmra.mxu3 %vm220_vm1, %v8124_v33 }
  0x6a   :  { %7013 = vmatmul.msk.f32.gmra.mxu2 %vm220_vm1, %v8095_v24  ;;  %6952 = vmatmul.msk.f32.gmra.mxu0 %vm220_vm1, %v179_v46 }
  0x6b   :  { %6981 = vmatmul.msk.f32.gmra.mxu1 %vm220_vm1, %v173_v32  ;;  %v7086_v32 = vld [vmem:[%s14440_s1 + $0x200] sm:$0xff] }
  0x6c   :  { %961 = vmatpush.msrb.mxu0 %v7086_v32 }
  0x6e   :  { %7048 = vmatmul.msk.f32.gmra.mxu3 %vm220_vm1, %v8137_v38 }
  0x72   :  { %7014 = vmatmul.msk.f32.gmra.mxu2 %vm220_vm1, %v8111_v29  ;;  %6953 = vmatmul.msk.f32.gmra.mxu0 %vm220_vm1, %v181_v51 }
  0x73   :  { %6982 = vmatmul.msk.f32.gmra.mxu1 %vm220_vm1, %v175_v36  ;;  %v194_v36 = vrot.slane %v8281_v30, 1 }
  0x76   :  { %7049 = vmatmul.msk.f32.gmra.mxu3 %vm220_vm1, %v8153_v44 }
  0x7a   :  { %7015 = vmatmul.msk.f32.gmra.mxu2 %vm220_vm1, %v8124_v33  ;;  %6954 = vmatmul.msk.f32.gmra.mxu0 %vm220_vm1, %v183_v56 }
  0x7b   :  { %6983 = vmatmul.msk.f32.gmra.mxu1 %vm220_vm1, %v177_v43  ;;  %v195_v43 = vsel %vm156_vm0, %v192_v20, %v194_v36 }
  0x7e   :  { %7050 = vmatmul.msk.f32.gmra.mxu3 %vm220_vm1, %v8166_v47 }
  0x82   :  { %7016 = vmatmul.msk.f32.gmra.mxu2 %vm220_vm1, %v8137_v38  ;;  %6955 = vmatmul.msk.f32.gmra.mxu0 %vm220_vm1, %v185_v60 }
  0x83   :  { %6984 = vmatmul.msk.f32.gmra.mxu1 %vm220_vm1, %v179_v46 }
  0x86   :  { %7051 = vmatmul.msk.f32.gmra.mxu3 %vm220_vm1, %v8185_v53 }
  0x8a   :  { %7017 = vmatmul.msk.f32.gmra.mxu2 %vm220_vm1, %v8153_v44  ;;  %6956 = vmatmul.msk.f32.gmra.mxu0 %vm220_vm1, %v187_v1 }
  0x8b   :  { %6985 = vmatmul.msk.f32.gmra.mxu1 %vm220_vm1, %v181_v51 }
  0x8e   :  { %7052 = vmatmul.msk.f32.gmra.mxu3 %vm220_vm1, %v8198_v57 }
  0x92   :  { %7018 = vmatmul.msk.f32.gmra.mxu2 %vm220_vm1, %v8166_v47  ;;  %6957 = vmatmul.msk.f32.gmra.mxu0 %vm220_vm1, %v189_v5 }
  0x93   :  { %6986 = vmatmul.msk.f32.gmra.mxu1 %vm220_vm1, %v183_v56  ;;  %v197_v56 = vsel %vm156_vm0, %v194_v36, %v196_v49 }
  0x96   :  { %v302_v9 = vpop.f32.mrf.mxu0  ;;  %7053 = vmatmul.msk.f32.gmra.mxu3 %vm220_vm1, %v8214_v61 }
  0x97   :  { %v8253_v10 = vpop.f32.mrf.mxu1 }
  0x98   :  { %14786 = vst [vmem:[#allocation2_spill] sm:$0xff] %v8253_v10 }
  0x9a   :  { %7019 = vmatmul.msk.f32.gmra.mxu2 %vm220_vm1, %v8185_v53  ;;  %6958 = vmatmul.msk.f32.gmra.mxu0 %vm220_vm1, %v191_v11 }
  0x9b   :  { %6987 = vmatmul.msk.f32.gmra.mxu1 %vm220_vm1, %v185_v60  ;;  %v7084_v60 = vld [vmem:[%s14440_s1 + $0x1f0] sm:$0xff] }
  0x9c   :  { %962 = vmatpush.msrb.mxu0 %v7084_v60 }
  0x9d   :  { %v8276_v27 = vpop.f32.mrf.mxu2 }
  0x9e   :  { %7054 = vmatmul.msk.f32.gmra.mxu3 %vm220_vm1, %v8230_v2  ;;  %14788 = vst [vmem:[#allocation4_spill] sm:$0xff] %v8276_v27 }
  0x9f   :  { %v305_v21 = vpop.f32.mrf.mxu0  ;;  %v8271_v25 = vpop.f32.mrf.mxu1 }
  0xa0   :  { %14787 = vst [vmem:[#allocation3_spill] sm:$0xff] %v8271_v25 }
  0xa1   :  { %v8290_v34 = vpop.f32.mrf.mxu3 }
  0xa2   :  { %7020 = vmatmul.msk.f32.gmra.mxu2 %vm220_vm1, %v8198_v57  ;;  %6959 = vmatmul.msk.f32.gmra.mxu0 %vm220_vm1, %v193_v26 }
  0xa3   :  { %6988 = vmatmul.msk.f32.gmra.mxu1 %vm220_vm1, %v187_v1 }
  0xa6   :  { %7055 = vmatmul.msk.f32.gmra.mxu3 %vm220_vm1, %v8243_v6 }
  0xa7   :  { %v308_v41 = vpop.f32.mrf.mxu0  ;;  %v8293_v42 = vpop.f32.mrf.mxu1 }
  0xa8   :  { %14789 = vst [vmem:[#allocation5_spill] sm:$0xff] %v8293_v42  ;;  %v8307_v46 = vpop.f32.mrf.mxu2  ;;  %v7074_v42 = vld [vmem:[%s14440_s1 + $0x1a0] sm:$0xff] }
  0xa9   :  { %14790 = vst [vmem:[#allocation6_spill] sm:$0xff] %v8307_v46  ;;  %v8309_v48 = vpop.f32.mrf.mxu3 }
  0xaa   :  { %7021 = vmatmul.msk.f32.gmra.mxu2 %vm220_vm1, %v8214_v61  ;;  %6960 = vmatmul.msk.f32.gmra.mxu0 %vm220_vm1, %v195_v43 }
  0xab   :  { %6989 = vmatmul.msk.f32.gmra.mxu1 %vm220_vm1, %v189_v5 }
  0xae   :  { %7056 = vmatmul.msk.f32.gmra.mxu3 %vm220_vm1, %v8261_v13 }
  0xaf   :  { %v311_v51 = vpop.f32.mrf.mxu0 }
  0xb0   :  { %v8315_v55 = vpop.f32.mrf.mxu1 }
  0xb1   :  { %v8329_v59 = vpop.f32.mrf.mxu3 }
  0xb2   :  { %7022 = vmatmul.msk.f32.gmra.mxu2 %vm220_vm1, %v8230_v2  ;;  %6961 = vmatmul.msk.f32.gmra.mxu0 %vm220_vm1, %v197_v56  ;;  %14791 = vst [vmem:[#allocation7_spill] sm:$0xff] %v8329_v59 }
  0xb3   :  { %6990 = vmatmul.msk.f32.gmra.mxu1 %vm220_vm1, %v191_v11  ;;  %v200_v11 = vrot.slane %v8347_v8, 1 }
  0xb5   :  { %v592_v63 = vpop.f32.mrf.mxu2  ;;  %v201_v49 = vsel %vm156_vm0, %v198_v62, %v200_v11 }
  0xb6   :  { %v8335_v1 = vadd.f32 %v592_v63, %v302_v9  ;;  %7057 = vmatmul.msk.f32.gmra.mxu3 %vm220_vm1, %v8281_v30  ;;  %v7082_v63 = vld [vmem:[%s14440_s1 + $0x1e0] sm:$0xff] }
  0xb7   :  { %v8337_v4 = vpop.f32.mrf.mxu0  ;;  %963 = vmatpush.msrb.mxu0 %v7082_v63  ;;  %v204_v63 = vrot.slane %v8396_v50, 1 }
  0xb8   :  { %v8339_v5 = vpop.f32.mrf.mxu1 }
  0xb9   :  { %v8353_v9 = vpop.f32.mrf.mxu3 }
  0xba   :  { %7023 = vmatmul.msk.f32.gmra.mxu2 %vm220_vm1, %v8243_v6  ;;  %6962 = vmatmul.msk.f32.gmra.mxu0 %vm220_vm1, %v199_v7  ;;  %14792 = vst [vmem:[#allocation8_spill] sm:$0xff] %v8353_v9 }
  0xbb   :  { %6991 = vmatmul.msk.f32.gmra.mxu1 %vm220_vm1, %v193_v26  ;;  %v8368_v26 = vld [vmem:[%s14441_s0 + $0xb8] sm:$0xff] }
  0xbc   :  { %v202_v60 = vrot.slane %v8368_v26, 1 }
  0xbd   :  { %v595_v14 = vpop.f32.mrf.mxu2 }
  0xbe   :  { %v8356_v20 = vadd.f32 %v595_v14, %v305_v21  ;;  %7058 = vmatmul.msk.f32.gmra.mxu3 %vm220_vm1, %v8301_v45  ;;  %v203_v27 = vsel %vm156_vm0, %v200_v11, %v202_v60 }
  0xbf   :  { %v8358_v32 = vpop.f32.mrf.mxu0 }
  0xc0   :  { %v8360_v36 = vpop.f32.mrf.mxu1 }
  0xc1   :  { %v8374_v21 = vpop.f32.mrf.mxu3 }
  0xc2   :  { %7024 = vmatmul.msk.f32.gmra.mxu2 %vm220_vm1, %v8261_v13  ;;  %6963 = vmatmul.msk.f32.gmra.mxu0 %vm220_vm1, %v201_v49  ;;  %14793 = vst [vmem:[#allocation9_spill] sm:$0xff] %v8374_v21 }
  0xc3   :  { %6992 = vmatmul.msk.f32.gmra.mxu1 %vm220_vm1, %v195_v43  ;;  %v7080_v43 = vld [vmem:[%s14440_s1 + $0x1d0] sm:$0xff] }
  0xc4   :  { %964 = vmatpush.msrb.mxu0 %v7080_v43 }
  0xc5   :  { %v598_v62 = vpop.f32.mrf.mxu2 }
  0xc6   :  { %v8383_v14 = vadd.f32 %v598_v62, %v308_v41  ;;  %7059 = vmatmul.msk.f32.gmra.mxu3 %vm220_vm1, %v8323_v58  ;;  %v7078_v41 = vld [vmem:[%s14440_s1 + $0x1c0] sm:$0xff]  ;;  %v7076_v62 = vld [vmem:[%s14440_s1 + $0x1b0] sm:$0xff] }
  0xc7   :  { %v320_v28 = vpop.f32.mrf.mxu0  ;;  %965 = vmatpush.msrb.mxu0 %v7078_v41 }
  0xc8   :  { %14794 = vst [vmem:[#allocation10_spill] sm:$0xff] %v8383_v14  ;;  %v8388_v46 = vpop.f32.mrf.mxu1 }
  0xc9   :  { %14795 = vst [vmem:[#allocation11_spill] sm:$0xff] %v8388_v46  ;;  %v8405_v11 = vpop.f32.mrf.mxu3  ;;  %966 = vmatpush.msrb.mxu0 %v7076_v62  ;;  %v8427_v62 = vld [vmem:[%s14441_s0 + $0xc8] sm:$0xff] }
  0xca   :  { %7025 = vmatmul.msk.f32.gmra.mxu2 %vm220_vm1, %v8281_v30  ;;  %6964 = vmatmul.msk.f32.gmra.mxu0 %vm220_vm1, %v203_v27  ;;  %14796 = vst [vmem:[#allocation12_spill] sm:$0xff] %v8405_v11  ;;  %v205_v11 = vsel %vm156_vm0, %v202_v60, %v204_v63  ;;  %v206_v60 = vrot.slane %v8427_v62, 1 }
  0xcb   :  { %6993 = vmatmul.msk.f32.gmra.mxu1 %vm220_vm1, %v197_v56  ;;  %967 = vmatpush.msrb.mxu0 %v7074_v42  ;;  %v7072_v56 = vld [vmem:[%s14440_s1 + $0x190] sm:$0xff]  ;;  %v7070_v42 = vld [vmem:[%s14440_s1 + $0x180] sm:$0xff] }
  0xcd   :  { %v601_v43 = vpop.f32.mrf.mxu2  ;;  %968 = vmatpush.msrb.mxu0 %v7072_v56 }
  0xce   :  { %v8414_v25 = vadd.f32 %v601_v43, %v311_v51  ;;  %7060 = vmatmul.msk.f32.gmra.mxu3 %vm220_vm1, %v8347_v8 }
  0xcf   :  { %v323_v41 = vpop.f32.mrf.mxu0  ;;  %969 = vmatpush.msrb.mxu0 %v7070_v42 }
  0xd0   :  { %14797 = vst [vmem:[#allocation13_spill] sm:$0xff] %v8414_v25  ;;  %v8419_v10 = vpop.f32.mrf.mxu1  ;;  %v207_v25 = vsel %vm156_vm0, %v204_v63, %v206_v60 }
  0xd1   :  { %14798 = vst [vmem:[#allocation14_spill] sm:$0xff] %v8419_v10  ;;  %v8436_v51 = vpop.f32.mrf.mxu3 }
  0xd2   :  { %7026 = vmatmul.msk.f32.gmra.mxu2 %vm220_vm1, %v8301_v45  ;;  %6965 = vmatmul.msk.f32.gmra.mxu0 %vm220_vm1, %v205_v11  ;;  %14799 = vst [vmem:[#allocation15_spill] sm:$0xff] %v8436_v51 }
  0xd3   :  { %6994 = vmatmul.msk.f32.gmra.mxu1 %vm220_vm1, %v199_v7  ;;  %v8450_v7 = vld [vmem:[%s14441_s0 + $0xd0] sm:$0xff] }
  0xd4   :  { %v208_v42 = vrot.slane %v8450_v7, 1 }
  0xd5   :  { %v604_v43 = vpop.f32.mrf.mxu2 }
  0xd6   :  { %v8440_v56 = vadd.f32 %v604_v43, %v8337_v4  ;;  %7061 = vmatmul.msk.f32.gmra.mxu3 %vm220_vm1, %v8368_v26  ;;  %v7079_v4 = vld [vmem:[%s14440_s1 + $0x1c8] sm:$0xff]  ;;  %v209_v9 = vsel %vm156_vm0, %v206_v60, %v208_v42  ;;  %v14808_v60 = vrot.slane %v7871_v18, 1 }
  0xd7   :  { %v326_v21 = vpop.f32.mrf.mxu0  ;;  %1078 = vmatpush.msra.mxu1 %v7079_v4 }
  0xd8   :  { %14800 = vst [vmem:[#allocation16_spill] sm:$0xff] %v8440_v56  ;;  %v8442_v10 = vpop.f32.mrf.mxu1 }
  0xd9   :  { %14801 = vst [vmem:[#allocation17_spill] sm:$0xff] %v8442_v10  ;;  %v8459_v63 = vpop.f32.mrf.mxu3 }
  0xda   :  { %7027 = vmatmul.msk.f32.gmra.mxu2 %vm220_vm1, %v8323_v58  ;;  %6966 = vmatmul.msk.f32.gmra.mxu0 %vm220_vm1, %v207_v25  ;;  %14802 = vst [vmem:[#allocation18_spill] sm:$0xff] %v8459_v63 }
  0xdb   :  { %6995 = vmatmul.msk.f32.gmra.mxu1 %vm220_vm1, %v201_v49 }
  0xdd   :  { %v607_v43 = vpop.f32.mrf.mxu2 }
  0xde   :  { %v8463_v51 = vadd.f32 %v607_v43, %v8358_v32  ;;  %7062 = vmatmul.msk.f32.gmra.mxu3 %vm220_vm1, %v8396_v50 }
  0xdf   :  { %v329_v10 = vpop.f32.mrf.mxu0 }
  0xe0   :  { %14803 = vst [vmem:[#allocation19_spill] sm:$0xff] %v8463_v51  ;;  %v8465_v56 = vpop.f32.mrf.mxu1 }
  0xe1   :  { %14804 = vst [vmem:[#allocation20_spill] sm:$0xff] %v8465_v56  ;;  %v8474_v49 = vpop.f32.mrf.mxu3  ;;  %v211_v56 = vsel %vm156_vm0, %v208_v42, %v14808_v60  ;;  %v7077_v42 = vld [vmem:[%s14440_s1 + $0x1b8] sm:$0xff]  ;;  %vm5690_vm0 = vcmask 648192  }
  0xe2   :  { %7028 = vmatmul.msk.f32.gmra.mxu2 %vm220_vm1, %v8347_v8  ;;  %6967 = vmatmul.msk.f32.gmra.mxu0 %vm220_vm1, %v209_v9  ;;  %14805 = vst [vmem:[#allocation21_spill] sm:$0xff] %v8474_v49 }
  0xe3   :  { %6996 = vmatmul.msk.f32.gmra.mxu1 %vm220_vm1, %v203_v27  ;;  %v827_v27 = vrot.slane %v7861_v16, 2 }
  0xe4   :  { %1079 = vmatpush.msra.mxu1 %v7077_v42 }
  0xe5   :  { %v610_v4 = vpop.f32.mrf.mxu2 }
  0xe6   :  { %v8476_v32 = vadd.f32 %v610_v4, %v320_v28  ;;  %7063 = vmatmul.msk.f32.gmra.mxu3 %vm220_vm1, %v8427_v62  ;;  %v828_v4 = vrot.slane %v7866_v17, 2 }
  0xe7   :  { %v8478_v43 = vpop.f32.mrf.mxu0 }
  0xe8   :  { %14806 = vst [vmem:[#allocation22_spill] sm:$0xff] %v8476_v32  ;;  %v8480_v63 = vpop.f32.mrf.mxu1 }
  0xe9   :  { %14807 = vst [vmem:[#allocation23_spill] sm:$0xff] %v8480_v63  ;;  %v8491_v28 = vpop.f32.mrf.mxu3 }
  0xea   :  { %7029 = vmatmul.msk.f32.gmra.mxu2 %vm220_vm1, %v8368_v26  ;;  %6968 = vmatmul.msk.f32.gmra.mxu0 %vm220_vm1, %v211_v56  ;;  %14809 = vst [vmem:[#allocation24_spill] sm:$0xff] %v8491_v28 }
  0xeb   :  { %6997 = vmatmul.msk.f32.gmra.mxu1 %vm220_vm1, %v205_v11  ;;  %v8505_v11 = vsel %vm826_vm2, %v827_v27, %v828_v4  ;;  %v7181_v27 = vld [vmem:[%s14440_s1 + $0x2f8] sm:$0xff] }
  0xec   :  { %1514 = vmatpush.msrb.mxu3 %v7181_v27  ;;  %v7177_v27 = vld [vmem:[%s14440_s1 + $0x2d8] sm:$0xff] }
  0xed   :  { %v613_v49 = vpop.f32.mrf.mxu2 }
  0xee   :  { %v8495_v63 = vadd.f32 %v613_v49, %v323_v41  ;;  %7064 = vmatmul.msk.f32.gmra.mxu3 %vm220_vm1, %v8450_v7  ;;  %v830_v49 = vrot.slane %v7928_v37, 2 }
  0xef   :  { %v8500_v60 = vpop.f32.mrf.mxu0 }
  0xf0   :  { %14810 = vst [vmem:[#allocation25_spill] sm:$0xff] %v8495_v63  ;;  %v8502_v32 = vpop.f32.mrf.mxu1 }
  0xf1   :  { %14811 = vst [vmem:[#allocation26_spill] sm:$0xff] %v8502_v32  ;;  %v8514_v41 = vpop.f32.mrf.mxu3 }
  0xf2   :  { %7030 = vmatmul.msk.f32.gmra.mxu2 %vm220_vm1, %v8396_v50  ;;  %7094 = vmatmul.msk.f32.vlgmr.msrb.gmra.mxu0 %vm220_vm1, %v8505_v11  ;;  %14812 = vst [vmem:[#allocation27_spill] sm:$0xff] %v8514_v41  ;;  %v832_v41 = vrot.slane %v7988_v54, 2 }
  0xf3   :  { %6998 = vmatmul.msk.f32.gmra.mxu1 %vm220_vm1, %v207_v25  ;;  %v8527_v25 = vsel %vm826_vm2, %v828_v4, %v830_v49 }
  0xf5   :  { %v616_v42 = vpop.f32.mrf.mxu2 }
  0xf6   :  { %v8517_v28 = vadd.f32 %v616_v42, %v326_v21  ;;  %7065 = vmatmul.msk.f32.gmra.mxu3 %vm220_vm1, %v7871_v18  ;;  %v7179_v21 = vld [vmem:[%s14440_s1 + $0x2e8] sm:$0xff]  ;;  %v7180_v42 = vld [vmem:[%s14440_s1 + $0x2f0] sm:$0xff] }
  0xf7   :  { %v8522_v32 = vpop.f32.mrf.mxu0  ;;  %1515 = vmatpush.msrb.mxu3 %v7179_v21  ;;  %1401 = vmatpush.msra.mxu2 %v7180_v42  ;;  %v8564_v42 = vsel %vm826_vm2, %v830_v49, %v832_v41  ;;  %v7171_v49 = vld [vmem:[%s14440_s1 + $0x2a8] sm:$0xff] }
  0xf8   :  { %14813 = vst [vmem:[#allocation28_spill] sm:$0xff] %v8517_v28  ;;  %v8524_v63 = vpop.f32.mrf.mxu1 }
  0xf9   :  { %14814 = vst [vmem:[#allocation29_spill] sm:$0xff] %v8524_v63  ;;  %v8542_v4 = vpop.f32.mrf.mxu3  ;;  %v7178_v63 = vld [vmem:[%s14440_s1 + $0x2e0] sm:$0xff]  ;;  %1516 = vmatpush.msrb.mxu3 %v7177_v27  ;;  %v7075_v27 = vld [vmem:[%s14440_s1 + $0x1a8] sm:$0xff] }
  0xfa   :  { %7031 = vmatmul.msk.f32.gmra.mxu2 %vm220_vm1, %v8427_v62  ;;  %7095 = vmatmul.msk.f32.gmra.mxu0 %vm220_vm1, %v8527_v25  ;;  %14815 = vst [vmem:[#allocation30_spill] sm:$0xff] %v8542_v4  ;;  %v7176_v4 = vld [vmem:[%s14440_s1 + $0x2d0] sm:$0xff] }
  0xfb   :  { %6999 = vmatmul.msk.f32.gmra.mxu1 %vm220_vm1, %v209_v9  ;;  %1402 = vmatpush.msra.mxu2 %v7178_v63  ;;  %v7175_v9 = vld [vmem:[%s14440_s1 + $0x2c8] sm:$0xff]  ;;  %v7174_v63 = vld [vmem:[%s14440_s1 + $0x2c0] sm:$0xff] }
  0xfc   :  { %1517 = vmatpush.msrb.mxu3 %v7175_v9  ;;  %v834_v9 = vrot.slane %v8037_v3, 2  ;;  %1080 = vmatpush.msra.mxu1 %v7075_v27  ;;  %v7163_v27 = vld [vmem:[%s14440_s1 + $0x268] sm:$0xff] }
  0xfd   :  { %v619_v28 = vpop.f32.mrf.mxu2  ;;  %1403 = vmatpush.msra.mxu2 %v7176_v4  ;;  %v7172_v4 = vld [vmem:[%s14440_s1 + $0x2b0] sm:$0xff] }
  0xfe   :  { %v8551_v51 = vadd.f32 %v619_v28, %v329_v10  ;;  %7066 = vmatmul.msk.f32.gmra.mxu3 %vm220_vm1, %v7876_v19  ;;  %v7173_v10 = vld [vmem:[%s14440_s1 + $0x2b8] sm:$0xff] }
  0xff   :  { %v8559_v46 = vpop.f32.mrf.mxu0  ;;  %1518 = vmatpush.msrb.mxu3 %v7173_v10  ;;  %1404 = vmatpush.msra.mxu2 %v7174_v63  ;;  %v8605_v10 = vsel %vm826_vm2, %v832_v41, %v834_v9  ;;  %v7168_v63 = vld [vmem:[%s14440_s1 + $0x290] sm:$0xff] }
 0x100   :  { %14816 = vst [vmem:[#allocation31_spill] sm:$0xff] %v8551_v51  ;;  %v8561_v21 = vpop.f32.mrf.mxu1  ;;  %v7169_v51 = vld [vmem:[%s14440_s1 + $0x298] sm:$0xff] }
 0x101   :  { %14817 = vst [vmem:[#allocation32_spill] sm:$0xff] %v8561_v21  ;;  %v8579_v28 = vpop.f32.mrf.mxu3  ;;  %1519 = vmatpush.msrb.mxu3 %v7171_v49  ;;  %1405 = vmatpush.msra.mxu2 %v7172_v4  ;;  %v836_v49 = vrot.slane %v8067_v12, 2 }
 0x102   :  { %7032 = vmatmul.msk.f32.gmra.mxu2 %vm220_vm1, %v8450_v7  ;;  %7096 = vmatmul.msk.f32.gmra.mxu0 %vm220_vm1, %v8564_v42  ;;  %14818 = vst [vmem:[#allocation33_spill] sm:$0xff] %v8579_v28  ;;  %v7170_v28 = vld [vmem:[%s14440_s1 + $0x2a0] sm:$0xff] }
 0x103   :  { %7000 = vmatmul.msk.f32.gmra.mxu1 %vm220_vm1, %v211_v56  ;;  %1406 = vmatpush.msra.mxu2 %v7170_v28  ;;  %v7166_v28 = vld [vmem:[%s14440_s1 + $0x280] sm:$0xff] }
 0x104   :  { %1520 = vmatpush.msrb.mxu3 %v7169_v51  ;;  %v7165_v51 = vld [vmem:[%s14440_s1 + $0x278] sm:$0xff] }
 0x105   :  { %v622_v56 = vpop.f32.mrf.mxu2  ;;  %1407 = vmatpush.msra.mxu2 %v7168_v63 }
 0x106   :  { %v8595_v21 = vadd.f32 %v622_v56, %v8478_v43  ;;  %7067 = vmatmul.msk.f32.gmra.mxu3 %vm220_vm1, %v7942_v40  ;;  %v7167_v43 = vld [vmem:[%s14440_s1 + $0x288] sm:$0xff]  ;;  %v7073_v56 = vld [vmem:[%s14440_s1 + $0x198] sm:$0xff] }
 0x107   :  { %v8600_v14 = vpop.f32.mrf.mxu0  ;;  %1521 = vmatpush.msrb.mxu3 %v7167_v43  ;;  %1408 = vmatpush.msra.mxu2 %v7166_v28 }
 0x108   :  { %v8602_v59 = vpop.f32.mrf.mxu1  ;;  %1081 = vmatpush.msra.mxu1 %v7073_v56 }
 0x109   :  { %14819 = vst [vmem:[#allocation34_spill] sm:$0xff] %v8602_v59  ;;  %v8621_v41 = vpop.f32.mrf.mxu3  ;;  %1522 = vmatpush.msrb.mxu3 %v7165_v51  ;;  %v7162_v51 = vld [vmem:[%s14440_s1 + $0x260] sm:$0xff] }
 0x10a   :  { %7033 = vmatmul.msk.f32.gmra.mxu2 %vm220_vm1, %v7871_v18  ;;  %7097 = vmatmul.msk.f32.gmra.mxu0 %vm220_vm1, %v8605_v10  ;;  %14820 = vst [vmem:[#allocation35_spill] sm:$0xff] %v8621_v41  ;;  %v8647_v41 = vsel %vm826_vm2, %v834_v9, %v836_v49  ;;  %v7071_v9 = vld [vmem:[%s14440_s1 + $0x188] sm:$0xff] }
 0x10b   :  { %7001 = vmatmul.msk.f32.gmra.mxu1 %vm220_vm1, %v7920_v35  ;;  %v7164_v35 = vld [vmem:[%s14440_s1 + $0x270] sm:$0xff]  ;;  %1523 = vmatpush.msrb.mxu3 %v7163_v27 }
 0x10c   :  { %1409 = vmatpush.msra.mxu2 %v7164_v35  ;;  %v838_v35 = vrot.slane %v8081_v15, 2  ;;  %1082 = vmatpush.msra.mxu1 %v7071_v9 }
 0x10d   :  { %v625_v18 = vpop.f32.mrf.mxu2 }
 0x10e   :  { %v8634_v4 = vadd.f32 %v625_v18, %v8500_v60  ;;  %7068 = vmatmul.msk.f32.gmra.mxu3 %vm220_vm1, %v7887_v22  ;;  %v7161_v60 = vld [vmem:[%s14440_s1 + $0x258] sm:$0xff]  ;;  %v7159_v18 = vld [vmem:[%s14440_s1 + $0x248] sm:$0xff]  ;;  %1410 = vmatpush.msra.mxu2 %v7162_v51  ;;  %v8684_v59 = vsel %vm826_vm2, %v836_v49, %v838_v35  ;;  %v1271_v51 = vrot.slane %v7866_v17, 3  ;;  %v840_v49 = vrot.slane %v8095_v24, 2 }
 0x10f   :  { %v8642_v43 = vpop.f32.mrf.mxu0  ;;  %1524 = vmatpush.msrb.mxu3 %v7161_v60  ;;  %v1270_v60 = vrot.slane %v7861_v16, 3 }
 0x110   :  { %v8644_v63 = vpop.f32.mrf.mxu1 }
 0x111   :  { %14821 = vst [vmem:[#allocation36_spill] sm:$0xff] %v8644_v63  ;;  %v8666_v28 = vpop.f32.mrf.mxu3  ;;  %1525 = vmatpush.msrb.mxu3 %v7159_v18  ;;  %v1272_v18 = vsel %vm1269_vm3, %v1270_v60, %v1271_v51 }
 0x112   :  { %7034 = vmatmul.msk.f32.gmra.mxu2 %vm220_vm1, %v7876_v19  ;;  %7098 = vmatmul.msk.f32.gmra.mxu0 %vm220_vm1, %v8647_v41  ;;  %14822 = vst [vmem:[#allocation37_spill] sm:$0xff] %v8666_v28  ;;  %v7160_v19 = vld [vmem:[%s14440_s1 + $0x250] sm:$0xff] }
 0x113   :  { %7002 = vmatmul.msk.f32.gmra.mxu1 %vm220_vm1, %v7980_v52  ;;  %v7158_v52 = vld [vmem:[%s14440_s1 + $0x240] sm:$0xff]  ;;  %1411 = vmatpush.msra.mxu2 %v7160_v19 }
 0x115   :  { %v628_v27 = vpop.f32.mrf.mxu2  ;;  %1412 = vmatpush.msra.mxu2 %v7158_v52 }
 0x116   :  { %v8679_v56 = vadd.f32 %v628_v27, %v8522_v32  ;;  %7069 = vmatmul.msk.f32.gmra.mxu3 %vm220_vm1, %v7892_v23  ;;  %v842_v27 = vrot.slane %v8111_v29, 2 }
 0x117   :  { %v350_v28 = vpop.f32.mrf.mxu0 }
 0x118   :  { %v8681_v63 = vpop.f32.mrf.mxu1 }
 0x119   :  { %14823 = vst [vmem:[#allocation38_spill] sm:$0xff] %v8681_v63  ;;  %v8696_v32 = vpop.f32.mrf.mxu3 }
 0x11a   :  { %7035 = vmatmul.msk.f32.gmra.mxu2 %vm220_vm1, %v7942_v40  ;;  %7099 = vmatmul.msk.f32.gmra.mxu0 %vm220_vm1, %v8684_v59  ;;  %14824 = vst [vmem:[#allocation39_spill] sm:$0xff] %v8696_v32  ;;  %v8706_v40 = vsel %vm826_vm2, %v838_v35, %v840_v49 }
 0x11b   :  { %7003 = vmatmul.msk.f32.gmra.mxu1 %vm220_vm1, %v8024_v0  ;;  %v1273_v0 = vrot.slane %v7928_v37, 3 }
 0x11d   :  { %v631_v9 = vpop.f32.mrf.mxu2  ;;  %v1274_v35 = vsel %vm1269_vm3, %v1271_v51, %v1273_v0  ;;  %v844_v51 = vrot.slane %v8124_v33, 2 }
 0x11e   :  { %v8701_v16 = vadd.f32 %v631_v9, %v8559_v46  ;;  %7214 = vmatmul.msk.f32.vlgmr.msrb.gmra.mxu3 %vm220_vm1, %v1272_v18 }
 0x11f   :  { %v353_v17 = vpop.f32.mrf.mxu0 }
 0x120   :  { %v8703_v19 = vpop.f32.mrf.mxu1 }
 0x121   :  { %14825 = vst [vmem:[#allocation40_spill] sm:$0xff] %v8703_v19  ;;  %v8716_v46 = vpop.f32.mrf.mxu3  ;;  %v14888_v19 = vld [vmem:[#allocation15_spill] sm:$0xff] }
 0x122   :  { %7036 = vmatmul.msk.f32.gmra.mxu2 %vm220_vm1, %v7887_v22  ;;  %7100 = vmatmul.msk.f32.gmra.mxu0 %vm220_vm1, %v8706_v40  ;;  %14826 = vst [vmem:[#allocation41_spill] sm:$0xff] %v8716_v46  ;;  %v8726_v22 = vsel %vm826_vm2, %v840_v49, %v842_v27 }
 0x123   :  { %7004 = vmatmul.msk.f32.gmra.mxu1 %vm220_vm1, %v7937_v39  ;;  %v1275_v39 = vrot.slane %v7988_v54, 3 }
 0x125   :  { %v634_v52 = vpop.f32.mrf.mxu2  ;;  %v1276_v49 = vsel %vm1269_vm3, %v1273_v0, %v1275_v39  ;;  %v846_v0 = vrot.slane %v8137_v38, 2 }
 0x126   :  { %v8721_v60 = vadd.f32 %v634_v52, %v8600_v14  ;;  %7215 = vmatmul.msk.f32.gmra.mxu3 %vm220_vm1, %v1274_v35 }
 0x127   :  { %v356_v37 = vpop.f32.mrf.mxu0 }
 0x128   :  { %v8723_v9 = vpop.f32.mrf.mxu1 }
 0x129   :  { %14827 = vst [vmem:[#allocation42_spill] sm:$0xff] %v8723_v9  ;;  %v8736_v14 = vpop.f32.mrf.mxu3 }
 0x12a   :  { %7037 = vmatmul.msk.f32.gmra.mxu2 %vm220_vm1, %v7892_v23  ;;  %7101 = vmatmul.msk.f32.gmra.mxu0 %vm220_vm1, %v8726_v22  ;;  %14828 = vst [vmem:[#allocation43_spill] sm:$0xff] %v8736_v14  ;;  %v8746_v23 = vsel %vm826_vm2, %v842_v27, %v844_v51 }
 0x12b   :  { %7005 = vmatmul.msk.f32.gmra.mxu1 %vm220_vm1, %v7906_v31  ;;  %v1277_v31 = vrot.slane %v8037_v3, 3  ;;  %v8764_v3 = vsel %vm826_vm2, %v844_v51, %v846_v0 }
 0x12d   :  { %v637_v52 = vpop.f32.mrf.mxu2  ;;  %v1278_v27 = vsel %vm1269_vm3, %v1275_v39, %v1277_v31 }
 0x12e   :  { %v8741_v46 = vadd.f32 %v637_v52, %v8642_v43  ;;  %7216 = vmatmul.msk.f32.gmra.mxu3 %vm220_vm1, %v1276_v49 }
 0x12f   :  { %v359_v54 = vpop.f32.mrf.mxu0 }
 0x130   :  { %14829 = vst [vmem:[#allocation44_spill] sm:$0xff] %v8741_v46  ;;  %v8743_v32 = vpop.f32.mrf.mxu1 }
 0x131   :  { %14830 = vst [vmem:[#allocation45_spill] sm:$0xff] %v8743_v32  ;;  %v8755_v43 = vpop.f32.mrf.mxu3 }
 0x132   :  { %7182 = vmatmul.msk.f32.vlgmr.msra.gmra.mxu2 %vm220_vm1, %v1272_v18  ;;  %7102 = vmatmul.msk.f32.gmra.mxu0 %vm220_vm1, %v8746_v23  ;;  %14831 = vst [vmem:[#allocation46_spill] sm:$0xff] %v8755_v43  ;;  %v1279_v18 = vrot.slane %v8067_v12, 3 }
 0x133   :  { %7126 = vmatmul.msk.f32.vlgmr.msra.gmra.mxu1 %vm220_vm1, %v8505_v11 }
 0x134   :  { %v1280_v51 = vsel %vm1269_vm3, %v1277_v31, %v1279_v18  ;;  %v7269_v31 = vld [vmem:[%s14440_s1 + $0x3b8] sm:$0xff] }
 0x135   :  { %v640_v52 = vpop.f32.mrf.mxu2  ;;  %1957 = vmatpush.msrb.mxu1 %v7269_v31 }
 0x136   :  { %v8759_v14 = vadd.f32 %v640_v52, %v350_v28  ;;  %7217 = vmatmul.msk.f32.gmra.mxu3 %vm220_vm1, %v1278_v27  ;;  %v848_v28 = vrot.slane %v8153_v44, 2 }
 0x137   :  { %v362_v32 = vpop.f32.mrf.mxu0 }
 0x138   :  { %14832 = vst [vmem:[#allocation47_spill] sm:$0xff] %v8759_v14  ;;  %v8761_v9 = vpop.f32.mrf.mxu1  ;;  %v8782_v12 = vsel %vm826_vm2, %v846_v0, %v848_v28 }
 0x139   :  { %14833 = vst [vmem:[#allocation48_spill] sm:$0xff] %v8761_v9  ;;  %v8773_v11 = vpop.f32.mrf.mxu3 }
 0x13a   :  { %7183 = vmatmul.msk.f32.gmra.mxu2 %vm220_vm1, %v1274_v35  ;;  %7103 = vmatmul.msk.f32.gmra.mxu0 %vm220_vm1, %v8764_v3  ;;  %14834 = vst [vmem:[#allocation49_spill] sm:$0xff] %v8773_v11  ;;  %v1281_v35 = vrot.slane %v8081_v15, 3  ;;  %v850_v15 = vrot.slane %v8166_v47, 2 }
 0x13b   :  { %7127 = vmatmul.msk.f32.gmra.mxu1 %vm220_vm1, %v8527_v25 }
 0x13c   :  { %v1282_v0 = vsel %vm1269_vm3, %v1279_v18, %v1281_v35  ;;  %v852_v18 = vrot.slane %v8185_v53, 2 }
 0x13d   :  { %v643_v39 = vpop.f32.mrf.mxu2 }
 0x13e   :  { %v8777_v52 = vadd.f32 %v643_v39, %v353_v17  ;;  %7218 = vmatmul.msk.f32.gmra.mxu3 %vm220_vm1, %v1280_v51  ;;  %v7268_v17 = vld [vmem:[%s14440_s1 + $0x3b0] sm:$0xff] }
 0x13f   :  { %v365_v43 = vpop.f32.mrf.mxu0  ;;  %1844 = vmatpush.msra.mxu0 %v7268_v17 }
 0x140   :  { %14835 = vst [vmem:[#allocation50_spill] sm:$0xff] %v8777_v52  ;;  %v8779_v9 = vpop.f32.mrf.mxu1  ;;  %v14891_v52 = vld [vmem:[#allocation18_spill] sm:$0xff] }
 0x141   :  { %14836 = vst [vmem:[#allocation51_spill] sm:$0xff] %v8779_v9  ;;  %v8791_v25 = vpop.f32.mrf.mxu3  ;;  %v1283_v9 = vrot.slane %v8095_v24, 3  ;;  %v8824_v24 = vsel %vm826_vm2, %v850_v15, %v852_v18 }
 0x142   :  { %7184 = vmatmul.msk.f32.gmra.mxu2 %vm220_vm1, %v1276_v49  ;;  %7104 = vmatmul.msk.f32.gmra.mxu0 %vm220_vm1, %v8782_v12  ;;  %14837 = vst [vmem:[#allocation52_spill] sm:$0xff] %v8791_v25  ;;  %v8806_v25 = vsel %vm826_vm2, %v848_v28, %v850_v15 }
 0x143   :  { %7128 = vmatmul.msk.f32.gmra.mxu1 %vm220_vm1, %v8564_v42  ;;  %v1284_v28 = vsel %vm1269_vm3, %v1281_v35, %v1283_v9 }
 0x145   :  { %v646_v49 = vpop.f32.mrf.mxu2 }
 0x146   :  { %v8801_v39 = vadd.f32 %v646_v49, %v356_v37  ;;  %7219 = vmatmul.msk.f32.gmra.mxu3 %vm220_vm1, %v1282_v0 }
 0x147   :  { %v368_v42 = vpop.f32.mrf.mxu0 }
 0x148   :  { %14838 = vst [vmem:[#allocation53_spill] sm:$0xff] %v8801_v39  ;;  %v8803_v11 = vpop.f32.mrf.mxu1 }
 0x149   :  { %14839 = vst [vmem:[#allocation54_spill] sm:$0xff] %v8803_v11  ;;  %v8815_v37 = vpop.f32.mrf.mxu3 }
 0x14a   :  { %7185 = vmatmul.msk.f32.gmra.mxu2 %vm220_vm1, %v1278_v27  ;;  %7105 = vmatmul.msk.f32.gmra.mxu0 %vm220_vm1, %v8806_v25  ;;  %14840 = vst [vmem:[#allocation55_spill] sm:$0xff] %v8815_v37  ;;  %v1285_v27 = vrot.slane %v8111_v29, 3 }
 0x14b   :  { %7129 = vmatmul.msk.f32.gmra.mxu1 %vm220_vm1, %v8605_v10 }
 0x14c   :  { %v1286_v15 = vsel %vm1269_vm3, %v1283_v9, %v1285_v27 }
 0x14d   :  { %v649_v17 = vpop.f32.mrf.mxu2 }
 0x14e   :  { %v8819_v31 = vadd.f32 %v649_v17, %v359_v54  ;;  %7220 = vmatmul.msk.f32.gmra.mxu3 %vm220_vm1, %v1284_v28  ;;  %v854_v54 = vrot.slane %v8198_v57, 2 }
 0x14f   :  { %v371_v49 = vpop.f32.mrf.mxu0 }
 0x150   :  { %14841 = vst [vmem:[#allocation56_spill] sm:$0xff] %v8819_v31  ;;  %v8821_v11 = vpop.f32.mrf.mxu1  ;;  %v8842_v29 = vsel %vm826_vm2, %v852_v18, %v854_v54 }
 0x151   :  { %14842 = vst [vmem:[#allocation57_spill] sm:$0xff] %v8821_v11  ;;  %v8833_v10 = vpop.f32.mrf.mxu3 }
 0x152   :  { %7186 = vmatmul.msk.f32.gmra.mxu2 %vm220_vm1, %v1280_v51  ;;  %7106 = vmatmul.msk.f32.gmra.mxu0 %vm220_vm1, %v8824_v24  ;;  %14843 = vst [vmem:[#allocation58_spill] sm:$0xff] %v8833_v10  ;;  %v1287_v51 = vrot.slane %v8124_v33, 3  ;;  %v856_v33 = vrot.slane %v8214_v61, 2 }
 0x153   :  { %7130 = vmatmul.msk.f32.gmra.mxu1 %vm220_vm1, %v8647_v41  ;;  %v7266_v41 = vld [vmem:[%s14440_s1 + $0x3a0] sm:$0xff] }
 0x154   :  { %1845 = vmatpush.msra.mxu0 %v7266_v41  ;;  %v1288_v18 = vsel %vm1269_vm3, %v1285_v27, %v1287_v51  ;;  %v858_v27 = vrot.slane %v8230_v2, 2 }
 0x155   :  { %v652_v35 = vpop.f32.mrf.mxu2 }
 0x156   :  { %v8837_v17 = vadd.f32 %v652_v35, %v362_v32  ;;  %7221 = vmatmul.msk.f32.gmra.mxu3 %vm220_vm1, %v1286_v15  ;;  %v7267_v32 = vld [vmem:[%s14440_s1 + $0x3a8] sm:$0xff] }
 0x157   :  { %v374_v37 = vpop.f32.mrf.mxu0  ;;  %1958 = vmatpush.msrb.mxu1 %v7267_v32 }
 0x158   :  { %14844 = vst [vmem:[#allocation59_spill] sm:$0xff] %v8837_v17  ;;  %v8839_v11 = vpop.f32.mrf.mxu1 }
 0x159   :  { %14845 = vst [vmem:[#allocation60_spill] sm:$0xff] %v8839_v11  ;;  %v8857_v9 = vpop.f32.mrf.mxu3  ;;  %v8866_v11 = vsel %vm826_vm2, %v854_v54, %v856_v33 }
 0x15a   :  { %7187 = vmatmul.msk.f32.gmra.mxu2 %vm220_vm1, %v1282_v0  ;;  %7107 = vmatmul.msk.f32.gmra.mxu0 %vm220_vm1, %v8842_v29  ;;  %14846 = vst [vmem:[#allocation61_spill] sm:$0xff] %v8857_v9 }
 0x15b   :  { %7131 = vmatmul.msk.f32.gmra.mxu1 %vm220_vm1, %v8684_v59  ;;  %v1289_v59 = vrot.slane %v8137_v38, 3  ;;  %v8884_v38 = vsel %vm826_vm2, %v856_v33, %v858_v27 }
 0x15d   :  { %v655_v0 = vpop.f32.mrf.mxu2  ;;  %v1290_v54 = vsel %vm1269_vm3, %v1287_v51, %v1289_v59 }
 0x15e   :  { %v8861_v35 = vadd.f32 %v655_v0, %v365_v43  ;;  %7222 = vmatmul.msk.f32.gmra.mxu3 %vm220_vm1, %v1288_v18 }
 0x15f   :  { %v377_v17 = vpop.f32.mrf.mxu0 }
 0x160   :  { %14847 = vst [vmem:[#allocation62_spill] sm:$0xff] %v8861_v35  ;;  %v8863_v10 = vpop.f32.mrf.mxu1 }
 0x161   :  { %14848 = vst [vmem:[#allocation63_spill] sm:$0xff] %v8863_v10  ;;  %v8875_v43 = vpop.f32.mrf.mxu3  ;;  %v9261_v10 = vld [vmem:[%s14441_s0 + $0xc8] sm:$0xff] }
 0x162   :  { %7188 = vmatmul.msk.f32.gmra.mxu2 %vm220_vm1, %v1284_v28  ;;  %7108 = vmatmul.msk.f32.gmra.mxu0 %vm220_vm1, %v8866_v11  ;;  %14849 = vst [vmem:[#allocation64_spill] sm:$0xff] %v8875_v43  ;;  %v1291_v28 = vrot.slane %v8153_v44, 3  ;;  %v7264_v44 = vld [vmem:[%s14440_s1 + $0x390] sm:$0xff] }
 0x163   :  { %7132 = vmatmul.msk.f32.gmra.mxu1 %vm220_vm1, %v8706_v40  ;;  %1846 = vmatpush.msra.mxu0 %v7264_v44 }
 0x164   :  { %v1292_v33 = vsel %vm1269_vm3, %v1289_v59, %v1291_v28 }
 0x165   :  { %v658_v41 = vpop.f32.mrf.mxu2 }
 0x166   :  { %v8879_v32 = vadd.f32 %v658_v41, %v368_v42  ;;  %7223 = vmatmul.msk.f32.gmra.mxu3 %vm220_vm1, %v1290_v54  ;;  %v860_v42 = vrot.slane %v8243_v6, 2 }
 0x167   :  { %v380_v0 = vpop.f32.mrf.mxu0 }
 0x168   :  { %14850 = vst [vmem:[#allocation65_spill] sm:$0xff] %v8879_v32  ;;  %v8881_v35 = vpop.f32.mrf.mxu1 }
 0x169   :  { %14851 = vst [vmem:[#allocation66_spill] sm:$0xff] %v8881_v35  ;;  %v8893_v40 = vpop.f32.mrf.mxu3 }
 0x16a   :  { %7189 = vmatmul.msk.f32.gmra.mxu2 %vm220_vm1, %v1286_v15  ;;  %7109 = vmatmul.msk.f32.gmra.mxu0 %vm220_vm1, %v8884_v38  ;;  %14852 = vst [vmem:[#allocation67_spill] sm:$0xff] %v8893_v40  ;;  %v7265_v15 = vld [vmem:[%s14440_s1 + $0x398] sm:$0xff]  ;;  %v8910_v40 = vsel %vm826_vm2, %v858_v27, %v860_v42 }
 0x16b   :  { %7133 = vmatmul.msk.f32.gmra.mxu1 %vm220_vm1, %v8726_v22 }
 0x16c   :  { %1959 = vmatpush.msrb.mxu1 %v7265_v15 }
 0x16d   :  { %v661_v51 = vpop.f32.mrf.mxu2 }
 0x16e   :  { %v8897_v41 = vadd.f32 %v661_v51, %v371_v49  ;;  %7224 = vmatmul.msk.f32.gmra.mxu3 %vm220_vm1, %v1292_v33  ;;  %v1293_v49 = vrot.slane %v8166_v47, 3  ;;  %v862_v51 = vrot.slane %v8261_v13, 2 }
 0x16f   :  { %v8907_v32 = vpop.f32.mrf.mxu0 }
 0x170   :  { %14853 = vst [vmem:[#allocation68_spill] sm:$0xff] %v8897_v41  ;;  %v8905_v22 = vpop.f32.mrf.mxu1  ;;  %v1294_v27 = vsel %vm1269_vm3, %v1291_v28, %v1293_v49  ;;  %v864_v28 = vrot.slane %v8281_v30, 2 }
 0x171   :  { %14854 = vst [vmem:[#allocation69_spill] sm:$0xff] %v8905_v22  ;;  %v8919_v59 = vpop.f32.mrf.mxu3  ;;  %v14885_v22 = vld [vmem:[#allocation12_spill] sm:$0xff] }
 0x172   :  { %7190 = vmatmul.msk.f32.gmra.mxu2 %vm220_vm1, %v1288_v18  ;;  %7110 = vmatmul.msk.f32.gmra.mxu0 %vm220_vm1, %v8910_v40  ;;  %14855 = vst [vmem:[#allocation70_spill] sm:$0xff] %v8919_v59  ;;  %v8930_v18 = vsel %vm826_vm2, %v860_v42, %v862_v51 }
 0x173   :  { %7134 = vmatmul.msk.f32.gmra.mxu1 %vm220_vm1, %v8746_v23  ;;  %v1295_v23 = vrot.slane %v8185_v53, 3 }
 0x175   :  { %v664_v44 = vpop.f32.mrf.mxu2  ;;  %v1296_v42 = vsel %vm1269_vm3, %v1293_v49, %v1295_v23  ;;  %v7262_v49 = vld [vmem:[%s14440_s1 + $0x380] sm:$0xff] }
 0x176   :  { %v8923_v15 = vadd.f32 %v664_v44, %v374_v37  ;;  %7225 = vmatmul.msk.f32.gmra.mxu3 %vm220_vm1, %v1294_v27  ;;  %1847 = vmatpush.msra.mxu0 %v7262_v49 }
 0x177   :  { %v8927_v47 = vpop.f32.mrf.mxu0 }
 0x178   :  { %14856 = vst [vmem:[#allocation71_spill] sm:$0xff] %v8923_v15  ;;  %v8925_v41 = vpop.f32.mrf.mxu1 }
 0x179   :  { %14857 = vst [vmem:[#allocation72_spill] sm:$0xff] %v8925_v41  ;;  %v8939_v37 = vpop.f32.mrf.mxu3 }
 0x17a   :  { %7191 = vmatmul.msk.f32.gmra.mxu2 %vm220_vm1, %v1290_v54  ;;  %7111 = vmatmul.msk.f32.gmra.mxu0 %vm220_vm1, %v8930_v18  ;;  %14858 = vst [vmem:[#allocation73_spill] sm:$0xff] %v8939_v37  ;;  %v8950_v54 = vsel %vm826_vm2, %v862_v51, %v864_v28  ;;  %v7263_v51 = vld [vmem:[%s14440_s1 + $0x388] sm:$0xff] }
 0x17b   :  { %7135 = vmatmul.msk.f32.gmra.mxu1 %vm220_vm1, %v8764_v3  ;;  %v1297_v3 = vrot.slane %v8198_v57, 3  ;;  %v866_v57 = vrot.slane %v8301_v45, 2 }
 0x17c   :  { %1960 = vmatpush.msrb.mxu1 %v7263_v51 }
 0x17d   :  { %v667_v44 = vpop.f32.mrf.mxu2  ;;  %v8976_v37 = vsel %vm826_vm2, %v864_v28, %v866_v57 }
 0x17e   :  { %v8943_v15 = vadd.f32 %v667_v44, %v377_v17  ;;  %7226 = vmatmul.msk.f32.gmra.mxu3 %vm220_vm1, %v1296_v42  ;;  %v1298_v44 = vsel %vm1269_vm3, %v1295_v23, %v1297_v3  ;;  %v868_v23 = vrot.slane %v8323_v58, 2 }
 0x17f   :  { %v8947_v53 = vpop.f32.mrf.mxu0 }
 0x180   :  { %14859 = vst [vmem:[#allocation74_spill] sm:$0xff] %v8943_v15  ;;  %v8945_v59 = vpop.f32.mrf.mxu1 }
 0x181   :  { %14860 = vst [vmem:[#allocation75_spill] sm:$0xff] %v8945_v59  ;;  %v8959_v17 = vpop.f32.mrf.mxu3  ;;  %v1299_v59 = vrot.slane %v8214_v61, 3  ;;  %v8996_v61 = vsel %vm826_vm2, %v866_v57, %v868_v23 }
 0x182   :  { %7192 = vmatmul.msk.f32.gmra.mxu2 %vm220_vm1, %v1292_v33  ;;  %7112 = vmatmul.msk.f32.gmra.mxu0 %vm220_vm1, %v8950_v54  ;;  %14861 = vst [vmem:[#allocation76_spill] sm:$0xff] %v8959_v17 }
 0x183   :  { %7136 = vmatmul.msk.f32.gmra.mxu1 %vm220_vm1, %v8782_v12  ;;  %v1300_v28 = vsel %vm1269_vm3, %v1297_v3, %v1299_v59 }
 0x185   :  { %v670_v33 = vpop.f32.mrf.mxu2 }
 0x186   :  { %v8969_v15 = vadd.f32 %v670_v33, %v380_v0  ;;  %7227 = vmatmul.msk.f32.gmra.mxu3 %vm220_vm1, %v1298_v44 }
 0x187   :  { %v8973_v17 = vpop.f32.mrf.mxu0 }
 0x188   :  { %14862 = vst [vmem:[#allocation77_spill] sm:$0xff] %v8969_v15  ;;  %v8971_v12 = vpop.f32.mrf.mxu1 }
 0x189   :  { %14863 = vst [vmem:[#allocation78_spill] sm:$0xff] %v8971_v12  ;;  %v8985_v0 = vpop.f32.mrf.mxu3 }
 0x18a   :  { %7193 = vmatmul.msk.f32.gmra.mxu2 %vm220_vm1, %v1294_v27  ;;  %7113 = vmatmul.msk.f32.gmra.mxu0 %vm220_vm1, %v8976_v37  ;;  %14864 = vst [vmem:[#allocation79_spill] sm:$0xff] %v8985_v0  ;;  %v1301_v27 = vrot.slane %v8230_v2, 3 }
 0x18b   :  { %7137 = vmatmul.msk.f32.gmra.mxu1 %vm220_vm1, %v8806_v25  ;;  %v870_v25 = vrot.slane %v8347_v8, 2 }
 0x18c   :  { %v1302_v57 = vsel %vm1269_vm3, %v1299_v59, %v1301_v27  ;;  %v7261_v59 = vld [vmem:[%s14440_s1 + $0x378] sm:$0xff] }
 0x18d   :  { %v8988_v49 = vpop.f32.mrf.mxu2  ;;  %v9016_v2 = vsel %vm826_vm2, %v868_v23, %v870_v25  ;;  %1961 = vmatpush.msrb.mxu1 %v7261_v59 }
 0x18e   :  { %14865 = vst [vmem:[#allocation80_spill] sm:$0xff] %v8988_v49  ;;  %7228 = vmatmul.msk.f32.gmra.mxu3 %vm220_vm1, %v1300_v28 }
 0x18f   :  { %v8993_v33 = vpop.f32.mrf.mxu0 }
 0x190   :  { %v8991_v51 = vpop.f32.mrf.mxu1 }
 0x191   :  { %14866 = vst [vmem:[#allocation81_spill] sm:$0xff] %v8991_v51  ;;  %v9005_v58 = vpop.f32.mrf.mxu3 }
 0x192   :  { %7194 = vmatmul.msk.f32.gmra.mxu2 %vm220_vm1, %v1296_v42  ;;  %7114 = vmatmul.msk.f32.gmra.mxu0 %vm220_vm1, %v8996_v61  ;;  %14867 = vst [vmem:[#allocation82_spill] sm:$0xff] %v9005_v58  ;;  %v1303_v42 = vrot.slane %v8243_v6, 3  ;;  %v872_v6 = vrot.slane %v8368_v26, 2 }
 0x193   :  { %7138 = vmatmul.msk.f32.gmra.mxu1 %vm220_vm1, %v8824_v24  ;;  %v7260_v24 = vld [vmem:[%s14440_s1 + $0x370] sm:$0xff] }
 0x194   :  { %1848 = vmatpush.msra.mxu0 %v7260_v24  ;;  %v1304_v23 = vsel %vm1269_vm3, %v1301_v27, %v1303_v42  ;;  %v874_v27 = vrot.slane %v8396_v50, 2 }
 0x195   :  { %v9008_v3 = vpop.f32.mrf.mxu2 }
 0x196   :  { %14868 = vst [vmem:[#allocation83_spill] sm:$0xff] %v9008_v3  ;;  %7229 = vmatmul.msk.f32.gmra.mxu3 %vm220_vm1, %v1302_v57 }
 0x197   :  { %v9013_v0 = vpop.f32.mrf.mxu0 }
 0x198   :  { %v9011_v15 = vpop.f32.mrf.mxu1 }
 0x199   :  { %14869 = vst [vmem:[#allocation84_spill] sm:$0xff] %v9011_v15  ;;  %v9025_v8 = vpop.f32.mrf.mxu3  ;;  %v1305_v15 = vrot.slane %v8261_v13, 3  ;;  %v9060_v13 = vsel %vm826_vm2, %v872_v6, %v874_v27 }
 0x19a   :  { %7195 = vmatmul.msk.f32.gmra.mxu2 %vm220_vm1, %v1298_v44  ;;  %7115 = vmatmul.msk.f32.gmra.mxu0 %vm220_vm1, %v9016_v2  ;;  %14870 = vst [vmem:[#allocation85_spill] sm:$0xff] %v9025_v8  ;;  %v9042_v8 = vsel %vm826_vm2, %v870_v25, %v872_v6 }
 0x19b   :  { %7139 = vmatmul.msk.f32.gmra.mxu1 %vm220_vm1, %v8842_v29  ;;  %v1306_v25 = vsel %vm1269_vm3, %v1303_v42, %v1305_v15 }
 0x19d   :  { %v9034_v44 = vpop.f32.mrf.mxu2 }
 0x19e   :  { %14871 = vst [vmem:[#allocation86_spill] sm:$0xff] %v9034_v44  ;;  %7230 = vmatmul.msk.f32.gmra.mxu3 %vm220_vm1, %v1304_v23 }
 0x19f   :  { %v9039_v29 = vpop.f32.mrf.mxu0 }
 0x1a0   :  { %v9037_v58 = vpop.f32.mrf.mxu1 }
 0x1a1   :  { %14872 = vst [vmem:[#allocation87_spill] sm:$0xff] %v9037_v58  ;;  %v1527_v26 = vpop.f32.mrf.mxu3 }
 0x1a2   :  { %7196 = vmatmul.msk.f32.gmra.mxu2 %vm220_vm1, %v1300_v28  ;;  %7116 = vmatmul.msk.f32.gmra.mxu0 %vm220_vm1, %v9042_v8  ;;  %v1307_v28 = vrot.slane %v8281_v30, 3  ;;  %v7259_v30 = vld [vmem:[%s14440_s1 + $0x368] sm:$0xff] }
 0x1a3   :  { %7140 = vmatmul.msk.f32.gmra.mxu1 %vm220_vm1, %v8866_v11  ;;  %v876_v11 = vrot.slane %v8427_v62, 2 }
 0x1a4   :  { %v1308_v6 = vsel %vm1269_vm3, %v1305_v15, %v1307_v28  ;;  %1962 = vmatpush.msrb.mxu1 %v7259_v30 }
 0x1a5   :  { %v9052_v24 = vpop.f32.mrf.mxu2 }
 0x1a6   :  { %14873 = vst [vmem:[#allocation88_spill] sm:$0xff] %v9052_v24  ;;  %7231 = vmatmul.msk.f32.gmra.mxu3 %vm220_vm1, %v1306_v25  ;;  %v1309_v24 = vrot.slane %v8301_v45, 3 }
 0x1a7   :  { %v9057_v58 = vpop.f32.mrf.mxu0 }
 0x1a8   :  { %v9055_v59 = vpop.f32.mrf.mxu1  ;;  %v1310_v30 = vsel %vm1269_vm3, %v1307_v28, %v1309_v24 }
 0x1a9   :  { %14874 = vst [vmem:[#allocation89_spill] sm:$0xff] %v9055_v59  ;;  %v1530_v50 = vpop.f32.mrf.mxu3  ;;  %v7258_v59 = vld [vmem:[%s14440_s1 + $0x360] sm:$0xff] }
 0x1aa   :  { %7197 = vmatmul.msk.f32.gmra.mxu2 %vm220_vm1, %v1302_v57  ;;  %7117 = vmatmul.msk.f32.gmra.mxu0 %vm220_vm1, %v9060_v13  ;;  %v706_v57 = vadd.f32 %v8290_v34, %v8315_v55  ;;  %v1180_v34 = vadd.f32 %v8907_v32, %v8335_v1  ;;  %v878_v55 = vrot.slane %v8450_v7, 2  ;;  %v9112_v7 = vld [vmem:[%s14441_s0 + $0xa8] sm:$0xff] }
 0x1ab   :  { %7141 = vmatmul.msk.f32.gmra.mxu1 %vm220_vm1, %v8884_v38  ;;  %1849 = vmatpush.msra.mxu0 %v7258_v59  ;;  %v1311_v32 = vrot.slane %v9112_v7, 3 }
 0x1ad   :  { %v9070_v42 = vpop.f32.mrf.mxu2 }
 0x1ae   :  { %14875 = vst [vmem:[#allocation90_spill] sm:$0xff] %v9070_v42  ;;  %v9084_v42 = vsel %vm826_vm2, %v874_v27, %v876_v11  ;;  %7232 = vmatmul.msk.f32.gmra.mxu3 %vm220_vm1, %v1308_v6 }
 0x1af   :  { %v9081_v38 = vpop.f32.mrf.mxu0 }
 0x1b0   :  { %v1084_v62 = vpop.f32.mrf.mxu1 }
 0x1b1   :  { %v1181_v15 = vadd.f32 %v1084_v62, %v706_v57  ;;  %v1533_v59 = vpop.f32.mrf.mxu3  ;;  %v9106_v62 = vsel %vm826_vm2, %v876_v11, %v878_v55 }
 0x1b2   :  { %7198 = vmatmul.msk.f32.gmra.mxu2 %vm220_vm1, %v1304_v23  ;;  %7118 = vmatmul.msk.f32.gmra.mxu0 %vm220_vm1, %v9084_v42  ;;  %v709_v23 = vadd.f32 %v8309_v48, %v8339_v5  ;;  %v1182_v48 = vadd.f32 %v8927_v47, %v8356_v20  ;;  %v9127_v5 = vld [vmem:[%s14441_s0 + $0xd8] sm:$0xff] }
 0x1b3   :  { %v9089_v44 = vadd.f32 %v1527_v26, %v1181_v15  ;;  %7142 = vmatmul.msk.f32.gmra.mxu1 %vm220_vm1, %v8910_v40  ;;  %v880_v28 = vrot.slane %v9127_v5, 2  ;;  %v14876_v15 = vld [vmem:[#allocation7_spill] sm:$0xff] }
 0x1b5   :  { %v1414_v27 = vpop.f32.mrf.mxu2  ;;  %v9138_v20 = vsel %vm826_vm2, %v878_v55, %v880_v28  ;;  %v7256_v55 = vld [vmem:[%s14440_s1 + $0x350] sm:$0xff] }
 0x1b6   :  { %v9099_v45 = vadd.f32 %v1414_v27, %v1180_v34  ;;  %7233 = vmatmul.msk.f32.gmra.mxu3 %vm220_vm1, %v1310_v30  ;;  %v712_v34 = vadd.f32 %v14876_v15, %v8360_v36  ;;  %1850 = vmatpush.msra.mxu0 %v7256_v55  ;;  %v9182_v55 = vld [vmem:[%s14441_s0 + $0xb8] sm:$0xff] }
 0x1b7   :  { %v9103_v26 = vpop.f32.mrf.mxu0 }
 0x1b8   :  { %v1087_v57 = vpop.f32.mrf.mxu1 }
 0x1b9   :  { %v1183_v1 = vadd.f32 %v1087_v57, %v709_v23  ;;  %v1536_v27 = vpop.f32.mrf.mxu3  ;;  %v9144_v57 = vld [vmem:[%s14441_s0 + $0xb0] sm:$0xff] }
 0x1ba   :  { %7199 = vmatmul.msk.f32.gmra.mxu2 %vm220_vm1, %v1306_v25  ;;  %7119 = vmatmul.msk.f32.gmra.mxu0 %vm220_vm1, %v9106_v62  ;;  %v1312_v25 = vsel %vm1269_vm3, %v1309_v24, %v1311_v32  ;;  %v1313_v24 = vrot.slane %v9144_v57, 3 }
 0x1bb   :  { %v9116_v40 = vadd.f32 %v1530_v50, %v1183_v1  ;;  %7143 = vmatmul.msk.f32.gmra.mxu1 %vm220_vm1, %v8930_v18  ;;  %v7257_v1 = vld [vmem:[%s14440_s1 + $0x358] sm:$0xff] }
 0x1bc   :  { %1963 = vmatpush.msrb.mxu1 %v7257_v1  ;;  %v1314_v15 = vsel %vm1269_vm3, %v1311_v32, %v1313_v24  ;;  %v1315_v32 = vrot.slane %v9182_v55, 3  ;;  %v7254_v1 = vld [vmem:[%s14440_s1 + $0x340] sm:$0xff] }
 0x1bd   :  { %v1417_v11 = vpop.f32.mrf.mxu2  ;;  %1851 = vmatpush.msra.mxu0 %v7254_v1 }
 0x1be   :  { %v9131_v50 = vadd.f32 %v1417_v11, %v1182_v48  ;;  %7234 = vmatmul.msk.f32.gmra.mxu3 %vm220_vm1, %v1312_v25  ;;  %v14877_v48 = vld [vmem:[#allocation10_spill] sm:$0xff] }
 0x1bf   :  { %v9135_v18 = vpop.f32.mrf.mxu0  ;;  %v1184_v11 = vadd.f32 %v8947_v53, %v14877_v48 }
 0x1c0   :  { %v1090_v23 = vpop.f32.mrf.mxu1 }
 0x1c1   :  { %v1185_v47 = vadd.f32 %v1090_v23, %v712_v34  ;;  %v14878_v23 = vld [vmem:[#allocation11_spill] sm:$0xff]  ;;  %v1539_v12 = vpop.f32.mrf.mxu3 }
 0x1c2   :  { %7200 = vmatmul.msk.f32.gmra.mxu2 %vm220_vm1, %v1308_v6  ;;  %7120 = vmatmul.msk.f32.gmra.mxu0 %vm220_vm1, %v9138_v20  ;;  %v9165_v6 = vld [vmem:[%s14441_s0 + $0xe0] sm:$0xff] }
 0x1c3   :  { %v9148_v36 = vadd.f32 %v1533_v59, %v1185_v47  ;;  %7144 = vmatmul.msk.f32.gmra.mxu1 %vm220_vm1, %v8950_v54  ;;  %v882_v59 = vrot.slane %v9165_v6, 2  ;;  %v14879_v47 = vld [vmem:[#allocation8_spill] sm:$0xff] }
 0x1c4   :  { %v715_v3 = vadd.f32 %v14879_v47, %v14878_v23  ;;  %v1316_v23 = vsel %vm1269_vm3, %v1313_v24, %v1315_v32 }
 0x1c5   :  { %v1420_v54 = vpop.f32.mrf.mxu2  ;;  %v9176_v48 = vsel %vm826_vm2, %v880_v28, %v882_v59 }
 0x1c6   :  { %v9169_v34 = vadd.f32 %v1420_v54, %v1184_v11  ;;  %7235 = vmatmul.msk.f32.gmra.mxu3 %vm220_vm1, %v1314_v15  ;;  %v14880_v11 = vld [vmem:[#allocation13_spill] sm:$0xff] }
 0x1c7   :  { %v9173_v51 = vpop.f32.mrf.mxu0  ;;  %v1186_v54 = vadd.f32 %v8973_v17, %v14880_v11  ;;  %v14882_v17 = vld [vmem:[#allocation9_spill] sm:$0xff]  ;;  %v7248_v11 = vld [vmem:[%s14440_s1 + $0x310] sm:$0xff] }
 0x1c8   :  { %v1093_v53 = vpop.f32.mrf.mxu1 }
 0x1c9   :  { %v1187_v49 = vadd.f32 %v1093_v53, %v715_v3  ;;  %v7252_v3 = vld [vmem:[%s14440_s1 + $0x330] sm:$0xff]  ;;  %v14881_v53 = vld [vmem:[#allocation14_spill] sm:$0xff] }
 0x1ca   :  { %7201 = vmatmul.msk.f32.gmra.mxu2 %vm220_vm1, %v1310_v30  ;;  %7121 = vmatmul.msk.f32.gmra.mxu0 %vm220_vm1, %v9176_v48  ;;  %v9203_v30 = vld [vmem:[%s14441_s0 + $0xe8] sm:$0xff]  ;;  %v718_v1 = vadd.f32 %v14882_v17, %v14881_v53  ;;  %v1542_v53 = vpop.f32.mrf.mxu3  ;;  %v14883_v17 = vld [vmem:[#allocation16_spill] sm:$0xff] }
 0x1cb   :  { %v9189_v28 = vadd.f32 %v1536_v27, %v1187_v49  ;;  %7145 = vmatmul.msk.f32.gmra.mxu1 %vm220_vm1, %v8976_v37  ;;  %v884_v49 = vrot.slane %v9203_v30, 2  ;;  %1852 = vmatpush.msra.mxu0 %v7252_v3  ;;  %v7250_v37 = vld [vmem:[%s14440_s1 + $0x320] sm:$0xff] }
 0x1cd   :  { %v1423_v27 = vpop.f32.mrf.mxu2  ;;  %1853 = vmatpush.msra.mxu0 %v7250_v37  ;;  %v9220_v43 = vsel %vm826_vm2, %v882_v59, %v884_v49  ;;  %v7246_v37 = vld [vmem:[%s14440_s1 + $0x300] sm:$0xff] }
 0x1ce   :  { %v9210_v47 = vadd.f32 %v1423_v27, %v1186_v54  ;;  %7236 = vmatmul.msk.f32.gmra.mxu3 %vm220_vm1, %v1316_v23  ;;  %v9226_v54 = vld [vmem:[%s14441_s0 + $0xc0] sm:$0xff] }
 0x1cf   :  { %v9217_v41 = vpop.f32.mrf.mxu0  ;;  %1854 = vmatpush.msra.mxu0 %v7248_v11  ;;  %v1317_v27 = vrot.slane %v9226_v54, 3  ;;  %v9244_v11 = vld [vmem:[%s14441_s0 + $0xf0] sm:$0xff] }
 0x1d0   :  { %v1096_v3 = vpop.f32.mrf.mxu1 }
 0x1d1   :  { %v1189_v24 = vadd.f32 %v1096_v3, %v718_v1  ;;  %1855 = vmatpush.msra.mxu0 %v7246_v37  ;;  %v1188_v1 = vadd.f32 %v8993_v33, %v14883_v17  ;;  %v14884_v37 = vld [vmem:[#allocation17_spill] sm:$0xff] }
 0x1d2   :  { %7202 = vmatmul.msk.f32.gmra.mxu2 %vm220_vm1, %v1312_v25  ;;  %7122 = vmatmul.msk.f32.gmra.mxu0 %vm220_vm1, %v9220_v43  ;;  %v886_v25 = vrot.slane %v9244_v11, 2  ;;  %v721_v9 = vadd.f32 %v14885_v22, %v14884_v37 }
 0x1d3   :  { %v9233_v59 = vadd.f32 %v1539_v12, %v1189_v24  ;;  %7146 = vmatmul.msk.f32.gmra.mxu1 %vm220_vm1, %v8996_v61  ;;  %v1318_v12 = vsel %vm1269_vm3, %v1315_v32, %v1317_v27  ;;  %v1319_v32 = vrot.slane %v9261_v10, 3 }
 0x1d4   :  { %v9255_v33 = vsel %vm826_vm2, %v884_v49, %v886_v25  ;;  %v9279_v49 = vld [vmem:[%s14441_s0 + $0xf8] sm:$0xff] }
 0x1d5   :  { %v1426_v3 = vpop.f32.mrf.mxu2 }
 0x1d6   :  { %v9248_v24 = vadd.f32 %v1426_v3, %v1188_v1  ;;  %7237 = vmatmul.msk.f32.gmra.mxu3 %vm220_vm1, %v1318_v12  ;;  %v1545_v3 = vpop.f32.mrf.mxu3 }
 0x1d7   :  { %v9252_v61 = vpop.f32.mrf.mxu0 }
 0x1d8   :  { %v1099_v35 = vpop.f32.mrf.mxu1 }
 0x1d9   :  { %v1191_v17 = vadd.f32 %v1099_v35, %v721_v9  ;;  %v7255_v9 = vld [vmem:[%s14440_s1 + $0x348] sm:$0xff] }
 0x1da   :  { %7203 = vmatmul.msk.f32.gmra.mxu2 %vm220_vm1, %v1314_v15  ;;  %7123 = vmatmul.msk.f32.gmra.mxu0 %vm220_vm1, %v9255_v33  ;;  %v14886_v35 = vld [vmem:[#allocation19_spill] sm:$0xff]  ;;  %v9282_v15 = vrot.slane %v9279_v49, 2 }
 0x1db   :  { %v9265_v1 = vadd.f32 %v1542_v53, %v1191_v17  ;;  %7147 = vmatmul.msk.f32.gmra.mxu1 %vm220_vm1, %v9016_v2  ;;  %v1190_v22 = vadd.f32 %v9013_v0, %v14886_v35  ;;  %v1320_v2 = vsel %vm1269_vm3, %v1317_v27, %v1319_v32  ;;  %v14887_v17 = vld [vmem:[#allocation20_spill] sm:$0xff] }
 0x1dc   :  { %1964 = vmatpush.msrb.mxu1 %v7255_v9  ;;  %v724_v31 = vadd.f32 %v14888_v19, %v14887_v17  ;;  %v9293_v35 = vsel %vm826_vm2, %v886_v25, %v9282_v15  ;;  %v9299_v9 = vld [vmem:[%s14441_s0 + $0xd0] sm:$0xff]  ;;  %v14889_v25 = vld [vmem:[#allocation22_spill] sm:$0xff]  ;;  %vm6797_vm2 = vcmask 1040384  }
 0x1dd   :  { %v1429_v53 = vpop.f32.mrf.mxu2  ;;  %v1321_v27 = vrot.slane %v9299_v9, 3 }
 0x1de   :  { %v9285_v37 = vadd.f32 %v1429_v53, %v1190_v22  ;;  %7238 = vmatmul.msk.f32.gmra.mxu3 %vm220_vm1, %v1320_v2 }
 0x1df   :  { %v9289_v63 = vpop.f32.mrf.mxu0  ;;  %v1322_v53 = vsel %vm1269_vm3, %v1319_v32, %v1321_v27 }
 0x1e0   :  { %v1102_v0 = vpop.f32.mrf.mxu1 }
 0x1e1   :  { %v1193_v39 = vadd.f32 %v1102_v0, %v724_v31  ;;  %v1192_v31 = vadd.f32 %v9039_v29, %v14889_v25  ;;  %v14890_v0 = vld [vmem:[#allocation23_spill] sm:$0xff]  ;;  %v7717_v25 = vld [vmem:[%s14441_s0] sm:$0xff] }
 0x1e2   :  { %7204 = vmatmul.msk.f32.gmra.mxu2 %vm220_vm1, %v1316_v23  ;;  %7124 = vmatmul.msk.f32.gmra.mxu0 %vm220_vm1, %v9293_v35  ;;  %v727_v14 = vadd.f32 %v14891_v52, %v14890_v0  ;;  %v1548_v23 = vpop.f32.mrf.mxu3  ;;  %v14893_v52 = vld [vmem:[#allocation25_spill] sm:$0xff] }
 0x1e3   :  { %v9303_v19 = vadd.f32 %v1545_v3, %v1193_v39  ;;  %7148 = vmatmul.msk.f32.gmra.mxu1 %vm220_vm1, %v9042_v8  ;;  %v1323_v8 = vrot.slane %v9127_v5, 3  ;;  %v1194_v32 = vadd.f32 %v9057_v58, %v14893_v52  ;;  %v7253_v58 = vld [vmem:[%s14440_s1 + $0x338] sm:$0xff]  ;;  %v1325_v52 = vrot.slane %v9165_v6, 3 }
 0x1e4   :  { %1965 = vmatpush.msrb.mxu1 %v7253_v58 }
 0x1e5   :  { %v1432_v22 = vpop.f32.mrf.mxu2 }
 0x1e6   :  { %v9312_v17 = vadd.f32 %v1432_v22, %v1192_v31  ;;  %7239 = vmatmul.msk.f32.gmra.mxu3 %vm220_vm1, %v1322_v53  ;;  %v1324_v22 = vsel %vm1269_vm3, %v1321_v27, %v1323_v8  ;;  %v7719_v27 = vld [vmem:[%s14441_s0 + $0x10] sm:$0xff] }
 0x1e7   :  { %v9316_v39 = vpop.f32.mrf.mxu0 }
 0x1e8   :  { %v1105_v3 = vpop.f32.mrf.mxu1 }
 0x1e9   :  { %v1195_v46 = vadd.f32 %v1105_v3, %v727_v14  ;;  %v1713_v14 = vrot.slane %v7717_v25, 4  ;;  %v1326_v25 = vsel %vm1269_vm3, %v1323_v8, %v1325_v52 }
 0x1ea   :  { %7205 = vmatmul.msk.f32.gmra.mxu2 %vm220_vm1, %v1318_v12  ;;  %7125 = vmatmul.msk.f32.gmra.mxu0 %vm220_vm1, %v9282_v15  ;;  %v7718_v12 = vld [vmem:[%s14441_s0 + $0x8] sm:$0xff] }
 0x1eb   :  { %v9321_v29 = vadd.f32 %v1548_v23, %v1195_v46  ;;  %7149 = vmatmul.msk.f32.gmra.mxu1 %vm220_vm1, %v9060_v13  ;;  %v1714_v46 = vrot.slane %v7718_v12, 4 }
 0x1ed   :  { %14892 = vst [vmem:[#allocation7_spill] sm:$0xff] %v9321_v29  ;;  %v1435_v31 = vpop.f32.mrf.mxu2  ;;  %v9346_v3 = vsel %vm1712_vm4, %v1713_v14, %v1714_v46 }
 0x1ee   :  { %v9336_v0 = vadd.f32 %v1435_v31, %v1194_v32  ;;  %7240 = vmatmul.msk.f32.gmra.mxu3 %vm220_vm1, %v1324_v22  ;;  %v1716_v32 = vrot.slane %v7719_v27, 4 }
 0x1ef   :  { %v9341_v13 = vpop.f32.mrf.mxu0 }
 0x1f0   :  { %14894 = vst [vmem:[#allocation10_spill] sm:$0xff] %v9341_v13  ;;  %v9343_v23 = vpop.f32.mrf.mxu1  ;;  %v9364_v31 = vsel %vm1712_vm4, %v1714_v46, %v1716_v32 }
 0x1f1   :  { %14895 = vst [vmem:[#allocation11_spill] sm:$0xff] %v9343_v23 }
 0x1f2   :  { %7206 = vmatmul.msk.f32.gmra.mxu2 %vm220_vm1, %v1320_v2  ;;  %7270 = vmatmul.msk.f32.vlgmr.msra.gmra.mxu0 %vm220_vm1, %v9346_v3  ;;  %v7720_v2 = vld [vmem:[%s14441_s0 + $0x18] sm:$0xff] }
 0x1f3   :  { %7150 = vmatmul.msk.f32.gmra.mxu1 %vm220_vm1, %v9084_v42  ;;  %v1327_v42 = vrot.slane %v9203_v30, 3  ;;  %v1718_v8 = vrot.slane %v7720_v2, 4 }
 0x1f5   :  { %v1328_v46 = vsel %vm1269_vm3, %v1325_v52, %v1327_v42  ;;  %v7721_v52 = vld [vmem:[%s14441_s0 + $0x20] sm:$0xff] }
 0x1f6   :  { %7241 = vmatmul.msk.f32.gmra.mxu3 %vm220_vm1, %v1326_v25 }
 0x1f7   :  { %v9359_v14 = vpop.f32.mrf.mxu0 }
 0x1f8   :  { %14896 = vst [vmem:[#allocation8_spill] sm:$0xff] %v9359_v14  ;;  %v9361_v12 = vpop.f32.mrf.mxu1  ;;  %v9382_v14 = vsel %vm1712_vm4, %v1716_v32, %v1718_v8  ;;  %v1720_v32 = vrot.slane %v7721_v52, 4  ;;  %v7249_v52 = vld [vmem:[%s14440_s1 + $0x318] sm:$0xff] }
 0x1f9   :  { %14897 = vst [vmem:[#allocation13_spill] sm:$0xff] %v9361_v12 }
 0x1fa   :  { %7207 = vmatmul.msk.f32.gmra.mxu2 %vm220_vm1, %v1322_v53  ;;  %7271 = vmatmul.msk.f32.gmra.mxu0 %vm220_vm1, %v9364_v31  ;;  %v7251_v53 = vld [vmem:[%s14440_s1 + $0x328] sm:$0xff] }
 0x1fb   :  { %7151 = vmatmul.msk.f32.gmra.mxu1 %vm220_vm1, %v9106_v62  ;;  %v1329_v62 = vrot.slane %v9244_v11, 3 }
 0x1fc   :  { %1966 = vmatpush.msrb.mxu1 %v7251_v53 }
 0x1fd   :  { %v1330_v2 = vsel %vm1269_vm3, %v1327_v42, %v1329_v62  ;;  %v7722_v42 = vld [vmem:[%s14441_s0 + $0x28] sm:$0xff] }
 0x1fe   :  { %7242 = vmatmul.msk.f32.gmra.mxu3 %vm220_vm1, %v1328_v46  ;;  %v1722_v53 = vrot.slane %v7722_v42, 4  ;;  %1967 = vmatpush.msrb.mxu1 %v7249_v52  ;;  %v7247_v42 = vld [vmem:[%s14440_s1 + $0x308] sm:$0xff] }
 0x1ff   :  { %v9377_v58 = vpop.f32.mrf.mxu0 }
 0x200   :  { %14898 = vst [vmem:[#allocation14_spill] sm:$0xff] %v9377_v58  ;;  %v9379_v27 = vpop.f32.mrf.mxu1  ;;  %1968 = vmatpush.msrb.mxu1 %v7247_v42 }
 0x201   :  { %14899 = vst [vmem:[#allocation9_spill] sm:$0xff] %v9379_v27  ;;  %v1331_v27 = vrot.slane %v9279_v49, 3 }
 0x202   :  { %7208 = vmatmul.msk.f32.gmra.mxu2 %vm220_vm1, %v1324_v22  ;;  %7272 = vmatmul.msk.f32.gmra.mxu0 %vm220_vm1, %v9382_v14 }
 0x203   :  { %7152 = vmatmul.msk.f32.gmra.mxu1 %vm220_vm1, %v9138_v20  ;;  %v9403_v20 = vsel %vm1712_vm4, %v1718_v8, %v1720_v32  ;;  %v1332_v8 = vsel %vm1269_vm3, %v1329_v62, %v1331_v27  ;;  %v7723_v62 = vld [vmem:[%s14441_s0 + $0x30] sm:$0xff]  ;;  %vm6793_vm3 = vcmask 465920  }
 0x206   :  { %7243 = vmatmul.msk.f32.gmra.mxu3 %vm220_vm1, %v1330_v2 }
 0x207   :  { %v9398_v58 = vpop.f32.mrf.mxu0 }
 0x208   :  { %14900 = vst [vmem:[#allocation16_spill] sm:$0xff] %v9398_v58  ;;  %v9400_v22 = vpop.f32.mrf.mxu1 }
 0x209   :  { %14901 = vst [vmem:[#allocation17_spill] sm:$0xff] %v9400_v22 }
 0x20a   :  { %7209 = vmatmul.msk.f32.gmra.mxu2 %vm220_vm1, %v1326_v25  ;;  %7273 = vmatmul.msk.f32.gmra.mxu0 %vm220_vm1, %v9403_v20 }
 0x20b   :  { %7153 = vmatmul.msk.f32.gmra.mxu1 %vm220_vm1, %v9176_v48  ;;  %v9424_v48 = vsel %vm1712_vm4, %v1720_v32, %v1722_v53  ;;  %v1724_v32 = vrot.slane %v7723_v62, 4 }
 0x20e   :  { %7244 = vmatmul.msk.f32.gmra.mxu3 %vm220_vm1, %v1332_v8 }
 0x20f   :  { %v9419_v58 = vpop.f32.mrf.mxu0 }
 0x210   :  { %14902 = vst [vmem:[#allocation12_spill] sm:$0xff] %v9419_v58  ;;  %v9421_v25 = vpop.f32.mrf.mxu1 }
 0x211   :  { %14903 = vst [vmem:[#allocation19_spill] sm:$0xff] %v9421_v25  ;;  %v9443_v25 = vsel %vm1712_vm4, %v1722_v53, %v1724_v32 }
 0x212   :  { %7210 = vmatmul.msk.f32.gmra.mxu2 %vm220_vm1, %v1328_v46  ;;  %7274 = vmatmul.msk.f32.gmra.mxu0 %vm220_vm1, %v9424_v48 }
 0x213   :  { %7154 = vmatmul.msk.f32.gmra.mxu1 %vm220_vm1, %v9220_v43  ;;  %v7724_v43 = vld [vmem:[%s14441_s0 + $0x38] sm:$0xff] }
 0x214   :  { %v1726_v46 = vrot.slane %v7724_v43, 4 }
 0x216   :  { %7245 = vmatmul.msk.f32.gmra.mxu3 %vm220_vm1, %v1331_v27  ;;  %v9459_v53 = vsel %vm1712_vm4, %v1724_v32, %v1726_v46 }
 0x217   :  { %v9438_v58 = vpop.f32.mrf.mxu0 }
 0x218   :  { %14904 = vst [vmem:[#allocation20_spill] sm:$0xff] %v9438_v58  ;;  %v9440_v52 = vpop.f32.mrf.mxu1 }
 0x219   :  { %14905 = vst [vmem:[#allocation15_spill] sm:$0xff] %v9440_v52 }
 0x21a   :  { %7211 = vmatmul.msk.f32.gmra.mxu2 %vm220_vm1, %v1330_v2  ;;  %7275 = vmatmul.msk.f32.gmra.mxu0 %vm220_vm1, %v9443_v25 }
 0x21b   :  { %7155 = vmatmul.msk.f32.gmra.mxu1 %vm220_vm1, %v9255_v33  ;;  %v7725_v33 = vld [vmem:[%s14441_s0 + $0x40] sm:$0xff] }
 0x21c   :  { %v1728_v2 = vrot.slane %v7725_v33, 4 }
 0x21e   :  { %v9474_v32 = vsel %vm1712_vm4, %v1726_v46, %v1728_v2 }
 0x21f   :  { %v9454_v42 = vpop.f32.mrf.mxu0 }
 0x220   :  { %14906 = vst [vmem:[#allocation22_spill] sm:$0xff] %v9454_v42  ;;  %v9456_v62 = vpop.f32.mrf.mxu1 }
 0x221   :  { %14907 = vst [vmem:[#allocation23_spill] sm:$0xff] %v9456_v62 }
 0x222   :  { %7212 = vmatmul.msk.f32.gmra.mxu2 %vm220_vm1, %v1332_v8  ;;  %7276 = vmatmul.msk.f32.gmra.mxu0 %vm220_vm1, %v9459_v53 }
 0x223   :  { %7156 = vmatmul.msk.f32.gmra.mxu1 %vm220_vm1, %v9293_v35  ;;  %v7726_v35 = vld [vmem:[%s14441_s0 + $0x48] sm:$0xff] }
 0x224   :  { %v1730_v8 = vrot.slane %v7726_v35, 4 }
 0x226   :  { %v9489_v46 = vsel %vm1712_vm4, %v1728_v2, %v1730_v8 }
 0x227   :  { %v9469_v43 = vpop.f32.mrf.mxu0 }
 0x228   :  { %14908 = vst [vmem:[#allocation18_spill] sm:$0xff] %v9469_v43  ;;  %v9471_v42 = vpop.f32.mrf.mxu1 }
 0x229   :  { %14909 = vst [vmem:[#allocation25_spill] sm:$0xff] %v9471_v42 }
 0x22a   :  { %7213 = vmatmul.msk.f32.gmra.mxu2 %vm220_vm1, %v1331_v27  ;;  %7277 = vmatmul.msk.f32.gmra.mxu0 %vm220_vm1, %v9474_v32 }
 0x22b   :  { %7157 = vmatmul.msk.f32.gmra.mxu1 %vm220_vm1, %v9282_v15  ;;  %v7727_v15 = vld [vmem:[%s14441_s0 + $0x50] sm:$0xff] }
 0x22c   :  { %v1732_v27 = vrot.slane %v7727_v15, 4 }
 0x22f   :  { %v9484_v33 = vpop.f32.mrf.mxu0 }
 0x230   :  { %14910 = vst [vmem:[#allocation91_spill] sm:$0xff] %v9484_v33  ;;  %v9486_v43 = vpop.f32.mrf.mxu1  ;;  %v9503_v33 = vsel %vm1712_vm4, %v1730_v8, %v1732_v27 }
 0x231   :  { %14911 = vst [vmem:[#allocation92_spill] sm:$0xff] %v9486_v43 }
 0x232   :  { %7278 = vmatmul.msk.f32.gmra.mxu0 %vm220_vm1, %v9489_v46 }
 0x233   :  { %7302 = vmatmul.msk.f32.vlgmr.msrb.gmra.mxu1 %vm220_vm1, %v9346_v3  ;;  %v7728_v3 = vld [vmem:[%s14441_s0 + $0x58] sm:$0xff] }
 0x234   :  { %v1734_v2 = vrot.slane %v7728_v3, 4  ;;  %v9528_v3 = vpop.f32.mrf.mxu2 }
 0x237   :  { %v9498_v58 = vpop.f32.mrf.mxu0 }
 0x238   :  { %14912 = vst [vmem:[#allocation93_spill] sm:$0xff] %v9498_v58  ;;  %v9500_v35 = vpop.f32.mrf.mxu1  ;;  %v9517_v58 = vsel %vm1712_vm4, %v1732_v27, %v1734_v2 }
 0x239   :  { %14913 = vst [vmem:[#allocation94_spill] sm:$0xff] %v9500_v35  ;;  %v9526_v35 = vpop.f32.mrf.mxu3 }
 0x23a   :  { %7279 = vmatmul.msk.f32.gmra.mxu0 %vm220_vm1, %v9503_v33  ;;  %14916 = vst [vmem:[#allocation97_spill] sm:$0xff] %v9526_v35  ;;  %v7735_v35 = vld [vmem:[%s14441_s0 + $0x90] sm:$0xff] }
 0x23b   :  { %7303 = vmatmul.msk.f32.gmra.mxu1 %vm220_vm1, %v9364_v31  ;;  %v7729_v31 = vld [vmem:[%s14441_s0 + $0x60] sm:$0xff] }
 0x23c   :  { %v1736_v8 = vrot.slane %v7729_v31, 4 }
 0x23e   :  { %v9535_v27 = vsel %vm1712_vm4, %v1734_v2, %v1736_v8 }
 0x23f   :  { %v9512_v43 = vpop.f32.mrf.mxu0 }
 0x240   :  { %14914 = vst [vmem:[#allocation95_spill] sm:$0xff] %v9512_v43  ;;  %v9514_v15 = vpop.f32.mrf.mxu1 }
 0x241   :  { %14915 = vst [vmem:[#allocation96_spill] sm:$0xff] %v9514_v15  ;;  %v9544_v42 = vpop.f32.mrf.mxu3 }
 0x242   :  { %7280 = vmatmul.msk.f32.gmra.mxu0 %vm220_vm1, %v9517_v58  ;;  %14919 = vst [vmem:[#allocation100_spill] sm:$0xff] %v9544_v42 }
 0x243   :  { %7304 = vmatmul.msk.f32.gmra.mxu1 %vm220_vm1, %v9382_v14  ;;  %v7730_v14 = vld [vmem:[%s14441_s0 + $0x68] sm:$0xff] }
 0x244   :  { %v1738_v31 = vrot.slane %v7730_v14, 4 }
 0x246   :  { %v9551_v2 = vsel %vm1712_vm4, %v1736_v8, %v1738_v31 }
 0x247   :  { %v9530_v43 = vpop.f32.mrf.mxu0 }
 0x248   :  { %14917 = vst [vmem:[#allocation98_spill] sm:$0xff] %v9530_v43  ;;  %v9532_v15 = vpop.f32.mrf.mxu1 }
 0x249   :  { %14918 = vst [vmem:[#allocation99_spill] sm:$0xff] %v9532_v15  ;;  %v9553_v15 = vpop.f32.mrf.mxu2 }
 0x24a   :  { %7281 = vmatmul.msk.f32.gmra.mxu0 %vm220_vm1, %v9535_v27 }
 0x24b   :  { %7305 = vmatmul.msk.f32.gmra.mxu1 %vm220_vm1, %v9403_v20  ;;  %v7731_v20 = vld [vmem:[%s14441_s0 + $0x70] sm:$0xff] }
 0x24c   :  { %v1740_v14 = vrot.slane %v7731_v20, 4 }
 0x24e   :  { %v9567_v8 = vsel %vm1712_vm4, %v1738_v31, %v1740_v14 }
 0x24f   :  { %v9546_v62 = vpop.f32.mrf.mxu0 }
 0x250   :  { %14920 = vst [vmem:[#allocation101_spill] sm:$0xff] %v9546_v62  ;;  %v9548_v43 = vpop.f32.mrf.mxu1 }
 0x251   :  { %14921 = vst [vmem:[#allocation102_spill] sm:$0xff] %v9548_v43  ;;  %v9569_v43 = vpop.f32.mrf.mxu3  ;;  %v9571_v22 = vpop.f32.mrf.mxu2 }
 0x252   :  { %7282 = vmatmul.msk.f32.gmra.mxu0 %vm220_vm1, %v9551_v2  ;;  %14924 = vst [vmem:[#allocation105_spill] sm:$0xff] %v9569_v43 }
 0x253   :  { %7306 = vmatmul.msk.f32.gmra.mxu1 %vm220_vm1, %v9424_v48  ;;  %v7732_v48 = vld [vmem:[%s14441_s0 + $0x78] sm:$0xff] }
 0x254   :  { %v1742_v20 = vrot.slane %v7732_v48, 4 }
 0x256   :  { %v9585_v31 = vsel %vm1712_vm4, %v1740_v14, %v1742_v20 }
 0x257   :  { %v9562_v52 = vpop.f32.mrf.mxu0 }
 0x258   :  { %14922 = vst [vmem:[#allocation103_spill] sm:$0xff] %v9562_v52  ;;  %v9564_v62 = vpop.f32.mrf.mxu1 }
 0x259   :  { %14923 = vst [vmem:[#allocation104_spill] sm:$0xff] %v9564_v62  ;;  %v9587_v43 = vpop.f32.mrf.mxu3  ;;  %v9596_v42 = vpop.f32.mrf.mxu2 }
 0x25a   :  { %7283 = vmatmul.msk.f32.gmra.mxu0 %vm220_vm1, %v9567_v8  ;;  %14927 = vst [vmem:[#allocation108_spill] sm:$0xff] %v9587_v43 }
 0x25b   :  { %7307 = vmatmul.msk.f32.gmra.mxu1 %vm220_vm1, %v9443_v25  ;;  %v7733_v25 = vld [vmem:[%s14441_s0 + $0x80] sm:$0xff] }
 0x25c   :  { %v1744_v48 = vrot.slane %v7733_v25, 4 }
 0x25e   :  { %v9603_v14 = vsel %vm1712_vm4, %v1742_v20, %v1744_v48 }
 0x25f   :  { %v9580_v52 = vpop.f32.mrf.mxu0 }
 0x260   :  { %14925 = vst [vmem:[#allocation106_spill] sm:$0xff] %v9580_v52  ;;  %v9582_v62 = vpop.f32.mrf.mxu1 }
 0x261   :  { %14926 = vst [vmem:[#allocation107_spill] sm:$0xff] %v9582_v62  ;;  %v9619_v20 = vpop.f32.mrf.mxu2 }
 0x262   :  { %7284 = vmatmul.msk.f32.gmra.mxu0 %vm220_vm1, %v9585_v31 }
 0x263   :  { %7308 = vmatmul.msk.f32.gmra.mxu1 %vm220_vm1, %v9459_v53  ;;  %v7734_v53 = vld [vmem:[%s14441_s0 + $0x88] sm:$0xff] }
 0x264   :  { %v1746_v25 = vrot.slane %v7734_v53, 4 }
 0x266   :  { %v9627_v13 = vsel %vm1712_vm4, %v1744_v48, %v1746_v25 }
 0x267   :  { %v9598_v52 = vpop.f32.mrf.mxu0 }
 0x268   :  { %14928 = vst [vmem:[#allocation109_spill] sm:$0xff] %v9598_v52  ;;  %v9600_v62 = vpop.f32.mrf.mxu1  ;;  %v9615_v52 = vld [vmem:[%s14442_s2] sm:$0x3] }
 0x269   :  { %14929 = vst [vmem:[#allocation110_spill] sm:$0xff] %v9600_v62  ;;  %v9617_v62 = vpop.f32.mrf.mxu3  ;;  %v9622_v43 = vperm.slane %v9615_v52, 0 }
 0x26a   :  { %7285 = vmatmul.msk.f32.gmra.mxu0 %vm220_vm1, %v9603_v14  ;;  %14930 = vst [vmem:[#allocation111_spill] sm:$0xff] %v9617_v62 }
 0x26b   :  { %7309 = vmatmul.msk.f32.gmra.mxu1 %vm220_vm1, %v9474_v32 }
 0x26f   :  { %v1857_v32 = vpop.f32.mrf.mxu0 }
 0x270   :  { %v9624_v12 = vpop.f32.mrf.mxu1  ;;  %v2066_v53 = vadd.f32 %v1857_v32, %v9099_v45 }
 0x271   :  { %14931 = vst [vmem:[#allocation112_spill] sm:$0xff] %v9624_v12  ;;  %v1748_v12 = vrot.slane %v7735_v35, 4  ;;  %v9641_v48 = vpop.f32.mrf.mxu3 }
 0x272   :  { %7286 = vmatmul.msk.f32.gmra.mxu0 %vm220_vm1, %v9627_v13  ;;  %v9635_v62 = vadd.f32 %v9622_v43, %v2066_v53  ;;  %14933 = vst [vmem:[#allocation114_spill] sm:$0xff] %v9641_v48  ;;  %v9651_v53 = vpop.f32.mrf.mxu2 }
 0x273   :  { %7310 = vmatmul.msk.f32.gmra.mxu1 %vm220_vm1, %v9489_v46  ;;  %v9649_v32 = vsel %vm1712_vm4, %v1746_v25, %v1748_v12 }
 0x274   :  { %14932 = vst [vmem:[#allocation113_spill] sm:$0xff] %v9635_v62  ;;  %v14455_v23 = vmax.f32 %v9635_v62, 0.0 }
 0x276   :  { %2328 = vrot.lane.b32.xlu0 %v14455_v23, %s7738_s14  ;;  %v7736_v23 = vld [vmem:[%s14441_s0 + $0x98] sm:$0xff] }
 0x277   :  { %v1860_v46 = vpop.f32.mrf.mxu0  ;;  %v1750_v62 = vrot.slane %v7736_v23, 4 }
 0x278   :  { %v9646_v45 = vpop.f32.mrf.mxu1  ;;  %v2068_v29 = vadd.f32 %v1860_v46, %v9131_v50 }
 0x279   :  { %14934 = vst [vmem:[#allocation115_spill] sm:$0xff] %v9646_v45  ;;  %v9671_v45 = vsel %vm1712_vm4, %v1748_v12, %v1750_v62  ;;  %v7737_v12 = vld [vmem:[%s14441_s0 + $0xa0] sm:$0xff] }
 0x27a   :  { %7287 = vmatmul.msk.f32.gmra.mxu0 %vm220_vm1, %v9649_v32  ;;  %v9659_v35 = vadd.f32 %v9622_v43, %v2068_v29  ;;  %v9676_v48 = vpop.f32.mrf.mxu2 }
 0x27b   :  { %7311 = vmatmul.msk.f32.gmra.mxu1 %vm220_vm1, %v9503_v33  ;;  %v9673_v33 = vpop.f32.mrf.mxu3 }
 0x27c   :  { %14935 = vst [vmem:[#allocation116_spill] sm:$0xff] %v9659_v35  ;;  %v14457_v25 = vmax.f32 %v9659_v35, 0.0 }
 0x27d   :  { %14937 = vst [vmem:[#allocation118_spill] sm:$0xff] %v9673_v33 }
 0x27e   :  { %2332 = vrot.lane.b32.xlu1 %v14457_v25, %s7738_s14  ;;  %v1752_v25 = vrot.slane %v7737_v12, 4  ;;  %v1754_v12 = vrot.slane %v9112_v7, 4  ;;  %v1756_v7 = vrot.slane %v9144_v57, 4 }
 0x27f   :  { %v1863_v46 = vpop.f32.mrf.mxu0 }
 0x280   :  { %v9668_v50 = vpop.f32.mrf.mxu1  ;;  %v2070_v29 = vadd.f32 %v1863_v46, %v9169_v34 }
 0x281   :  { %14936 = vst [vmem:[#allocation117_spill] sm:$0xff] %v9668_v50  ;;  %v9695_v50 = vsel %vm1712_vm4, %v1750_v62, %v1752_v25 }
 0x282   :  { %7288 = vmatmul.msk.f32.gmra.mxu0 %vm220_vm1, %v9671_v45  ;;  %v9683_v23 = vadd.f32 %v9622_v43, %v2070_v29 }
 0x283   :  { %7312 = vmatmul.msk.f32.gmra.mxu1 %vm220_vm1, %v9517_v58  ;;  %v9698_v29 = vpop.f32.mrf.mxu3 }
 0x284   :  { %14938 = vst [vmem:[#allocation119_spill] sm:$0xff] %v9683_v23  ;;  %v14459_v35 = vmax.f32 %v9683_v23, 0.0 }
 0x286   :  { %2336 = vrot.lane.b32.xlu2 %v14459_v35, %s7738_s14  ;;  %v9708_v35 = vpop.f32.mrf.mxu2 }
 0x287   :  { %v1866_v46 = vpop.f32.mrf.mxu0 }
 0x288   :  { %v9692_v34 = vpop.f32.mrf.mxu1  ;;  %v2072_v58 = vadd.f32 %v1866_v46, %v9210_v47 }
 0x289   :  { %14939 = vst [vmem:[#allocation120_spill] sm:$0xff] %v9692_v34 }
 0x28a   :  { %v9701_v33 = vadd.f32 %v9622_v43, %v2072_v58  ;;  %7289 = vmatmul.msk.f32.gmra.mxu0 %vm220_vm1, %v9695_v50  ;;  %v9717_v58 = vsel %vm1712_vm4, %v1752_v25, %v1754_v12 }
 0x28b   :  { %7313 = vmatmul.msk.f32.gmra.mxu1 %vm220_vm1, %v9535_v27 }
 0x28c   :  { %14940 = vst [vmem:[#allocation121_spill] sm:$0xff] %v9701_v33  ;;  %v14461_v62 = vmax.f32 %v9701_v33, 0.0 }
 0x28e   :  { %2340 = vrot.lane.b32.xlu0 %v14461_v62, %s7738_s14  ;;  %v9728_v62 = vpop.f32.mrf.mxu3 }
 0x28f   :  { %v1869_v46 = vpop.f32.mrf.mxu0 }
 0x290   :  { %v9714_v47 = vpop.f32.mrf.mxu1  ;;  %v2074_v23 = vadd.f32 %v1869_v46, %v9248_v24  ;;  %v1758_v46 = vrot.slane %v9182_v55, 4 }
 0x291   :  { %14941 = vst [vmem:[#allocation122_spill] sm:$0xff] %v9714_v47  ;;  %v9731_v47 = vpop.f32.mrf.mxu2 }
 0x292   :  { %v9721_v27 = vadd.f32 %v9622_v43, %v2074_v23  ;;  %7290 = vmatmul.msk.f32.gmra.mxu0 %vm220_vm1, %v9717_v58  ;;  %v9739_v23 = vsel %vm1712_vm4, %v1754_v12, %v1756_v7 }
 0x293   :  { %7314 = vmatmul.msk.f32.gmra.mxu1 %vm220_vm1, %v9551_v2 }
 0x294   :  { %14942 = vst [vmem:[#allocation123_spill] sm:$0xff] %v9721_v27  ;;  %v14463_v33 = vmax.f32 %v9721_v27, 0.0 }
 0x296   :  { %2344 = vrot.lane.b32.xlu2 %v14463_v33, %s7738_s14  ;;  %v9751_v27 = vpop.f32.mrf.mxu3 }
 0x297   :  { %v1872_v25 = vpop.f32.mrf.mxu0 }
 0x298   :  { %v9736_v24 = vpop.f32.mrf.mxu1  ;;  %v2076_v2 = vadd.f32 %v1872_v25, %v9285_v37  ;;  %v9759_v25 = vsel %vm1712_vm4, %v1756_v7, %v1758_v46 }
 0x299   :  { %14943 = vst [vmem:[#allocation124_spill] sm:$0xff] %v9736_v24 }
 0x29a   :  { %v9743_v57 = vadd.f32 %v9622_v43, %v2076_v2  ;;  %7291 = vmatmul.msk.f32.gmra.mxu0 %vm220_vm1, %v9739_v23  ;;  %v9761_v2 = vpop.f32.mrf.mxu2 }
 0x29b   :  { %7315 = vmatmul.msk.f32.gmra.mxu1 %vm220_vm1, %v9567_v8 }
 0x29c   :  { %14944 = vst [vmem:[#allocation125_spill] sm:$0xff] %v9743_v57  ;;  %v14465_v33 = vmax.f32 %v9743_v57, 0.0 }
 0x29e   :  { %2348 = vrot.lane.b32.xlu1 %v14465_v33, %s7738_s14  ;;  %v1760_v33 = vrot.slane %v9226_v54, 4 }
 0x29f   :  { %v1875_v12 = vpop.f32.mrf.mxu0 }
 0x2a0   :  { %v9756_v37 = vpop.f32.mrf.mxu1  ;;  %v2078_v8 = vadd.f32 %v1875_v12, %v9312_v17  ;;  %v9779_v12 = vsel %vm1712_vm4, %v1758_v46, %v1760_v33 }
 0x2a1   :  { %14945 = vst [vmem:[#allocation126_spill] sm:$0xff] %v9756_v37 }
 0x2a2   :  { %v9765_v55 = vadd.f32 %v9622_v43, %v2078_v8  ;;  %7292 = vmatmul.msk.f32.gmra.mxu0 %vm220_vm1, %v9759_v25  ;;  %v9781_v8 = vpop.f32.mrf.mxu3  ;;  %v9784_v24 = vpop.f32.mrf.mxu2 }
 0x2a3   :  { %7316 = vmatmul.msk.f32.gmra.mxu1 %vm220_vm1, %v9585_v31  ;;  %v1762_v31 = vrot.slane %v9261_v10, 4 }
 0x2a4   :  { %14946 = vst [vmem:[#allocation127_spill] sm:$0xff] %v9765_v55  ;;  %v14467_v57 = vmax.f32 %v9765_v55, 0.0 }
 0x2a6   :  { %2352 = vrot.lane.b32.xlu0 %v14467_v57, %s7738_s14  ;;  %v14949_v57 = vld [vmem:[#allocation28_spill] sm:$0xff] }
 0x2a7   :  { %v1878_v17 = vpop.f32.mrf.mxu0  ;;  %v1196_v46 = vadd.f32 %v9081_v38, %v14949_v57 }
 0x2a8   :  { %v9776_v7 = vpop.f32.mrf.mxu1  ;;  %v2080_v37 = vadd.f32 %v1878_v17, %v9336_v0 }
 0x2a9   :  { %14947 = vst [vmem:[#allocation128_spill] sm:$0xff] %v9776_v7  ;;  %v1639_v0 = vadd.f32 %v9528_v3, %v1196_v46 }
 0x2aa   :  { %v9787_v54 = vadd.f32 %v9622_v43, %v2080_v37  ;;  %7293 = vmatmul.msk.f32.gmra.mxu0 %vm220_vm1, %v9779_v12  ;;  %v9802_v37 = vperm.slane %v9615_v52, 1  ;;  %v9808_v38 = vpop.f32.mrf.mxu3  ;;  %v1764_v52 = vrot.slane %v9299_v9, 4 }
 0x2ab   :  { %7317 = vmatmul.msk.f32.gmra.mxu1 %vm220_vm1, %v9603_v14  ;;  %v9805_v14 = vsel %vm1712_vm4, %v1760_v33, %v1762_v31  ;;  %v14951_v33 = vld [vmem:[#allocation31_spill] sm:$0xff] }
 0x2ac   :  { %14948 = vst [vmem:[#allocation129_spill] sm:$0xff] %v9787_v54  ;;  %v14478_v55 = vmax.f32 %v9787_v54, 0.0  ;;  %v1198_v46 = vadd.f32 %v9103_v26, %v14951_v33  ;;  %v9830_v9 = vsel %vm1712_vm4, %v1762_v31, %v1764_v52 }
 0x2ae   :  { %2356 = vrot.lane.b32.xlu2 %v14478_v55, %s7738_s14 }
 0x2af   :  { %v1881_v17 = vpop.f32.mrf.mxu0 }
 0x2b0   :  { %v1970_v7 = vpop.f32.mrf.mxu1  ;;  %v2082_v10 = vadd.f32 %v1881_v17, %v1639_v0  ;;  %v9821_v0 = vpop.f32.mrf.mxu2  ;;  %v1641_v17 = vadd.f32 %v9553_v15, %v1198_v46  ;;  %v1766_v15 = vrot.slane %v9127_v5, 4  ;;  %v1200_v5 = vadd.f32 %v9135_v18, %v8595_v21 }
 0x2b1   :  { %v2067_v34 = vadd.f32 %v1970_v7, %v9089_v44 }
 0x2b2   :  { %v9811_v57 = vadd.f32 %v9622_v43, %v2082_v10  ;;  %7294 = vmatmul.msk.f32.gmra.mxu0 %vm220_vm1, %v9805_v14  ;;  %v9842_v46 = vpop.f32.mrf.mxu3 }
 0x2b3   :  { %v2137_v3 = vadd.f32 %v9802_v37, %v2067_v34  ;;  %7318 = vmatmul.msk.f32.gmra.mxu1 %vm220_vm1, %v9627_v13 }
 0x2b4   :  { %14950 = vst [vmem:[#allocation28_spill] sm:$0xff] %v9811_v57  ;;  %v14479_v7 = vmax.f32 %v9811_v57, 0.0 }
 0x2b5   :  { %v2201_v44 = vmax.f32 %v2137_v3, 0.0 }
 0x2b6   :  { %2360 = vrot.lane.b32.xlu1 %v14479_v7, %s7738_s14  ;;  %v15005_v7 = vld [vmem:[#allocation48_spill] sm:$0xff] }
 0x2b7   :  { %2330 = vrot.lane.b32.xlu0 %v2201_v44, %s7738_s14  ;;  %v1884_v34 = vpop.f32.mrf.mxu0 }
 0x2b8   :  { %v1973_v13 = vpop.f32.mrf.mxu1  ;;  %v2084_v10 = vadd.f32 %v1884_v34, %v1641_v17  ;;  %v9845_v17 = vpop.f32.mrf.mxu2 }
 0x2b9   :  { %v2069_v26 = vadd.f32 %v1973_v13, %v9116_v40  ;;  %v9852_v13 = vsel %vm1712_vm4, %v1764_v52, %v1766_v15 }
 0x2ba   :  { %v9834_v3 = vadd.f32 %v9622_v43, %v2084_v10  ;;  %7295 = vmatmul.msk.f32.gmra.mxu0 %vm220_vm1, %v9830_v9  ;;  %v1643_v10 = vadd.f32 %v9571_v22, %v1200_v5  ;;  %v1202_v22 = vadd.f32 %v9173_v51, %v8634_v4  ;;  %v7354_v4 = vld [vmem:[%s14443_s3 + $0x150] sm:$0xf]  ;;  %v7355_v51 = vld [vmem:[%s14443_s3 + $0x158] sm:$0xf] }
 0x2bb   :  { %v2139_v33 = vadd.f32 %v9802_v37, %v2069_v26  ;;  %7319 = vmatmul.msk.f32.gmra.mxu1 %vm220_vm1, %v9649_v32  ;;  %7356 = vmatpush.msk.msrb.mxu2 %vm1712_vm4, %v7354_v4 }
 0x2bc   :  { %14952 = vst [vmem:[#allocation31_spill] sm:$0xff] %v9834_v3  ;;  %v14469_v44 = vmax.f32 %v9834_v3, 0.0  ;;  %7373 = vmatpush.msk.msra.mxu3 %vm1712_vm4, %v7355_v51  ;;  %v15032_v3 = vld [vmem:[#allocation76_spill] sm:$0xff] }
 0x2bd   :  { %v2203_v31 = vmax.f32 %v2139_v33, 0.0  ;;  %v1768_v33 = vrot.slane %v9165_v6, 4 }
 0x2bf   :  { %2334 = vrot.lane.b32.xlu1 %v2203_v31, %s7738_s14  ;;  %2364 = vrot.lane.b32.xlu0 %v14469_v44, %s7738_s14  ;;  %v1887_v40 = vpop.f32.mrf.mxu0  ;;  %v9864_v44 = vpop.f32.mrf.mxu3 }
 0x2c0   :  { %v1976_v34 = vpop.f32.mrf.mxu1  ;;  %v2086_v31 = vadd.f32 %v1887_v40, %v1643_v10  ;;  %v1645_v40 = vadd.f32 %v9596_v42, %v1202_v22 }
 0x2c1   :  { %v2071_v32 = vadd.f32 %v1976_v34, %v9148_v36  ;;  %v9868_v36 = vsel %vm1712_vm4, %v1766_v15, %v1768_v33  ;;  %v9872_v34 = vpop.f32.mrf.mxu2 }
 0x2c2   :  { %7296 = vmatmul.msk.f32.gmra.mxu0 %vm220_vm1, %v9852_v13 }
 0x2c3   :  { %v2141_v26 = vadd.f32 %v9802_v37, %v2071_v32  ;;  %7320 = vmatmul.msk.f32.gmra.mxu1 %vm220_vm1, %v9671_v45  ;;  %v9875_v45 = vadd.f32 %v9622_v43, %v2086_v31 }
 0x2c5   :  { %v2205_v52 = vmax.f32 %v2141_v26, 0.0  ;;  %14953 = vst [vmem:[#allocation130_spill] sm:$0xff] %v9875_v45  ;;  %v14476_v32 = vmax.f32 %v9875_v45, 0.0 }
 0x2c7   :  { %2338 = vrot.lane.b32.xlu2 %v2205_v52, %s7738_s14  ;;  %v1890_v21 = vpop.f32.mrf.mxu0  ;;  %v9903_v31 = vpop.f32.mrf.mxu3 }
 0x2c8   :  { %v1979_v18 = vpop.f32.mrf.mxu1  ;;  %v2088_v42 = vadd.f32 %v1890_v21, %v1645_v40 }
 0x2c9   :  { %v2073_v6 = vadd.f32 %v1979_v18, %v9189_v28  ;;  %v1770_v28 = vrot.slane %v9203_v30, 4  ;;  %v1204_v30 = vadd.f32 %v9217_v41, %v8679_v56  ;;  %v9910_v22 = vpop.f32.mrf.mxu2  ;;  %v1772_v56 = vrot.slane %v9244_v11, 4 }
 0x2ca   :  { %7297 = vmatmul.msk.f32.gmra.mxu0 %vm220_vm1, %v9868_v36  ;;  %v9906_v52 = vadd.f32 %v9622_v43, %v2088_v42 }
 0x2cb   :  { %v2143_v5 = vadd.f32 %v9802_v37, %v2073_v6  ;;  %7321 = vmatmul.msk.f32.gmra.mxu1 %vm220_vm1, %v9695_v50  ;;  %v9899_v26 = vsel %vm1712_vm4, %v1768_v33, %v1770_v28  ;;  %v1647_v18 = vadd.f32 %v9619_v20, %v1204_v30 }
 0x2cc   :  { %14954 = vst [vmem:[#allocation131_spill] sm:$0xff] %v9906_v52  ;;  %v14477_v40 = vmax.f32 %v9906_v52, 0.0 }
 0x2cd   :  { %v2207_v15 = vmax.f32 %v2143_v5, 0.0  ;;  %v9924_v5 = vsel %vm1712_vm4, %v1770_v28, %v1772_v56  ;;  %v9941_v28 = vrot.slane %v9279_v49, 4  ;;  %v1208_v49 = vadd.f32 %v9289_v63, %v8721_v60  ;;  %v7353_v63 = vld [vmem:[%s14443_s3 + $0x148] sm:$0xff] }
 0x2ce   :  { %4046 = vmatpush.msra.mxu3 %v7353_v63  ;;  %v14965_v63 = vld [vmem:[#allocation97_spill] sm:$0xff] }
 0x2cf   :  { %2342 = vrot.lane.b32.xlu1 %v2207_v15, %s7738_s14  ;;  %2368 = vrot.lane.b32.xlu2 %v14476_v32, %s7738_s14  ;;  %v1893_v50 = vpop.f32.mrf.mxu0  ;;  %v9933_v42 = vpop.f32.mrf.mxu3  ;;  %14956 = vst [vmem:[#allocation133_spill] sm:$0xff] %v9941_v28  ;;  %v15002_v32 = vld [vmem:[#allocation39_spill] sm:$0xff] }
 0x2d0   :  { %v1982_v10 = vpop.f32.mrf.mxu1  ;;  %v2090_v41 = vadd.f32 %v1893_v50, %v1647_v18  ;;  %v1651_v18 = vadd.f32 %v9676_v48, %v1208_v49 }
 0x2d1   :  { %v2075_v21 = vadd.f32 %v1982_v10, %v9233_v59 }
 0x2d2   :  { %7298 = vmatmul.msk.f32.gmra.mxu0 %vm220_vm1, %v9899_v26  ;;  %v9929_v11 = vadd.f32 %v9622_v43, %v2090_v41 }
 0x2d3   :  { %v2145_v6 = vadd.f32 %v9802_v37, %v2075_v21  ;;  %7322 = vmatmul.msk.f32.gmra.mxu1 %vm220_vm1, %v9717_v58  ;;  %v1206_v58 = vadd.f32 %v9252_v61, %v8701_v16  ;;  %v9943_v16 = vpop.f32.mrf.mxu2 }
 0x2d4   :  { %14955 = vst [vmem:[#allocation132_spill] sm:$0xff] %v9929_v11 }
 0x2d5   :  { %v2209_v33 = vmax.f32 %v2145_v6, 0.0  ;;  %v1649_v51 = vadd.f32 %v9651_v53, %v1206_v58  ;;  %v14960_v58 = vld [vmem:[#allocation21_spill] sm:$0xff] }
 0x2d7   :  { %2346 = vrot.lane.b32.xlu0 %v2209_v33, %s7738_s14  ;;  %2372 = vrot.lane.b32.xlu1 %v14477_v40, %s7738_s14  ;;  %v1896_v59 = vpop.f32.mrf.mxu0  ;;  %v9972_v60 = vpop.f32.mrf.mxu3  ;;  %v15004_v40 = vld [vmem:[#allocation41_spill] sm:$0xff] }
 0x2d8   :  { %v1985_v20 = vpop.f32.mrf.mxu1  ;;  %v2092_v61 = vadd.f32 %v1896_v59, %v1649_v51  ;;  %v14961_v51 = vld [vmem:[#allocation44_spill] sm:$0xff] }
 0x2d9   :  { %v2077_v4 = vadd.f32 %v1985_v20, %v9265_v1  ;;  %v14473_v1 = vmax.f32 %v9929_v11, 0.0  ;;  %v14959_v20 = vld [vmem:[#allocation26_spill] sm:$0xff] }
 0x2da   :  { %7299 = vmatmul.msk.f32.gmra.mxu0 %vm220_vm1, %v9924_v5  ;;  %v9957_v30 = vadd.f32 %v9622_v43, %v2092_v61 }
 0x2db   :  { %v2147_v15 = vadd.f32 %v9802_v37, %v2077_v4  ;;  %7323 = vmatmul.msk.f32.gmra.mxu1 %vm220_vm1, %v9739_v23  ;;  %v9952_v23 = vsel %vm1712_vm4, %v1772_v56, %v9941_v28  ;;  %v7352_v56 = vld [vmem:[%s14443_s3 + $0x140] sm:$0xff]  ;;  %v9975_v33 = vpop.f32.mrf.mxu2  ;;  %v730_v4 = vadd.f32 %v14960_v58, %v14959_v20  ;;  %v14966_v20 = vld [vmem:[#allocation29_spill] sm:$0xff]  ;;  %v14967_v58 = vld [vmem:[#allocation24_spill] sm:$0xff] }
 0x2dc   :  { %14957 = vst [vmem:[#allocation134_spill] sm:$0xff] %v9952_v23  ;;  %3981 = vmatpush.msrb.mxu2 %v7352_v56  ;;  %v14472_v41 = vmax.f32 %v9957_v30, 0.0 }
 0x2dd   :  { %v2211_v50 = vmax.f32 %v2147_v15, 0.0  ;;  %14958 = vst [vmem:[#allocation135_spill] sm:$0xff] %v9957_v30  ;;  %v1210_v15 = vadd.f32 %v9316_v39, %v14961_v51 }
 0x2df   :  { %2350 = vrot.lane.b32.xlu2 %v2211_v50, %s7738_s14  ;;  %2376 = vrot.lane.b32.xlu0 %v14473_v1, %s7738_s14  ;;  %v1899_v53 = vpop.f32.mrf.mxu0  ;;  %v14963_v50 = vld [vmem:[#allocation7_spill] sm:$0xff]  ;;  %v15000_v1 = vld [vmem:[#allocation37_spill] sm:$0xff] }
 0x2e0   :  { %v1988_v10 = vpop.f32.mrf.mxu1 }
 0x2e1   :  { %v2079_v21 = vadd.f32 %v1988_v10, %v9303_v19  ;;  %v2094_v19 = vadd.f32 %v1899_v53, %v1651_v18  ;;  %v14964_v10 = vld [vmem:[#allocation11_spill] sm:$0xff] }
 0x2e2   :  { %7300 = vmatmul.msk.f32.gmra.mxu0 %vm220_vm1, %v9952_v23  ;;  %v1197_v49 = vadd.f32 %v14964_v10, %v730_v4  ;;  %v733_v4 = vadd.f32 %v14967_v58, %v14966_v20  ;;  %v14971_v10 = vld [vmem:[#allocation13_spill] sm:$0xff]  ;;  %v14972_v58 = vld [vmem:[#allocation100_spill] sm:$0xff] }
 0x2e3   :  { %v2149_v6 = vadd.f32 %v9802_v37, %v2079_v21  ;;  %7324 = vmatmul.msk.f32.gmra.mxu1 %vm220_vm1, %v9759_v25  ;;  %v9986_v61 = vadd.f32 %v9622_v43, %v2094_v19  ;;  %v1653_v21 = vadd.f32 %v9708_v35, %v1210_v15  ;;  %v10008_v15 = vpop.f32.mrf.mxu2 }
 0x2e4   :  { %v1640_v19 = vadd.f32 %v14965_v63, %v1197_v49  ;;  %v1199_v49 = vadd.f32 %v14971_v10, %v733_v4 }
 0x2e5   :  { %v2213_v48 = vmax.f32 %v2149_v6, 0.0  ;;  %14962 = vst [vmem:[#allocation26_spill] sm:$0xff] %v9986_v61  ;;  %v14475_v39 = vmax.f32 %v9986_v61, 0.0 }
 0x2e7   :  { %2354 = vrot.lane.b32.xlu1 %v2213_v48, %s7738_s14  ;;  %2380 = vrot.lane.b32.xlu2 %v14472_v41, %s7738_s14  ;;  %v1902_v25 = vpop.f32.mrf.mxu0  ;;  %v9998_v48 = vpop.f32.mrf.mxu3 }
 0x2e8   :  { %v1991_v59 = vpop.f32.mrf.mxu1  ;;  %v2096_v6 = vadd.f32 %v1902_v25, %v1653_v21  ;;  %v14969_v25 = vld [vmem:[#allocation10_spill] sm:$0xff]  ;;  %v10080_v41 = vpop.permute.xlu2 %2336 }
 0x2e9   :  { %v2081_v53 = vadd.f32 %v1991_v59, %v14963_v50 }
 0x2ea   :  { %7301 = vmatmul.msk.f32.gmra.mxu0 %vm220_vm1, %v9941_v28  ;;  %v10011_v50 = vadd.f32 %v9622_v43, %v2096_v6 }
 0x2eb   :  { %v2151_v18 = vadd.f32 %v9802_v37, %v2081_v53  ;;  %7325 = vmatmul.msk.f32.gmra.mxu1 %vm220_vm1, %v9779_v12  ;;  %v14968_v12 = vld [vmem:[#allocation47_spill] sm:$0xff] }
 0x2ec   :  { %v1212_v51 = vadd.f32 %v14969_v25, %v14968_v12  ;;  %14970 = vst [vmem:[#allocation21_spill] sm:$0xff] %v10011_v50  ;;  %v14471_v20 = vmax.f32 %v10011_v50, 0.0  ;;  %v1642_v12 = vadd.f32 %v14972_v58, %v1199_v49  ;;  %v14975_v25 = vld [vmem:[#allocation50_spill] sm:$0xff]  ;;  %v14979_v49 = vld [vmem:[#allocation9_spill] sm:$0xff]  ;;  %v15009_v50 = vld [vmem:[#allocation19_spill] sm:$0xff] }
 0x2ed   :  { %v2215_v56 = vmax.f32 %v2151_v18, 0.0  ;;  %14997 = vst [vmem:[#allocation47_spill] sm:$0xff] %v10080_v41 }
 0x2ee   :  { %v1655_v21 = vadd.f32 %v9731_v47, %v1212_v51  ;;  %v14973_v47 = vld [vmem:[#allocation32_spill] sm:$0xff] }
 0x2ef   :  { %2358 = vrot.lane.b32.xlu0 %v2215_v56, %s7738_s14  ;;  %2384 = vrot.lane.b32.xlu1 %v14475_v39, %s7738_s14  ;;  %v1905_v35 = vpop.f32.mrf.mxu0  ;;  %v14976_v51 = vld [vmem:[#allocation8_spill] sm:$0xff]  ;;  %v15001_v39 = vld [vmem:[#allocation42_spill] sm:$0xff] }
 0x2f0   :  { %v1994_v59 = vpop.f32.mrf.mxu1  ;;  %v2098_v56 = vadd.f32 %v1905_v35, %v1655_v21  ;;  %v10028_v35 = vpop.f32.mrf.mxu3 }
 0x2f1   :  { %v2083_v53 = vadd.f32 %v1994_v59, %v1640_v19  ;;  %v14974_v59 = vld [vmem:[#allocation27_spill] sm:$0xff]  ;;  %14977 = vst [vmem:[#allocation44_spill] sm:$0xff] %v10028_v35  ;;  %v15071_v35 = vld [vmem:[#allocation18_spill] sm:$0xff] }
 0x2f2   :  { %v736_v4 = vadd.f32 %v14974_v59, %v14973_v47  ;;  %v7350_v47 = vld [vmem:[%s14443_s3 + $0x130] sm:$0xff]  ;;  %v14981_v59 = vld [vmem:[#allocation105_spill] sm:$0xff] }
 0x2f3   :  { %v2153_v18 = vadd.f32 %v9802_v37, %v2083_v53  ;;  %7326 = vmatmul.msk.f32.gmra.mxu1 %vm220_vm1, %v9805_v14  ;;  %v1214_v14 = vadd.f32 %v14976_v51, %v14975_v25  ;;  %v10031_v53 = vadd.f32 %v9622_v43, %v2098_v56  ;;  %v7351_v56 = vld [vmem:[%s14443_s3 + $0x138] sm:$0xff]  ;;  %3982 = vmatpush.msrb.mxu2 %v7350_v47  ;;  %v14982_v51 = vld [vmem:[#allocation34_spill] sm:$0xff] }
 0x2f4   :  { %v1201_v21 = vadd.f32 %v14979_v49, %v736_v4  ;;  %4047 = vmatpush.msra.mxu3 %v7351_v56  ;;  %v14984_v49 = vld [vmem:[#allocation53_spill] sm:$0xff]  ;;  %v14985_v47 = vld [vmem:[#allocation14_spill] sm:$0xff] }
 0x2f5   :  { %v2217_v63 = vmax.f32 %v2153_v18, 0.0  ;;  %14978 = vst [vmem:[#allocation7_spill] sm:$0xff] %v10031_v53  ;;  %v1657_v18 = vadd.f32 %v9761_v2, %v1214_v14  ;;  %v14470_v2 = vmax.f32 %v10031_v53, 0.0  ;;  %v14983_v14 = vld [vmem:[#allocation30_spill] sm:$0xff]  ;;  %v1216_v56 = vadd.f32 %v14985_v47, %v14984_v49  ;;  %v15007_v53 = vld [vmem:[#allocation51_spill] sm:$0xff] }
 0x2f6   :  { %v1644_v4 = vadd.f32 %v14981_v59, %v1201_v21 }
 0x2f7   :  { %2362 = vrot.lane.b32.xlu2 %v2217_v63, %s7738_s14  ;;  %2388 = vrot.lane.b32.xlu0 %v14471_v20, %s7738_s14  ;;  %v1908_v6 = vpop.f32.mrf.mxu0  ;;  %v10035_v63 = vpop.f32.mrf.mxu2 }
 0x2f8   :  { %v1997_v19 = vpop.f32.mrf.mxu1  ;;  %14980 = vst [vmem:[#allocation11_spill] sm:$0xff] %v10035_v63  ;;  %v10061_v59 = vpop.f32.mrf.mxu3 }
 0x2f9   :  { %v2085_v10 = vadd.f32 %v1997_v19, %v1642_v12  ;;  %v2100_v12 = vadd.f32 %v1908_v6, %v1657_v18  ;;  %14988 = vst [vmem:[#allocation29_spill] sm:$0xff] %v10061_v59 }
 0x2fb   :  { %v2155_v58 = vadd.f32 %v9802_v37, %v2085_v10  ;;  %7327 = vmatmul.msk.f32.gmra.mxu1 %vm220_vm1, %v9830_v9  ;;  %v739_v10 = vadd.f32 %v14983_v14, %v14982_v51  ;;  %v10057_v6 = vadd.f32 %v9622_v43, %v2100_v12  ;;  %v14990_v12 = vld [vmem:[#allocation108_spill] sm:$0xff] }
 0x2fd   :  { %v2219_v19 = vmax.f32 %v2155_v58, 0.0  ;;  %14986 = vst [vmem:[#allocation97_spill] sm:$0xff] %v10057_v6  ;;  %v14987_v58 = vld [vmem:[#allocation17_spill] sm:$0xff]  ;;  %v14474_v49 = vmax.f32 %v10057_v6, 0.0 }
 0x2fe   :  { %v1203_v21 = vadd.f32 %v14987_v58, %v739_v10 }
 0x2ff   :  { %2366 = vrot.lane.b32.xlu1 %v2219_v19, %s7738_s14  ;;  %2392 = vrot.lane.b32.xlu2 %v14470_v2, %s7738_s14  ;;  %v1911_v9 = vpop.f32.mrf.mxu0  ;;  %v1659_v19 = vadd.f32 %v9784_v24, %v1216_v56  ;;  %v10066_v20 = vpop.f32.mrf.mxu2  ;;  %v14991_v24 = vld [vmem:[#allocation36_spill] sm:$0xff] }
 0x300   :  { %v2000_v25 = vpop.f32.mrf.mxu1  ;;  %14989 = vst [vmem:[#allocation24_spill] sm:$0xff] %v10066_v20  ;;  %v1646_v47 = vadd.f32 %v14990_v12, %v1203_v21  ;;  %v14999_v12 = vld [vmem:[#allocation40_spill] sm:$0xff] }
 0x301   :  { %v2087_v18 = vadd.f32 %v2000_v25, %v1644_v4  ;;  %v2102_v51 = vadd.f32 %v1911_v9, %v1659_v19  ;;  %v14992_v4 = vld [vmem:[#allocation33_spill] sm:$0xff]  ;;  %v14995_v9 = vld [vmem:[#allocation56_spill] sm:$0xff] }
 0x302   :  { %v742_v25 = vadd.f32 %v14992_v4, %v14991_v24  ;;  %v751_v24 = vadd.f32 %v15002_v32, %v15001_v39  ;;  %v15003_v4 = vld [vmem:[#allocation45_spill] sm:$0xff] }
 0x303   :  { %v2157_v2 = vadd.f32 %v9802_v37, %v2087_v18  ;;  %7328 = vmatmul.msk.f32.gmra.mxu1 %vm220_vm1, %v9852_v13  ;;  %v14993_v13 = vld [vmem:[#allocation38_spill] sm:$0xff]  ;;  %v14994_v18 = vld [vmem:[#allocation35_spill] sm:$0xff]  ;;  %v10083_v21 = vadd.f32 %v9622_v43, %v2102_v51  ;;  %v754_v55 = vadd.f32 %v15004_v40, %v15003_v4  ;;  %v15011_v32 = vld [vmem:[#allocation49_spill] sm:$0xff] }
 0x304   :  { %v745_v58 = vadd.f32 %v14994_v18, %v14993_v13  ;;  %v15006_v13 = vld [vmem:[#allocation43_spill] sm:$0xff]  ;;  %v1205_v6 = vadd.f32 %v15009_v50, %v742_v25  ;;  %v15013_v40 = vld [vmem:[#allocation52_spill] sm:$0xff]  ;;  %v15019_v25 = vld [vmem:[#allocation61_spill] sm:$0xff] }
 0x305   :  { %v2221_v14 = vmax.f32 %v2157_v2, 0.0  ;;  %v14996_v2 = vld [vmem:[#allocation16_spill] sm:$0xff]  ;;  %14998 = vst [vmem:[#allocation10_spill] sm:$0xff] %v10083_v21  ;;  %v757_v18 = vadd.f32 %v15006_v13, %v15005_v7  ;;  %v15015_v7 = vld [vmem:[#allocation55_spill] sm:$0xff] }
 0x306   :  { %v1218_v19 = vadd.f32 %v14996_v2, %v14995_v9  ;;  %v15008_v9 = vld [vmem:[#allocation46_spill] sm:$0xff]  ;;  %v15014_v4 = vld [vmem:[#allocation60_spill] sm:$0xff] }
 0x307   :  { %2370 = vrot.lane.b32.xlu0 %v2221_v14, %s7738_s14  ;;  %2396 = vrot.lane.b32.xlu1 %v14474_v49, %s7738_s14  ;;  %v1914_v10 = vpop.f32.mrf.mxu0  ;;  %v748_v49 = vadd.f32 %v15000_v1, %v14999_v12  ;;  %v760_v2 = vadd.f32 %v15008_v9, %v15007_v53  ;;  %v15010_v1 = vld [vmem:[#allocation54_spill] sm:$0xff]  ;;  %v10106_v13 = vadd.f32 %v15015_v7, %v15014_v4  ;;  %v15016_v53 = vld [vmem:[#allocation63_spill] sm:$0xff]  ;;  %v15023_v4 = vld [vmem:[#allocation72_spill] sm:$0xff]  ;;  %v10142_v54 = vpop.f32.mrf.mxu2 }
 0x308   :  { %v2003_v56 = vpop.f32.mrf.mxu1  ;;  %v1661_v51 = vadd.f32 %v9821_v0, %v1218_v19  ;;  %v763_v39 = vadd.f32 %v15011_v32, %v15010_v1  ;;  %v15017_v9 = vld [vmem:[#allocation58_spill] sm:$0xff]  ;;  %v15021_v32 = vld [vmem:[#allocation69_spill] sm:$0xff]  ;;  %v15024_v7 = vld [vmem:[#allocation67_spill] sm:$0xff]  ;;  %15034 = vst [vmem:[#allocation100_spill] sm:$0xff] %v10142_v54 }
 0x309   :  { %v2089_v14 = vadd.f32 %v2003_v56, %v1646_v47  ;;  %v15012_v56 = vld [vmem:[#allocation57_spill] sm:$0xff]  ;;  %v10110_v50 = vadd.f32 %v15017_v9, %v15016_v53  ;;  %v15018_v0 = vld [vmem:[#allocation66_spill] sm:$0xff]  ;;  %v10125_v11 = vadd.f32 %v15024_v7, %v15023_v4  ;;  %v15025_v53 = vld [vmem:[#allocation75_spill] sm:$0xff]  ;;  %v15035_v4 = vmax.f32 %v10083_v21, 0.0 }
 0x30a   :  { %v766_v12 = vadd.f32 %v15013_v40, %v15012_v56  ;;  %v10114_v19 = vadd.f32 %v15019_v25, %v15018_v0  ;;  %v15022_v56 = vld [vmem:[#allocation64_spill] sm:$0xff]  ;;  %v15026_v9 = vld [vmem:[#allocation70_spill] sm:$0xff]  ;;  %v15028_v25 = vld [vmem:[#allocation73_spill] sm:$0xff] }
 0x30b   :  { %v2159_v47 = vadd.f32 %v9802_v37, %v2089_v14  ;;  %7329 = vmatmul.msk.f32.gmra.mxu1 %vm220_vm1, %v9868_v36  ;;  %v10116_v14 = vpop.f32.mrf.mxu3  ;;  %v2104_v36 = vadd.f32 %v1914_v10, %v1661_v51  ;;  %v10121_v40 = vadd.f32 %v15022_v56, %v15021_v32  ;;  %v10129_v61 = vadd.f32 %v15026_v9, %v15025_v53  ;;  %v15027_v0 = vld [vmem:[#allocation78_spill] sm:$0xff]  ;;  %v15030_v51 = vld [vmem:[#allocation80_spill] sm:$0xff]  ;;  %v15031_v1 = vld [vmem:[#allocation81_spill] sm:$0xff] }
 0x30c   :  { %15020 = vst [vmem:[#allocation13_spill] sm:$0xff] %v10116_v14  ;;  %v10133_v45 = vadd.f32 %v15028_v25, %v15027_v0  ;;  %v15029_v10 = vld [vmem:[#allocation2_spill] sm:$0xff]  ;;  %v10139_v52 = vadd.f32 %v15032_v3, %v15031_v1  ;;  %v15033_v32 = vld [vmem:[#allocation111_spill] sm:$0xff]  ;;  %v15038_v0 = vld [vmem:[#allocation84_spill] sm:$0xff] }
 0x30d   :  { %v2223_v30 = vmax.f32 %v2159_v47, 0.0  ;;  %v674_v47 = vadd.f32 %v15030_v51, %v15029_v10  ;;  %v1648_v56 = vadd.f32 %v15033_v32, %v1205_v6  ;;  %v15036_v7 = vld [vmem:[#allocation3_spill] sm:$0xff]  ;;  %v15041_v51 = vld [vmem:[#allocation5_spill] sm:$0xff]  ;;  %v15042_v3 = vld [vmem:[#allocation86_spill] sm:$0xff] }
 0x30e   :  { %v15037_v53 = vld [vmem:[#allocation83_spill] sm:$0xff]  ;;  %v10156_v1 = vadd.f32 %v15042_v3, %v15041_v51  ;;  %v15045_v54 = vld [vmem:[#allocation82_spill] sm:$0xff]  ;;  %v15048_v21 = vld [vmem:[#allocation12_spill] sm:$0xff] }
 0x30f   :  { %2374 = vrot.lane.b32.xlu2 %v2223_v30, %s7738_s14  ;;  %2400 = vrot.lane.b32.xlu0 %v15035_v4, %s7738_s14  ;;  %v677_v9 = vadd.f32 %v15037_v53, %v15036_v7  ;;  %v15039_v25 = vld [vmem:[#allocation79_spill] sm:$0xff]  ;;  %v1917_v57 = vpop.f32.mrf.mxu0  ;;  %v10165_v7 = vpop.permute.xlu0 %2328  ;;  %v15052_v51 = vld [vmem:[#allocation4_spill] sm:$0xff] }
 0x310   :  { %v10152_v10 = vadd.f32 %v15039_v25, %v15038_v0  ;;  %v15043_v6 = vld [vmem:[#allocation15_spill] sm:$0xff]  ;;  %v2006_v28 = vpop.f32.mrf.mxu1  ;;  %15049 = vst [vmem:[#allocation50_spill] sm:$0xff] %v10165_v7  ;;  %v10167_v53 = vpop.permute.xlu2 %2344  ;;  %v10170_v0 = vadd.f32 %v9622_v43, %v2104_v36  ;;  %v15053_v3 = vld [vmem:[#allocation88_spill] sm:$0xff]  ;;  %v15060_v7 = vld [vmem:[#allocation90_spill] sm:$0xff] }
 0x311   :  { %v1207_v32 = vadd.f32 %v15043_v6, %v745_v58  ;;  %v15044_v30 = vld [vmem:[#allocation87_spill] sm:$0xff]  ;;  %15050 = vst [vmem:[#allocation8_spill] sm:$0xff] %v10167_v53  ;;  %v2091_v25 = vadd.f32 %v2006_v28, %v1648_v56  ;;  %v10174_v58 = vadd.f32 %v15053_v3, %v15052_v51  ;;  %v15054_v6 = vld [vmem:[#allocation89_spill] sm:$0xff]  ;;  %v15061_v53 = vld [vmem:[#allocation92_spill] sm:$0xff] }
 0x312   :  { %15040 = vst [vmem:[#allocation32_spill] sm:$0xff] %v10152_v10  ;;  %v10161_v14 = vadd.f32 %v15045_v54, %v15044_v30  ;;  %v15047_v4 = vld [vmem:[#allocation59_spill] sm:$0xff]  ;;  %v15055_v10 = vld [vmem:[#allocation85_spill] sm:$0xff]  ;;  %v1213_v36 = vadd.f32 %v15061_v53, %v754_v55  ;;  %v15062_v51 = vld [vmem:[#allocation62_spill] sm:$0xff] }
 0x313   :  { %v1220_v20 = vadd.f32 %v15048_v21, %v15047_v4  ;;  %15051 = vst [vmem:[#allocation9_spill] sm:$0xff] %v10170_v0  ;;  %v10178_v59 = vadd.f32 %v15055_v10, %v15054_v6  ;;  %v15057_v54 = vld [vmem:[#allocation23_spill] sm:$0xff]  ;;  %v15059_v4 = vld [vmem:[#allocation6_spill] sm:$0xff]  ;;  %v2161_v56 = vadd.f32 %v9802_v37, %v2091_v25  ;;  %7330 = vmatmul.msk.f32.gmra.mxu1 %vm220_vm1, %v9899_v26  ;;  %v15063_v10 = vld [vmem:[#allocation20_spill] sm:$0xff] }
 0x314   :  { %15046 = vst [vmem:[#allocation27_spill] sm:$0xff] %v10161_v14  ;;  %v1209_v30 = vadd.f32 %v15057_v54, %v748_v49  ;;  %v15058_v14 = vld [vmem:[#allocation25_spill] sm:$0xff]  ;;  %v10184_v63 = vadd.f32 %v15060_v7, %v15059_v4  ;;  %v1222_v3 = vadd.f32 %v15063_v10, %v15062_v51  ;;  %v15064_v6 = vld [vmem:[#allocation114_spill] sm:$0xff]  ;;  %v15070_v26 = vld [vmem:[#allocation68_spill] sm:$0xff] }
 0x315   :  { %15056 = vst [vmem:[#allocation105_spill] sm:$0xff] %v10178_v59  ;;  %v1211_v21 = vadd.f32 %v15058_v14, %v751_v24  ;;  %v1663_v28 = vadd.f32 %v9845_v17, %v1220_v20  ;;  %v1650_v49 = vadd.f32 %v15064_v6, %v1207_v32  ;;  %v15065_v54 = vld [vmem:[#allocation94_spill] sm:$0xff]  ;;  %v15066_v14 = vld [vmem:[#allocation96_spill] sm:$0xff]  ;;  %v15067_v7 = vld [vmem:[#allocation65_spill] sm:$0xff]  ;;  %v2225_v53 = vmax.f32 %v2161_v56, 0.0 }
 0x316   :  { %v1215_v24 = vadd.f32 %v15065_v54, %v757_v18  ;;  %v1217_v59 = vadd.f32 %v15066_v14, %v760_v2  ;;  %v15068_v4 = vld [vmem:[#allocation22_spill] sm:$0xff]  ;;  %v14495_v17 = vmax.f32 %v10170_v0, 0.0  ;;  %v1226_v41 = vadd.f32 %v15071_v35, %v15070_v26  ;;  %v15072_v32 = vld [vmem:[#allocation99_spill] sm:$0xff]  ;;  %v15076_v56 = vld [vmem:[#allocation93_spill] sm:$0xff]  ;;  %v10221_v14 = vpop.permute.xlu1 %2332 }
 0x317   :  { %v1224_v23 = vadd.f32 %v15068_v4, %v15067_v7  ;;  %v2106_v55 = vadd.f32 %v1917_v57, %v1663_v28  ;;  %v15069_v20 = vld [vmem:[#allocation118_spill] sm:$0xff]  ;;  %v10205_v51 = vadd.f32 %v9698_v29, %v1211_v21  ;;  %v1219_v18 = vadd.f32 %v15072_v32, %v763_v39  ;;  %v15073_v10 = vld [vmem:[#allocation71_spill] sm:$0xff]  ;;  %2378 = vrot.lane.b32.xlu1 %v2225_v53, %s7738_s14  ;;  %v15077_v35 = vld [vmem:[#allocation77_spill] sm:$0xff]  ;;  %v1920_v4 = vpop.f32.mrf.mxu0  ;;  %v10246_v32 = vpop.permute.xlu0 %2340 }
 0x318   :  { %v10200_v25 = vadd.f32 %v15069_v20, %v1209_v30  ;;  %v15074_v2 = vld [vmem:[#allocation91_spill] sm:$0xff]  ;;  %v10213_v57 = vadd.f32 %v9728_v62, %v1213_v36  ;;  %v15075_v28 = vld [vmem:[#allocation74_spill] sm:$0xff]  ;;  %v10219_v30 = vpop.f32.mrf.mxu3  ;;  %2404 = vrot.lane.b32.xlu2 %v14495_v17, %s7738_s14  ;;  %v10228_v29 = vadd.f32 %v9751_v27, %v1215_v24  ;;  %v10235_v21 = vadd.f32 %v9781_v8, %v1217_v59  ;;  %v2009_v20 = vpop.f32.mrf.mxu1  ;;  %v15080_v24 = vld [vmem:[#allocation104_spill] sm:$0xff] }
 0x319   :  { %v10210_v6 = vadd.f32 %v15074_v2, %v15073_v10  ;;  %v10217_v54 = vadd.f32 %v15076_v56, %v15075_v28  ;;  %v15078_v62 = vld [vmem:[#allocation95_spill] sm:$0xff]  ;;  %v15079_v36 = vld [vmem:[#allocation102_spill] sm:$0xff]  ;;  %v1223_v26 = vadd.f32 %v15080_v24, %v10106_v13  ;;  %v10248_v10 = vpop.permute.xlu2 %2356  ;;  %v10251_v8 = vadd.f32 %v9622_v43, %v2106_v55  ;;  %v7442_v55 = vld [vmem:[%s14443_s3 + $0x1f0] sm:$0xff] }
 0x31a   :  { %v10232_v39 = vadd.f32 %v15078_v62, %v15077_v35  ;;  %v1221_v7 = vadd.f32 %v15079_v36, %v766_v12  ;;  %v7444_v53 = vld [vmem:[%s14443_s3 + $0x200] sm:$0xf]  ;;  %v7445_v27 = vld [vmem:[%s14443_s3 + $0x208] sm:$0xf]  ;;  %v2093_v59 = vadd.f32 %v2009_v20, %v1650_v49  ;;  %v10259_v28 = vadd.f32 %v9808_v38, %v1219_v18  ;;  %v7443_v49 = vld [vmem:[%s14443_s3 + $0x1f8] sm:$0xff]  ;;  %v10275_v18 = vpop.f32.mrf.mxu2 }
 0x31b   :  { %15081 = vst [vmem:[#allocation34_spill] sm:$0xff] %v10251_v8  ;;  %7446 = vmatpush.msk.msrb.mxu0 %vm1712_vm4, %v7444_v53  ;;  %7463 = vmatpush.msk.msra.mxu1 %vm1712_vm4, %v7445_v27  ;;  %v15082_v12 = vld [vmem:[#allocation98_spill] sm:$0xff]  ;;  %v1665_v13 = vadd.f32 %v9872_v34, %v1222_v3  ;;  %v15083_v56 = vld [vmem:[#allocation107_spill] sm:$0xff]  ;;  %v15084_v62 = vld [vmem:[#allocation101_spill] sm:$0xff] }
 0x31c   :  { %v10256_v2 = vadd.f32 %v15082_v12, %v674_v47  ;;  %v1225_v35 = vadd.f32 %v15083_v56, %v10110_v50  ;;  %v10271_v36 = vadd.f32 %v15084_v62, %v677_v9  ;;  %v15085_v47 = vld [vmem:[#allocation110_spill] sm:$0xff]  ;;  %v2163_v34 = vadd.f32 %v9802_v37, %v2093_v59  ;;  %7331 = vmatmul.msk.f32.gmra.mxu1 %vm220_vm1, %v9924_v5  ;;  %v15086_v3 = vld [vmem:[#allocation103_spill] sm:$0xff]  ;;  %v15087_v9 = vld [vmem:[#allocation112_spill] sm:$0xff] }
 0x31d   :  { %v1227_v38 = vadd.f32 %v15085_v47, %v10114_v19  ;;  %4554 = vmatpush.msrb.mxu0 %v7442_v55  ;;  %v10281_v50 = vadd.f32 %v9842_v46, %v1221_v7  ;;  %v10285_v20 = vadd.f32 %v15086_v3, %v10156_v1  ;;  %v1229_v53 = vadd.f32 %v15087_v9, %v10121_v40  ;;  %v15088_v24 = vld [vmem:[#allocation115_spill] sm:$0xff]  ;;  %v7348_v46 = vld [vmem:[%s14443_s3 + $0x120] sm:$0xff]  ;;  %v15091_v56 = vld [vmem:[#allocation117_spill] sm:$0xff] }
 0x31e   :  { %v2108_v27 = vadd.f32 %v1920_v4, %v1665_v13  ;;  %4619 = vmatpush.msra.mxu1 %v7443_v49  ;;  %v10290_v19 = vadd.f32 %v9864_v44, %v1223_v26  ;;  %v1231_v59 = vadd.f32 %v15088_v24, %v10125_v11  ;;  %v2227_v5 = vmax.f32 %v2163_v34, 0.0  ;;  %v7349_v1 = vld [vmem:[%s14443_s3 + $0x128] sm:$0xff]  ;;  %v15089_v40 = vld [vmem:[#allocation106_spill] sm:$0xff]  ;;  %3983 = vmatpush.msrb.mxu2 %v7348_v46  ;;  %v15090_v4 = vld [vmem:[#allocation109_spill] sm:$0xff]  ;;  %v10318_v49 = vpop.permute.xlu1 %2348 }
 0x31f   :  { %v14496_v12 = vmax.f32 %v10251_v8, 0.0  ;;  %v10303_v7 = vadd.f32 %v15089_v40, %v10174_v58  ;;  %v10306_v44 = vadd.f32 %v9903_v31, %v1225_v35  ;;  %v1667_v11 = vadd.f32 %v9910_v22, %v1224_v23  ;;  %4048 = vmatpush.msra.mxu3 %v7349_v1  ;;  %v7440_v35 = vld [vmem:[%s14443_s3 + $0x1e0] sm:$0xff]  ;;  %v15096_v9 = vld [vmem:[#allocation44_spill] sm:$0xff]  ;;  %v7347_v46 = vld [vmem:[%s14443_s3 + $0x118] sm:$0xff] }
 0x320   :  { %v10311_v26 = vadd.f32 %v15090_v4, %v10184_v63  ;;  %v10314_v13 = vadd.f32 %v9933_v42, %v1227_v38  ;;  %v1233_v55 = vadd.f32 %v15091_v56, %v10129_v61  ;;  %2382 = vrot.lane.b32.xlu0 %v2227_v5, %s7738_s14  ;;  %v10325_v31 = vadd.f32 %v9943_v16, %v1226_v41  ;;  %v15092_v42 = vld [vmem:[#allocation120_spill] sm:$0xff]  ;;  %v1923_v63 = vpop.f32.mrf.mxu0  ;;  %v2012_v58 = vpop.f32.mrf.mxu1  ;;  %v7441_v16 = vld [vmem:[%s14443_s3 + $0x1e8] sm:$0xff]  ;;  %v15094_v34 = vld [vmem:[#allocation122_spill] sm:$0xff] }
 0x321   :  { %2408 = vrot.lane.b32.xlu1 %v14496_v12, %s7738_s14  ;;  %v10328_v22 = vadd.f32 %v9972_v60, %v1229_v53  ;;  %v1235_v23 = vadd.f32 %v15092_v42, %v10133_v45  ;;  %v10333_v61 = vadd.f32 %v9622_v43, %v2108_v27  ;;  %v10343_v60 = vadd.f32 %v9975_v33, %v10210_v6  ;;  %v10348_v45 = vpop.permute.xlu0 %2352  ;;  %v2339_v47 = vpop.permute.xlu2 %2338  ;;  %v15095_v33 = vld [vmem:[#allocation47_spill] sm:$0xff]  ;;  %v7346_v5 = vld [vmem:[%s14443_s3 + $0x110] sm:$0xff]  ;;  %v15102_v4 = vld [vmem:[#allocation29_spill] sm:$0xff] }
 0x322   :  { %v10346_v41 = vadd.f32 %v9998_v48, %v1231_v59  ;;  %v2095_v62 = vadd.f32 %v2012_v58, %v10200_v25  ;;  %4555 = vmatpush.msrb.mxu0 %v7440_v35  ;;  %4620 = vmatpush.msra.mxu1 %v7441_v16  ;;  %v10353_v38 = vadd.f32 %v10008_v15, %v10217_v54  ;;  %v7438_v48 = vld [vmem:[%s14443_s3 + $0x1d0] sm:$0xff]  ;;  %v7439_v25 = vld [vmem:[%s14443_s3 + $0x1d8] sm:$0xff]  ;;  %v10368_v15 = vpop.f32.mrf.mxu3  ;;  %v15100_v59 = vld [vmem:[#allocation134_spill] sm:$0xff]  ;;  %v10395_v16 = vpop.f32.mrf.mxu2 }
 0x323   :  { %15093 = vst [vmem:[#allocation30_spill] sm:$0xff] %v10333_v61  ;;  %v1237_v3 = vadd.f32 %v15094_v34, %v10139_v52  ;;  %v2459_v6 = vsel %vm2456_vm5, %v15095_v33, %v2339_v47  ;;  %v10366_v53 = vadd.f32 %v15096_v9, %v1233_v55  ;;  %v15098_v52 = vld [vmem:[#allocation119_spill] sm:$0xff]  ;;  %v10386_v56 = vadd.f32 %v15102_v4, %v1235_v23  ;;  %v7436_v58 = vld [vmem:[%s14443_s3 + $0x1c0] sm:$0xff]  ;;  %v15104_v34 = vld [vmem:[#allocation24_spill] sm:$0xff] }
 0x324   :  { %v2165_v54 = vadd.f32 %v9802_v37, %v2095_v62  ;;  %v15099_v27 = vmax.f32 %v15098_v52, 0.0  ;;  %7332 = vmatmul.msk.f32.gmra.mxu1 %vm220_vm1, %v15100_v59  ;;  %4556 = vmatpush.msrb.mxu0 %v7438_v48  ;;  %v15101_v1 = vld [vmem:[#allocation11_spill] sm:$0xff]  ;;  %v2110_v55 = vadd.f32 %v1923_v63, %v1667_v11  ;;  %v14494_v42 = vmax.f32 %v10333_v61, 0.0  ;;  %v7344_v11 = vld [vmem:[%s14443_s3 + $0x100] sm:$0xff]  ;;  %v7434_v52 = vld [vmem:[%s14443_s3 + $0x1b0] sm:$0xff] }
 0x325   :  { %15097 = vst [vmem:[#allocation53_spill] sm:$0xff] %v10366_v53  ;;  %v10383_v40 = vadd.f32 %v15101_v1, %v10232_v39  ;;  %4621 = vmatpush.msra.mxu1 %v7439_v25  ;;  %3984 = vmatpush.msrb.mxu2 %v7346_v5  ;;  %v7437_v35 = vld [vmem:[%s14443_s3 + $0x1c8] sm:$0xff]  ;;  %v10406_v33 = vadd.f32 %v15104_v34, %v10256_v2  ;;  %v15108_v59 = vld [vmem:[#allocation124_spill] sm:$0xff]  ;;  %v7343_v1 = vld [vmem:[%s14443_s3 + $0xf8] sm:$0xff] }
 0x326   :  { %v2523_v24 = vmax.f32 %v15099_v27, %v2459_v6  ;;  %15103 = vst [vmem:[#allocation14_spill] sm:$0xff] %v10386_v56  ;;  %4049 = vmatpush.msra.mxu3 %v7347_v46  ;;  %4557 = vmatpush.msrb.mxu0 %v7436_v58  ;;  %v7345_v63 = vld [vmem:[%s14443_s3 + $0x108] sm:$0xff]  ;;  %v15105_v6 = vld [vmem:[#allocation13_spill] sm:$0xff]  ;;  %v2229_v9 = vmax.f32 %v2165_v54, 0.0  ;;  %v7342_v54 = vld [vmem:[%s14443_s3 + $0xf0] sm:$0xff] }
 0x327   :  { %v10409_v48 = vadd.f32 %v15105_v6, %v1237_v3  ;;  %4622 = vmatpush.msra.mxu1 %v7437_v35  ;;  %3985 = vmatpush.msrb.mxu2 %v7344_v11  ;;  %v7435_v27 = vld [vmem:[%s14443_s3 + $0x1b8] sm:$0xff]  ;;  %v7432_v11 = vld [vmem:[%s14443_s3 + $0x1a0] sm:$0xff] }
 0x328   :  { %v2591_v39 = vrot.slane %v2523_v24, 2  ;;  %v2592_v62 = vrot.slane %v2523_v24, 4  ;;  %v2593_v47 = vrot.slane %v2523_v24, 6  ;;  %v2830_v23 = vsel %vm2773_vm6, %v2523_v24, -inf  ;;  %v15107_v24 = vld [vmem:[#allocation32_spill] sm:$0xff]  ;;  %2412 = vrot.lane.b32.xlu0 %v14494_v42, %s7738_s14  ;;  %4050 = vmatpush.msra.mxu3 %v7345_v63  ;;  %v15109_v63 = vld [vmem:[#allocation27_spill] sm:$0xff] }
 0x329   :  { %15106 = vst [vmem:[#allocation17_spill] sm:$0xff] %v10409_v48  ;;  %v2831_v25 = vrot.slane %v2830_v23, 4  ;;  %v1239_v5 = vadd.f32 %v15108_v59, %v15107_v24  ;;  %2386 = vrot.lane.b32.xlu2 %v2229_v9, %s7738_s14  ;;  %4558 = vmatpush.msrb.mxu0 %v7434_v52  ;;  %v15110_v34 = vld [vmem:[#allocation126_spill] sm:$0xff]  ;;  %v10440_v24 = vadd.f32 %v9622_v43, %v2110_v55  ;;  %v10443_v59 = vpop.permute.xlu1 %2360  ;;  %v7433_v9 = vld [vmem:[%s14443_s3 + $0x1a8] sm:$0xff]  ;;  %v15114_v12 = vld [vmem:[#allocation133_spill] sm:$0xff] }
 0x32a   :  { %v2837_v2 = vsel %vm2773_vm6, %v2591_v39, -inf  ;;  %v2844_v3 = vsel %vm2773_vm6, %v2592_v62, -inf  ;;  %v2851_v46 = vsel %vm2773_vm6, %v2593_v47, -inf  ;;  %v1926_v62 = vpop.f32.mrf.mxu0  ;;  %v2015_v47 = vpop.f32.mrf.mxu1  ;;  %v1241_v6 = vadd.f32 %v15110_v34, %v15109_v63  ;;  %4623 = vmatpush.msra.mxu1 %v7435_v27  ;;  %3986 = vmatpush.msrb.mxu2 %v7342_v54  ;;  %v7340_v52 = vld [vmem:[%s14443_s3 + $0xe0] sm:$0xff]  ;;  %v7341_v55 = vld [vmem:[%s14443_s3 + $0xe8] sm:$0xff]  ;;  %v15112_v27 = vld [vmem:[#allocation100_spill] sm:$0xff] }
 0x32b   :  { %v10431_v4 = vmax.f32 %v2830_v23, %v2831_v25  ;;  %v2838_v58 = vrot.slane %v2837_v2, 4  ;;  %v2845_v35 = vrot.slane %v2844_v3, 4  ;;  %v2852_v39 = vrot.slane %v2851_v46, 4  ;;  %15111 = vst [vmem:[#allocation108_spill] sm:$0xff] %v10440_v24  ;;  %v2331_v25 = vpop.permute.xlu0 %2330  ;;  %4051 = vmatpush.msra.mxu3 %v7343_v1  ;;  %4559 = vmatpush.msrb.mxu0 %v7432_v11  ;;  %v15113_v42 = vld [vmem:[#allocation50_spill] sm:$0xff]  ;;  %v15117_v1 = vld [vmem:[#allocation128_spill] sm:$0xff]  ;;  %v1620_v11 = vpop.f32.mrf.mxu3 }
 0x32c   :  { %v2097_v23 = vadd.f32 %v2015_v47, %v10205_v51  ;;  %v2112_v47 = vadd.f32 %v1926_v62, %v10325_v31  ;;  %v10461_v54 = vadd.f32 %v15112_v27, %v10271_v36  ;;  %v2457_v17 = vsel %vm2456_vm5, %v15113_v42, %v2331_v25  ;;  %7333 = vmatmul.msk.f32.gmra.mxu1 %vm220_vm1, %v15114_v12  ;;  %v7431_v31 = vld [vmem:[%s14443_s3 + $0x198] sm:$0xff]  ;;  %v7338_v12 = vld [vmem:[%s14443_s3 + $0xd0] sm:$0xff]  ;;  %v1507_v27 = vpop.f32.mrf.mxu2 }
 0x32d   :  { %v10454_v63 = vmax.f32 %v2837_v2, %v2838_v58  ;;  %v10456_v51 = vmax.f32 %v2844_v3, %v2845_v35  ;;  %3987 = vmatpush.msrb.mxu2 %v7340_v52  ;;  %v7430_v2 = vld [vmem:[%s14443_s3 + $0x190] sm:$0xff]  ;;  %v10475_v36 = vadd.f32 %v10219_v30, %v1239_v5  ;;  %v15116_v3 = vld [vmem:[#allocation105_spill] sm:$0xff]  ;;  %v2833_v42 = vrot.slane %v10431_v4, 2  ;;  %4624 = vmatpush.msra.mxu1 %v7433_v9  ;;  %v7428_v9 = vld [vmem:[%s14443_s3 + $0x180] sm:$0xff] }
 0x32e   :  { %v2167_v34 = vadd.f32 %v9802_v37, %v2097_v23  ;;  %v1243_v58 = vadd.f32 %v15117_v1, %v15116_v3  ;;  %v10480_v35 = vmax.f32 %v2851_v46, %v2852_v39  ;;  %4052 = vmatpush.msra.mxu3 %v7341_v55  ;;  %v7339_v62 = vld [vmem:[%s14443_s3 + $0xd8] sm:$0xff]  ;;  %v10490_v30 = vadd.f32 %v10275_v18, %v10285_v20  ;;  %v7429_v52 = vld [vmem:[%s14443_s3 + $0x188] sm:$0xff] }
 0x32f   :  { %15115 = vst [vmem:[#allocation36_spill] sm:$0xff] %v10475_v36  ;;  %v10493_v5 = vadd.f32 %v10368_v15, %v1241_v6  ;;  %v15119_v46 = vld [vmem:[#allocation113_spill] sm:$0xff]  ;;  %4560 = vmatpush.msrb.mxu0 %v7430_v2  ;;  %3988 = vmatpush.msrb.mxu2 %v7338_v12  ;;  %v2840_v18 = vrot.slane %v10454_v63, 2  ;;  %v2847_v20 = vrot.slane %v10456_v51, 2  ;;  %v10506_v15 = vadd.f32 %v9622_v43, %v2112_v47  ;;  %v7336_v6 = vld [vmem:[%s14443_s3 + $0xc0] sm:$0xff]  ;;  %v7337_v55 = vld [vmem:[%s14443_s3 + $0xc8] sm:$0xff] }
 0x330   :  { %v15120_v39 = vmax.f32 %v15119_v46, 0.0  ;;  %v2231_v25 = vmax.f32 %v2167_v34, 0.0  ;;  %4625 = vmatpush.msra.mxu1 %v7431_v31  ;;  %4053 = vmatpush.msra.mxu3 %v7339_v62  ;;  %v7426_v47 = vld [vmem:[%s14443_s3 + $0x170] sm:$0xff]  ;;  %v7427_v31 = vld [vmem:[%s14443_s3 + $0x178] sm:$0xff]  ;;  %v10525_v12 = vadd.f32 %v10395_v16, %v10303_v7  ;;  %v10527_v62 = vadd.f32 %v1620_v11, %v1243_v58 }
 0x331   :  { %15118 = vst [vmem:[#allocation33_spill] sm:$0xff] %v10493_v5  ;;  %4561 = vmatpush.msrb.mxu0 %v7428_v9  ;;  %v10530_v46 = vmax.f32 %v10431_v4, %v2833_v42  ;;  %v7334_v7 = vld [vmem:[%s14443_s3 + $0xb0] sm:$0xff]  ;;  %v7335_v16 = vld [vmem:[%s14443_s3 + $0xb8] sm:$0xff]  ;;  %v2335_v9 = vpop.permute.xlu1 %2334  ;;  %3989 = vmatpush.msrb.mxu2 %v7336_v6  ;;  %vm6245_vm1 = vcmask 654336  }
 0x332   :  { %v2521_v23 = vmax.f32 %v15120_v39, %v2457_v17  ;;  %15121 = vst [vmem:[#allocation38_spill] sm:$0xff] %v10506_v15  ;;  %v14497_v17 = vmax.f32 %v10440_v24, 0.0  ;;  %2390 = vrot.lane.b32.xlu1 %v2231_v25, %s7738_s14  ;;  %v2854_v39 = vrot.slane %v10480_v35, 2  ;;  %v2018_v25 = vpop.f32.mrf.mxu1  ;;  %4626 = vmatpush.msra.mxu1 %v7429_v52  ;;  %v10548_v52 = vadd.f32 %v1507_v27, %v10311_v26 }
 0x333   :  { %15122 = vst [vmem:[#allocation35_spill] sm:$0xff] %v10527_v62  ;;  %4054 = vmatpush.msra.mxu3 %v7337_v55  ;;  %v10554_v24 = vmax.f32 %v10456_v51, %v2847_v20  ;;  %4562 = vmatpush.msrb.mxu0 %v7426_v47  ;;  %v2835_v6 = vrot.slane %v10530_v46, 1  ;;  %v2099_v55 = vadd.f32 %v2018_v25, %v10213_v57 }
 0x334   :  { %v2585_v34 = vrot.slane %v2521_v23, 2  ;;  %v2586_v2 = vrot.slane %v2521_v23, 4  ;;  %v2587_v3 = vrot.slane %v2521_v23, 6  ;;  %v2774_v1 = vsel %vm2773_vm6, %v2521_v23, -inf  ;;  %2416 = vrot.lane.b32.xlu2 %v14497_v17, %s7738_s14  ;;  %v10536_v23 = vpop.f32.mrf.mxu0  ;;  %4627 = vmatpush.msra.mxu1 %v7427_v31 }
 0x335   :  { %v2775_v4 = vrot.slane %v2774_v1, 4  ;;  %v10551_v17 = vmax.f32 %v10454_v63, %v2840_v18  ;;  %3990 = vmatpush.msrb.mxu2 %v7334_v7  ;;  %4055 = vmatpush.msra.mxu3 %v7335_v16  ;;  %v2458_v63 = vsel %vm2456_vm5, %v10221_v14, %v2335_v9  ;;  %v10562_v51 = vmax.f32 %v10480_v35, %v2854_v39 }
 0x336   :  { %v2781_v58 = vsel %vm2773_vm6, %v2585_v34, -inf  ;;  %v2788_v42 = vsel %vm2773_vm6, %v2586_v2, -inf  ;;  %v2795_v11 = vsel %vm2773_vm6, %v2587_v3, -inf  ;;  %v14502_v3 = vmax.f32 %v10506_v15, 0.0 }
 0x337   :  { %v2782_v61 = vrot.slane %v2781_v58, 4  ;;  %v2776_v34 = vmax.f32 %v2774_v1, %v2775_v4  ;;  %v2789_v0 = vrot.slane %v2788_v42, 4  ;;  %v2796_v2 = vrot.slane %v2795_v11, 4  ;;  %v10564_v1 = vpop.permute.xlu2 %2368 }
 0x338   :  { %v2842_v47 = vrot.slane %v10551_v17, 1  ;;  %v2849_v31 = vrot.slane %v10554_v24, 1  ;;  %v2169_v35 = vadd.f32 %v9802_v37, %v2099_v55  ;;  %v10594_v53 = vmax.f32 %v10530_v46, %v2835_v6 }
 0x339   :  { %v2783_v26 = vmax.f32 %v2781_v58, %v2782_v61  ;;  %v2777_v18 = vrot.slane %v2776_v34, 2  ;;  %v2790_v20 = vmax.f32 %v2788_v42, %v2789_v0  ;;  %v2797_v27 = vmax.f32 %v2795_v11, %v2796_v2  ;;  %v15123_v61 = vld [vmem:[#allocation116_spill] sm:$0xff] }
 0x33a   :  { %v15124_v16 = vmax.f32 %v15123_v61, 0.0  ;;  %2420 = vrot.lane.b32.xlu1 %v14502_v3, %s7738_s14  ;;  %v2021_v9 = vpop.f32.mrf.mxu1  ;;  %15127 = vst [vmem:[#allocation40_spill] sm:$0xff] %v10594_v53 }
 0x33b   :  { %v2784_v7 = vrot.slane %v2783_v26, 2  ;;  %v2778_v25 = vmax.f32 %v2776_v34, %v2777_v18  ;;  %v2791_v4 = vrot.slane %v2790_v20, 2  ;;  %v2798_v14 = vrot.slane %v2797_v27, 2 }
 0x33c   :  { %v2522_v57 = vmax.f32 %v15124_v16, %v2458_v63  ;;  %v1932_v11 = vpop.f32.mrf.mxu0  ;;  %v2856_v16 = vrot.slane %v10562_v51, 1  ;;  %v2101_v56 = vadd.f32 %v2021_v9, %v10228_v29  ;;  %v15132_v9 = vld [vmem:[#allocation125_spill] sm:$0xff] }
 0x33d   :  { %v2785_v0 = vmax.f32 %v2783_v26, %v2784_v7  ;;  %v2779_v2 = vrot.slane %v2778_v25, 1  ;;  %v2792_v8 = vmax.f32 %v2790_v20, %v2791_v4  ;;  %v2799_v62 = vmax.f32 %v2797_v27, %v2798_v14  ;;  %v7424_v20 = vld [vmem:[%s14443_s3 + $0x160] sm:$0xff]  ;;  %v7425_v27 = vld [vmem:[%s14443_s3 + $0x168] sm:$0xff] }
 0x33e   :  { %v2588_v39 = vrot.slane %v2522_v57, 2  ;;  %v2589_v58 = vrot.slane %v2522_v57, 4  ;;  %v2590_v42 = vrot.slane %v2522_v57, 6  ;;  %v2802_v63 = vsel %vm2773_vm6, %v2522_v57, -inf  ;;  %4563 = vmatpush.msrb.mxu0 %v7424_v20  ;;  %4628 = vmatpush.msra.mxu1 %v7425_v27 }
 0x33f   :  { %v2786_v34 = vrot.slane %v2785_v0, 1  ;;  %v2803_v18 = vrot.slane %v2802_v63, 4  ;;  %v2780_v3 = vmax.f32 %v2778_v25, %v2779_v2  ;;  %v2793_v26 = vrot.slane %v2792_v8, 1 }
 0x340   :  { %v2809_v61 = vsel %vm2773_vm6, %v2588_v39, -inf  ;;  %v2816_v55 = vsel %vm2773_vm6, %v2589_v58, -inf  ;;  %v2823_v48 = vsel %vm2773_vm6, %v2590_v42, -inf  ;;  %v2800_v57 = vrot.slane %v2799_v62, 1  ;;  %v2351_v39 = vpop.permute.xlu2 %2350 }
 0x341   :  { %v2810_v7 = vrot.slane %v2809_v61, 4  ;;  %v2787_v15 = vmax.f32 %v2785_v0, %v2786_v34  ;;  %v2804_v5 = vmax.f32 %v2802_v63, %v2803_v18  ;;  %v2817_v36 = vrot.slane %v2816_v55, 4 }
 0x342   :  { %v2114_v4 = vadd.f32 %v10536_v23, %v10343_v60  ;;  %v2824_v14 = vrot.slane %v2823_v48, 4  ;;  %v2233_v2 = vmax.f32 %v2169_v35, 0.0  ;;  %v10590_v63 = vmax.f32 %v2792_v8, %v2793_v26  ;;  %v2024_v46 = vpop.f32.mrf.mxu1 }
 0x343   :  { %v2811_v25 = vmax.f32 %v2809_v61, %v2810_v7  ;;  %v10588_v0 = vsel %vm3823_vm7, %v2787_v15, %v2780_v3  ;;  %v2805_v58 = vrot.slane %v2804_v5, 2  ;;  %v2818_v42 = vmax.f32 %v2816_v55, %v2817_v36 }
 0x344   :  { %15125 = vst [vmem:[#allocation56_spill] sm:$0xff] %v10588_v0  ;;  %v2825_v18 = vmax.f32 %v2823_v48, %v2824_v14  ;;  %v10597_v60 = vmax.f32 %v10551_v17, %v2842_v47  ;;  %2394 = vrot.lane.b32.xlu0 %v2233_v2, %s7738_s14  ;;  %v2462_v3 = vsel %vm2456_vm5, %v10318_v49, %v2351_v39  ;;  %v1935_v36 = vpop.f32.mrf.mxu0  ;;  %v15133_v61 = vmax.f32 %v15132_v9, 0.0  ;;  %v15136_v9 = vld [vmem:[#allocation121_spill] sm:$0xff] }
 0x345   :  { %15126 = vst [vmem:[#allocation16_spill] sm:$0xff] %v10590_v63  ;;  %v2812_v34 = vrot.slane %v2811_v25, 2  ;;  %v2819_v23 = vrot.slane %v2818_v42, 2  ;;  %v10603_v8 = vmax.f32 %v10554_v24, %v2849_v31  ;;  %v2116_v48 = vadd.f32 %v1932_v11, %v10353_v38 }
 0x346   :  { %15128 = vst [vmem:[#allocation37_spill] sm:$0xff] %v10597_v60  ;;  %v2826_v35 = vrot.slane %v2825_v18, 2  ;;  %v2171_v29 = vadd.f32 %v9802_v37, %v2101_v56  ;;  %v10608_v6 = vmax.f32 %v10562_v51, %v2856_v16  ;;  %v10611_v17 = vadd.f32 %v9622_v43, %v2114_v4  ;;  %v2343_v4 = vpop.permute.xlu1 %2342 }
 0x347   :  { %15129 = vst [vmem:[#allocation42_spill] sm:$0xff] %v10603_v8  ;;  %v2806_v47 = vmax.f32 %v2804_v5, %v2805_v58  ;;  %v2526_v49 = vmax.f32 %v15133_v61, %v2462_v3  ;;  %v10615_v55 = vmax.f32 %v2799_v62, %v2800_v57  ;;  %v2813_v24 = vmax.f32 %v2811_v25, %v2812_v34 }
 0x348   :  { %15130 = vst [vmem:[#allocation39_spill] sm:$0xff] %v10608_v6  ;;  %v2235_v31 = vmax.f32 %v2171_v29, 0.0  ;;  %v10619_v38 = vsel %vm3823_vm7, %v10590_v63, %v2787_v15  ;;  %v2820_v56 = vmax.f32 %v2818_v42, %v2819_v23  ;;  %v2103_v51 = vadd.f32 %v2024_v46, %v10235_v21 }
 0x349   :  { %15131 = vst [vmem:[#allocation45_spill] sm:$0xff] %v10611_v17  ;;  %v2600_v11 = vrot.slane %v2526_v49, 2  ;;  %v2601_v26 = vrot.slane %v2526_v49, 4  ;;  %v2827_v16 = vmax.f32 %v2825_v18, %v2826_v35  ;;  %v10623_v7 = vadd.f32 %v9622_v43, %v2116_v48 }
 0x34a   :  { %15134 = vst [vmem:[#allocation41_spill] sm:$0xff] %v10615_v55  ;;  %v2602_v5 = vrot.slane %v2526_v49, 6  ;;  %v2914_v20 = vsel %vm2773_vm6, %v2526_v49, -inf  ;;  %2398 = vrot.lane.b32.xlu2 %v2235_v31, %s7738_s14  ;;  %v2807_v62 = vrot.slane %v2806_v47, 1  ;;  %v2814_v25 = vrot.slane %v2813_v24, 1 }
 0x34b   :  { %15135 = vst [vmem:[#allocation48_spill] sm:$0xff] %v10623_v7  ;;  %v2915_v27 = vrot.slane %v2914_v20, 4  ;;  %v2921_v57 = vsel %vm2773_vm6, %v2600_v11, -inf  ;;  %v2928_v15 = vsel %vm2773_vm6, %v2601_v26, -inf  ;;  %v2821_v58 = vrot.slane %v2820_v56, 1 }
 0x34c   :  { %v2922_v14 = vrot.slane %v2921_v57, 4  ;;  %v2929_v39 = vrot.slane %v2928_v15, 4  ;;  %v2935_v21 = vsel %vm2773_vm6, %v2602_v5, -inf  ;;  %v2173_v34 = vadd.f32 %v9802_v37, %v2103_v51  ;;  %v1938_v48 = vpop.f32.mrf.mxu0 }
 0x34d   :  { %v2916_v42 = vmax.f32 %v2914_v20, %v2915_v27  ;;  %v2936_v2 = vrot.slane %v2935_v21, 4  ;;  %v2828_v18 = vrot.slane %v2827_v16, 1  ;;  %v2460_v35 = vsel %vm2456_vm5, %v10246_v32, %v2343_v4 }
 0x34e   :  { %v2923_v23 = vmax.f32 %v2921_v57, %v2922_v14  ;;  %v2930_v3 = vmax.f32 %v2928_v15, %v2929_v39  ;;  %v15137_v61 = vmax.f32 %v15136_v9, 0.0  ;;  %v2237_v31 = vmax.f32 %v2173_v34, 0.0  ;;  %v2027_v39 = vpop.f32.mrf.mxu1 }
 0x34f   :  { %v2917_v29 = vrot.slane %v2916_v42, 2  ;;  %v2937_v46 = vmax.f32 %v2935_v21, %v2936_v2  ;;  %v10635_v11 = vmax.f32 %v2806_v47, %v2807_v62  ;;  %v10637_v26 = vmax.f32 %v2813_v24, %v2814_v25  ;;  %v10647_v62 = vpop.permute.xlu0 %2364 }
 0x350   :  { %v2524_v49 = vmax.f32 %v15137_v61, %v2460_v35  ;;  %v2924_v5 = vrot.slane %v2923_v23, 2  ;;  %v2118_v51 = vadd.f32 %v1935_v36, %v10383_v40  ;;  %v2931_v20 = vrot.slane %v2930_v3, 2  ;;  %2402 = vrot.lane.b32.xlu1 %v2237_v31, %s7738_s14  ;;  %v10659_v31 = vpop.permute.xlu2 %2380 }
 0x351   :  { %15138 = vst [vmem:[#allocation43_spill] sm:$0xff] %v10635_v11  ;;  %v2120_v32 = vadd.f32 %v1938_v48, %v10406_v33  ;;  %v10642_v15 = vmax.f32 %v2820_v56, %v2821_v58  ;;  %v2918_v4 = vmax.f32 %v2916_v42, %v2917_v29  ;;  %v10645_v24 = vmax.f32 %v2827_v16, %v2828_v18 }
 0x352   :  { %15139 = vst [vmem:[#allocation51_spill] sm:$0xff] %v10637_v26  ;;  %v2594_v27 = vrot.slane %v2524_v49, 2  ;;  %v2595_v57 = vrot.slane %v2524_v49, 4  ;;  %v2596_v14 = vrot.slane %v2524_v49, 6  ;;  %v2858_v47 = vsel %vm2773_vm6, %v2524_v49, -inf }
 0x353   :  { %15140 = vst [vmem:[#allocation46_spill] sm:$0xff] %v10642_v15  ;;  %v2938_v40 = vrot.slane %v2937_v46, 2  ;;  %v2859_v36 = vrot.slane %v2858_v47, 4  ;;  %v2925_v21 = vmax.f32 %v2923_v23, %v2924_v5  ;;  %v10651_v2 = vadd.f32 %v9622_v43, %v2118_v51 }
 0x354   :  { %15141 = vst [vmem:[#allocation19_spill] sm:$0xff] %v10645_v24  ;;  %v2865_v25 = vsel %vm2773_vm6, %v2594_v27, -inf  ;;  %v2872_v56 = vsel %vm2773_vm6, %v2595_v57, -inf  ;;  %v2932_v58 = vmax.f32 %v2930_v3, %v2931_v20  ;;  %v10655_v16 = vadd.f32 %v9622_v43, %v2120_v32 }
 0x355   :  { %v2866_v33 = vrot.slane %v2865_v25, 4  ;;  %v2860_v42 = vmax.f32 %v2858_v47, %v2859_v36  ;;  %v2873_v34 = vrot.slane %v2872_v56, 4  ;;  %v2919_v18 = vrot.slane %v2918_v4, 1 }
 0x356   :  { %v2879_v48 = vsel %vm2773_vm6, %v2596_v14, -inf  ;;  %v2105_v29 = vadd.f32 %v2027_v39, %v10259_v28  ;;  %v2939_v9 = vmax.f32 %v2937_v46, %v2938_v40  ;;  %v2926_v5 = vrot.slane %v2925_v21, 1 }
 0x357   :  { %v2867_v35 = vmax.f32 %v2865_v25, %v2866_v33  ;;  %v2861_v23 = vrot.slane %v2860_v42, 2  ;;  %v2874_v61 = vmax.f32 %v2872_v56, %v2873_v34  ;;  %v2880_v49 = vrot.slane %v2879_v48, 4  ;;  %v2347_v36 = vpop.permute.xlu0 %2346 }
 0x358   :  { %v3826_v3 = vsel %vm3825_vm8, %v10615_v55, %v10619_v38  ;;  %v2933_v20 = vrot.slane %v2932_v58, 1  ;;  %v2175_v28 = vadd.f32 %v9802_v37, %v2105_v29  ;;  %v10669_v14 = vmax.f32 %v2918_v4, %v2919_v18  ;;  %v2030_v18 = vpop.f32.mrf.mxu1 }
 0x359   :  { %v2868_v51 = vrot.slane %v2867_v35, 2  ;;  %v2862_v27 = vmax.f32 %v2860_v42, %v2861_v23  ;;  %v2875_v57 = vrot.slane %v2874_v61, 2  ;;  %v3828_v32 = vsel %vm3827_vm9, %v10635_v11, %v3826_v3 }
 0x35a   :  { %v3830_v46 = vsel %vm3829_vm10, %v10637_v26, %v3828_v32  ;;  %15142 = vst [vmem:[#allocation54_spill] sm:$0xff] %v10669_v14  ;;  %v2940_v47 = vrot.slane %v2939_v9, 1  ;;  %v2881_v40 = vmax.f32 %v2879_v48, %v2880_v49  ;;  %v10677_v56 = vmax.f32 %v2925_v21, %v2926_v5 }
 0x35b   :  { %v3832_v38 = vsel %vm3831_vm11, %v10642_v15, %v3830_v46  ;;  %v2863_v25 = vrot.slane %v2862_v27, 1  ;;  %v10673_v39 = vmax.f32 %v2867_v35, %v2868_v51  ;;  %v10679_v42 = vmax.f32 %v2874_v61, %v2875_v57  ;;  %v15145_v35 = vld [vmem:[#allocation8_spill] sm:$0xff]  ;;  %v15147_v51 = vld [vmem:[#allocation123_spill] sm:$0xff] }
 0x35c   :  { %v3834_v33 = vsel %vm3833_vm12, %v10645_v24, %v3832_v38  ;;  %15143 = vst [vmem:[#allocation49_spill] sm:$0xff] %v10677_v56  ;;  %v4404_v34 = vsel %vm3823_vm7, %v10615_v55, %v10590_v63  ;;  %v10686_v48 = vmax.f32 %v2932_v58, %v2933_v20  ;;  %v2461_v29 = vsel %vm2456_vm5, %v15145_v35, %v2347_v36  ;;  %v2363_v20 = vpop.permute.xlu2 %2362 }
 0x35d   :  { %v3836_v4 = vsel %vm3835_vm13, %v10594_v53, %v3834_v33  ;;  %v4405_v21 = vsel %vm3825_vm8, %v10635_v11, %v4404_v34  ;;  %v2239_v23 = vmax.f32 %v2175_v28, 0.0  ;;  %v10694_v61 = vmax.f32 %v2939_v9, %v2940_v47 }
 0x35e   :  { %15144 = vst [vmem:[#allocation57_spill] sm:$0xff] %v10686_v48  ;;  %7357 = vmatmul.msk.f32.vlgmr.msrb.gmra.mxu2 %vm3936_vm14, %v3836_v4  ;;  %7374 = vmatmul.msk.f32.vlgmr.msra.gmra.mxu3 %vm3936_vm14, %v3836_v4  ;;  %v2882_v49 = vrot.slane %v2881_v40, 2  ;;  %v4406_v5 = vsel %vm3827_vm9, %v10637_v26, %v4405_v21  ;;  %v15148_v58 = vmax.f32 %v15147_v51, 0.0  ;;  %v10700_v57 = vmax.f32 %v2862_v27, %v2863_v25  ;;  %v1941_v4 = vpop.f32.mrf.mxu0 }
 0x35f   :  { %15146 = vst [vmem:[#allocation52_spill] sm:$0xff] %v10694_v61  ;;  %v2870_v32 = vrot.slane %v10673_v39, 1  ;;  %v4407_v46 = vsel %vm3829_vm10, %v10642_v15, %v4406_v5  ;;  %2406 = vrot.lane.b32.xlu0 %v2239_v23, %s7738_s14  ;;  %v2107_v9 = vadd.f32 %v2030_v18, %v10281_v50  ;;  %v2877_v28 = vrot.slane %v10679_v42, 1 }
 0x360   :  { %v2525_v3 = vmax.f32 %v15148_v58, %v2461_v29  ;;  %15149 = vst [vmem:[#allocation60_spill] sm:$0xff] %v10700_v57  ;;  %v4408_v47 = vsel %vm3831_vm11, %v10645_v24, %v4407_v46  ;;  %v2465_v34 = vsel %vm2456_vm5, %v10443_v59, %v2363_v20  ;;  %v2883_v58 = vmax.f32 %v2881_v40, %v2882_v49  ;;  %v10723_v20 = vpop.permute.xlu1 %2372  ;;  %v15150_v46 = vld [vmem:[#allocation28_spill] sm:$0xff] }
 0x361   :  { %v4409_v27 = vsel %vm3833_vm12, %v10594_v53, %v4408_v47  ;;  %v2177_v51 = vadd.f32 %v9802_v37, %v2107_v9  ;;  %v15151_v47 = vmax.f32 %v15150_v46, 0.0  ;;  %v14513_v24 = vmax.f32 %v10611_v17, 0.0 }
 0x362   :  { %v2597_v38 = vrot.slane %v2525_v3, 2  ;;  %v2598_v36 = vrot.slane %v2525_v3, 4  ;;  %v2599_v25 = vrot.slane %v2525_v3, 6  ;;  %v2886_v33 = vsel %vm2773_vm6, %v2525_v3, -inf }
 0x363   :  { %v4410_v50 = vsel %vm3835_vm13, %v10597_v60, %v4409_v27  ;;  %v2887_v18 = vrot.slane %v2886_v33, 4  ;;  %v2241_v53 = vmax.f32 %v2177_v51, 0.0  ;;  %v2122_v51 = vadd.f32 %v1941_v4, %v10461_v54 }
 0x364   :  { %v2893_v21 = vsel %vm2773_vm6, %v2597_v38, -inf  ;;  %v2900_v35 = vsel %vm2773_vm6, %v2598_v36, -inf  ;;  %7447 = vmatmul.msk.f32.vlgmr.msrb.gmra.mxu0 %vm3936_vm14, %v4410_v50  ;;  %7464 = vmatmul.msk.f32.vlgmr.msra.gmra.mxu1 %vm3936_vm14, %v4410_v50  ;;  %v2907_v5 = vsel %vm2773_vm6, %v2599_v25, -inf  ;;  %v2529_v38 = vmax.f32 %v15151_v47, %v2465_v34 }
 0x365   :  { %v2894_v29 = vrot.slane %v2893_v21, 4  ;;  %v2901_v23 = vrot.slane %v2900_v35, 4  ;;  %v2888_v59 = vmax.f32 %v2886_v33, %v2887_v18  ;;  %v2908_v3 = vrot.slane %v2907_v5, 4  ;;  %2410 = vrot.lane.b32.xlu2 %v2241_v53, %s7738_s14 }
 0x366   :  { %v2609_v15 = vrot.slane %v2529_v38, 2  ;;  %v2610_v63 = vrot.slane %v2529_v38, 4  ;;  %v2611_v9 = vrot.slane %v2529_v38, 6  ;;  %v2998_v40 = vsel %vm2773_vm6, %v2529_v38, -inf }
 0x367   :  { %v2895_v27 = vmax.f32 %v2893_v21, %v2894_v29  ;;  %v2902_v36 = vmax.f32 %v2900_v35, %v2901_v23  ;;  %v2889_v50 = vrot.slane %v2888_v59, 2  ;;  %v2909_v55 = vmax.f32 %v2907_v5, %v2908_v3  ;;  %2424 = vrot.lane.b32.xlu0 %v14513_v24, %s7738_s14 }
 0x368   :  { %v2999_v34 = vrot.slane %v2998_v40, 4  ;;  %v3005_v18 = vsel %vm2773_vm6, %v2609_v15, -inf  ;;  %v2884_v21 = vrot.slane %v2883_v58, 1  ;;  %v3012_v23 = vsel %vm2773_vm6, %v2610_v63, -inf  ;;  %v1944_v15 = vpop.f32.mrf.mxu0 }
 0x369   :  { %v2896_v25 = vrot.slane %v2895_v27, 2  ;;  %v2903_v0 = vrot.slane %v2902_v36, 2  ;;  %v2890_v49 = vmax.f32 %v2888_v59, %v2889_v50  ;;  %v2910_v33 = vrot.slane %v2909_v55, 2  ;;  %v2033_v50 = vpop.f32.mrf.mxu1 }
 0x36a   :  { %v3006_v29 = vrot.slane %v3005_v18, 4  ;;  %v10736_v5 = vmax.f32 %v10673_v39, %v2870_v32  ;;  %v3000_v53 = vmax.f32 %v2998_v40, %v2999_v34  ;;  %v3013_v3 = vrot.slane %v3012_v23, 4  ;;  %v2355_v39 = vpop.permute.xlu1 %2354 }
 0x36b   :  { %v2904_v35 = vmax.f32 %v2902_v36, %v2903_v0  ;;  %v10740_v46 = vmax.f32 %v10679_v42, %v2877_v28  ;;  %v2897_v59 = vmax.f32 %v2895_v27, %v2896_v25  ;;  %v3019_v38 = vsel %vm2773_vm6, %v2611_v9, -inf }
 0x36c   :  { %15152 = vst [vmem:[#allocation55_spill] sm:$0xff] %v10736_v5  ;;  %v3007_v47 = vmax.f32 %v3005_v18, %v3006_v29  ;;  %v2891_v0 = vrot.slane %v2890_v49, 1  ;;  %v10743_v36 = vmax.f32 %v2909_v55, %v2910_v33  ;;  %v3001_v63 = vrot.slane %v3000_v53, 2  ;;  %v15156_v29 = vld [vmem:[#allocation127_spill] sm:$0xff] }
 0x36d   :  { %15153 = vst [vmem:[#allocation63_spill] sm:$0xff] %v10740_v46  ;;  %v3014_v24 = vmax.f32 %v3012_v23, %v3013_v3  ;;  %v10745_v32 = vmax.f32 %v2883_v58, %v2884_v21  ;;  %v2905_v54 = vrot.slane %v2904_v35, 1  ;;  %v3020_v40 = vrot.slane %v3019_v38, 4 }
 0x36e   :  { %v3008_v4 = vrot.slane %v3007_v47, 2  ;;  %v10748_v42 = vadd.f32 %v9622_v43, %v2122_v51  ;;  %v10750_v28 = vmax.f32 %v3000_v53, %v3001_v63  ;;  %v2124_v25 = vadd.f32 %v1944_v15, %v10490_v30 }
 0x36f   :  { %15154 = vst [vmem:[#allocation58_spill] sm:$0xff] %v10745_v32  ;;  %v3015_v27 = vrot.slane %v3014_v24, 2  ;;  %v3021_v9 = vmax.f32 %v3019_v38, %v3020_v40  ;;  %v2109_v55 = vadd.f32 %v2033_v50, %v10290_v19  ;;  %v2463_v33 = vsel %vm2456_vm5, %v10348_v45, %v2355_v39  ;;  %v10771_v50 = vpop.permute.xlu0 %2376 }
 0x370   :  { %v3837_v58 = vsel %vm3823_vm7, %v10603_v8, %v10597_v60  ;;  %v10759_v34 = vmax.f32 %v2890_v49, %v2891_v0  ;;  %v2898_v18 = vrot.slane %v2897_v59, 1  ;;  %v2912_v21 = vrot.slane %v10743_v36, 1 }
 0x371   :  { %v15157_v23 = vmax.f32 %v15156_v29, 0.0  ;;  %v10764_v53 = vmax.f32 %v2904_v35, %v2905_v54  ;;  %v3003_v30 = vrot.slane %v10750_v28, 1  ;;  %v10767_v19 = vmax.f32 %v3007_v47, %v3008_v4  ;;  %v10779_v4 = vpop.permute.xlu2 %2392  ;;  %v1947_v29 = vpop.f32.mrf.mxu0 }
 0x372   :  { %15155 = vst [vmem:[#allocation66_spill] sm:$0xff] %v10759_v34  ;;  %v3022_v3 = vrot.slane %v3021_v9, 2  ;;  %v3016_v45 = vmax.f32 %v3014_v24, %v3015_v27  ;;  %v3838_v49 = vsel %vm3825_vm8, %v10608_v6, %v3837_v58  ;;  %v2179_v0 = vadd.f32 %v9802_v37, %v2109_v55 }
 0x373   :  { %v2527_v51 = vmax.f32 %v15157_v23, %v2463_v33  ;;  %15158 = vst [vmem:[#allocation61_spill] sm:$0xff] %v10764_v53  ;;  %v3839_v35 = vsel %vm3827_vm9, %v10700_v57, %v3838_v49  ;;  %v10781_v40 = vmax.f32 %v2897_v59, %v2898_v18  ;;  %v2036_v23 = vpop.f32.mrf.mxu1  ;;  %v4411_v59 = vsel %vm3823_vm7, %v10608_v6, %v10603_v8 }
 0x374   :  { %v3023_v27 = vmax.f32 %v3021_v9, %v3022_v3  ;;  %v3840_v49 = vsel %vm3829_vm10, %v10736_v5, %v3839_v35 }
 0x375   :  { %v2603_v38 = vrot.slane %v2527_v51, 2  ;;  %v2604_v15 = vrot.slane %v2527_v51, 4  ;;  %v2605_v63 = vrot.slane %v2527_v51, 6  ;;  %v2942_v39 = vsel %vm2773_vm6, %v2527_v51, -inf  ;;  %15159 = vst [vmem:[#allocation69_spill] sm:$0xff] %v10781_v40 }
 0x376   :  { %v2943_v54 = vrot.slane %v2942_v39, 4  ;;  %v3017_v51 = vrot.slane %v3016_v45, 1 }
 0x377   :  { %v2949_v47 = vsel %vm2773_vm6, %v2603_v38, -inf  ;;  %v2956_v24 = vsel %vm2773_vm6, %v2604_v15, -inf  ;;  %v2963_v55 = vsel %vm2773_vm6, %v2605_v63, -inf  ;;  %v3841_v15 = vsel %vm3831_vm11, %v10740_v46, %v3840_v49 }
 0x378   :  { %v2950_v33 = vrot.slane %v2949_v47, 4  ;;  %v2957_v58 = vrot.slane %v2956_v24, 4  ;;  %v2944_v60 = vmax.f32 %v2942_v39, %v2943_v54  ;;  %v2964_v26 = vrot.slane %v2963_v55, 4 }
 0x379   :  { %v3842_v3 = vsel %vm3833_vm12, %v10745_v32, %v3841_v15  ;;  %v4412_v63 = vsel %vm3825_vm8, %v10700_v57, %v4411_v59  ;;  %v3024_v39 = vrot.slane %v3023_v27, 1  ;;  %v14522_v59 = vmax.f32 %v10623_v7, 0.0 }
 0x37a   :  { %v2951_v38 = vmax.f32 %v2949_v47, %v2950_v33  ;;  %v2958_v11 = vmax.f32 %v2956_v24, %v2957_v58  ;;  %v2945_v9 = vrot.slane %v2944_v60, 2  ;;  %v2965_v18 = vmax.f32 %v2963_v55, %v2964_v26 }
 0x37b   :  { %v3843_v35 = vsel %vm3835_vm13, %v10759_v34, %v3842_v3  ;;  %v4413_v47 = vsel %vm3827_vm9, %v10736_v5, %v4412_v63  ;;  %v2243_v58 = vmax.f32 %v2179_v0, 0.0  ;;  %v10804_v55 = vadd.f32 %v9622_v43, %v2124_v25  ;;  %v2359_v3 = vpop.permute.xlu0 %2358  ;;  %2428 = vrot.lane.b32.xlu2 %v14522_v59, %s7738_s14 }
 0x37c   :  { %v2959_v54 = vrot.slane %v2958_v11, 2  ;;  %v2952_v24 = vrot.slane %v2951_v38, 2  ;;  %v2966_v33 = vrot.slane %v2965_v18, 2  ;;  %7358 = vmatmul.msk.f32.gmra.mxu2 %vm3936_vm14, %v3843_v35  ;;  %7375 = vmatmul.msk.f32.gmra.mxu3 %vm3936_vm14, %v3843_v35  ;;  %v4414_v26 = vsel %vm3829_vm10, %v10740_v46, %v4413_v47 }
 0x37d   :  { %v10806_v49 = vmax.f32 %v2944_v60, %v2945_v9  ;;  %v4415_v15 = vsel %vm3831_vm11, %v10745_v32, %v4414_v26  ;;  %v10812_v63 = vmax.f32 %v10743_v36, %v2912_v21  ;;  %2414 = vrot.lane.b32.xlu1 %v2243_v58, %s7738_s14  ;;  %v10822_v60 = vmax.f32 %v10750_v28, %v3003_v30  ;;  %v2375_v36 = vpop.permute.xlu2 %2374 }
 0x37e   :  { %v10814_v6 = vmax.f32 %v2958_v11, %v2959_v54  ;;  %v10816_v35 = vmax.f32 %v2965_v18, %v2966_v33  ;;  %v4416_v0 = vsel %vm3833_vm12, %v10759_v34, %v4415_v15  ;;  %v10824_v25 = vmax.f32 %v3016_v45, %v3017_v51 }
 0x37f   :  { %15160 = vst [vmem:[#allocation64_spill] sm:$0xff] %v10812_v63  ;;  %v4417_v9 = vsel %vm3835_vm13, %v10781_v40, %v4416_v0  ;;  %v2111_v11 = vadd.f32 %v2036_v23, %v10306_v44  ;;  %v10833_v18 = vmax.f32 %v3023_v27, %v3024_v39  ;;  %v10835_v54 = vmax.f32 %v2951_v38, %v2952_v24  ;;  %v15164_v23 = vld [vmem:[#allocation129_spill] sm:$0xff]  ;;  %v1950_v27 = vpop.f32.mrf.mxu0  ;;  %v2039_v39 = vpop.f32.mrf.mxu1 }
 0x380   :  { %15161 = vst [vmem:[#allocation72_spill] sm:$0xff] %v10822_v60  ;;  %7448 = vmatmul.msk.f32.gmra.mxu0 %vm3936_vm14, %v4417_v9  ;;  %7465 = vmatmul.msk.f32.gmra.mxu1 %vm3936_vm14, %v4417_v9  ;;  %v2464_v28 = vsel %vm2456_vm5, %v10248_v10, %v2359_v3  ;;  %v2947_v30 = vrot.slane %v10806_v49, 1  ;;  %v2126_v45 = vadd.f32 %v1947_v29, %v10525_v12  ;;  %v15165_v51 = vmax.f32 %v15164_v23, 0.0 }
 0x381   :  { %15162 = vst [vmem:[#allocation67_spill] sm:$0xff] %v10824_v25  ;;  %v2181_v44 = vadd.f32 %v9802_v37, %v2111_v11  ;;  %v2961_v38 = vrot.slane %v10814_v6, 1  ;;  %v2968_v24 = vrot.slane %v10816_v35, 1  ;;  %v2468_v10 = vsel %vm2456_vm5, %v10723_v20, %v2375_v36 }
 0x382   :  { %15163 = vst [vmem:[#allocation75_spill] sm:$0xff] %v10833_v18  ;;  %v2528_v47 = vmax.f32 %v15165_v51, %v2464_v28  ;;  %v2128_v0 = vadd.f32 %v1950_v27, %v10548_v52  ;;  %v2113_v9 = vadd.f32 %v2039_v39, %v10314_v13  ;;  %v15166_v51 = vld [vmem:[#allocation131_spill] sm:$0xff]  ;;  %v15168_v52 = vmax.f32 %v10651_v2, 0.0 }
 0x383   :  { %v2245_v3 = vmax.f32 %v2181_v44, 0.0  ;;  %v15167_v59 = vmax.f32 %v15166_v51, 0.0 }
 0x384   :  { %v2606_v26 = vrot.slane %v2528_v47, 2  ;;  %v2607_v58 = vrot.slane %v2528_v47, 4  ;;  %v2608_v15 = vrot.slane %v2528_v47, 6  ;;  %v2970_v12 = vsel %vm2773_vm6, %v2528_v47, -inf }
 0x385   :  { %v2971_v29 = vrot.slane %v2970_v12, 4  ;;  %v2532_v20 = vmax.f32 %v15167_v59, %v2468_v10  ;;  %2418 = vrot.lane.b32.xlu0 %v2245_v3, %s7738_s14  ;;  %2432 = vrot.lane.b32.xlu1 %v15168_v52, %s7738_s14  ;;  %v10864_v59 = vpop.permute.xlu1 %2384 }
 0x386   :  { %v2977_v11 = vsel %vm2773_vm6, %v2606_v26, -inf  ;;  %v2984_v28 = vsel %vm2773_vm6, %v2607_v58, -inf  ;;  %v2991_v23 = vsel %vm2773_vm6, %v2608_v15, -inf }
 0x387   :  { %v2972_v36 = vmax.f32 %v2970_v12, %v2971_v29  ;;  %v2978_v21 = vrot.slane %v2977_v11, 4  ;;  %v2985_v33 = vrot.slane %v2984_v28, 4  ;;  %v2992_v32 = vrot.slane %v2991_v23, 4  ;;  %v2042_v17 = vpop.f32.mrf.mxu1 }
 0x388   :  { %v2618_v13 = vrot.slane %v2532_v20, 2  ;;  %v2619_v44 = vrot.slane %v2532_v20, 4  ;;  %v2620_v47 = vrot.slane %v2532_v20, 6  ;;  %v3082_v27 = vsel %vm2773_vm6, %v2532_v20, -inf }
 0x389   :  { %v2973_v39 = vrot.slane %v2972_v36, 2  ;;  %v2979_v26 = vmax.f32 %v2977_v11, %v2978_v21  ;;  %v2986_v58 = vmax.f32 %v2984_v28, %v2985_v33  ;;  %v2993_v15 = vmax.f32 %v2991_v23, %v2992_v32 }
 0x38a   :  { %v3083_v10 = vrot.slane %v3082_v27, 4  ;;  %v3089_v12 = vsel %vm2773_vm6, %v2618_v13, -inf  ;;  %v3096_v29 = vsel %vm2773_vm6, %v2619_v44, -inf  ;;  %v3103_v3 = vsel %vm2773_vm6, %v2620_v47, -inf }
 0x38b   :  { %v2974_v51 = vmax.f32 %v2972_v36, %v2973_v39  ;;  %v2980_v52 = vrot.slane %v2979_v26, 2  ;;  %v2987_v34 = vrot.slane %v2986_v58, 2  ;;  %v2994_v46 = vrot.slane %v2993_v15, 2 }
 0x38c   :  { %v3084_v5 = vmax.f32 %v3082_v27, %v3083_v10  ;;  %v3090_v57 = vrot.slane %v3089_v12, 4  ;;  %v3097_v20 = vrot.slane %v3096_v29, 4  ;;  %v3104_v8 = vrot.slane %v3103_v3, 4 }
 0x38d   :  { %v2975_v21 = vrot.slane %v2974_v51, 1  ;;  %v2981_v33 = vmax.f32 %v2979_v26, %v2980_v52  ;;  %v2988_v32 = vmax.f32 %v2986_v58, %v2987_v34  ;;  %v2995_v11 = vmax.f32 %v2993_v15, %v2994_v46  ;;  %v2367_v15 = vpop.permute.xlu1 %2366 }
 0x38e   :  { %v3085_v28 = vrot.slane %v3084_v5, 2  ;;  %v3091_v23 = vmax.f32 %v3089_v12, %v3090_v57  ;;  %v3098_v7 = vmax.f32 %v3096_v29, %v3097_v20  ;;  %v3105_v13 = vmax.f32 %v3103_v3, %v3104_v8 }
 0x38f   :  { %v10870_v44 = vmax.f32 %v10806_v49, %v2947_v30  ;;  %v2954_v36 = vrot.slane %v10835_v54, 1  ;;  %v2982_v47 = vrot.slane %v2981_v33, 1  ;;  %v2183_v27 = vadd.f32 %v9802_v37, %v2113_v9 }
 0x390   :  { %v10875_v39 = vadd.f32 %v9622_v43, %v2126_v45  ;;  %v2989_v10 = vrot.slane %v2988_v32, 1  ;;  %v2996_v26 = vrot.slane %v2995_v11, 1  ;;  %v3086_v34 = vmax.f32 %v3084_v5, %v3085_v28 }
 0x391   :  { %15169 = vst [vmem:[#allocation70_spill] sm:$0xff] %v10870_v44  ;;  %v10878_v46 = vmax.f32 %v10814_v6, %v2961_v38  ;;  %v10881_v8 = vmax.f32 %v10816_v35, %v2968_v24  ;;  %v10884_v57 = vadd.f32 %v9622_v43, %v2128_v0  ;;  %v3844_v49 = vsel %vm3823_vm7, %v10764_v53, %v10781_v40 }
 0x392   :  { %v10889_v30 = vmax.f32 %v2974_v51, %v2975_v21  ;;  %v3092_v45 = vrot.slane %v3091_v23, 2  ;;  %v3099_v9 = vrot.slane %v3098_v7, 2  ;;  %v3106_v58 = vrot.slane %v3105_v13, 2 }
 0x393   :  { %15170 = vst [vmem:[#allocation78_spill] sm:$0xff] %v10878_v46  ;;  %v10891_v5 = vmax.f32 %v2981_v33, %v2982_v47  ;;  %v3845_v6 = vsel %vm3825_vm8, %v10812_v63, %v3844_v49  ;;  %v4418_v43 = vsel %vm3823_vm7, %v10812_v63, %v10764_v53  ;;  %v2247_v35 = vmax.f32 %v2183_v27, 0.0  ;;  %v2045_v47 = vpop.f32.mrf.mxu1 }
 0x394   :  { %15171 = vst [vmem:[#allocation73_spill] sm:$0xff] %v10881_v8  ;;  %v10898_v38 = vmax.f32 %v2988_v32, %v2989_v10  ;;  %v10900_v24 = vmax.f32 %v2995_v11, %v2996_v26  ;;  %v3087_v0 = vrot.slane %v3086_v34, 1  ;;  %v10903_v12 = vmax.f32 %v10835_v54, %v2954_v36 }
 0x395   :  { %15172 = vst [vmem:[#allocation2_spill] sm:$0xff] %v10884_v57  ;;  %v3846_v29 = vsel %vm3827_vm9, %v10669_v14, %v3845_v6  ;;  %v4419_v3 = vsel %vm3825_vm8, %v10669_v14, %v4418_v43  ;;  %2422 = vrot.lane.b32.xlu2 %v2247_v35, %s7738_s14  ;;  %v2115_v51 = vadd.f32 %v2042_v17, %v10328_v22  ;;  %v15178_v17 = vld [vmem:[#allocation31_spill] sm:$0xff] }
 0x396   :  { %15173 = vst [vmem:[#allocation80_spill] sm:$0xff] %v10889_v30  ;;  %v2466_v52 = vsel %vm2456_vm5, %v10647_v62, %v2367_v15  ;;  %v10913_v20 = vmax.f32 %v3091_v23, %v3092_v45  ;;  %v10915_v21 = vmax.f32 %v3098_v7, %v3099_v9  ;;  %v10917_v33 = vmax.f32 %v3105_v13, %v3106_v58  ;;  %v10928_v23 = vpop.permute.xlu0 %2388 }
 0x397   :  { %15174 = vst [vmem:[#allocation81_spill] sm:$0xff] %v10891_v5  ;;  %v3847_v54 = vsel %vm3829_vm10, %v10677_v56, %v3846_v29  ;;  %v4420_v11 = vsel %vm3827_vm9, %v10677_v56, %v4419_v3  ;;  %v2185_v22 = vadd.f32 %v9802_v37, %v2115_v51  ;;  %v15179_v28 = vmax.f32 %v15178_v17, 0.0 }
 0x398   :  { %15175 = vst [vmem:[#allocation76_spill] sm:$0xff] %v10898_v38  ;;  %v3848_v32 = vsel %vm3831_vm11, %v10686_v48, %v3847_v54  ;;  %v10930_v7 = vmax.f32 %v3086_v34, %v3087_v0  ;;  %v4421_v36 = vsel %vm3829_vm10, %v10686_v48, %v4420_v11  ;;  %v3851_v27 = vsel %vm3823_vm7, %v10878_v46, %v10903_v12 }
 0x399   :  { %15176 = vst [vmem:[#allocation111_spill] sm:$0xff] %v10900_v24  ;;  %v2530_v62 = vmax.f32 %v15179_v28, %v2466_v52  ;;  %v3849_v13 = vsel %vm3833_vm12, %v10694_v61, %v3848_v32  ;;  %v4422_v26 = vsel %vm3831_vm11, %v10694_v61, %v4421_v36  ;;  %v2249_v15 = vmax.f32 %v2185_v22, 0.0  ;;  %v10957_v22 = vpop.permute.xlu2 %2404 }
 0x39a   :  { %15177 = vst [vmem:[#allocation3_spill] sm:$0xff] %v10903_v12  ;;  %v3850_v10 = vsel %vm3835_vm13, %v10870_v44, %v3849_v13  ;;  %v4423_v45 = vsel %vm3833_vm12, %v10870_v44, %v4422_v26  ;;  %v2117_v52 = vadd.f32 %v2045_v47, %v10346_v41  ;;  %v3094_v54 = vrot.slane %v10913_v20, 1 }
 0x39b   :  { %15180 = vst [vmem:[#allocation83_spill] sm:$0xff] %v10930_v7  ;;  %v2612_v49 = vrot.slane %v2530_v62, 2  ;;  %v2613_v34 = vrot.slane %v2530_v62, 4  ;;  %7359 = vmatmul.msk.f32.gmra.mxu2 %vm3936_vm14, %v3850_v10  ;;  %7376 = vmatmul.msk.f32.gmra.mxu3 %vm3936_vm14, %v3850_v10  ;;  %v2614_v9 = vrot.slane %v2530_v62, 6  ;;  %v3026_v58 = vsel %vm2773_vm6, %v2530_v62, -inf }
 0x39c   :  { %v4424_v6 = vsel %vm3835_vm13, %v10903_v12, %v4423_v45  ;;  %v3027_v43 = vrot.slane %v3026_v58, 4  ;;  %2426 = vrot.lane.b32.xlu1 %v2249_v15, %s7738_s14  ;;  %v3852_v17 = vsel %vm3825_vm8, %v10881_v8, %v3851_v27  ;;  %v4425_v41 = vsel %vm3823_vm7, %v10881_v8, %v10878_v46 }
 0x39d   :  { %v3033_v35 = vsel %vm2773_vm6, %v2612_v49, -inf  ;;  %v3040_v0 = vsel %vm2773_vm6, %v2613_v34, -inf  ;;  %7449 = vmatmul.msk.f32.gmra.mxu0 %vm3936_vm14, %v4424_v6  ;;  %7466 = vmatmul.msk.f32.gmra.mxu1 %vm3936_vm14, %v4424_v6  ;;  %v3047_v51 = vsel %vm2773_vm6, %v2614_v9, -inf  ;;  %v3853_v13 = vsel %vm3827_vm9, %v10889_v30, %v3852_v17 }
 0x39e   :  { %v3034_v29 = vrot.slane %v3033_v35, 4  ;;  %v3041_v3 = vrot.slane %v3040_v0, 4  ;;  %v3028_v32 = vmax.f32 %v3026_v58, %v3027_v43  ;;  %v3048_v11 = vrot.slane %v3047_v51, 4  ;;  %v2371_v9 = vpop.permute.xlu0 %2370 }
 0x39f   :  { %v3854_v10 = vsel %vm3829_vm10, %v10891_v5, %v3853_v13  ;;  %v4426_v26 = vsel %vm3825_vm8, %v10889_v30, %v4425_v41  ;;  %v2187_v27 = vadd.f32 %v9802_v37, %v2117_v52  ;;  %v15181_v6 = vrot.slane %v10767_v19, 1  ;;  %v2048_v52 = vpop.f32.mrf.mxu1 }
 0x3a0   :  { %v3035_v28 = vmax.f32 %v3033_v35, %v3034_v29  ;;  %v3042_v62 = vmax.f32 %v3040_v0, %v3041_v3  ;;  %v3029_v36 = vrot.slane %v3028_v32, 2  ;;  %v3049_v47 = vmax.f32 %v3047_v51, %v3048_v11 }
 0x3a1   :  { %v3855_v34 = vsel %vm3831_vm11, %v10898_v38, %v3854_v10  ;;  %v4427_v45 = vsel %vm3827_vm9, %v10891_v5, %v4426_v26  ;;  %v10981_v43 = vmax.f32 %v10767_v19, %v15181_v6  ;;  %v3101_v17 = vrot.slane %v10915_v21, 1 }
 0x3a2   :  { %v3036_v49 = vrot.slane %v3035_v28, 2  ;;  %v3043_v58 = vrot.slane %v3042_v62, 2  ;;  %v3856_v15 = vsel %vm3833_vm12, %v10900_v24, %v3855_v34  ;;  %v4428_v35 = vsel %vm3829_vm10, %v10898_v38, %v4427_v45  ;;  %v15186_v34 = vld [vmem:[#allocation53_spill] sm:$0xff] }
 0x3a3   :  { %15182 = vst [vmem:[#allocation84_spill] sm:$0xff] %v10981_v43  ;;  %v10985_v0 = vmax.f32 %v3028_v32, %v3029_v36  ;;  %v3050_v29 = vrot.slane %v3049_v47, 2  ;;  %v3857_v3 = vsel %vm3835_vm13, %v10822_v60, %v3856_v15  ;;  %v4429_v51 = vsel %vm3831_vm11, %v10900_v24, %v4428_v35  ;;  %v15183_v36 = vld [vmem:[#allocation130_spill] sm:$0xff] }
 0x3a4   :  { %v10991_v11 = vmax.f32 %v3035_v28, %v3036_v49  ;;  %7360 = vmatmul.msk.f32.gmra.mxu2 %vm3936_vm14, %v3857_v3  ;;  %7377 = vmatmul.msk.f32.gmra.mxu3 %vm3936_vm14, %v3857_v3  ;;  %v4430_v19 = vsel %vm3833_vm12, %v10822_v60, %v4429_v51  ;;  %v2467_v32 = vsel %vm2456_vm5, %v10564_v1, %v2371_v9  ;;  %v3108_v13 = vrot.slane %v10917_v33, 1  ;;  %v2387_v9 = vpop.permute.xlu2 %2386 }
 0x3a5   :  { %v4431_v41 = vsel %vm3835_vm13, %v10981_v43, %v4430_v19  ;;  %v15184_v28 = vmax.f32 %v15183_v36, 0.0  ;;  %v11006_v26 = vmax.f32 %v10913_v20, %v3094_v54  ;;  %v11008_v49 = vmax.f32 %v3042_v62, %v3043_v58  ;;  %v15187_v36 = vld [vmem:[#allocation26_spill] sm:$0xff] }
 0x3a6   :  { %7450 = vmatmul.msk.f32.gmra.mxu0 %vm3936_vm14, %v4431_v41  ;;  %7467 = vmatmul.msk.f32.gmra.mxu1 %vm3936_vm14, %v4431_v41  ;;  %v2251_v1 = vmax.f32 %v2187_v27, 0.0  ;;  %v2119_v45 = vadd.f32 %v2048_v52, %v15186_v34  ;;  %v3031_v15 = vrot.slane %v10985_v0, 1  ;;  %v11014_v6 = vmax.f32 %v3049_v47, %v3050_v29  ;;  %v11025_v41 = vpop.permute.xlu1 %2396 }
 0x3a7   :  { %v2531_v10 = vmax.f32 %v15184_v28, %v2467_v32  ;;  %15185 = vst [vmem:[#allocation79_spill] sm:$0xff] %v11006_v26  ;;  %v3038_v51 = vrot.slane %v10991_v11, 1  ;;  %v2471_v47 = vsel %vm2456_vm5, %v10864_v59, %v2387_v9  ;;  %v15188_v28 = vmax.f32 %v15187_v36, 0.0 }
 0x3a8   :  { %2430 = vrot.lane.b32.xlu0 %v2251_v1, %s7738_s14  ;;  %v2189_v62 = vadd.f32 %v9802_v37, %v2119_v45  ;;  %v14549_v60 = vmax.f32 %v10655_v16, 0.0 }
 0x3a9   :  { %v2615_v35 = vrot.slane %v2531_v10, 2  ;;  %v2616_v3 = vrot.slane %v2531_v10, 4  ;;  %v2617_v20 = vrot.slane %v2531_v10, 6  ;;  %v3054_v54 = vsel %vm2773_vm6, %v2531_v10, -inf }
 0x3aa   :  { %v3055_v58 = vrot.slane %v3054_v54, 4  ;;  %v2535_v10 = vmax.f32 %v15188_v28, %v2471_v47  ;;  %v2253_v45 = vmax.f32 %v2189_v62, 0.0  ;;  %v11039_v28 = vmax.f32 %v10915_v21, %v3101_v17 }
 0x3ab   :  { %v3061_v27 = vsel %vm2773_vm6, %v2615_v35, -inf  ;;  %v3068_v52 = vsel %vm2773_vm6, %v2616_v3, -inf  ;;  %v3075_v32 = vsel %vm2773_vm6, %v2617_v20, -inf  ;;  %v11051_v17 = vmax.f32 %v10985_v0, %v3031_v15 }
 0x3ac   :  { %v3062_v29 = vrot.slane %v3061_v27, 4  ;;  %v3069_v19 = vrot.slane %v3068_v52, 4  ;;  %v3056_v1 = vmax.f32 %v3054_v54, %v3055_v58  ;;  %v3076_v34 = vrot.slane %v3075_v32, 4  ;;  %2434 = vrot.lane.b32.xlu2 %v2253_v45, %s7738_s14  ;;  %15189 = vst [vmem:[#allocation5_spill] sm:$0xff] %v11039_v28 }
 0x3ad   :  { %v2627_v3 = vrot.slane %v2535_v10, 2  ;;  %v2628_v8 = vrot.slane %v2535_v10, 4  ;;  %v2629_v9 = vrot.slane %v2535_v10, 6  ;;  %v3166_v46 = vsel %vm2773_vm6, %v2535_v10, -inf  ;;  %15191 = vst [vmem:[#allocation15_spill] sm:$0xff] %v11051_v17 }
 0x3ae   :  { %v3063_v35 = vmax.f32 %v3061_v27, %v3062_v29  ;;  %v3070_v24 = vmax.f32 %v3068_v52, %v3069_v19  ;;  %v3057_v38 = vrot.slane %v3056_v1, 2  ;;  %v3077_v59 = vmax.f32 %v3075_v32, %v3076_v34 }
 0x3af   :  { %v3167_v36 = vrot.slane %v3166_v46, 4  ;;  %v3173_v54 = vsel %vm2773_vm6, %v2627_v3, -inf  ;;  %v3180_v27 = vsel %vm2773_vm6, %v2628_v8, -inf  ;;  %v3045_v52 = vrot.slane %v11008_v49, 1  ;;  %v2051_v8 = vpop.f32.mrf.mxu1 }
 0x3b0   :  { %v3064_v20 = vrot.slane %v3063_v35, 2  ;;  %v3071_v5 = vrot.slane %v3070_v24, 2  ;;  %v3058_v58 = vmax.f32 %v3056_v1, %v3057_v38  ;;  %v3078_v62 = vrot.slane %v3077_v59, 2  ;;  %2436 = vrot.lane.b32.xlu0 %v14549_v60, %s7738_s14 }
 0x3b1   :  { %v3174_v47 = vrot.slane %v3173_v54, 4  ;;  %v3168_v19 = vmax.f32 %v3166_v46, %v3167_v36  ;;  %v3181_v32 = vrot.slane %v3180_v27, 4  ;;  %v11042_v10 = vmax.f32 %v10917_v33, %v3108_v13 }
 0x3b2   :  { %v3072_v29 = vmax.f32 %v3070_v24, %v3071_v5  ;;  %v3052_v38 = vrot.slane %v11014_v6, 1  ;;  %v3187_v1 = vsel %vm2773_vm6, %v2629_v9, -inf  ;;  %v3059_v34 = vrot.slane %v3058_v58, 1  ;;  %v2379_v24 = vpop.permute.xlu1 %2378 }
 0x3b3   :  { %15190 = vst [vmem:[#allocation86_spill] sm:$0xff] %v11042_v10  ;;  %v3065_v45 = vmax.f32 %v3063_v35, %v3064_v20  ;;  %v3169_v5 = vrot.slane %v3168_v19, 2  ;;  %v3182_v46 = vmax.f32 %v3180_v27, %v3181_v32  ;;  %v11046_v36 = vmax.f32 %v3077_v59, %v3078_v62  ;;  %v15194_v27 = vld [vmem:[#allocation14_spill] sm:$0xff] }
 0x3b4   :  { %v3073_v3 = vrot.slane %v3072_v29, 1  ;;  %v11048_v60 = vmax.f32 %v3173_v54, %v3174_v47  ;;  %v3188_v21 = vrot.slane %v3187_v1, 4  ;;  %v11054_v33 = vmax.f32 %v10991_v11, %v3038_v51  ;;  %v15197_v11 = vld [vmem:[#allocation132_spill] sm:$0xff] }
 0x3b5   :  { %v11057_v13 = vmax.f32 %v11008_v49, %v3045_v52  ;;  %v11059_v9 = vmax.f32 %v3168_v19, %v3169_v5  ;;  %v3183_v35 = vrot.slane %v3182_v46, 2  ;;  %v2121_v32 = vadd.f32 %v2051_v8, %v15194_v27 }
 0x3b6   :  { %15192 = vst [vmem:[#allocation87_spill] sm:$0xff] %v11054_v33  ;;  %v3189_v20 = vmax.f32 %v3187_v1, %v3188_v21  ;;  %v2469_v59 = vsel %vm2456_vm5, %v10771_v50, %v2379_v24  ;;  %v11065_v54 = vmax.f32 %v11014_v6, %v3052_v38  ;;  %v11067_v0 = vmax.f32 %v3058_v58, %v3059_v34  ;;  %v11079_v58 = vpop.permute.xlu0 %2400 }
 0x3b7   :  { %15193 = vst [vmem:[#allocation82_spill] sm:$0xff] %v11057_v13  ;;  %v3066_v15 = vrot.slane %v3065_v45, 1  ;;  %v15198_v51 = vmax.f32 %v15197_v11, 0.0  ;;  %v11071_v49 = vmax.f32 %v3072_v29, %v3073_v3  ;;  %v3080_v47 = vrot.slane %v11046_v36, 1 }
 0x3b8   :  { %15195 = vst [vmem:[#allocation59_spill] sm:$0xff] %v11065_v54  ;;  %v3171_v52 = vrot.slane %v11059_v9, 1  ;;  %v3176_v19 = vrot.slane %v11048_v60, 2  ;;  %v3190_v1 = vrot.slane %v3189_v20, 2  ;;  %v3858_v6 = vsel %vm3823_vm7, %v10824_v25, %v10981_v43  ;;  %v11090_v43 = vpop.permute.xlu2 %2416 }
 0x3b9   :  { %15196 = vst [vmem:[#allocation12_spill] sm:$0xff] %v11067_v0  ;;  %v2533_v62 = vmax.f32 %v15198_v51, %v2469_v59  ;;  %v11081_v38 = vmax.f32 %v3182_v46, %v3183_v35  ;;  %v2191_v29 = vadd.f32 %v9802_v37, %v2121_v32  ;;  %v11087_v27 = vmax.f32 %v3065_v45, %v3066_v15  ;;  %v2054_v35 = vpop.f32.mrf.mxu1 }
 0x3ba   :  { %15199 = vst [vmem:[#allocation4_spill] sm:$0xff] %v11071_v49  ;;  %v3859_v46 = vsel %vm3825_vm8, %v10833_v18, %v3858_v6  ;;  %v11094_v32 = vmax.f32 %v3189_v20, %v3190_v1 }
 0x3bb   :  { %v2621_v8 = vrot.slane %v2533_v62, 2  ;;  %v2622_v50 = vrot.slane %v2533_v62, 4  ;;  %v2623_v34 = vrot.slane %v2533_v62, 6  ;;  %v3110_v5 = vsel %vm2773_vm6, %v2533_v62, -inf  ;;  %15200 = vst [vmem:[#allocation88_spill] sm:$0xff] %v11087_v27 }
 0x3bc   :  { %v3111_v24 = vrot.slane %v3110_v5, 4 }
 0x3bd   :  { %v3117_v3 = vsel %vm2773_vm6, %v2621_v8, -inf  ;;  %v3124_v21 = vsel %vm2773_vm6, %v2622_v50, -inf  ;;  %v3131_v51 = vsel %vm2773_vm6, %v2623_v34, -inf  ;;  %v3860_v8 = vsel %vm3827_vm9, %v11051_v17, %v3859_v46 }
 0x3be   :  { %v3118_v59 = vrot.slane %v3117_v3, 4  ;;  %v3125_v11 = vrot.slane %v3124_v21, 4  ;;  %v3112_v62 = vmax.f32 %v3110_v5, %v3111_v24  ;;  %v3132_v30 = vrot.slane %v3131_v51, 4 }
 0x3bf   :  { %v3861_v15 = vsel %vm3829_vm10, %v11054_v33, %v3860_v8  ;;  %v4432_v34 = vsel %vm3823_vm7, %v10833_v18, %v10824_v25 }
 0x3c0   :  { %v3119_v50 = vmax.f32 %v3117_v3, %v3118_v59  ;;  %v3126_v45 = vmax.f32 %v3124_v21, %v3125_v11  ;;  %v3113_v61 = vrot.slane %v3112_v62, 2  ;;  %v3133_v12 = vmax.f32 %v3131_v51, %v3132_v30 }
 0x3c1   :  { %v3862_v20 = vsel %vm3831_vm11, %v11057_v13, %v3861_v15  ;;  %v4433_v1 = vsel %vm3825_vm8, %v11051_v17, %v4432_v34  ;;  %v11127_v15 = vmax.f32 %v11046_v36, %v3080_v47  ;;  %v15203_v36 = vld [vmem:[#allocation17_spill] sm:$0xff]  ;;  %v2399_v47 = vpop.permute.xlu2 %2398 }
 0x3c2   :  { %v3120_v6 = vrot.slane %v3119_v50, 2  ;;  %v3127_v5 = vrot.slane %v3126_v45, 2  ;;  %v3863_v24 = vsel %vm3833_vm12, %v11065_v54, %v3862_v20  ;;  %v4434_v3 = vsel %vm3827_vm9, %v11054_v33, %v4433_v1 }
 0x3c3   :  { %v11111_v21 = vmax.f32 %v3112_v62, %v3113_v61  ;;  %v3134_v59 = vrot.slane %v3133_v12, 2  ;;  %v3864_v30 = vsel %vm3835_vm13, %v11067_v0, %v3863_v24  ;;  %v4435_v11 = vsel %vm3829_vm10, %v11057_v13, %v4434_v3  ;;  %v2383_v62 = vpop.permute.xlu0 %2382  ;;  %15201 = vst [vmem:[#allocation89_spill] sm:$0xff] %v11127_v15  ;;  %v15204_v24 = vld [vmem:[#allocation135_spill] sm:$0xff] }
 0x3c4   :  { %v11117_v51 = vmax.f32 %v3119_v50, %v3120_v6  ;;  %v11119_v46 = vmax.f32 %v3126_v45, %v3127_v5  ;;  %7361 = vmatmul.msk.f32.gmra.mxu2 %vm3936_vm14, %v3864_v30  ;;  %7378 = vmatmul.msk.f32.gmra.mxu3 %vm3936_vm14, %v3864_v30  ;;  %v4436_v8 = vsel %vm3831_vm11, %v11065_v54, %v4435_v11  ;;  %v14558_v61 = vmax.f32 %v10748_v42, 0.0  ;;  %v2057_v30 = vpop.f32.mrf.mxu1 }
 0x3c5   :  { %v11129_v34 = vmax.f32 %v3133_v12, %v3134_v59  ;;  %v4437_v50 = vsel %vm3833_vm12, %v11067_v0, %v4436_v8  ;;  %v2255_v45 = vmax.f32 %v2191_v29, 0.0  ;;  %v11134_v20 = vmax.f32 %v11059_v9, %v3171_v52 }
 0x3c6   :  { %v11137_v1 = vmax.f32 %v11048_v60, %v3176_v19  ;;  %v4438_v6 = vsel %vm3835_vm13, %v11087_v27, %v4437_v50  ;;  %2440 = vrot.lane.b32.xlu2 %v14558_v61, %s7738_s14  ;;  %v2123_v12 = vadd.f32 %v2054_v35, %v15203_v36  ;;  %v2470_v60 = vsel %vm2456_vm5, %v10659_v31, %v2383_v62  ;;  %v15207_v61 = vld [vmem:[#allocation97_spill] sm:$0xff] }
 0x3c7   :  { %15202 = vst [vmem:[#allocation85_spill] sm:$0xff] %v11134_v20  ;;  %7451 = vmatmul.msk.f32.gmra.mxu0 %vm3936_vm14, %v4438_v6  ;;  %7468 = vmatmul.msk.f32.gmra.mxu1 %vm3936_vm14, %v4438_v6  ;;  %v15205_v3 = vmax.f32 %v15204_v24, 0.0  ;;  %v3136_v11 = vrot.slane %v11129_v34, 1  ;;  %v2474_v50 = vsel %vm2456_vm5, %v11025_v41, %v2399_v47  ;;  %v3865_v31 = vsel %vm3823_vm7, %v11071_v49, %v11087_v27 }
 0x3c8   :  { %2438 = vrot.lane.b32.xlu1 %v2255_v45, %s7738_s14  ;;  %v2193_v35 = vadd.f32 %v9802_v37, %v2123_v12  ;;  %v15208_v52 = vmax.f32 %v15207_v61, 0.0  ;;  %v3866_v29 = vsel %vm3825_vm8, %v11127_v15, %v3865_v31 }
 0x3c9   :  { %v2534_v59 = vmax.f32 %v15205_v3, %v2470_v60  ;;  %v15206_v60 = vld [vmem:[#allocation36_spill] sm:$0xff] }
 0x3ca   :  { %v2257_v24 = vmax.f32 %v2193_v35, 0.0  ;;  %v2125_v3 = vadd.f32 %v2057_v30, %v15206_v60  ;;  %v2538_v19 = vmax.f32 %v15208_v52, %v2474_v50 }
 0x3cb   :  { %v2624_v62 = vrot.slane %v2534_v59, 2  ;;  %v2625_v6 = vrot.slane %v2534_v59, 4  ;;  %v2626_v45 = vrot.slane %v2534_v59, 6  ;;  %v3138_v36 = vsel %vm2773_vm6, %v2534_v59, -inf }
 0x3cc   :  { %v3139_v12 = vrot.slane %v3138_v36, 4  ;;  %2442 = vrot.lane.b32.xlu0 %v2257_v24, %s7738_s14  ;;  %v2636_v35 = vrot.slane %v2538_v19, 2  ;;  %v2637_v30 = vrot.slane %v2538_v19, 4  ;;  %v2638_v60 = vrot.slane %v2538_v19, 6  ;;  %v2060_v44 = vpop.f32.mrf.mxu1 }
 0x3cd   :  { %v3145_v9 = vsel %vm2773_vm6, %v2624_v62, -inf  ;;  %v3152_v41 = vsel %vm2773_vm6, %v2625_v6, -inf  ;;  %v3159_v47 = vsel %vm2773_vm6, %v2626_v45, -inf  ;;  %v3250_v61 = vsel %vm2773_vm6, %v2538_v19, -inf  ;;  %v11182_v19 = vpop.permute.xlu1 %2408 }
 0x3ce   :  { %v3140_v5 = vmax.f32 %v3138_v36, %v3139_v12  ;;  %v3146_v8 = vrot.slane %v3145_v9, 4  ;;  %v3153_v54 = vrot.slane %v3152_v41, 4  ;;  %v3160_v59 = vrot.slane %v3159_v47, 4 }
 0x3cf   :  { %v15209_v45 = vmax.f32 %v10804_v55, 0.0  ;;  %v3251_v31 = vrot.slane %v3250_v61, 4  ;;  %v3257_v36 = vsel %vm2773_vm6, %v2636_v35, -inf  ;;  %v3264_v12 = vsel %vm2773_vm6, %v2637_v30, -inf }
 0x3d0   :  { %v3141_v52 = vrot.slane %v3140_v5, 2  ;;  %v3147_v50 = vmax.f32 %v3145_v9, %v3146_v8  ;;  %v3154_v62 = vmax.f32 %v3152_v41, %v3153_v54  ;;  %v3161_v6 = vmax.f32 %v3159_v47, %v3160_v59 }
 0x3d1   :  { %2444 = vrot.lane.b32.xlu1 %v15209_v45, %s7738_s14  ;;  %v3271_v24 = vsel %vm2773_vm6, %v2638_v60, -inf  ;;  %v3252_v9 = vmax.f32 %v3250_v61, %v3251_v31  ;;  %v3258_v54 = vrot.slane %v3257_v36, 4  ;;  %v3265_v8 = vrot.slane %v3264_v12, 4 }
 0x3d2   :  { %v3142_v27 = vmax.f32 %v3140_v5, %v3141_v52  ;;  %v3148_v0 = vrot.slane %v3147_v50, 2  ;;  %v3155_v13 = vrot.slane %v3154_v62, 2  ;;  %v3162_v18 = vrot.slane %v3161_v6, 2 }
 0x3d3   :  { %v3272_v41 = vrot.slane %v3271_v24, 4  ;;  %v3253_v17 = vrot.slane %v3252_v9, 2  ;;  %v3259_v35 = vmax.f32 %v3257_v36, %v3258_v54  ;;  %v3266_v25 = vmax.f32 %v3264_v12, %v3265_v8  ;;  %v11217_v8 = vpop.permute.xlu0 %2412 }
 0x3d4   :  { %v3143_v47 = vrot.slane %v3142_v27, 1  ;;  %v3149_v59 = vmax.f32 %v3147_v50, %v3148_v0  ;;  %v3156_v45 = vmax.f32 %v3154_v62, %v3155_v13  ;;  %v3163_v33 = vmax.f32 %v3161_v6, %v3162_v18 }
 0x3d5   :  { %v3273_v30 = vmax.f32 %v3271_v24, %v3272_v41  ;;  %v15210_v5 = vrot.slane %v11081_v38, 1  ;;  %v15212_v52 = vrot.slane %v11094_v32, 1  ;;  %v15214_v31 = vrot.slane %v11111_v21, 1 }
 0x3d6   :  { %v2195_v18 = vadd.f32 %v9802_v37, %v2125_v3  ;;  %v3150_v0 = vrot.slane %v3149_v59, 1  ;;  %v3157_v50 = vrot.slane %v3156_v45, 1  ;;  %v3164_v62 = vrot.slane %v3163_v33, 1 }
 0x3d7   :  { %v11187_v60 = vmax.f32 %v11081_v38, %v15210_v5  ;;  %v11192_v61 = vmax.f32 %v11094_v32, %v15212_v52  ;;  %v11197_v13 = vmax.f32 %v11111_v21, %v15214_v31  ;;  %v3254_v6 = vmax.f32 %v3252_v9, %v3253_v17  ;;  %v2391_v5 = vpop.permute.xlu1 %2390 }
 0x3d8   :  { %v15216_v36 = vrot.slane %v11119_v46, 1  ;;  %v11206_v12 = vmax.f32 %v11129_v34, %v3136_v11  ;;  %v3867_v32 = vsel %vm3827_vm9, %v10930_v7, %v3866_v29  ;;  %v15219_v21 = vrot.slane %v11117_v51, 1 }
 0x3d9   :  { %15211 = vst [vmem:[#allocation23_spill] sm:$0xff] %v11187_v60  ;;  %v11215_v3 = vmax.f32 %v3142_v27, %v3143_v47  ;;  %v3260_v54 = vrot.slane %v3259_v35, 2  ;;  %v3267_v17 = vrot.slane %v3266_v25, 2  ;;  %v3274_v9 = vrot.slane %v3273_v30, 2 }
 0x3da   :  { %15213 = vst [vmem:[#allocation25_spill] sm:$0xff] %v11192_v61  ;;  %v11203_v38 = vmax.f32 %v11119_v46, %v15216_v36  ;;  %v11213_v24 = vmax.f32 %v11117_v51, %v15219_v21  ;;  %v3868_v46 = vsel %vm3829_vm10, %v11006_v26, %v3867_v32  ;;  %v4439_v34 = vsel %vm3823_vm7, %v11127_v15, %v11071_v49  ;;  %v15227_v21 = vld [vmem:[#allocation21_spill] sm:$0xff] }
 0x3db   :  { %15215 = vst [vmem:[#allocation6_spill] sm:$0xff] %v11197_v13  ;;  %v2259_v29 = vmax.f32 %v2195_v18, 0.0  ;;  %v14578_v11 = vmax.f32 %v10875_v39, 0.0  ;;  %v11225_v41 = vmax.f32 %v3149_v59, %v3150_v0  ;;  %v11227_v51 = vmax.f32 %v3156_v45, %v3157_v50  ;;  %v15225_v59 = vld [vmem:[#allocation33_spill] sm:$0xff] }
 0x3dc   :  { %15217 = vst [vmem:[#allocation90_spill] sm:$0xff] %v11203_v38  ;;  %v11229_v27 = vmax.f32 %v3163_v33, %v3164_v62  ;;  %v3255_v47 = vrot.slane %v3254_v6, 1  ;;  %v3869_v52 = vsel %vm3831_vm11, %v11039_v28, %v3868_v46  ;;  %v4440_v31 = vsel %vm3825_vm8, %v10930_v7, %v4439_v34 }
 0x3dd   :  { %15218 = vst [vmem:[#allocation92_spill] sm:$0xff] %v11206_v12  ;;  %2446 = vrot.lane.b32.xlu2 %v2259_v29, %s7738_s14  ;;  %2448 = vrot.lane.b32.xlu0 %v14578_v11, %s7738_s14  ;;  %v2127_v18 = vadd.f32 %v2060_v44, %v15225_v59  ;;  %v11240_v45 = vmax.f32 %v3259_v35, %v3260_v54  ;;  %v3178_v35 = vrot.slane %v11137_v1, 1  ;;  %v15228_v54 = vmax.f32 %v15227_v21, 0.0 }
 0x3de   :  { %15220 = vst [vmem:[#allocation62_spill] sm:$0xff] %v11213_v24  ;;  %v11242_v33 = vmax.f32 %v3266_v25, %v3267_v17  ;;  %v11244_v0 = vmax.f32 %v3273_v30, %v3274_v9  ;;  %v3870_v50 = vsel %vm3833_vm12, %v11042_v10, %v3869_v52  ;;  %v4441_v36 = vsel %vm3827_vm9, %v11006_v26, %v4440_v31  ;;  %v2063_v9 = vpop.f32.mrf.mxu1 }
 0x3df   :  { %15221 = vst [vmem:[#allocation20_spill] sm:$0xff] %v11215_v3  ;;  %v3871_v62 = vsel %vm3835_vm13, %v11197_v13, %v3870_v50  ;;  %v2197_v32 = vadd.f32 %v9802_v37, %v2127_v18  ;;  %v2472_v44 = vsel %vm2456_vm5, %v10928_v23, %v2391_v5  ;;  %v11256_v25 = vmax.f32 %v3254_v6, %v3255_v47  ;;  %v15229_v18 = vld [vmem:[#allocation35_spill] sm:$0xff] }
 0x3e0   :  { %15222 = vst [vmem:[#allocation114_spill] sm:$0xff] %v11225_v41  ;;  %7362 = vmatmul.msk.f32.gmra.mxu2 %vm3936_vm14, %v3871_v62  ;;  %7379 = vmatmul.msk.f32.gmra.mxu3 %vm3936_vm14, %v3871_v62  ;;  %v4442_v30 = vsel %vm3829_vm10, %v11039_v28, %v4441_v36  ;;  %v2536_v17 = vmax.f32 %v15228_v54, %v2472_v44  ;;  %v14577_v23 = vmax.f32 %v10884_v57, 0.0  ;;  %v2395_v36 = vpop.permute.xlu0 %2394  ;;  %v11305_v57 = vpop.permute.xlu1 %2420 }
 0x3e1   :  { %15223 = vst [vmem:[#allocation94_spill] sm:$0xff] %v11227_v51  ;;  %v4443_v46 = vsel %vm3831_vm11, %v11042_v10, %v4442_v30  ;;  %v2261_v34 = vmax.f32 %v2197_v32, 0.0  ;;  %v3872_v6 = vsel %vm3823_vm7, %v11203_v38, %v11213_v24  ;;  %v2129_v50 = vadd.f32 %v2063_v9, %v15229_v18 }
 0x3e2   :  { %15224 = vst [vmem:[#allocation96_spill] sm:$0xff] %v11229_v27  ;;  %v4444_v29 = vsel %vm3833_vm12, %v11197_v13, %v4443_v46  ;;  %v2630_v47 = vrot.slane %v2536_v17, 2  ;;  %v2631_v5 = vrot.slane %v2536_v17, 4  ;;  %v2632_v52 = vrot.slane %v2536_v17, 6 }
 0x3e3   :  { %15226 = vst [vmem:[#allocation65_spill] sm:$0xff] %v11256_v25  ;;  %v4445_v31 = vsel %vm3835_vm13, %v11213_v24, %v4444_v29  ;;  %v3194_v59 = vsel %vm2773_vm6, %v2536_v17, -inf  ;;  %2450 = vrot.lane.b32.xlu1 %v2261_v34, %s7738_s14  ;;  %v3873_v62 = vsel %vm3825_vm8, %v11206_v12, %v3872_v6  ;;  %v4446_v29 = vsel %vm3823_vm7, %v11206_v12, %v11203_v38 }
 0x3e4   :  { %7452 = vmatmul.msk.f32.gmra.mxu0 %vm3936_vm14, %v4445_v31  ;;  %7469 = vmatmul.msk.f32.gmra.mxu1 %vm3936_vm14, %v4445_v31  ;;  %v3195_v32 = vrot.slane %v3194_v59, 4  ;;  %v3201_v44 = vsel %vm2773_vm6, %v2630_v47, -inf  ;;  %v3208_v30 = vsel %vm2773_vm6, %v2631_v5, -inf  ;;  %v3215_v21 = vsel %vm2773_vm6, %v2632_v52, -inf }
 0x3e5   :  { %v3202_v54 = vrot.slane %v3201_v44, 4  ;;  %v3209_v17 = vrot.slane %v3208_v30, 4  ;;  %v3216_v46 = vrot.slane %v3215_v21, 4  ;;  %2452 = vrot.lane.b32.xlu2 %v14577_v23, %s7738_s14  ;;  %v3874_v9 = vsel %vm3827_vm9, %v11215_v3, %v3873_v62 }
 0x3e6   :  { %v3196_v34 = vmax.f32 %v3194_v59, %v3195_v32  ;;  %v3875_v6 = vsel %vm3829_vm10, %v11225_v41, %v3874_v9  ;;  %v2473_v47 = vsel %vm2456_vm5, %v10779_v4, %v2395_v36  ;;  %v3262_v23 = vrot.slane %v11240_v45, 1  ;;  %v15230_v32 = vld [vmem:[#allocation7_spill] sm:$0xff] }
 0x3e7   :  { %v3203_v5 = vmax.f32 %v3201_v44, %v3202_v54  ;;  %v3210_v52 = vmax.f32 %v3208_v30, %v3209_v17  ;;  %v3217_v31 = vmax.f32 %v3215_v21, %v3216_v46  ;;  %v3876_v18 = vsel %vm3831_vm11, %v11227_v51, %v3875_v6 }
 0x3e8   :  { %v3877_v59 = vsel %vm3833_vm12, %v11229_v27, %v3876_v18  ;;  %v4447_v62 = vsel %vm3825_vm8, %v11215_v3, %v4446_v29  ;;  %v15231_v9 = vmax.f32 %v15230_v32, 0.0  ;;  %v3269_v4 = vrot.slane %v11242_v33, 1 }
 0x3e9   :  { %v3197_v36 = vrot.slane %v3196_v34, 2  ;;  %v3204_v44 = vrot.slane %v3203_v5, 2  ;;  %v3878_v30 = vsel %vm3835_vm13, %v11134_v20, %v3877_v59  ;;  %v3276_v21 = vrot.slane %v11244_v0, 1 }
 0x3ea   :  { %v2537_v11 = vmax.f32 %v15231_v9, %v2473_v47  ;;  %v3211_v54 = vrot.slane %v3210_v52, 2  ;;  %7363 = vmatmul.msk.f32.gmra.mxu2 %vm3936_vm14, %v3878_v30  ;;  %7380 = vmatmul.msk.f32.gmra.mxu3 %vm3936_vm14, %v3878_v30  ;;  %v4448_v17 = vsel %vm3827_vm9, %v11225_v41, %v4447_v62  ;;  %v3218_v6 = vrot.slane %v3217_v31, 2 }
 0x3eb   :  { %v2199_v29 = vadd.f32 %v9802_v37, %v2129_v50  ;;  %v11317_v47 = vmax.f32 %v11137_v1, %v3178_v35  ;;  %v4449_v18 = vsel %vm3829_vm10, %v11227_v51, %v4448_v17  ;;  %v11325_v12 = vmax.f32 %v11240_v45, %v3262_v23 }
 0x3ec   :  { %v2633_v46 = vrot.slane %v2537_v11, 2  ;;  %v4450_v59 = vsel %vm3831_vm11, %v11229_v27, %v4449_v18  ;;  %v2634_v32 = vrot.slane %v2537_v11, 4  ;;  %v2635_v9 = vrot.slane %v2537_v11, 6  ;;  %v2411_v18 = vpop.permute.xlu2 %2410 }
 0x3ed   :  { %15232 = vst [vmem:[#allocation22_spill] sm:$0xff] %v11317_v47  ;;  %v3222_v30 = vsel %vm2773_vm6, %v2537_v11, -inf  ;;  %v3198_v62 = vmax.f32 %v3196_v34, %v3197_v36  ;;  %v3205_v38 = vmax.f32 %v3203_v5, %v3204_v44  ;;  %v4451_v37 = vsel %vm3833_vm12, %v11134_v20, %v4450_v59  ;;  %v2403_v44 = vpop.permute.xlu1 %2402 }
 0x3ee   :  { %15233 = vst [vmem:[#allocation118_spill] sm:$0xff] %v11325_v12  ;;  %v3212_v1 = vmax.f32 %v3210_v52, %v3211_v54  ;;  %v4452_v35 = vsel %vm3835_vm13, %v11317_v47, %v4451_v37  ;;  %v3223_v50 = vrot.slane %v3222_v30, 4  ;;  %v3229_v17 = vsel %vm2773_vm6, %v2633_v46, -inf }
 0x3ef   :  { %v11333_v27 = vmax.f32 %v11242_v33, %v3269_v4  ;;  %v11336_v11 = vmax.f32 %v11244_v0, %v3276_v21  ;;  %v11338_v45 = vmax.f32 %v3217_v31, %v3218_v6  ;;  %7453 = vmatmul.msk.f32.gmra.mxu0 %vm3936_vm14, %v4452_v35  ;;  %7470 = vmatmul.msk.f32.gmra.mxu1 %vm3936_vm14, %v4452_v35  ;;  %v3230_v23 = vrot.slane %v3229_v17, 4  ;;  %v15236_v6 = vld [vmem:[#allocation34_spill] sm:$0xff] }
 0x3f0   :  { %v3224_v34 = vmax.f32 %v3222_v30, %v3223_v50  ;;  %v3236_v5 = vsel %vm2773_vm6, %v2634_v32, -inf  ;;  %v3243_v52 = vsel %vm2773_vm6, %v2635_v9, -inf  ;;  %v2263_v36 = vmax.f32 %v2199_v29, 0.0 }
 0x3f1   :  { %15234 = vst [vmem:[#allocation68_spill] sm:$0xff] %v11333_v27  ;;  %v3199_v54 = vrot.slane %v3198_v62, 1  ;;  %v3237_v33 = vrot.slane %v3236_v5, 4  ;;  %v3244_v4 = vrot.slane %v3243_v52, 4  ;;  %v2477_v0 = vsel %vm2456_vm5, %v11182_v19, %v2411_v18 }
 0x3f2   :  { %15235 = vst [vmem:[#allocation18_spill] sm:$0xff] %v11336_v11  ;;  %v3206_v31 = vrot.slane %v3205_v38, 1  ;;  %v3213_v21 = vrot.slane %v3212_v1, 1  ;;  %v3231_v46 = vmax.f32 %v3229_v17, %v3230_v23  ;;  %2454 = vrot.lane.b32.xlu0 %v2263_v36, %s7738_s14  ;;  %v15237_v59 = vmax.f32 %v15236_v6, 0.0 }
 0x3f3   :  { %v3225_v37 = vrot.slane %v3224_v34, 2  ;;  %v3238_v32 = vmax.f32 %v3236_v5, %v3237_v33  ;;  %v3245_v35 = vmax.f32 %v3243_v52, %v3244_v4  ;;  %v2475_v29 = vsel %vm2456_vm5, %v11079_v58, %v2403_v44  ;;  %v15239_v52 = vld [vmem:[#allocation10_spill] sm:$0xff] }
 0x3f4   :  { %v2541_v30 = vmax.f32 %v15237_v59, %v2477_v0  ;;  %v3220_v9 = vrot.slane %v11338_v45, 1  ;;  %v11352_v19 = vmax.f32 %v3198_v62, %v3199_v54  ;;  %v15240_v33 = vmax.f32 %v15239_v52, 0.0 }
 0x3f5   :  { %v3239_v18 = vrot.slane %v3238_v32, 2  ;;  %v3246_v17 = vrot.slane %v3245_v35, 2  ;;  %v11359_v58 = vmax.f32 %v3205_v38, %v3206_v31  ;;  %v3226_v44 = vmax.f32 %v3224_v34, %v3225_v37 }
 0x3f6   :  { %v2645_v50 = vrot.slane %v2541_v30, 2  ;;  %v2646_v20 = vrot.slane %v2541_v30, 4  ;;  %v2647_v51 = vrot.slane %v2541_v30, 6  ;;  %15238 = vst [vmem:[#allocation99_spill] sm:$0xff] %v11352_v19  ;;  %v3334_v23 = vsel %vm2773_vm6, %v2541_v30, -inf }
 0x3f7   :  { %v3335_v36 = vrot.slane %v3334_v23, 4  ;;  %v2539_v4 = vmax.f32 %v15240_v33, %v2475_v29  ;;  %15241 = vst [vmem:[#allocation71_spill] sm:$0xff] %v11359_v58  ;;  %v3232_v6 = vrot.slane %v3231_v46, 2  ;;  %v11361_v41 = vmax.f32 %v3212_v1, %v3213_v21 }
 0x3f8   :  { %v3341_v0 = vsel %vm2773_vm6, %v2645_v50, -inf  ;;  %v3348_v5 = vsel %vm2773_vm6, %v2646_v20, -inf  ;;  %v3355_v3 = vsel %vm2773_vm6, %v2647_v51, -inf  ;;  %v3240_v30 = vmax.f32 %v3238_v32, %v3239_v18 }
 0x3f9   :  { %v3342_v59 = vrot.slane %v3341_v0, 4  ;;  %15242 = vst [vmem:[#allocation91_spill] sm:$0xff] %v11361_v41  ;;  %v3336_v62 = vmax.f32 %v3334_v23, %v3335_v36  ;;  %v3349_v54 = vrot.slane %v3348_v5, 4  ;;  %v3247_v10 = vmax.f32 %v3245_v35, %v3246_v17 }
 0x3fa   :  { %v3356_v50 = vrot.slane %v3355_v3, 4  ;;  %v2639_v28 = vrot.slane %v2539_v4, 2  ;;  %v2640_v52 = vrot.slane %v2539_v4, 4  ;;  %v3227_v29 = vrot.slane %v3226_v44, 1 }
 0x3fb   :  { %v3343_v24 = vmax.f32 %v3341_v0, %v3342_v59  ;;  %v3337_v13 = vrot.slane %v3336_v62, 2  ;;  %v3350_v20 = vmax.f32 %v3348_v5, %v3349_v54  ;;  %v3233_v38 = vmax.f32 %v3231_v46, %v3232_v6 }
 0x3fc   :  { %v3357_v34 = vmax.f32 %v3355_v3, %v3356_v50  ;;  %v2641_v1 = vrot.slane %v2539_v4, 6  ;;  %v3278_v21 = vsel %vm2773_vm6, %v2539_v4, -inf  ;;  %v3241_v23 = vrot.slane %v3240_v30, 1 }
 0x3fd   :  { %v3344_v31 = vrot.slane %v3343_v24, 2  ;;  %v3338_v37 = vmax.f32 %v3336_v62, %v3337_v13  ;;  %v3351_v33 = vrot.slane %v3350_v20, 2  ;;  %v3279_v51 = vrot.slane %v3278_v21, 4 }
 0x3fe   :  { %v3358_v36 = vrot.slane %v3357_v34, 2  ;;  %v3285_v32 = vsel %vm2773_vm6, %v2639_v28, -inf  ;;  %v3248_v35 = vrot.slane %v3247_v10, 1  ;;  %v3292_v0 = vsel %vm2773_vm6, %v2640_v52, -inf  ;;  %v11378_v52 = vpop.permute.xlu2 %2428 }
 0x3ff   :  { %v3352_v18 = vmax.f32 %v3350_v20, %v3351_v33  ;;  %v3286_v17 = vrot.slane %v3285_v32, 4  ;;  %v11368_v5 = vmax.f32 %v11338_v45, %v3220_v9  ;;  %v11370_v46 = vmax.f32 %v3343_v24, %v3344_v31  ;;  %v2407_v45 = vpop.permute.xlu0 %2406 }
 0x400   :  { %v3280_v13 = vmax.f32 %v3278_v21, %v3279_v51  ;;  %v3293_v3 = vrot.slane %v3292_v0, 4  ;;  %v3339_v6 = vrot.slane %v3338_v37, 1  ;;  %v11372_v59 = vmax.f32 %v3357_v34, %v3358_v36 }
 0x401   :  { %15243 = vst [vmem:[#allocation74_spill] sm:$0xff] %v11368_v5  ;;  %v3299_v4 = vsel %vm2773_vm6, %v2641_v1, -inf  ;;  %v3879_v28 = vsel %vm3823_vm7, %v11187_v60, %v11317_v47  ;;  %v3234_v62 = vrot.slane %v3233_v38, 1  ;;  %v3287_v54 = vmax.f32 %v3285_v32, %v3286_v17 }
 0x402   :  { %v3294_v50 = vmax.f32 %v3292_v0, %v3293_v3  ;;  %v3300_v20 = vrot.slane %v3299_v4, 4  ;;  %v11380_v24 = vmax.f32 %v3226_v44, %v3227_v29  ;;  %v11382_v9 = vmax.f32 %v3240_v30, %v3241_v23  ;;  %v15249_v3 = vld [vmem:[#allocation9_spill] sm:$0xff] }
 0x403   :  { %v11384_v31 = vmax.f32 %v3247_v10, %v3248_v35  ;;  %v3353_v34 = vrot.slane %v3352_v18, 1  ;;  %v3281_v1 = vrot.slane %v3280_v13, 2  ;;  %v3880_v36 = vsel %vm3825_vm8, %v11192_v61, %v3879_v28 }
 0x404   :  { %15244 = vst [vmem:[#allocation93_spill] sm:$0xff] %v11380_v24  ;;  %v3301_v21 = vmax.f32 %v3299_v4, %v3300_v20  ;;  %v11389_v51 = vmax.f32 %v3338_v37, %v3339_v6  ;;  %v3881_v44 = vsel %vm3827_vm9, %v11352_v19, %v3880_v36  ;;  %v2476_v30 = vsel %vm2456_vm5, %v10957_v22, %v2407_v45 }
 0x405   :  { %15245 = vst [vmem:[#allocation77_spill] sm:$0xff] %v11382_v9  ;;  %v3288_v10 = vrot.slane %v3287_v54, 2  ;;  %v3295_v29 = vrot.slane %v3294_v50, 2  ;;  %v3882_v23 = vsel %vm3829_vm10, %v11359_v58, %v3881_v44  ;;  %v4453_v35 = vsel %vm3823_vm7, %v11192_v61, %v11187_v60 }
 0x406   :  { %15246 = vst [vmem:[#allocation95_spill] sm:$0xff] %v11384_v31  ;;  %v11401_v17 = vmax.f32 %v3352_v18, %v3353_v34  ;;  %v3883_v37 = vsel %vm3831_vm11, %v11361_v41, %v3882_v23  ;;  %v4454_v0 = vsel %vm3825_vm8, %v11352_v19, %v4453_v35  ;;  %v15250_v6 = vmax.f32 %v15249_v3, 0.0 }
 0x407   :  { %15247 = vst [vmem:[#allocation102_spill] sm:$0xff] %v11389_v51  ;;  %v3282_v4 = vmax.f32 %v3280_v13, %v3281_v1  ;;  %v3302_v28 = vrot.slane %v3301_v21, 2  ;;  %v3884_v20 = vsel %vm3833_vm12, %v11368_v5, %v3883_v37  ;;  %v11411_v45 = vmax.f32 %v3233_v38, %v3234_v62  ;;  %v2423_v62 = vpop.permute.xlu2 %2422 }
 0x408   :  { %15248 = vst [vmem:[#allocation104_spill] sm:$0xff] %v11401_v17  ;;  %v2540_v22 = vmax.f32 %v15250_v6, %v2476_v30  ;;  %v3885_v18 = vsel %vm3835_vm13, %v11380_v24, %v3884_v20  ;;  %v4455_v34 = vsel %vm3827_vm9, %v11359_v58, %v4454_v0  ;;  %v11417_v23 = vmax.f32 %v3287_v54, %v3288_v10 }
 0x409   :  { %15251 = vst [vmem:[#allocation98_spill] sm:$0xff] %v11411_v45  ;;  %v3296_v35 = vmax.f32 %v3294_v50, %v3295_v29  ;;  %7364 = vmatmul.msk.f32.gmra.mxu2 %vm3936_vm14, %v3885_v18  ;;  %7381 = vmatmul.msk.f32.gmra.mxu3 %vm3936_vm14, %v3885_v18  ;;  %v4456_v13 = vsel %vm3829_vm10, %v11361_v41, %v4455_v34  ;;  %v15252_v34 = vld [vmem:[#allocation38_spill] sm:$0xff] }
 0x40a   :  { %v2642_v36 = vrot.slane %v2540_v22, 2  ;;  %v2643_v44 = vrot.slane %v2540_v22, 4  ;;  %v2644_v38 = vrot.slane %v2540_v22, 6  ;;  %v4457_v1 = vsel %vm3831_vm11, %v11368_v5, %v4456_v13 }
 0x40b   :  { %v3306_v30 = vsel %vm2773_vm6, %v2540_v22, -inf  ;;  %v3303_v10 = vmax.f32 %v3301_v21, %v3302_v28  ;;  %v4458_v50 = vsel %vm3833_vm12, %v11380_v24, %v4457_v1  ;;  %v2480_v18 = vsel %vm2456_vm5, %v11305_v57, %v2423_v62 }
 0x40c   :  { %v3313_v37 = vsel %vm2773_vm6, %v2642_v36, -inf  ;;  %v3320_v54 = vsel %vm2773_vm6, %v2643_v44, -inf  ;;  %v3307_v29 = vrot.slane %v3306_v30, 4  ;;  %v4459_v3 = vsel %vm3835_vm13, %v11411_v45, %v4458_v50 }
 0x40d   :  { %v3314_v0 = vrot.slane %v3313_v37, 4  ;;  %v3321_v6 = vrot.slane %v3320_v54, 4  ;;  %v3327_v20 = vsel %vm2773_vm6, %v2644_v38, -inf  ;;  %7454 = vmatmul.msk.f32.gmra.mxu0 %vm3936_vm14, %v4459_v3  ;;  %7471 = vmatmul.msk.f32.gmra.mxu1 %vm3936_vm14, %v4459_v3  ;;  %v15253_v36 = vmax.f32 %v15252_v34, 0.0 }
 0x40e   :  { %v3308_v22 = vmax.f32 %v3306_v30, %v3307_v29  ;;  %v3328_v28 = vrot.slane %v3327_v20, 4  ;;  %v3283_v13 = vrot.slane %v3282_v4, 1  ;;  %v3290_v1 = vrot.slane %v11417_v23, 1 }
 0x40f   :  { %v3315_v21 = vmax.f32 %v3313_v37, %v3314_v0  ;;  %v2544_v44 = vmax.f32 %v15253_v36, %v2480_v18  ;;  %v3297_v50 = vrot.slane %v3296_v35, 1  ;;  %v3322_v33 = vmax.f32 %v3320_v54, %v3321_v6 }
 0x410   :  { %v3309_v32 = vrot.slane %v3308_v22, 2  ;;  %v3329_v5 = vmax.f32 %v3327_v20, %v3328_v28  ;;  %v3304_v30 = vrot.slane %v3303_v10, 1  ;;  %v3886_v54 = vsel %vm3823_vm7, %v11382_v9, %v11411_v45 }
 0x411   :  { %v3316_v38 = vrot.slane %v3315_v21, 2  ;;  %v2654_v24 = vrot.slane %v2544_v44, 2  ;;  %v3323_v57 = vrot.slane %v3322_v33, 2  ;;  %v2655_v62 = vrot.slane %v2544_v44, 4 }
 0x412   :  { %v2656_v41 = vrot.slane %v2544_v44, 6  ;;  %v3418_v3 = vsel %vm2773_vm6, %v2544_v44, -inf  ;;  %v3310_v37 = vmax.f32 %v3308_v22, %v3309_v32  ;;  %v3330_v29 = vrot.slane %v3329_v5, 2 }
 0x413   :  { %v3419_v0 = vrot.slane %v3418_v3, 4  ;;  %v3425_v18 = vsel %vm2773_vm6, %v2654_v24, -inf  ;;  %v3432_v34 = vsel %vm2773_vm6, %v2655_v62, -inf  ;;  %v3317_v6 = vmax.f32 %v3315_v21, %v3316_v38 }
 0x414   :  { %v3439_v36 = vsel %vm2773_vm6, %v2656_v41, -inf  ;;  %v3324_v20 = vmax.f32 %v3322_v33, %v3323_v57  ;;  %v4460_v44 = vsel %vm3823_vm7, %v11384_v31, %v11382_v9  ;;  %v3331_v32 = vmax.f32 %v3329_v5, %v3330_v29 }
 0x415   :  { %v3420_v28 = vmax.f32 %v3418_v3, %v3419_v0  ;;  %v3426_v22 = vrot.slane %v3425_v18, 4  ;;  %v3433_v61 = vrot.slane %v3432_v34, 4  ;;  %v3440_v58 = vrot.slane %v3439_v36, 4  ;;  %v2415_v0 = vpop.permute.xlu1 %2414 }
 0x416   :  { %v15254_v24 = vrot.slane %v11372_v59, 1  ;;  %v11455_v41 = vmax.f32 %v3282_v4, %v3283_v13  ;;  %v11457_v19 = vmax.f32 %v3296_v35, %v3297_v50  ;;  %v3311_v21 = vrot.slane %v3310_v37, 1  ;;  %v11468_v13 = vpop.permute.xlu0 %2424 }
 0x417   :  { %v11459_v33 = vmax.f32 %v3303_v10, %v3304_v30  ;;  %v3421_v38 = vrot.slane %v3420_v28, 2  ;;  %v3427_v57 = vmax.f32 %v3425_v18, %v3426_v22  ;;  %v3434_v3 = vmax.f32 %v3432_v34, %v3433_v61  ;;  %v15262_v22 = vld [vmem:[#allocation30_spill] sm:$0xff] }
 0x418   :  { %v11453_v62 = vmax.f32 %v11372_v59, %v15254_v24  ;;  %15256 = vst [vmem:[#allocation101_spill] sm:$0xff] %v11455_v41  ;;  %v3318_v5 = vrot.slane %v3317_v6, 1  ;;  %v3887_v29 = vsel %vm3825_vm8, %v11384_v31, %v3886_v54  ;;  %v11464_v9 = vmax.f32 %v11417_v23, %v3290_v1 }
 0x419   :  { %15257 = vst [vmem:[#allocation110_spill] sm:$0xff] %v11457_v19  ;;  %v4461_v59 = vsel %vm3825_vm8, %v11256_v25, %v4460_v44  ;;  %v3325_v4 = vrot.slane %v3324_v20, 1  ;;  %v3332_v35 = vrot.slane %v3331_v32, 1  ;;  %v3441_v10 = vmax.f32 %v3439_v36, %v3440_v58 }
 0x41a   :  { %15255 = vst [vmem:[#allocation107_spill] sm:$0xff] %v11453_v62  ;;  %v3888_v50 = vsel %vm3827_vm9, %v11256_v25, %v3887_v29  ;;  %v11472_v61 = vmax.f32 %v3310_v37, %v3311_v21  ;;  %v4462_v23 = vsel %vm3827_vm9, %v11325_v12, %v4461_v59  ;;  %v2478_v1 = vsel %vm2456_vm5, %v11217_v8, %v2415_v0 }
 0x41b   :  { %15258 = vst [vmem:[#allocation103_spill] sm:$0xff] %v11459_v33  ;;  %v3889_v30 = vsel %vm3829_vm10, %v11325_v12, %v3888_v50  ;;  %v3422_v18 = vmax.f32 %v3420_v28, %v3421_v38  ;;  %v3428_v34 = vrot.slane %v3427_v57, 2  ;;  %v3435_v54 = vrot.slane %v3434_v3, 2 }
 0x41c   :  { %15259 = vst [vmem:[#allocation112_spill] sm:$0xff] %v11464_v9  ;;  %v3890_v58 = vsel %vm3831_vm11, %v11333_v27, %v3889_v30  ;;  %v11482_v36 = vmax.f32 %v3317_v6, %v3318_v5  ;;  %v4463_v44 = vsel %vm3829_vm10, %v11333_v27, %v4462_v23  ;;  %v15263_v24 = vmax.f32 %v15262_v22, 0.0 }
 0x41d   :  { %15260 = vst [vmem:[#allocation115_spill] sm:$0xff] %v11472_v61  ;;  %v3891_v37 = vsel %vm3833_vm12, %v11336_v11, %v3890_v58  ;;  %v11490_v29 = vmax.f32 %v3324_v20, %v3325_v4  ;;  %v11492_v8 = vmax.f32 %v3331_v32, %v3332_v35  ;;  %v3442_v28 = vrot.slane %v3441_v10, 2 }
 0x41e   :  { %15261 = vst [vmem:[#allocation106_spill] sm:$0xff] %v11482_v36  ;;  %v2542_v21 = vmax.f32 %v15263_v24, %v2478_v1  ;;  %v3892_v38 = vsel %vm3835_vm13, %v11455_v41, %v3891_v37  ;;  %v4464_v6 = vsel %vm3831_vm11, %v11336_v11, %v4463_v44  ;;  %v3423_v50 = vrot.slane %v3422_v18, 1 }
 0x41f   :  { %15264 = vst [vmem:[#allocation109_spill] sm:$0xff] %v11490_v29  ;;  %7365 = vmatmul.msk.f32.gmra.mxu2 %vm3936_vm14, %v3892_v38  ;;  %7382 = vmatmul.msk.f32.gmra.mxu3 %vm3936_vm14, %v3892_v38  ;;  %v3429_v30 = vmax.f32 %v3427_v57, %v3428_v34  ;;  %v3436_v20 = vmax.f32 %v3434_v3, %v3435_v54  ;;  %v2419_v34 = vpop.permute.xlu0 %2418 }
 0x420   :  { %15265 = vst [vmem:[#allocation117_spill] sm:$0xff] %v11492_v8  ;;  %v2648_v0 = vrot.slane %v2542_v21, 2  ;;  %v2649_v5 = vrot.slane %v2542_v21, 4  ;;  %v2650_v59 = vrot.slane %v2542_v21, 6  ;;  %v4465_v32 = vsel %vm3833_vm12, %v11455_v41, %v4464_v6 }
 0x421   :  { %v4466_v4 = vsel %vm3835_vm13, %v11464_v9, %v4465_v32  ;;  %v3362_v35 = vsel %vm2773_vm6, %v2542_v21, -inf  ;;  %v3443_v54 = vmax.f32 %v3441_v10, %v3442_v28  ;;  %v3893_v22 = vsel %vm3823_vm7, %v11457_v19, %v11464_v9 }
 0x422   :  { %v3369_v23 = vsel %vm2773_vm6, %v2648_v0, -inf  ;;  %v3376_v1 = vsel %vm2773_vm6, %v2649_v5, -inf  ;;  %7455 = vmatmul.msk.f32.gmra.mxu0 %vm3936_vm14, %v4466_v4  ;;  %7472 = vmatmul.msk.f32.gmra.mxu1 %vm3936_vm14, %v4466_v4  ;;  %v3363_v58 = vrot.slane %v3362_v35, 4  ;;  %v3383_v3 = vsel %vm2773_vm6, %v2650_v59, -inf }
 0x423   :  { %v3370_v37 = vrot.slane %v3369_v23, 4  ;;  %v3377_v57 = vrot.slane %v3376_v1, 4  ;;  %v3384_v44 = vrot.slane %v3383_v3, 4  ;;  %v4467_v24 = vsel %vm3823_vm7, %v11459_v33, %v11457_v19 }
 0x424   :  { %v3364_v21 = vmax.f32 %v3362_v35, %v3363_v58  ;;  %v3894_v0 = vsel %vm3825_vm8, %v11459_v33, %v3893_v22  ;;  %v4468_v10 = vsel %vm3825_vm8, %v11472_v61, %v4467_v24  ;;  %v2479_v28 = vsel %vm2456_vm5, %v11090_v43, %v2419_v34  ;;  %v2435_v33 = vpop.permute.xlu2 %2434 }
 0x425   :  { %v3371_v38 = vmax.f32 %v3369_v23, %v3370_v37  ;;  %v3378_v6 = vmax.f32 %v3376_v1, %v3377_v57  ;;  %v3385_v5 = vmax.f32 %v3383_v3, %v3384_v44  ;;  %v3895_v59 = vsel %vm3827_vm9, %v11472_v61, %v3894_v0  ;;  %v2433_v23 = vpop.permute.xlu1 %2432  ;;  %v15266_v57 = vld [vmem:[#allocation108_spill] sm:$0xff]  ;;  %v3676_v0 = vld [vmem:[%s14443_s3 + $0xa0] sm:$0xf] }
 0x426   :  { %v3430_v32 = vrot.slane %v3429_v30, 1  ;;  %v3437_v4 = vrot.slane %v3436_v20, 1  ;;  %v3365_v11 = vrot.slane %v3364_v21, 2  ;;  %v3896_v35 = vsel %vm3829_vm10, %v11482_v36, %v3895_v59  ;;  %v3677_v59 = vld [vmem:[%s14443_s3 + $0xa8] sm:$0xf]  ;;  %7390 = vmatpush.msk.msra.mxu2 %vm1712_vm4, %v3676_v0 }
 0x427   :  { %v3372_v1 = vrot.slane %v3371_v38, 2  ;;  %v3897_v58 = vsel %vm3831_vm11, %v11490_v29, %v3896_v35  ;;  %v4469_v37 = vsel %vm3827_vm9, %v11482_v36, %v4468_v10  ;;  %v15267_v3 = vmax.f32 %v15266_v57, 0.0  ;;  %7407 = vmatpush.msk.msrb.mxu3 %vm1712_vm4, %v3677_v59 }
 0x428   :  { %v11532_v22 = vmax.f32 %v3422_v18, %v3423_v50  ;;  %v3379_v43 = vrot.slane %v3378_v6, 2  ;;  %v3386_v34 = vrot.slane %v3385_v5, 2  ;;  %v3898_v24 = vsel %vm3833_vm12, %v11492_v8, %v3897_v58 }
 0x429   :  { %v2543_v44 = vmax.f32 %v15267_v3, %v2479_v28  ;;  %v3366_v35 = vmax.f32 %v3364_v21, %v3365_v11  ;;  %v3899_v10 = vsel %vm3835_vm13, %v11389_v51, %v3898_v24  ;;  %v4470_v18 = vsel %vm3829_vm10, %v11490_v29, %v4469_v37 }
 0x42a   :  { %15268 = vst [vmem:[#allocation120_spill] sm:$0xff] %v11532_v22  ;;  %v11548_v28 = vmax.f32 %v3429_v30, %v3430_v32  ;;  %v3444_v58 = vrot.slane %v3443_v54, 1  ;;  %7366 = vmatmul.msk.f32.gmra.mxu2 %vm3936_vm14, %v3899_v10  ;;  %7383 = vmatmul.msk.f32.gmra.mxu3 %vm3936_vm14, %v3899_v10  ;;  %v15270_v11 = vrot.slane %v11370_v46, 1  ;;  %v4471_v37 = vsel %vm3831_vm11, %v11492_v8, %v4470_v18 }
 0x42b   :  { %v2651_v50 = vrot.slane %v2543_v44, 2  ;;  %v3373_v57 = vmax.f32 %v3371_v38, %v3372_v1  ;;  %v4472_v3 = vsel %vm3833_vm12, %v11389_v51, %v4471_v37  ;;  %v2652_v24 = vrot.slane %v2543_v44, 4 }
 0x42c   :  { %15269 = vst [vmem:[#allocation122_spill] sm:$0xff] %v11548_v28  ;;  %v11555_v21 = vmax.f32 %v11370_v46, %v15270_v11  ;;  %v2653_v30 = vrot.slane %v2543_v44, 6  ;;  %v11561_v32 = vmax.f32 %v3436_v20, %v3437_v4  ;;  %v3380_v0 = vmax.f32 %v3378_v6, %v3379_v43 }
 0x42d   :  { %v3387_v59 = vmax.f32 %v3385_v5, %v3386_v34  ;;  %v3367_v29 = vrot.slane %v3366_v35, 1  ;;  %v3390_v46 = vsel %vm2773_vm6, %v2543_v44, -inf  ;;  %v3397_v38 = vsel %vm2773_vm6, %v2651_v50, -inf  ;;  %v2427_v5 = vpop.permute.xlu1 %2426 }
 0x42e   :  { %15271 = vst [vmem:[#allocation47_spill] sm:$0xff] %v11555_v21  ;;  %v4473_v10 = vsel %vm3835_vm13, %v11555_v21, %v4472_v3  ;;  %v3404_v1 = vsel %vm2773_vm6, %v2652_v24, -inf  ;;  %v3391_v18 = vrot.slane %v3390_v46, 4  ;;  %v3398_v20 = vrot.slane %v3397_v38, 4 }
 0x42f   :  { %15272 = vst [vmem:[#allocation44_spill] sm:$0xff] %v11561_v32  ;;  %7456 = vmatmul.msk.f32.gmra.mxu0 %vm3936_vm14, %v4473_v10  ;;  %7473 = vmatmul.msk.f32.gmra.mxu1 %vm3936_vm14, %v4473_v10  ;;  %v3405_v4 = vrot.slane %v3404_v1, 4  ;;  %v3411_v6 = vsel %vm2773_vm6, %v2653_v30, -inf  ;;  %v11571_v43 = vmax.f32 %v3443_v54, %v3444_v58  ;;  %v3374_v34 = vrot.slane %v3373_v57, 1 }
 0x430   :  { %v3412_v11 = vrot.slane %v3411_v6, 4  ;;  %v2483_v37 = vsel %vm2456_vm5, %v2433_v23, %v2435_v33  ;;  %v3392_v3 = vmax.f32 %v3390_v46, %v3391_v18  ;;  %v3399_v10 = vmax.f32 %v3397_v38, %v3398_v20 }
 0x431   :  { %15273 = vst [vmem:[#allocation119_spill] sm:$0xff] %v11571_v43  ;;  %v3406_v51 = vmax.f32 %v3404_v1, %v3405_v4  ;;  %v15274_v44 = vmax.f32 %v10651_v2, 0.0  ;;  %v3381_v8 = vrot.slane %v3380_v0, 1  ;;  %v3388_v24 = vrot.slane %v3387_v59, 1  ;;  %v15276_v2 = vld [vmem:[#allocation45_spill] sm:$0xff] }
 0x432   :  { %v3413_v19 = vmax.f32 %v3411_v6, %v3412_v11  ;;  %v2481_v36 = vsel %vm2456_vm5, %v11468_v13, %v2427_v5  ;;  %v11578_v30 = vmax.f32 %v3366_v35, %v3367_v29  ;;  %v3393_v54 = vrot.slane %v3392_v3, 2 }
 0x433   :  { %v2547_v50 = vmax.f32 %v15274_v44, %v2483_v37  ;;  %v3407_v58 = vrot.slane %v3406_v51, 2  ;;  %v3400_v46 = vrot.slane %v3399_v10, 2  ;;  %v15277_v1 = vmax.f32 %v15276_v2, 0.0 }
 0x434   :  { %15275 = vst [vmem:[#allocation134_spill] sm:$0xff] %v11578_v30  ;;  %v3414_v9 = vrot.slane %v3413_v19, 2  ;;  %v3900_v20 = vsel %vm3823_vm7, %v11401_v17, %v11555_v21  ;;  %v3394_v13 = vmax.f32 %v3392_v3, %v3393_v54  ;;  %v11589_v6 = vmax.f32 %v3373_v57, %v3374_v34  ;;  %v3675_v3 = vld [vmem:[%s14443_s3 + $0x98] sm:$0xff] }
 0x435   :  { %v2663_v61 = vrot.slane %v2547_v50, 2  ;;  %v2664_v41 = vrot.slane %v2547_v50, 4  ;;  %v2665_v33 = vrot.slane %v2547_v50, 6  ;;  %v3502_v23 = vsel %vm2773_vm6, %v2547_v50, -inf  ;;  %4321 = vmatpush.msrb.mxu3 %v3675_v3 }
 0x436   :  { %v3503_v38 = vrot.slane %v3502_v23, 4  ;;  %v2545_v18 = vmax.f32 %v15277_v1, %v2481_v36  ;;  %15278 = vst [vmem:[#allocation11_spill] sm:$0xff] %v11589_v6  ;;  %v11591_v5 = vmax.f32 %v3380_v0, %v3381_v8  ;;  %v3408_v11 = vmax.f32 %v3406_v51, %v3407_v58  ;;  %v3674_v36 = vld [vmem:[%s14443_s3 + $0x90] sm:$0xff] }
 0x437   :  { %v3509_v29 = vsel %vm2773_vm6, %v2663_v61, -inf  ;;  %v3516_v35 = vsel %vm2773_vm6, %v2664_v41, -inf  ;;  %v3523_v4 = vsel %vm2773_vm6, %v2665_v33, -inf  ;;  %v3415_v37 = vmax.f32 %v3413_v19, %v3414_v9  ;;  %4256 = vmatpush.msra.mxu2 %v3674_v36 }
 0x438   :  { %15279 = vst [vmem:[#allocation29_spill] sm:$0xff] %v11591_v5  ;;  %v3504_v44 = vmax.f32 %v3502_v23, %v3503_v38  ;;  %v3510_v61 = vrot.slane %v3509_v29, 4  ;;  %v3517_v50 = vrot.slane %v3516_v35, 4  ;;  %v3524_v41 = vrot.slane %v3523_v4, 4 }
 0x439   :  { %v11599_v57 = vmax.f32 %v3387_v59, %v3388_v24  ;;  %v3401_v8 = vmax.f32 %v3399_v10, %v3400_v46  ;;  %v2657_v0 = vrot.slane %v2545_v18, 2  ;;  %v3901_v19 = vsel %vm3825_vm8, %v11453_v62, %v3900_v20 }
 0x43a   :  { %v3395_v9 = vrot.slane %v3394_v13, 1  ;;  %v3511_v51 = vmax.f32 %v3509_v29, %v3510_v61  ;;  %v3518_v34 = vmax.f32 %v3516_v35, %v3517_v50  ;;  %v4474_v54 = vsel %vm3823_vm7, %v11453_v62, %v11401_v17 }
 0x43b   :  { %15280 = vst [vmem:[#allocation24_spill] sm:$0xff] %v11599_v57  ;;  %v3409_v58 = vrot.slane %v3408_v11, 1  ;;  %v2658_v33 = vrot.slane %v2545_v18, 4  ;;  %v2659_v23 = vrot.slane %v2545_v18, 6  ;;  %v3446_v38 = vsel %vm2773_vm6, %v2545_v18, -inf }
 0x43c   :  { %v3416_v2 = vrot.slane %v3415_v37, 1  ;;  %v3505_v59 = vrot.slane %v3504_v44, 2  ;;  %v3525_v24 = vmax.f32 %v3523_v4, %v3524_v41  ;;  %v3447_v10 = vrot.slane %v3446_v38, 4 }
 0x43d   :  { %v3402_v46 = vrot.slane %v3401_v8, 1  ;;  %v3453_v1 = vsel %vm2773_vm6, %v2657_v0, -inf  ;;  %v3460_v20 = vsel %vm2773_vm6, %v2658_v33, -inf  ;;  %v3467_v29 = vsel %vm2773_vm6, %v2659_v23, -inf }
 0x43e   :  { %v11610_v35 = vmax.f32 %v3394_v13, %v3395_v9  ;;  %v3512_v36 = vrot.slane %v3511_v51, 2  ;;  %v3519_v3 = vrot.slane %v3518_v34, 2  ;;  %v3448_v61 = vmax.f32 %v3446_v38, %v3447_v10 }
 0x43f   :  { %v11612_v50 = vmax.f32 %v3408_v11, %v3409_v58  ;;  %v3454_v62 = vrot.slane %v3453_v1, 4  ;;  %v3461_v18 = vrot.slane %v3460_v20, 4  ;;  %v3468_v17 = vrot.slane %v3467_v29, 4 }
 0x440   :  { %15281 = vst [vmem:[#allocation13_spill] sm:$0xff] %v11610_v35  ;;  %v11614_v21 = vmax.f32 %v3415_v37, %v3416_v2  ;;  %v11616_v4 = vmax.f32 %v3504_v44, %v3505_v59  ;;  %v3526_v41 = vrot.slane %v3525_v24, 2  ;;  %v3449_v0 = vrot.slane %v3448_v61, 2  ;;  %v3672_v37 = vld [vmem:[%s14443_s3 + $0x80] sm:$0xff] }
 0x441   :  { %15282 = vst [vmem:[#allocation32_spill] sm:$0xff] %v11612_v50  ;;  %v3455_v27 = vmax.f32 %v3453_v1, %v3454_v62  ;;  %v3462_v33 = vmax.f32 %v3460_v20, %v3461_v18  ;;  %v3469_v31 = vmax.f32 %v3467_v29, %v3468_v17  ;;  %v3902_v13 = vsel %vm3827_vm9, %v11578_v30, %v3901_v19  ;;  %v3673_v62 = vld [vmem:[%s14443_s3 + $0x88] sm:$0xff] }
 0x442   :  { %15283 = vst [vmem:[#allocation124_spill] sm:$0xff] %v11614_v21  ;;  %v11620_v9 = vmax.f32 %v3511_v51, %v3512_v36  ;;  %v11622_v23 = vmax.f32 %v3518_v34, %v3519_v3  ;;  %v3450_v11 = vmax.f32 %v3448_v61, %v3449_v0  ;;  %v3903_v58 = vsel %vm3829_vm10, %v11589_v6, %v3902_v13  ;;  %v2431_v51 = vpop.permute.xlu0 %2430 }
 0x443   :  { %v3456_v17 = vrot.slane %v3455_v27, 2  ;;  %v3463_v44 = vrot.slane %v3462_v33, 2  ;;  %v3470_v38 = vrot.slane %v3469_v31, 2  ;;  %v3904_v19 = vsel %vm3831_vm11, %v11591_v5, %v3903_v58  ;;  %4257 = vmatpush.msra.mxu2 %v3672_v37  ;;  %4322 = vmatpush.msrb.mxu3 %v3673_v62 }
 0x444   :  { %v3451_v34 = vrot.slane %v3450_v11, 1  ;;  %v3905_v2 = vsel %vm3833_vm12, %v11599_v57, %v3904_v19  ;;  %v11636_v59 = vmax.f32 %v3401_v8, %v3402_v46  ;;  %v4475_v10 = vsel %vm3825_vm8, %v11578_v30, %v4474_v54 }
 0x445   :  { %v3457_v1 = vmax.f32 %v3455_v27, %v3456_v17  ;;  %v3464_v20 = vmax.f32 %v3462_v33, %v3463_v44  ;;  %v11640_v29 = vmax.f32 %v3469_v31, %v3470_v38  ;;  %v3906_v36 = vsel %vm3835_vm13, %v11610_v35, %v3905_v2 }
 0x446   :  { %15284 = vst [vmem:[#allocation27_spill] sm:$0xff] %v11636_v59  ;;  %v11645_v61 = vmax.f32 %v3525_v24, %v3526_v41  ;;  %7367 = vmatmul.msk.f32.gmra.mxu2 %vm3936_vm14, %v3906_v36  ;;  %7384 = vmatmul.msk.f32.gmra.mxu3 %vm3936_vm14, %v3906_v36  ;;  %v4476_v8 = vsel %vm3827_vm9, %v11589_v6, %v4475_v10  ;;  %v15286_v41 = vld [vmem:[#allocation48_spill] sm:$0xff] }
 0x447   :  { %v2482_v27 = vsel %vm2456_vm5, %v11378_v52, %v2431_v51  ;;  %v11653_v54 = vmax.f32 %v3450_v11, %v3451_v34  ;;  %v3458_v31 = vrot.slane %v3457_v1, 1  ;;  %v3465_v46 = vrot.slane %v3464_v20, 1 }
 0x448   :  { %v4477_v18 = vsel %vm3829_vm10, %v11591_v5, %v4476_v8  ;;  %v15287_v0 = vmax.f32 %v15286_v41, 0.0  ;;  %v3907_v13 = vsel %vm3823_vm7, %v11612_v50, %v11636_v59  ;;  %v4481_v52 = vsel %vm3823_vm7, %v11614_v21, %v11612_v50 }
 0x449   :  { %15285 = vst [vmem:[#allocation126_spill] sm:$0xff] %v11653_v54  ;;  %v4478_v24 = vsel %vm3831_vm11, %v11599_v57, %v4477_v18  ;;  %v11667_v11 = vmax.f32 %v3464_v20, %v3465_v46  ;;  %v3472_v58 = vrot.slane %v11640_v29, 1  ;;  %v3908_v62 = vsel %vm3825_vm8, %v11614_v21, %v3907_v13  ;;  %v2439_v20 = vpop.permute.xlu1 %2438  ;;  %v3657_v21 = vld [vmem:[%s14443_s3 + $0x8] sm:$0xff] }
 0x44a   :  { %v2546_v33 = vmax.f32 %v15287_v0, %v2482_v27  ;;  %v4479_v37 = vsel %vm3833_vm12, %v11610_v35, %v4478_v24  ;;  %v3909_v34 = vsel %vm3827_vm9, %v11532_v22, %v3908_v62  ;;  %v11681_v2 = vmax.f32 %v3457_v1, %v3458_v31  ;;  %v2437_v0 = vpop.permute.xlu0 %2436 }
 0x44b   :  { %15288 = vst [vmem:[#allocation100_spill] sm:$0xff] %v11667_v11  ;;  %v4480_v17 = vsel %vm3835_vm13, %v11636_v59, %v4479_v37  ;;  %v4482_v10 = vsel %vm3825_vm8, %v11532_v22, %v4481_v52  ;;  %v2484_v52 = vsel %vm2456_vm5, %v2437_v0, %v2439_v20 }
 0x44c   :  { %v2660_v44 = vrot.slane %v2546_v33, 2  ;;  %v2661_v38 = vrot.slane %v2546_v33, 4  ;;  %v2662_v19 = vrot.slane %v2546_v33, 6  ;;  %7457 = vmatmul.msk.f32.gmra.mxu0 %vm3936_vm14, %v4480_v17  ;;  %7474 = vmatmul.msk.f32.gmra.mxu1 %vm3936_vm14, %v4480_v17  ;;  %v3474_v51 = vsel %vm2773_vm6, %v2546_v33, -inf  ;;  %15289 = vst [vmem:[#allocation50_spill] sm:$0xff] %v11681_v2 }
 0x44d   :  { %v3475_v36 = vrot.slane %v3474_v51, 4  ;;  %v3910_v33 = vsel %vm3829_vm10, %v11548_v28, %v3909_v34  ;;  %v4483_v13 = vsel %vm3827_vm9, %v11548_v28, %v4482_v10  ;;  %v15290_v34 = vmax.f32 %v10655_v16, 0.0 }
 0x44e   :  { %v3481_v8 = vsel %vm2773_vm6, %v2660_v44, -inf  ;;  %v3488_v27 = vsel %vm2773_vm6, %v2661_v38, -inf  ;;  %v3495_v46 = vsel %vm2773_vm6, %v2662_v19, -inf  ;;  %v3911_v31 = vsel %vm3831_vm11, %v11561_v32, %v3910_v33 }
 0x44f   :  { %v3482_v18 = vrot.slane %v3481_v8, 4  ;;  %v3489_v24 = vrot.slane %v3488_v27, 4  ;;  %v3496_v41 = vrot.slane %v3495_v46, 4  ;;  %v3476_v1 = vmax.f32 %v3474_v51, %v3475_v36 }
 0x450   :  { %v3912_v44 = vsel %vm3833_vm12, %v11571_v43, %v3911_v31  ;;  %v4484_v51 = vsel %vm3829_vm10, %v11561_v32, %v4483_v13  ;;  %v2548_v36 = vmax.f32 %v15290_v34, %v2484_v52 }
 0x451   :  { %v3483_v37 = vmax.f32 %v3481_v8, %v3482_v18  ;;  %v3490_v62 = vmax.f32 %v3488_v27, %v3489_v24  ;;  %v3497_v17 = vmax.f32 %v3495_v46, %v3496_v41  ;;  %v3477_v38 = vrot.slane %v3476_v1, 2 }
 0x452   :  { %v3913_v19 = vsel %vm3835_vm13, %v11653_v54, %v3912_v44  ;;  %v4485_v20 = vsel %vm3831_vm11, %v11571_v43, %v4484_v51  ;;  %v2666_v46 = vrot.slane %v2548_v36, 2  ;;  %v2667_v18 = vrot.slane %v2548_v36, 4  ;;  %v2443_v34 = vpop.permute.xlu0 %2442 }
 0x453   :  { %v3484_v33 = vrot.slane %v3483_v37, 2  ;;  %v3491_v10 = vrot.slane %v3490_v62, 2  ;;  %v3498_v3 = vrot.slane %v3497_v17, 2  ;;  %7368 = vmatmul.msk.f32.gmra.mxu2 %vm3936_vm14, %v3913_v19  ;;  %7385 = vmatmul.msk.f32.gmra.mxu3 %vm3936_vm14, %v3913_v19  ;;  %v3478_v8 = vmax.f32 %v3476_v1, %v3477_v38 }
 0x454   :  { %v4486_v27 = vsel %vm3833_vm12, %v11653_v54, %v4485_v20  ;;  %v2668_v13 = vrot.slane %v2548_v36, 6  ;;  %v3530_v52 = vsel %vm2773_vm6, %v2548_v36, -inf  ;;  %v3537_v1 = vsel %vm2773_vm6, %v2666_v46, -inf  ;;  %v3670_v36 = vld [vmem:[%s14443_s3 + $0x70] sm:$0xff] }
 0x455   :  { %v3485_v24 = vmax.f32 %v3483_v37, %v3484_v33  ;;  %v3492_v41 = vmax.f32 %v3490_v62, %v3491_v10  ;;  %v3499_v16 = vmax.f32 %v3497_v17, %v3498_v3  ;;  %v4487_v0 = vsel %vm3835_vm13, %v11681_v2, %v4486_v27  ;;  %4258 = vmatpush.msra.mxu2 %v3670_v36 }
 0x456   :  { %v3479_v31 = vrot.slane %v3478_v8, 1  ;;  %7458 = vmatmul.msk.f32.gmra.mxu0 %vm3936_vm14, %v4487_v0  ;;  %7475 = vmatmul.msk.f32.gmra.mxu1 %vm3936_vm14, %v4487_v0  ;;  %v11716_v44 = vmax.f32 %v11640_v29, %v3472_v58  ;;  %v3531_v62 = vrot.slane %v3530_v52, 4  ;;  %v3538_v17 = vrot.slane %v3537_v1, 4  ;;  %v3671_v29 = vld [vmem:[%s14443_s3 + $0x78] sm:$0xff] }
 0x457   :  { %v3486_v38 = vrot.slane %v3485_v24, 1  ;;  %v3493_v37 = vrot.slane %v3492_v41, 1  ;;  %v3544_v19 = vsel %vm2773_vm6, %v2667_v18, -inf  ;;  %v3551_v51 = vsel %vm2773_vm6, %v2668_v13, -inf  ;;  %4323 = vmatpush.msrb.mxu3 %v3671_v29 }
 0x458   :  { %15291 = vst [vmem:[#allocation133_spill] sm:$0xff] %v11716_v44  ;;  %v11718_v3 = vmax.f32 %v3478_v8, %v3479_v31  ;;  %v3500_v10 = vrot.slane %v3499_v16, 1  ;;  %v3532_v20 = vmax.f32 %v3530_v52, %v3531_v62  ;;  %v2441_v8 = vpop.permute.xlu2 %2440  ;;  %v3539_v27 = vmax.f32 %v3537_v1, %v3538_v17 }
 0x459   :  { %v11728_v58 = vmax.f32 %v3485_v24, %v3486_v38  ;;  %v11730_v33 = vmax.f32 %v3492_v41, %v3493_v37  ;;  %v3545_v46 = vrot.slane %v3544_v19, 4  ;;  %v3552_v18 = vrot.slane %v3551_v51, 4 }
 0x45a   :  { %15292 = vst [vmem:[#allocation105_spill] sm:$0xff] %v11718_v3  ;;  %v3914_v0 = vsel %vm3823_vm7, %v11667_v11, %v11681_v2  ;;  %v3521_v31 = vrot.slane %v11622_v23, 1  ;;  %v3533_v13 = vrot.slane %v3532_v20, 2  ;;  %v2485_v41 = vsel %vm2456_vm5, %v2441_v8, %v2443_v34  ;;  %v3668_v34 = vld [vmem:[%s14443_s3 + $0x60] sm:$0xff] }
 0x45b   :  { %15293 = vst [vmem:[#allocation128_spill] sm:$0xff] %v11728_v58  ;;  %v3915_v24 = vsel %vm3825_vm8, %v11716_v44, %v3914_v0  ;;  %v3528_v52 = vrot.slane %v11645_v61, 1  ;;  %v3540_v38 = vrot.slane %v3539_v27, 2  ;;  %v3546_v37 = vmax.f32 %v3544_v19, %v3545_v46  ;;  %v3669_v19 = vld [vmem:[%s14443_s3 + $0x68] sm:$0xff]  ;;  %4259 = vmatpush.msra.mxu2 %v3668_v34 }
 0x45c   :  { %15294 = vst [vmem:[#allocation113_spill] sm:$0xff] %v11730_v33  ;;  %v3916_v1 = vsel %vm3827_vm9, %v11718_v3, %v3915_v24  ;;  %v11742_v62 = vmax.f32 %v3499_v16, %v3500_v10  ;;  %v3553_v17 = vmax.f32 %v3551_v51, %v3552_v18  ;;  %v15296_v29 = vmax.f32 %v10748_v42, 0.0  ;;  %4324 = vmatpush.msrb.mxu3 %v3669_v19 }
 0x45d   :  { %v3917_v36 = vsel %vm3829_vm10, %v11728_v58, %v3916_v1  ;;  %v15297_v8 = vrot.slane %v11616_v4, 1  ;;  %v3514_v51 = vrot.slane %v11620_v9, 1  ;;  %v3534_v10 = vmax.f32 %v3532_v20, %v3533_v13 }
 0x45e   :  { %15295 = vst [vmem:[#allocation116_spill] sm:$0xff] %v11742_v62  ;;  %v2549_v43 = vmax.f32 %v15296_v29, %v2485_v41  ;;  %v3918_v42 = vsel %vm3831_vm11, %v11730_v33, %v3917_v36  ;;  %v11763_v46 = vmax.f32 %v11622_v23, %v3521_v31  ;;  %v2445_v41 = vpop.permute.xlu1 %2444  ;;  %v3541_v1 = vmax.f32 %v3539_v27, %v3540_v38 }
 0x45f   :  { %v11757_v16 = vmax.f32 %v11616_v4, %v15297_v8  ;;  %v3919_v18 = vsel %vm3833_vm12, %v11742_v62, %v3918_v42  ;;  %v11768_v4 = vmax.f32 %v11645_v61, %v3528_v52  ;;  %v3547_v29 = vrot.slane %v3546_v37, 2 }
 0x460   :  { %15299 = vst [vmem:[#allocation121_spill] sm:$0xff] %v11763_v46  ;;  %v2669_v0 = vrot.slane %v2549_v43, 2  ;;  %v2670_v24 = vrot.slane %v2549_v43, 4  ;;  %v3554_v13 = vrot.slane %v3553_v17, 2  ;;  %v2671_v23 = vrot.slane %v2549_v43, 6 }
 0x461   :  { %15298 = vst [vmem:[#allocation125_spill] sm:$0xff] %v11757_v16  ;;  %v3920_v20 = vsel %vm3835_vm13, %v11757_v16, %v3919_v18  ;;  %v3558_v31 = vsel %vm2773_vm6, %v2549_v43, -inf  ;;  %v3535_v34 = vrot.slane %v3534_v10, 1  ;;  %v11777_v61 = vmax.f32 %v11620_v9, %v3514_v51  ;;  %v2447_v43 = vpop.permute.xlu2 %2446 }
 0x462   :  { %7369 = vmatmul.msk.f32.gmra.mxu2 %vm3936_vm14, %v3920_v20  ;;  %7386 = vmatmul.msk.f32.gmra.mxu3 %vm3936_vm14, %v3920_v20  ;;  %v3565_v36 = vsel %vm2773_vm6, %v2669_v0, -inf  ;;  %v3559_v19 = vrot.slane %v3558_v31, 4  ;;  %v4488_v27 = vsel %vm3823_vm7, %v11716_v44, %v11667_v11  ;;  %v3572_v38 = vsel %vm2773_vm6, %v2670_v24, -inf }
 0x463   :  { %15300 = vst [vmem:[#allocation8_spill] sm:$0xff] %v11777_v61  ;;  %v3566_v52 = vrot.slane %v3565_v36, 4  ;;  %v3579_v8 = vsel %vm2773_vm6, %v2671_v23, -inf  ;;  %v4489_v42 = vsel %vm3825_vm8, %v11718_v3, %v4488_v27  ;;  %v3542_v18 = vrot.slane %v3541_v1, 1 }
 0x464   :  { %v3548_v0 = vmax.f32 %v3546_v37, %v3547_v29  ;;  %v3560_v20 = vmax.f32 %v3558_v31, %v3559_v19  ;;  %v3573_v2 = vrot.slane %v3572_v38, 4  ;;  %v11786_v54 = vmax.f32 %v3553_v17, %v3554_v13  ;;  %v3666_v37 = vld [vmem:[%s14443_s3 + $0x50] sm:$0xff]  ;;  %v3667_v17 = vld [vmem:[%s14443_s3 + $0x58] sm:$0xff]  ;;  %v7557_v31 = vld [vmem:[%s14443_s3 + $0x368] sm:$0xf] }
 0x465   :  { %v3580_v9 = vrot.slane %v3579_v8, 4  ;;  %v4490_v51 = vsel %vm3827_vm9, %v11728_v58, %v4489_v42  ;;  %v2486_v44 = vsel %vm2456_vm5, %v2445_v41, %v2447_v43  ;;  %v3567_v11 = vmax.f32 %v3565_v36, %v3566_v52  ;;  %v7556_v41 = vld [vmem:[%s14443_s3 + $0x360] sm:$0xf]  ;;  %4260 = vmatpush.msra.mxu2 %v3666_v37  ;;  %4325 = vmatpush.msrb.mxu3 %v3667_v17 }
 0x466   :  { %v3574_v24 = vmax.f32 %v3572_v38, %v3573_v2  ;;  %v4491_v23 = vsel %vm3829_vm10, %v11730_v33, %v4490_v51  ;;  %v15301_v27 = vmax.f32 %v10804_v55, 0.0  ;;  %v11804_v29 = vmax.f32 %v3534_v10, %v3535_v34  ;;  %7558 = vmatpush.msk.msra.mxu0 %vm1712_vm4, %v7556_v41  ;;  %7575 = vmatpush.msk.msrb.mxu1 %vm1712_vm4, %v7557_v31  ;;  %v7554_v10 = vld [vmem:[%s14443_s3 + $0x350] sm:$0xff]  ;;  %v7555_v34 = vld [vmem:[%s14443_s3 + $0x358] sm:$0xff]  ;;  %v2449_v51 = vpop.permute.xlu0 %2448  ;;  %v3664_v41 = vld [vmem:[%s14443_s3 + $0x40] sm:$0xff] }
 0x467   :  { %v3561_v2 = vrot.slane %v3560_v20, 2  ;;  %v3581_v13 = vmax.f32 %v3579_v8, %v3580_v9  ;;  %v4492_v55 = vsel %vm3831_vm11, %v11742_v62, %v4491_v23  ;;  %v3549_v36 = vrot.slane %v3548_v0, 1  ;;  %v7552_v23 = vld [vmem:[%s14443_s3 + $0x340] sm:$0xff]  ;;  %v7550_v33 = vld [vmem:[%s14443_s3 + $0x330] sm:$0xff]  ;;  %4261 = vmatpush.msra.mxu2 %v3664_v41 }
 0x468   :  { %v2550_v3 = vmax.f32 %v15301_v27, %v2486_v44  ;;  %v2451_v44 = vpop.permute.xlu1 %2450  ;;  %v3575_v19 = vrot.slane %v3574_v24, 2  ;;  %v4493_v52 = vsel %vm3833_vm12, %v11757_v16, %v4492_v55  ;;  %v11821_v8 = vmax.f32 %v3541_v1, %v3542_v18  ;;  %v7553_v18 = vld [vmem:[%s14443_s3 + $0x348] sm:$0xff]  ;;  %5214 = vmatpush.msra.mxu0 %v7554_v10  ;;  %5279 = vmatpush.msrb.mxu1 %v7555_v34 }
 0x469   :  { %v3582_v42 = vrot.slane %v3581_v13, 2  ;;  %v4494_v43 = vsel %vm3835_vm13, %v11777_v61, %v4493_v52  ;;  %v3568_v27 = vrot.slane %v3567_v11, 2  ;;  %v2487_v1 = vsel %vm2456_vm5, %v2449_v51, %v2451_v44  ;;  %v3665_v55 = vld [vmem:[%s14443_s3 + $0x48] sm:$0xff] }
 0x46a   :  { %v2672_v38 = vrot.slane %v2550_v3, 2  ;;  %v2673_v9 = vrot.slane %v2550_v3, 4  ;;  %7459 = vmatmul.msk.f32.gmra.mxu0 %vm3936_vm14, %v4494_v43  ;;  %7476 = vmatmul.msk.f32.gmra.mxu1 %vm3936_vm14, %v4494_v43  ;;  %v2674_v37 = vrot.slane %v2550_v3, 6  ;;  %v3586_v17 = vsel %vm2773_vm6, %v2550_v3, -inf }
 0x46b   :  { %v11841_v31 = vmax.f32 %v3560_v20, %v3561_v2  ;;  %v11843_v52 = vmax.f32 %v3574_v24, %v3575_v19  ;;  %v3587_v43 = vrot.slane %v3586_v17, 4  ;;  %v11846_v44 = vmax.f32 %v3548_v0, %v3549_v36  ;;  %v7551_v20 = vld [vmem:[%s14443_s3 + $0x338] sm:$0xff]  ;;  %4326 = vmatpush.msrb.mxu3 %v3665_v55  ;;  %5215 = vmatpush.msra.mxu0 %v7552_v23  ;;  %v3662_v19 = vld [vmem:[%s14443_s3 + $0x30] sm:$0xff]  ;;  %v7548_v23 = vld [vmem:[%s14443_s3 + $0x320] sm:$0xff] }
 0x46c   :  { %v3593_v3 = vsel %vm2773_vm6, %v2672_v38, -inf  ;;  %v3556_v51 = vrot.slane %v11786_v54, 1  ;;  %v3600_v62 = vsel %vm2773_vm6, %v2673_v9, -inf  ;;  %v11856_v24 = vmax.f32 %v3581_v13, %v3582_v42  ;;  %5280 = vmatpush.msrb.mxu1 %v7553_v18  ;;  %v3663_v38 = vld [vmem:[%s14443_s3 + $0x38] sm:$0xff]  ;;  %4262 = vmatpush.msra.mxu2 %v3662_v19  ;;  %v3658_v19 = vld [vmem:[%s14443_s3 + $0x10] sm:$0xff] }
 0x46d   :  { %v3594_v16 = vrot.slane %v3593_v3, 4  ;;  %v3588_v2 = vmax.f32 %v3586_v17, %v3587_v43  ;;  %v3601_v0 = vrot.slane %v3600_v62, 4  ;;  %v3607_v36 = vsel %vm2773_vm6, %v2674_v37, -inf  ;;  %v7549_v37 = vld [vmem:[%s14443_s3 + $0x328] sm:$0xff]  ;;  %4327 = vmatpush.msrb.mxu3 %v3663_v38  ;;  %5216 = vmatpush.msra.mxu0 %v7550_v33  ;;  %v7547_v43 = vld [vmem:[%s14443_s3 + $0x318] sm:$0xff] }
 0x46e   :  { %v11865_v10 = vmax.f32 %v3567_v11, %v3568_v27  ;;  %v3608_v9 = vrot.slane %v3607_v36, 4  ;;  %v15302_v13 = vmax.f32 %v10875_v39, 0.0  ;;  %v3563_v17 = vrot.slane %v11841_v31, 1  ;;  %5281 = vmatpush.msrb.mxu1 %v7551_v20  ;;  %v7546_v39 = vld [vmem:[%s14443_s3 + $0x310] sm:$0xff]  ;;  %v3661_v33 = vld [vmem:[%s14443_s3 + $0x28] sm:$0xff]  ;;  %v3659_v38 = vld [vmem:[%s14443_s3 + $0x18] sm:$0xff] }
 0x46f   :  { %v3595_v34 = vmax.f32 %v3593_v3, %v3594_v16  ;;  %v3577_v11 = vrot.slane %v11843_v52, 1  ;;  %v3589_v16 = vrot.slane %v3588_v2, 2  ;;  %v3602_v27 = vmax.f32 %v3600_v62, %v3601_v0  ;;  %v3660_v62 = vld [vmem:[%s14443_s3 + $0x20] sm:$0xff]  ;;  %5217 = vmatpush.msra.mxu0 %v7548_v23  ;;  %v7545_v23 = vld [vmem:[%s14443_s3 + $0x308] sm:$0xff]  ;;  %4328 = vmatpush.msrb.mxu3 %v3661_v33 }
 0x470   :  { %v11869_v42 = vmax.f32 %v15302_v13, %v2487_v1  ;;  %v3609_v18 = vmax.f32 %v3607_v36, %v3608_v9  ;;  %v3584_v3 = vrot.slane %v11856_v24, 1  ;;  %5282 = vmatpush.msrb.mxu1 %v7549_v37  ;;  %4263 = vmatpush.msra.mxu2 %v3660_v62  ;;  %v11910_v37 = vmax.f32 %v11786_v54, %v3556_v51  ;;  %v7542_v51 = vld [vmem:[%s14443_s3 + $0x2f0] sm:$0xff] }
 0x471   :  { %v3596_v1 = vrot.slane %v3595_v34, 2  ;;  %v3590_v20 = vmax.f32 %v3588_v2, %v3589_v16  ;;  %v3603_v0 = vrot.slane %v3602_v27, 2  ;;  %v7544_v2 = vld [vmem:[%s14443_s3 + $0x300] sm:$0xff]  ;;  %v3570_v16 = vrot.slane %v11865_v10, 1  ;;  %5218 = vmatpush.msra.mxu0 %v7546_v39  ;;  %v7543_v39 = vld [vmem:[%s14443_s3 + $0x2f8] sm:$0xff]  ;;  %4329 = vmatpush.msrb.mxu3 %v3659_v38 }
 0x472   :  { %v2675_v41 = vrot.slane %v11869_v42, 2  ;;  %v2676_v55 = vrot.slane %v11869_v42, 4  ;;  %v3614_v36 = vsel %vm2773_vm6, %v11869_v42, -inf  ;;  %v3610_v13 = vrot.slane %v3609_v18, 2  ;;  %5283 = vmatpush.msrb.mxu1 %v7547_v43  ;;  %4264 = vmatpush.msra.mxu2 %v3658_v19  ;;  %v7540_v19 = vld [vmem:[%s14443_s3 + $0x2e0] sm:$0xff] }
 0x473   :  { %v3597_v9 = vmax.f32 %v3595_v34, %v3596_v1  ;;  %v3615_v58 = vrot.slane %v3614_v36, 4  ;;  %v3591_v34 = vrot.slane %v3590_v20, 1  ;;  %v3604_v28 = vmax.f32 %v3602_v27, %v3603_v0  ;;  %5219 = vmatpush.msra.mxu0 %v7544_v2  ;;  %4330 = vmatpush.msrb.mxu3 %v3657_v21 }
 0x474   :  { %v3621_v32 = vsel %vm2773_vm6, %v2675_v41, -inf  ;;  %v3656_v41 = vld [vmem:[%s14443_s3] sm:$0xff]  ;;  %v3628_v33 = vsel %vm2773_vm6, %v2676_v55, -inf  ;;  %v3921_v54 = vsel %vm3823_vm7, %v11763_v46, %v11777_v61  ;;  %v11930_v43 = vmax.f32 %v11841_v31, %v3563_v17  ;;  %5284 = vmatpush.msrb.mxu1 %v7545_v23 }
 0x475   :  { %v3622_v1 = vrot.slane %v3621_v32, 4  ;;  %v3616_v62 = vmax.f32 %v3614_v36, %v3615_v58  ;;  %v11933_v58 = vmax.f32 %v11843_v52, %v3577_v11  ;;  %v2677_v27 = vrot.slane %v11869_v42, 6  ;;  %4265 = vmatpush.msra.mxu2 %v3656_v41  ;;  %5220 = vmatpush.msra.mxu0 %v7542_v51  ;;  %v7537_v51 = vld [vmem:[%s14443_s3 + $0x2c8] sm:$0xff] }
 0x476   :  { %15303 = vst [vmem:[#allocation123_spill] sm:$0xff] %v11930_v43  ;;  %v11937_v0 = vmax.f32 %v11856_v24, %v3584_v3  ;;  %v3598_v36 = vrot.slane %v3597_v9, 1  ;;  %v3611_v61 = vmax.f32 %v3609_v18, %v3610_v13  ;;  %v11942_v31 = vmax.f32 %v3590_v20, %v3591_v34  ;;  %5285 = vmatpush.msrb.mxu1 %v7543_v39  ;;  %v7541_v24 = vld [vmem:[%s14443_s3 + $0x2e8] sm:$0xff]  ;;  %v7538_v3 = vld [vmem:[%s14443_s3 + $0x2d0] sm:$0xff] }
 0x477   :  { %v3623_v55 = vmax.f32 %v3621_v32, %v3622_v1  ;;  %v3617_v22 = vrot.slane %v3616_v62, 2  ;;  %v3629_v17 = vrot.slane %v3628_v33, 4  ;;  %v3922_v32 = vsel %vm3825_vm8, %v11768_v4, %v3921_v54  ;;  %5221 = vmatpush.msra.mxu0 %v7540_v19  ;;  %v7536_v54 = vld [vmem:[%s14443_s3 + $0x2c0] sm:$0xff] }
 0x478   :  { %v3605_v42 = vrot.slane %v3604_v28, 1  ;;  %v3923_v18 = vsel %vm3827_vm9, %v11804_v29, %v3922_v32  ;;  %v11952_v21 = vmax.f32 %v11865_v10, %v3570_v16  ;;  %v3635_v38 = vsel %vm2773_vm6, %v2677_v27, -inf  ;;  %v7539_v10 = vld [vmem:[%s14443_s3 + $0x2d8] sm:$0xff]  ;;  %5286 = vmatpush.msrb.mxu1 %v7541_v24 }
 0x479   :  { %v3624_v52 = vrot.slane %v3623_v55, 2  ;;  %v3618_v11 = vmax.f32 %v3616_v62, %v3617_v22  ;;  %v3924_v13 = vsel %vm3829_vm10, %v11821_v8, %v3923_v18  ;;  %v4495_v22 = vsel %vm3823_vm7, %v11768_v4, %v11763_v46  ;;  %5222 = vmatpush.msra.mxu0 %v7538_v3 }
 0x47a   :  { %v11966_v2 = vmax.f32 %v3597_v9, %v3598_v36  ;;  %v3925_v16 = vsel %vm3831_vm11, %v11846_v44, %v3924_v13  ;;  %v4496_v34 = vsel %vm3825_vm8, %v11804_v29, %v4495_v22  ;;  %v3612_v1 = vrot.slane %v3611_v61, 1  ;;  %5287 = vmatpush.msrb.mxu1 %v7539_v10 }
 0x47b   :  { %v3625_v20 = vmax.f32 %v3623_v55, %v3624_v52  ;;  %v3619_v23 = vrot.slane %v3618_v11, 1  ;;  %v3926_v41 = vsel %vm3833_vm12, %v11910_v37, %v3925_v16  ;;  %v4497_v62 = vsel %vm3827_vm9, %v11821_v8, %v4496_v34  ;;  %5223 = vmatpush.msra.mxu0 %v7536_v54 }
 0x47c   :  { %v3928_v9 = vsel %vm3823_vm7, %v11933_v58, %v11952_v21  ;;  %v11985_v39 = vmax.f32 %v3604_v28, %v3605_v42  ;;  %v3630_v27 = vmax.f32 %v3628_v33, %v3629_v17  ;;  %v3927_v55 = vsel %vm3835_vm13, %v11930_v43, %v3926_v41  ;;  %5288 = vmatpush.msrb.mxu1 %v7537_v51 }
 0x47d   :  { %v4498_v36 = vsel %vm3829_vm10, %v11846_v44, %v4497_v62  ;;  %v3626_v19 = vrot.slane %v3625_v20, 1  ;;  %v3636_v52 = vrot.slane %v3635_v38, 4  ;;  %7370 = vmatmul.msk.f32.gmra.mxu2 %vm3936_vm14, %v3927_v55  ;;  %7387 = vmatmul.msk.f32.gmra.mxu3 %vm3936_vm14, %v3927_v55  ;;  %v3929_v28 = vsel %vm3825_vm8, %v11937_v0, %v3928_v9 }
 0x47e   :  { %v4499_v32 = vsel %vm3831_vm11, %v11910_v37, %v4498_v36  ;;  %v11997_v33 = vmax.f32 %v3618_v11, %v3619_v23  ;;  %v3930_v24 = vsel %vm3827_vm9, %v11942_v31, %v3929_v28  ;;  %v12003_v42 = vmax.f32 %v3611_v61, %v3612_v1  ;;  %v15304_v36 = vld [vmem:[#allocation43_spill] sm:$0xff]  ;;  %v15307_v28 = vld [vmem:[#allocation16_spill] sm:$0xff] }
 0x47f   :  { %v4500_v17 = vsel %vm3833_vm12, %v11930_v43, %v4499_v32  ;;  %v3931_v3 = vsel %vm3829_vm10, %v11966_v2, %v3930_v24  ;;  %v4502_v11 = vsel %vm3823_vm7, %v11937_v0, %v11933_v58  ;;  %v3631_v22 = vrot.slane %v3630_v27, 2  ;;  %v15306_v32 = vld [vmem:[#allocation56_spill] sm:$0xff] }
 0x480   :  { %v4501_v18 = vsel %vm3835_vm13, %v11952_v21, %v4500_v17  ;;  %v3932_v13 = vsel %vm3831_vm11, %v11985_v39, %v3931_v3  ;;  %v4503_v61 = vsel %vm3825_vm8, %v11942_v31, %v4502_v11  ;;  %v12020_v23 = vmax.f32 %v3625_v20, %v3626_v19  ;;  %v15305_v19 = vld [vmem:[#allocation51_spill] sm:$0xff]  ;;  %v15309_v11 = vld [vmem:[#allocation41_spill] sm:$0xff] }
 0x481   :  { %7460 = vmatmul.msk.f32.gmra.mxu0 %vm3936_vm14, %v4501_v18  ;;  %7477 = vmatmul.msk.f32.gmra.mxu1 %vm3936_vm14, %v4501_v18  ;;  %v3933_v10 = vsel %vm3833_vm12, %v12003_v42, %v3932_v13  ;;  %v4504_v16 = vsel %vm3827_vm9, %v11966_v2, %v4503_v61  ;;  %v3637_v34 = vmax.f32 %v3635_v38, %v3636_v52  ;;  %v15308_v18 = vld [vmem:[#allocation46_spill] sm:$0xff] }
 0x482   :  { %v3934_v1 = vsel %vm3835_vm13, %v11997_v33, %v3933_v10  ;;  %v4505_v41 = vsel %vm3829_vm10, %v11985_v39, %v4504_v16  ;;  %v3632_v62 = vmax.f32 %v3630_v27, %v3631_v22  ;;  %v5064_v27 = vsel %vm3823_vm7, %v15305_v19, %v15304_v36  ;;  %v15310_v10 = vld [vmem:[#allocation19_spill] sm:$0xff] }
 0x483   :  { %v4506_v9 = vsel %vm3831_vm11, %v12003_v42, %v4505_v41  ;;  %v3638_v54 = vrot.slane %v3637_v34, 2  ;;  %v4107_v17 = vsel %vm3825_vm8, %v15307_v28, %v15306_v32  ;;  %v5065_v3 = vsel %vm3825_vm8, %v15308_v18, %v5064_v27  ;;  %v15312_v41 = vld [vmem:[#allocation37_spill] sm:$0xff]  ;;  %v15315_v27 = vld [vmem:[#allocation55_spill] sm:$0xff] }
 0x484   :  { %v4507_v51 = vsel %vm3833_vm12, %v11997_v33, %v4506_v9  ;;  %v3633_v20 = vrot.slane %v3632_v62, 1  ;;  %v4108_v13 = vsel %vm3827_vm9, %v15309_v11, %v4107_v17  ;;  %v5066_v16 = vsel %vm3827_vm9, %v15310_v10, %v5065_v3  ;;  %v15316_v17 = vld [vmem:[#allocation39_spill] sm:$0xff] }
 0x485   :  { %7371 = vmatmul.msk.f32.gmra.mxu2 %vm3936_vm14, %v3934_v1  ;;  %7388 = vmatmul.msk.f32.gmra.mxu3 %vm3936_vm14, %v3934_v1  ;;  %v4508_v38 = vsel %vm3835_vm13, %v12020_v23, %v4507_v51  ;;  %v3639_v55 = vmax.f32 %v3637_v34, %v3638_v54  ;;  %v4109_v22 = vsel %vm3829_vm10, %v15304_v36, %v4108_v13  ;;  %v15311_v1 = vld [vmem:[#allocation40_spill] sm:$0xff]  ;;  %v15317_v13 = vld [vmem:[#allocation63_spill] sm:$0xff] }
 0x486   :  { %v12044_v24 = vmax.f32 %v3632_v62, %v3633_v20  ;;  %v4113_v62 = vsel %vm3823_vm7, %v15312_v41, %v15311_v1  ;;  %v4110_v9 = vsel %vm3831_vm11, %v15305_v19, %v4109_v22  ;;  %v5067_v54 = vsel %vm3829_vm10, %v15311_v1, %v5066_v16  ;;  %v15313_v20 = vld [vmem:[#allocation42_spill] sm:$0xff] }
 0x487   :  { %v3640_v52 = vrot.slane %v3639_v55, 1  ;;  %v4111_v32 = vsel %vm3833_vm12, %v15308_v18, %v4110_v9  ;;  %v5068_v28 = vsel %vm3831_vm11, %v15312_v41, %v5067_v54  ;;  %v15318_v16 = vld [vmem:[#allocation66_spill] sm:$0xff] }
 0x488   :  { %v3935_v34 = vsel %vm3823_vm7, %v12044_v24, %v12020_v23  ;;  %v5069_v9 = vsel %vm3833_vm12, %v15313_v20, %v5068_v28  ;;  %v15319_v54 = vld [vmem:[#allocation58_spill] sm:$0xff]  ;;  %v5078_v28 = vsel %vm3823_vm7, %v10677_v56, %v10669_v14 }
 0x489   :  { %7461 = vmatmul.msk.f32.gmra.mxu0 %vm3936_vm14, %v4508_v38  ;;  %7478 = vmatmul.msk.f32.gmra.mxu1 %vm3936_vm14, %v4508_v38  ;;  %v12050_v61 = vmax.f32 %v3639_v55, %v3640_v52  ;;  %v4114_v38 = vsel %vm3825_vm8, %v15313_v20, %v4113_v62  ;;  %v15314_v55 = vld [vmem:[#allocation60_spill] sm:$0xff]  ;;  %v12112_v20 = vpop.f32.mrf.mxu3 }
 0x48a   :  { %v5071_v52 = vsel %vm3823_vm7, %v15315_v27, %v15314_v55  ;;  %v4115_v3 = vsel %vm3827_vm9, %v15316_v17, %v4114_v38  ;;  %15321 = vst [vmem:[#allocation127_spill] sm:$0xff] %v12112_v20 }
 0x48b   :  { %v4509_v51 = vsel %vm3823_vm7, %v12050_v61, %v12044_v24  ;;  %v5072_v22 = vsel %vm3825_vm8, %v15317_v13, %v5071_v52  ;;  %v4116_v62 = vsel %vm3829_vm10, %v15314_v55, %v4115_v3 }
 0x48c   :  { %v5073_v38 = vsel %vm3827_vm9, %v15319_v54, %v5072_v22  ;;  %v4117_v41 = vsel %vm3831_vm11, %v15315_v27, %v4116_v62 }
 0x48d   :  { %7372 = vmatmul.msk.f32.gmra.mxu2 %vm3936_vm14, %v3935_v34  ;;  %7389 = vmatmul.msk.f32.gmra.mxu3 %vm3936_vm14, %v3935_v34  ;;  %v4120_v34 = vsel %vm3823_vm7, %v10781_v40, %v15318_v16  ;;  %v5074_v3 = vsel %vm3829_vm10, %v15318_v16, %v5073_v38 }
 0x48e   :  { %v4121_v52 = vsel %vm3825_vm8, %v10764_v53, %v4120_v34  ;;  %v4118_v34 = vsel %vm3833_vm12, %v15317_v13, %v4117_v41  ;;  %v5075_v62 = vsel %vm3831_vm11, %v10781_v40, %v5074_v3  ;;  %v15324_v41 = vld [vmem:[#allocation52_spill] sm:$0xff]  ;;  %v15326_v40 = vld [vmem:[#allocation81_spill] sm:$0xff] }
 0x48f   :  { %v4122_v22 = vsel %vm3827_vm9, %v10812_v63, %v4121_v52  ;;  %v4119_v20 = vsel %vm3835_vm13, %v15319_v54, %v4118_v34  ;;  %v15323_v52 = vld [vmem:[#allocation3_spill] sm:$0xff]  ;;  %v15327_v54 = vld [vmem:[#allocation78_spill] sm:$0xff] }
 0x490   :  { %v4123_v38 = vsel %vm3829_vm10, %v10669_v14, %v4122_v22 }
 0x491   :  { %7462 = vmatmul.msk.f32.gmra.mxu0 %vm3936_vm14, %v4509_v51  ;;  %7479 = vmatmul.msk.f32.gmra.mxu1 %vm3936_vm14, %v4509_v51  ;;  %v4112_v51 = vsel %vm3835_vm13, %v15310_v10, %v4111_v32  ;;  %v5070_v32 = vsel %vm3835_vm13, %v15316_v17, %v5069_v9  ;;  %v5079_v9 = vsel %vm3825_vm8, %v10686_v48, %v5078_v28  ;;  %v15325_v28 = vld [vmem:[#allocation80_spill] sm:$0xff]  ;;  %v12150_v13 = vpop.f32.mrf.mxu3 }
 0x492   :  { %v5080_v3 = vsel %vm3827_vm9, %v15324_v41, %v5079_v9  ;;  %v5085_v22 = vsel %vm3823_vm7, %v15326_v40, %v15325_v28  ;;  %v4124_v34 = vsel %vm3831_vm11, %v10677_v56, %v4123_v38  ;;  %15329 = vst [vmem:[#allocation131_spill] sm:$0xff] %v12150_v13  ;;  %v15330_v9 = vld [vmem:[#allocation76_spill] sm:$0xff]  ;;  %v15332_v13 = vld [vmem:[#allocation111_spill] sm:$0xff] }
 0x493   :  { %v5086_v38 = vsel %vm3825_vm8, %v15330_v9, %v5085_v22 }
 0x494   :  { %v5087_v56 = vsel %vm3827_vm9, %v15332_v13, %v5086_v38 }
 0x495   :  { %7391 = vmatmul.msk.f32.vlgmr.msra.gmra.mxu2 %vm3936_vm14, %v4112_v51  ;;  %7408 = vmatmul.msk.f32.vlgmr.msrb.gmra.mxu3 %vm3936_vm14, %v4112_v51  ;;  %v12110_v51 = vpop.f32.mrf.mxu2 }
 0x496   :  { %15320 = vst [vmem:[#allocation28_spill] sm:$0xff] %v12110_v51  ;;  %v15322_v51 = vld [vmem:[#allocation70_spill] sm:$0xff] }
 0x497   :  { %v4127_v16 = vsel %vm3823_vm7, %v15323_v52, %v15322_v51 }
 0x498   :  { %v4128_v14 = vsel %vm3825_vm8, %v15327_v54, %v4127_v16 }
 0x499   :  { %7559 = vmatmul.msk.f32.vlgmr.msra.gmra.mxu0 %vm3936_vm14, %v5070_v32  ;;  %7576 = vmatmul.msk.f32.vlgmr.msrb.gmra.mxu1 %vm3936_vm14, %v5070_v32  ;;  %v5076_v32 = vsel %vm3833_vm12, %v10764_v53, %v5075_v62  ;;  %v5081_v62 = vsel %vm3829_vm10, %v15322_v51, %v5080_v3  ;;  %v4125_v3 = vsel %vm3833_vm12, %v10686_v48, %v4124_v34  ;;  %v15331_v51 = vld [vmem:[#allocation73_spill] sm:$0xff]  ;;  %v15334_v34 = vld [vmem:[#allocation84_spill] sm:$0xff] }
 0x49a   :  { %v5077_v53 = vsel %vm3835_vm13, %v10812_v63, %v5076_v32  ;;  %v5082_v32 = vsel %vm3831_vm11, %v15323_v52, %v5081_v62  ;;  %v4129_v16 = vsel %vm3827_vm9, %v15331_v51, %v4128_v14  ;;  %v15333_v63 = vld [vmem:[#allocation72_spill] sm:$0xff] }
 0x49b   :  { %v5083_v22 = vsel %vm3833_vm12, %v15327_v54, %v5082_v32  ;;  %v4134_v48 = vsel %vm3823_vm7, %v15334_v34, %v15333_v63  ;;  %v5088_v62 = vsel %vm3829_vm10, %v15333_v63, %v5087_v56  ;;  %v15337_v54 = vld [vmem:[#allocation87_spill] sm:$0xff] }
 0x49c   :  { %v5084_v38 = vsel %vm3835_vm13, %v15331_v51, %v5083_v22  ;;  %v15341_v22 = vld [vmem:[#allocation82_spill] sm:$0xff] }
 0x49d   :  { %7392 = vmatmul.msk.f32.gmra.mxu2 %vm3936_vm14, %v4119_v20  ;;  %7409 = vmatmul.msk.f32.gmra.mxu3 %vm3936_vm14, %v4119_v20  ;;  %v12148_v20 = vpop.f32.mrf.mxu2 }
 0x49e   :  { %15328 = vst [vmem:[#allocation129_spill] sm:$0xff] %v12148_v20  ;;  %v4130_v20 = vsel %vm3829_vm10, %v15325_v28, %v4129_v16  ;;  %v15336_v16 = vld [vmem:[#allocation15_spill] sm:$0xff]  ;;  %v12188_v28 = vpop.f32.mrf.mxu3 }
 0x49f   :  { %v4131_v14 = vsel %vm3831_vm11, %v15326_v40, %v4130_v20  ;;  %v5092_v52 = vsel %vm3823_vm7, %v15337_v54, %v15336_v16  ;;  %15339 = vst [vmem:[#allocation130_spill] sm:$0xff] %v12188_v28  ;;  %v5089_v20 = vsel %vm3831_vm11, %v15334_v34, %v5088_v62  ;;  %v15342_v40 = vld [vmem:[#allocation12_spill] sm:$0xff]  ;;  %v15344_v34 = vld [vmem:[#allocation59_spill] sm:$0xff] }
 0x4a0   :  { %v4132_v56 = vsel %vm3833_vm12, %v15330_v9, %v4131_v14  ;;  %v5093_v63 = vsel %vm3825_vm8, %v15341_v22, %v5092_v52  ;;  %v7501_v14 = vld [vmem:[%s14443_s3 + $0x2b8] sm:$0xf] }
 0x4a1   :  { %7560 = vmatmul.msk.f32.gmra.mxu0 %vm3936_vm14, %v5077_v53  ;;  %7577 = vmatmul.msk.f32.gmra.mxu1 %vm3936_vm14, %v5077_v53  ;;  %v4126_v53 = vsel %vm3835_vm13, %v15324_v41, %v4125_v3  ;;  %v15335_v3 = vld [vmem:[#allocation67_spill] sm:$0xff]  ;;  %v4133_v52 = vsel %vm3835_vm13, %v15332_v13, %v4132_v56  ;;  %v5094_v9 = vsel %vm3827_vm9, %v15344_v34, %v5093_v63 }
 0x4a2   :  { %v4135_v32 = vsel %vm3825_vm8, %v15335_v3, %v4134_v48  ;;  %7519 = vmatpush.msk.msra.mxu3 %vm1712_vm4, %v7501_v14  ;;  %v5095_v14 = vsel %vm3829_vm10, %v15342_v40, %v5094_v9  ;;  %v7499_v9 = vld [vmem:[%s14443_s3 + $0x2a8] sm:$0xff] }
 0x4a4   :  { %4949 = vmatpush.msra.mxu3 %v7499_v9  ;;  %v15352_v9 = vld [vmem:[#allocation114_spill] sm:$0xff] }
 0x4a5   :  { %7393 = vmatmul.msk.f32.gmra.mxu2 %vm3936_vm14, %v4126_v53  ;;  %7410 = vmatmul.msk.f32.gmra.mxu3 %vm3936_vm14, %v4126_v53  ;;  %v12186_v41 = vpop.f32.mrf.mxu2  ;;  %v15340_v53 = vld [vmem:[#allocation75_spill] sm:$0xff] }
 0x4a6   :  { %15338 = vst [vmem:[#allocation31_spill] sm:$0xff] %v12186_v41  ;;  %v4136_v48 = vsel %vm3827_vm9, %v15340_v53, %v4135_v32  ;;  %v15343_v41 = vld [vmem:[#allocation88_spill] sm:$0xff]  ;;  %v5090_v32 = vsel %vm3833_vm12, %v15335_v3, %v5089_v20  ;;  %v5099_v20 = vsel %vm3823_vm7, %v11006_v26, %v10930_v7  ;;  %v12234_v3 = vpop.f32.mrf.mxu3 }
 0x4a7   :  { %v4141_v28 = vsel %vm3823_vm7, %v15343_v41, %v15342_v40  ;;  %v4137_v62 = vsel %vm3829_vm10, %v15336_v16, %v4136_v48  ;;  %v5091_v56 = vsel %vm3835_vm13, %v15340_v53, %v5090_v32  ;;  %15346 = vst [vmem:[#allocation26_spill] sm:$0xff] %v12234_v3  ;;  %v5096_v32 = vsel %vm3831_vm11, %v15343_v41, %v5095_v14  ;;  %v15349_v16 = vld [vmem:[#allocation62_spill] sm:$0xff] }
 0x4a8   :  { %v4142_v48 = vsel %vm3825_vm8, %v11071_v49, %v4141_v28  ;;  %v7498_v28 = vld [vmem:[%s14443_s3 + $0x2a0] sm:$0xff]  ;;  %v5097_v40 = vsel %vm3833_vm12, %v11071_v49, %v5096_v32 }
 0x4a9   :  { %7561 = vmatmul.msk.f32.gmra.mxu0 %vm3936_vm14, %v5084_v38  ;;  %7578 = vmatmul.msk.f32.gmra.mxu1 %vm3936_vm14, %v5084_v38  ;;  %v7500_v38 = vld [vmem:[%s14443_s3 + $0x2b0] sm:$0xf]  ;;  %v4143_v63 = vsel %vm3827_vm9, %v11127_v15, %v4142_v48  ;;  %v15350_v14 = vld [vmem:[#allocation86_spill] sm:$0xff]  ;;  %v5098_v49 = vsel %vm3835_vm13, %v11127_v15, %v5097_v40  ;;  %v15359_v15 = vld [vmem:[#allocation85_spill] sm:$0xff] }
 0x4aa   :  { %7502 = vmatpush.msk.msrb.mxu2 %vm1712_vm4, %v7500_v38  ;;  %v4138_v38 = vsel %vm3831_vm11, %v15337_v54, %v4137_v62  ;;  %v4144_v48 = vsel %vm3829_vm10, %v10930_v7, %v4143_v63  ;;  %v15348_v54 = vld [vmem:[#allocation6_spill] sm:$0xff] }
 0x4ab   :  { %v4139_v62 = vsel %vm3833_vm12, %v15341_v22, %v4138_v38  ;;  %v4148_v38 = vsel %vm3823_vm7, %v15349_v16, %v15348_v54  ;;  %v15353_v41 = vld [vmem:[#allocation90_spill] sm:$0xff] }
 0x4ac   :  { %4884 = vmatpush.msrb.mxu2 %v7498_v28  ;;  %v15351_v28 = vld [vmem:[#allocation20_spill] sm:$0xff] }
 0x4ad   :  { %7394 = vmatmul.msk.f32.gmra.mxu2 %vm3936_vm14, %v4133_v52  ;;  %7411 = vmatmul.msk.f32.gmra.mxu3 %vm3936_vm14, %v4133_v52  ;;  %v12232_v52 = vpop.f32.mrf.mxu2  ;;  %v5106_v63 = vsel %vm3823_vm7, %v15352_v9, %v15351_v28 }
 0x4ae   :  { %15345 = vst [vmem:[#allocation53_spill] sm:$0xff] %v12232_v52  ;;  %v4140_v52 = vsel %vm3835_vm13, %v15344_v34, %v4139_v62  ;;  %v4145_v62 = vsel %vm3831_vm11, %v11006_v26, %v4144_v48  ;;  %v4149_v34 = vsel %vm3825_vm8, %v15353_v41, %v4148_v38  ;;  %v12278_v7 = vpop.f32.mrf.mxu3 }
 0x4af   :  { %15355 = vst [vmem:[#allocation132_spill] sm:$0xff] %v12278_v7  ;;  %v15358_v7 = vld [vmem:[#allocation96_spill] sm:$0xff] }
 0x4b1   :  { %7562 = vmatmul.msk.f32.gmra.mxu0 %vm3936_vm14, %v5091_v56  ;;  %7579 = vmatmul.msk.f32.gmra.mxu1 %vm3936_vm14, %v5091_v56  ;;  %v15347_v56 = vld [vmem:[#allocation5_spill] sm:$0xff] }
 0x4b2   :  { %v5100_v3 = vsel %vm3825_vm8, %v15347_v56, %v5099_v20 }
 0x4b3   :  { %v5101_v20 = vsel %vm3827_vm9, %v15350_v14, %v5100_v3  ;;  %v15356_v3 = vld [vmem:[#allocation94_spill] sm:$0xff] }
 0x4b4   :  { %v5102_v32 = vsel %vm3829_vm10, %v15348_v54, %v5101_v20  ;;  %v5107_v48 = vsel %vm3825_vm8, %v15356_v3, %v5106_v63  ;;  %v4146_v20 = vsel %vm3833_vm12, %v15347_v56, %v4145_v62  ;;  %v15357_v54 = vld [vmem:[#allocation92_spill] sm:$0xff]  ;;  %v4155_v62 = vsel %vm3823_vm7, %v11317_v47, %v15359_v15 }
 0x4b5   :  { %7395 = vmatmul.msk.f32.gmra.mxu2 %vm3936_vm14, %v4140_v52  ;;  %7412 = vmatmul.msk.f32.gmra.mxu3 %vm3936_vm14, %v4140_v52  ;;  %v12276_v52 = vpop.f32.mrf.mxu2  ;;  %v5103_v40 = vsel %vm3831_vm11, %v15349_v16, %v5102_v32  ;;  %v4150_v38 = vsel %vm3827_vm9, %v15357_v54, %v4149_v34  ;;  %v5108_v26 = vsel %vm3827_vm9, %v15358_v7, %v5107_v48  ;;  %v7496_v34 = vld [vmem:[%s14443_s3 + $0x290] sm:$0xff]  ;;  %v7497_v32 = vld [vmem:[%s14443_s3 + $0x298] sm:$0xff] }
 0x4b6   :  { %15354 = vst [vmem:[#allocation14_spill] sm:$0xff] %v12276_v52  ;;  %v4151_v52 = vsel %vm3829_vm10, %v15351_v28, %v4150_v38  ;;  %v5104_v63 = vsel %vm3833_vm12, %v15353_v41, %v5103_v40  ;;  %4885 = vmatpush.msrb.mxu2 %v7496_v34  ;;  %4950 = vmatpush.msra.mxu3 %v7497_v32  ;;  %v15361_v41 = vld [vmem:[#allocation71_spill] sm:$0xff]  ;;  %v12322_v28 = vpop.f32.mrf.mxu3 }
 0x4b7   :  { %v4152_v48 = vsel %vm3831_vm11, %v15352_v9, %v4151_v52  ;;  %v5105_v40 = vsel %vm3835_vm13, %v15357_v54, %v5104_v63  ;;  %v4156_v38 = vsel %vm3825_vm8, %v11187_v60, %v4155_v62  ;;  %15363 = vst [vmem:[#allocation135_spill] sm:$0xff] %v12322_v28  ;;  %v15364_v63 = vld [vmem:[#allocation25_spill] sm:$0xff]  ;;  %v15365_v34 = vld [vmem:[#allocation91_spill] sm:$0xff] }
 0x4b8   :  { %v4157_v62 = vsel %vm3827_vm9, %v15364_v63, %v4156_v38  ;;  %v15368_v38 = vld [vmem:[#allocation77_spill] sm:$0xff] }
 0x4b9   :  { %7563 = vmatmul.msk.f32.gmra.mxu0 %vm3936_vm14, %v5098_v49  ;;  %7580 = vmatmul.msk.f32.gmra.mxu1 %vm3936_vm14, %v5098_v49  ;;  %v4147_v49 = vsel %vm3835_vm13, %v15350_v14, %v4146_v20  ;;  %v5109_v20 = vsel %vm3829_vm10, %v15359_v15, %v5108_v26  ;;  %v4153_v26 = vsel %vm3833_vm12, %v15356_v3, %v4152_v48  ;;  %v15366_v15 = vld [vmem:[#allocation93_spill] sm:$0xff] }
 0x4ba   :  { %v5110_v52 = vsel %vm3831_vm11, %v11317_v47, %v5109_v20  ;;  %v4162_v28 = vsel %vm3823_vm7, %v11411_v45, %v15366_v15  ;;  %v15367_v20 = vld [vmem:[#allocation74_spill] sm:$0xff] }
 0x4bb   :  { %v5111_v48 = vsel %vm3833_vm12, %v11187_v60, %v5110_v52  ;;  %v4163_v47 = vsel %vm3825_vm8, %v15368_v38, %v4162_v28  ;;  %v5120_v52 = vsel %vm3823_vm7, %v11325_v12, %v11256_v25  ;;  %v15371_v28 = vld [vmem:[#allocation95_spill] sm:$0xff] }
 0x4bd   :  { %7396 = vmatmul.msk.f32.gmra.mxu2 %vm3936_vm14, %v4147_v49  ;;  %7413 = vmatmul.msk.f32.gmra.mxu3 %vm3936_vm14, %v4147_v49  ;;  %v15360_v49 = vld [vmem:[#allocation99_spill] sm:$0xff]  ;;  %v12320_v14 = vpop.f32.mrf.mxu2 }
 0x4be   :  { %v5113_v16 = vsel %vm3823_vm7, %v15361_v41, %v15360_v49  ;;  %15362 = vst [vmem:[#allocation17_spill] sm:$0xff] %v12320_v14  ;;  %v4158_v14 = vsel %vm3829_vm10, %v15360_v49, %v4157_v62  ;;  %v12360_v60 = vpop.f32.mrf.mxu3  ;;  %v15373_v49 = vld [vmem:[#allocation101_spill] sm:$0xff] }
 0x4bf   :  { %v5114_v32 = vsel %vm3825_vm8, %v15365_v34, %v5113_v16  ;;  %v4159_v3 = vsel %vm3831_vm11, %v15361_v41, %v4158_v14  ;;  %15370 = vst [vmem:[#allocation97_spill] sm:$0xff] %v12360_v60  ;;  %v4164_v14 = vsel %vm3827_vm9, %v15371_v28, %v4163_v47 }
 0x4c0   :  { %v5115_v16 = vsel %vm3827_vm9, %v15367_v20, %v5114_v32  ;;  %v7494_v32 = vld [vmem:[%s14443_s3 + $0x280] sm:$0xff]  ;;  %v4165_v47 = vsel %vm3829_vm10, %v11256_v25, %v4164_v14 }
 0x4c1   :  { %7564 = vmatmul.msk.f32.gmra.mxu0 %vm3936_vm14, %v5105_v40  ;;  %7581 = vmatmul.msk.f32.gmra.mxu1 %vm3936_vm14, %v5105_v40  ;;  %v4154_v40 = vsel %vm3835_vm13, %v15358_v7, %v4153_v26  ;;  %v5116_v62 = vsel %vm3829_vm10, %v15366_v15, %v5115_v16  ;;  %v5112_v26 = vsel %vm3835_vm13, %v15364_v63, %v5111_v48  ;;  %v7495_v48 = vld [vmem:[%s14443_s3 + $0x288] sm:$0xff]  ;;  %v15374_v63 = vld [vmem:[#allocation112_spill] sm:$0xff] }
 0x4c2   :  { %v4160_v16 = vsel %vm3833_vm12, %v15365_v34, %v4159_v3  ;;  %v5117_v60 = vsel %vm3831_vm11, %v11411_v45, %v5116_v62  ;;  %4886 = vmatpush.msrb.mxu2 %v7494_v32  ;;  %4951 = vmatpush.msra.mxu3 %v7495_v48  ;;  %v4169_v3 = vsel %vm3823_vm7, %v15374_v63, %v15373_v49  ;;  %v15375_v62 = vld [vmem:[#allocation18_spill] sm:$0xff]  ;;  %v15376_v32 = vld [vmem:[#allocation115_spill] sm:$0xff] }
 0x4c3   :  { %v4161_v15 = vsel %vm3835_vm13, %v15367_v20, %v4160_v16  ;;  %v5118_v41 = vsel %vm3833_vm12, %v15368_v38, %v5117_v60  ;;  %v15377_v48 = vld [vmem:[#allocation106_spill] sm:$0xff]  ;;  %v4166_v16 = vsel %vm3831_vm11, %v11325_v12, %v4165_v47 }
 0x4c4   :  { %v5127_v14 = vsel %vm3823_vm7, %v15377_v48, %v15376_v32  ;;  %v5119_v38 = vsel %vm3835_vm13, %v15371_v28, %v5118_v41  ;;  %v15378_v45 = vld [vmem:[#allocation110_spill] sm:$0xff] }
 0x4c5   :  { %7397 = vmatmul.msk.f32.gmra.mxu2 %vm3936_vm14, %v4154_v40  ;;  %7414 = vmatmul.msk.f32.gmra.mxu3 %vm3936_vm14, %v4154_v40  ;;  %v12358_v40 = vpop.f32.mrf.mxu2  ;;  %v4170_v20 = vsel %vm3825_vm8, %v15378_v45, %v4169_v3  ;;  %v15384_v28 = vld [vmem:[#allocation102_spill] sm:$0xff] }
 0x4c6   :  { %15369 = vst [vmem:[#allocation36_spill] sm:$0xff] %v12358_v40  ;;  %v12404_v25 = vpop.f32.mrf.mxu3 }
 0x4c7   :  { %15380 = vst [vmem:[#allocation21_spill] sm:$0xff] %v12404_v25  ;;  %v15383_v25 = vld [vmem:[#allocation117_spill] sm:$0xff] }
 0x4c9   :  { %7565 = vmatmul.msk.f32.gmra.mxu0 %vm3936_vm14, %v5112_v26  ;;  %7582 = vmatmul.msk.f32.gmra.mxu1 %vm3936_vm14, %v5112_v26  ;;  %v15372_v26 = vld [vmem:[#allocation68_spill] sm:$0xff] }
 0x4ca   :  { %v5121_v40 = vsel %vm3825_vm8, %v15372_v26, %v5120_v52 }
 0x4cb   :  { %v5122_v52 = vsel %vm3827_vm9, %v15375_v62, %v5121_v40  ;;  %v15381_v40 = vld [vmem:[#allocation109_spill] sm:$0xff] }
 0x4cc   :  { %v5123_v60 = vsel %vm3829_vm10, %v15373_v49, %v5122_v52  ;;  %v5128_v47 = vsel %vm3825_vm8, %v15381_v40, %v5127_v14  ;;  %v4167_v52 = vsel %vm3833_vm12, %v15372_v26, %v4166_v16  ;;  %v15382_v49 = vld [vmem:[#allocation103_spill] sm:$0xff] }
 0x4cd   :  { %7398 = vmatmul.msk.f32.gmra.mxu2 %vm3936_vm14, %v4161_v15  ;;  %7415 = vmatmul.msk.f32.gmra.mxu3 %vm3936_vm14, %v4161_v15  ;;  %v12402_v15 = vpop.f32.mrf.mxu2  ;;  %v5124_v41 = vsel %vm3831_vm11, %v15374_v63, %v5123_v60  ;;  %v4171_v3 = vsel %vm3827_vm9, %v15382_v49, %v4170_v20  ;;  %v5129_v12 = vsel %vm3827_vm9, %v15383_v25, %v5128_v47  ;;  %v15385_v16 = vld [vmem:[#allocation47_spill] sm:$0xff]  ;;  %v12429_v20 = vpop.f32.mrf.mxu0 }
 0x4ce   :  { %15379 = vst [vmem:[#allocation33_spill] sm:$0xff] %v12402_v15  ;;  %v4172_v15 = vsel %vm3829_vm10, %v15376_v32, %v4171_v3  ;;  %v5125_v14 = vsel %vm3833_vm12, %v15378_v45, %v5124_v41  ;;  %v4176_v26 = vsel %vm3823_vm7, %v15385_v16, %v15384_v28  ;;  %v5130_v47 = vsel %vm3829_vm10, %v15384_v28, %v5129_v12  ;;  %v15388_v3 = vld [vmem:[#allocation104_spill] sm:$0xff] }
 0x4cf   :  { %15386 = vst [vmem:[#allocation35_spill] sm:$0xff] %v12429_v20  ;;  %v4173_v60 = vsel %vm3831_vm11, %v15377_v48, %v4172_v15  ;;  %v5126_v41 = vsel %vm3835_vm13, %v15382_v49, %v5125_v14  ;;  %v4177_v45 = vsel %vm3825_vm8, %v15388_v3, %v4176_v26  ;;  %v12446_v20 = vpop.f32.mrf.mxu3  ;;  %v5131_v15 = vsel %vm3831_vm11, %v15385_v16, %v5130_v47  ;;  %v15391_v14 = vld [vmem:[#allocation107_spill] sm:$0xff]  ;;  %v15395_v16 = vld [vmem:[#allocation122_spill] sm:$0xff] }
 0x4d0   :  { %15390 = vst [vmem:[#allocation10_spill] sm:$0xff] %v12446_v20  ;;  %v4174_v12 = vsel %vm3833_vm12, %v15381_v40, %v4173_v60  ;;  %v4178_v26 = vsel %vm3827_vm9, %v15391_v14, %v4177_v45  ;;  %v4183_v20 = vsel %vm3823_vm7, %v11636_v59, %v11610_v35  ;;  %v5132_v60 = vsel %vm3833_vm12, %v15388_v3, %v5131_v15  ;;  %v15394_v3 = vld [vmem:[#allocation120_spill] sm:$0xff] }
 0x4d1   :  { %7566 = vmatmul.msk.f32.gmra.mxu0 %vm3936_vm14, %v5119_v38  ;;  %7583 = vmatmul.msk.f32.gmra.mxu1 %vm3936_vm14, %v5119_v38  ;;  %v4168_v38 = vsel %vm3835_vm13, %v15375_v62, %v4167_v52  ;;  %v12435_v52 = vpop.f32.mrf.mxu1  ;;  %v4184_v47 = vsel %vm3825_vm8, %v11612_v50, %v4183_v20  ;;  %v5133_v20 = vsel %vm3835_vm13, %v15391_v14, %v5132_v60  ;;  %v7491_v60 = vld [vmem:[%s14443_s3 + $0x268] sm:$0xff]  ;;  %v15401_v14 = vld [vmem:[#allocation50_spill] sm:$0xff] }
 0x4d2   :  { %15387 = vst [vmem:[#allocation7_spill] sm:$0xff] %v12435_v52  ;;  %v5141_v28 = vsel %vm3823_vm7, %v15395_v16, %v15394_v3 }
 0x4d5   :  { %7399 = vmatmul.msk.f32.gmra.mxu2 %vm3936_vm14, %v4168_v38  ;;  %7416 = vmatmul.msk.f32.gmra.mxu3 %vm3936_vm14, %v4168_v38  ;;  %v5134_v38 = vsel %vm3823_vm7, %v11589_v6, %v11578_v30  ;;  %v12444_v63 = vpop.f32.mrf.mxu2 }
 0x4d6   :  { %15389 = vst [vmem:[#allocation34_spill] sm:$0xff] %v12444_v63  ;;  %v5135_v52 = vsel %vm3825_vm8, %v11591_v5, %v5134_v38  ;;  %v4179_v63 = vsel %vm3829_vm10, %v11578_v30, %v4178_v26  ;;  %v7492_v38 = vld [vmem:[%s14443_s3 + $0x270] sm:$0xff]  ;;  %v12479_v26 = vpop.f32.mrf.mxu0 }
 0x4d7   :  { %v5136_v45 = vsel %vm3827_vm9, %v11599_v57, %v5135_v52  ;;  %15392 = vst [vmem:[#allocation9_spill] sm:$0xff] %v12479_v26  ;;  %v4180_v15 = vsel %vm3831_vm11, %v11589_v6, %v4179_v63  ;;  %4887 = vmatpush.msrb.mxu2 %v7492_v38  ;;  %v12494_v26 = vpop.f32.mrf.mxu3  ;;  %v15398_v63 = vld [vmem:[#allocation124_spill] sm:$0xff]  ;;  %v7490_v38 = vld [vmem:[%s14443_s3 + $0x260] sm:$0xff] }
 0x4d8   :  { %15397 = vst [vmem:[#allocation108_spill] sm:$0xff] %v12494_v26  ;;  %v15400_v6 = vld [vmem:[#allocation126_spill] sm:$0xff] }
 0x4d9   :  { %7567 = vmatmul.msk.f32.gmra.mxu0 %vm3936_vm14, %v5126_v41  ;;  %7584 = vmatmul.msk.f32.gmra.mxu1 %vm3936_vm14, %v5126_v41  ;;  %v4175_v41 = vsel %vm3835_vm13, %v15383_v25, %v4174_v12  ;;  %v7493_v12 = vld [vmem:[%s14443_s3 + $0x278] sm:$0xff]  ;;  %v12485_v52 = vpop.f32.mrf.mxu1 }
 0x4da   :  { %4952 = vmatpush.msra.mxu3 %v7493_v12  ;;  %15393 = vst [vmem:[#allocation38_spill] sm:$0xff] %v12485_v52  ;;  %v4181_v12 = vsel %vm3833_vm12, %v11591_v5, %v4180_v15  ;;  %4888 = vmatpush.msrb.mxu2 %v7490_v38  ;;  %v4190_v15 = vsel %vm3823_vm7, %v15401_v14, %v15400_v6  ;;  %v15403_v38 = vld [vmem:[#allocation105_spill] sm:$0xff] }
 0x4db   :  { %v4182_v52 = vsel %vm3835_vm13, %v11599_v57, %v4181_v12  ;;  %v2455_v12 = vpop.permute.xlu0 %2454 }
 0x4dc   :  { %4953 = vmatpush.msra.mxu3 %v7491_v60  ;;  %v15404_v60 = vld [vmem:[#allocation128_spill] sm:$0xff] }
 0x4dd   :  { %7400 = vmatmul.msk.f32.gmra.mxu2 %vm3936_vm14, %v4175_v41  ;;  %7417 = vmatmul.msk.f32.gmra.mxu3 %vm3936_vm14, %v4175_v41  ;;  %v5137_v41 = vsel %vm3829_vm10, %v11610_v35, %v5136_v45  ;;  %v12492_v30 = vpop.f32.mrf.mxu2  ;;  %v4185_v45 = vsel %vm3827_vm9, %v15398_v63, %v4184_v47 }
 0x4de   :  { %15396 = vst [vmem:[#allocation30_spill] sm:$0xff] %v12492_v30  ;;  %v5138_v26 = vsel %vm3831_vm11, %v11636_v59, %v5137_v41  ;;  %v15399_v30 = vld [vmem:[#allocation44_spill] sm:$0xff]  ;;  %v4186_v47 = vsel %vm3829_vm10, %v15394_v3, %v4185_v45  ;;  %v15402_v41 = vld [vmem:[#allocation119_spill] sm:$0xff]  ;;  %v5148_v45 = vsel %vm3823_vm7, %v15404_v60, %v15403_v38  ;;  %v12528_v59 = vpop.f32.mrf.mxu0  ;;  %v2453_v3 = vpop.permute.xlu2 %2452 }
 0x4df   :  { %v5139_v35 = vsel %vm3833_vm12, %v11612_v50, %v5138_v26  ;;  %15405 = vst [vmem:[#allocation45_spill] sm:$0xff] %v12528_v59  ;;  %v4187_v26 = vsel %vm3831_vm11, %v15395_v16, %v4186_v47  ;;  %v12542_v40 = vpop.f32.mrf.mxu3  ;;  %v15410_v47 = vld [vmem:[#allocation113_spill] sm:$0xff]  ;;  %v15413_v16 = vld [vmem:[#allocation2_spill] sm:$0xff] }
 0x4e0   :  { %15409 = vst [vmem:[#allocation51_spill] sm:$0xff] %v12542_v40  ;;  %v4188_v59 = vsel %vm3833_vm12, %v15399_v30, %v4187_v26  ;;  %v15415_v26 = vld [vmem:[#allocation125_spill] sm:$0xff] }
 0x4e1   :  { %7568 = vmatmul.msk.f32.gmra.mxu0 %vm3936_vm14, %v5133_v20  ;;  %7585 = vmatmul.msk.f32.gmra.mxu1 %vm3936_vm14, %v5133_v20  ;;  %v5142_v20 = vsel %vm3825_vm8, %v15399_v30, %v5141_v28  ;;  %v12534_v57 = vpop.f32.mrf.mxu1 }
 0x4e2   :  { %v5143_v28 = vsel %vm3827_vm9, %v15402_v41, %v5142_v20  ;;  %15406 = vst [vmem:[#allocation48_spill] sm:$0xff] %v12534_v57  ;;  %v15407_v20 = vld [vmem:[#allocation100_spill] sm:$0xff]  ;;  %v2488_v57 = vsel %vm2456_vm5, %v2453_v3, %v2455_v12  ;;  %v4189_v3 = vsel %vm3835_vm13, %v15402_v41, %v4188_v59  ;;  %vm6908_vm5 = vcmask 80896  }
 0x4e3   :  { %v5144_v50 = vsel %vm3829_vm10, %v15400_v6, %v5143_v28  ;;  %v4191_v5 = vsel %vm3825_vm8, %v15407_v20, %v4190_v15  ;;  %v5149_v28 = vsel %vm3825_vm8, %v15410_v47, %v5148_v45  ;;  %v15411_v15 = vld [vmem:[#allocation133_spill] sm:$0xff]  ;;  %v15412_v6 = vld [vmem:[#allocation116_spill] sm:$0xff] }
 0x4e5   :  { %7401 = vmatmul.msk.f32.gmra.mxu2 %vm3936_vm14, %v4182_v52  ;;  %7418 = vmatmul.msk.f32.gmra.mxu3 %vm3936_vm14, %v4182_v52  ;;  %v5140_v52 = vsel %vm3835_vm13, %v15398_v63, %v5139_v35  ;;  %v12540_v25 = vpop.f32.mrf.mxu2  ;;  %v5145_v35 = vsel %vm3831_vm11, %v15401_v14, %v5144_v50  ;;  %v15414_v63 = vmax.f32 %v15413_v16, 0.0  ;;  %v15416_v50 = vld [vmem:[#allocation8_spill] sm:$0xff]  ;;  %v7486_v16 = vld [vmem:[%s14443_s3 + $0x240] sm:$0xff] }
 0x4e6   :  { %15408 = vst [vmem:[#allocation43_spill] sm:$0xff] %v12540_v25  ;;  %v4192_v25 = vsel %vm3827_vm9, %v15411_v15, %v4191_v5  ;;  %v5146_v12 = vsel %vm3833_vm12, %v15407_v20, %v5145_v35  ;;  %v4197_v14 = vsel %vm3823_vm7, %v15416_v50, %v15415_v26  ;;  %v7489_v5 = vld [vmem:[%s14443_s3 + $0x258] sm:$0xff] }
 0x4e7   :  { %v4193_v40 = vsel %vm3829_vm10, %v15403_v38, %v4192_v25  ;;  %v2552_v45 = vmax.f32 %v15414_v63, %v2488_v57  ;;  %v7488_v25 = vld [vmem:[%s14443_s3 + $0x250] sm:$0xff]  ;;  %4954 = vmatpush.msra.mxu3 %v7489_v5  ;;  %v7487_v63 = vld [vmem:[%s14443_s3 + $0x248] sm:$0xff] }
 0x4e8   :  { %v4194_v57 = vsel %vm3831_vm11, %v15404_v60, %v4193_v40  ;;  %4889 = vmatpush.msrb.mxu2 %v7488_v25  ;;  %v5147_v40 = vsel %vm3835_vm13, %v15411_v15, %v5146_v12  ;;  %v7484_v12 = vld [vmem:[%s14443_s3 + $0x230] sm:$0xff] }
 0x4e9   :  { %7569 = vmatmul.msk.f32.gmra.mxu0 %vm3936_vm14, %v5140_v52  ;;  %7586 = vmatmul.msk.f32.gmra.mxu1 %vm3936_vm14, %v5140_v52  ;;  %v5150_v52 = vsel %vm3827_vm9, %v15412_v6, %v5149_v28  ;;  %v12586_v28 = vpop.f32.mrf.mxu0  ;;  %v12588_v35 = vpop.f32.mrf.mxu1  ;;  %v2678_v25 = vrot.slane %v2552_v45, 2 }
 0x4ea   :  { %v5151_v59 = vsel %vm3829_vm10, %v15415_v26, %v5150_v52  ;;  %15417 = vst [vmem:[#allocation56_spill] sm:$0xff] %v12586_v28  ;;  %v4198_v52 = vsel %vm3825_vm8, %v11763_v46, %v4197_v14  ;;  %v12599_v26 = vpop.f32.mrf.mxu3  ;;  %v7485_v14 = vld [vmem:[%s14443_s3 + $0x238] sm:$0xff]  ;;  %4890 = vmatpush.msrb.mxu2 %v7486_v16  ;;  %4955 = vmatpush.msra.mxu3 %v7487_v63 }
 0x4eb   :  { %15418 = vst [vmem:[#allocation16_spill] sm:$0xff] %v12588_v35  ;;  %v4195_v35 = vsel %vm3833_vm12, %v15410_v47, %v4194_v57  ;;  %v4204_v28 = vsel %vm3823_vm7, %v11952_v21, %v11930_v43  ;;  %v7482_v57 = vld [vmem:[%s14443_s3 + $0x220] sm:$0xff]  ;;  %v3649_v16 = vsel %vm2773_vm6, %v2678_v25, -inf }
 0x4ec   :  { %15420 = vst [vmem:[#allocation41_spill] sm:$0xff] %v12599_v26  ;;  %v4199_v26 = vsel %vm3827_vm9, %v11768_v4, %v4198_v52  ;;  %4891 = vmatpush.msrb.mxu2 %v7484_v12  ;;  %4956 = vmatpush.msra.mxu3 %v7485_v14  ;;  %v4196_v63 = vsel %vm3835_vm13, %v15412_v6, %v4195_v35  ;;  %v3642_v12 = vsel %vm2773_vm6, %v2552_v45, -inf  ;;  %v7481_v14 = vld [vmem:[%s14443_s3 + $0x218] sm:$0xff]  ;;  %v3650_v45 = vrot.slane %v3649_v16, 4 }
 0x4ed   :  { %7402 = vmatmul.msk.f32.gmra.mxu2 %vm3936_vm14, %v4189_v3  ;;  %7419 = vmatmul.msk.f32.gmra.mxu3 %vm3936_vm14, %v4189_v3  ;;  %v5155_v3 = vsel %vm3823_vm7, %v11821_v8, %v11804_v29  ;;  %v12597_v5 = vpop.f32.mrf.mxu2  ;;  %v4200_v20 = vsel %vm3829_vm10, %v11804_v29, %v4199_v26 }
 0x4ee   :  { %15419 = vst [vmem:[#allocation46_spill] sm:$0xff] %v12597_v5  ;;  %v5152_v5 = vsel %vm3831_vm11, %v15416_v50, %v5151_v59  ;;  %v7483_v59 = vld [vmem:[%s14443_s3 + $0x228] sm:$0xff]  ;;  %v4201_v25 = vsel %vm3831_vm11, %v11821_v8, %v4200_v20  ;;  %4892 = vmatpush.msrb.mxu2 %v7482_v57  ;;  %v5162_v57 = vsel %vm3823_vm7, %v11966_v2, %v11942_v31 }
 0x4ef   :  { %v5153_v52 = vsel %vm3833_vm12, %v11763_v46, %v5152_v5  ;;  %4957 = vmatpush.msra.mxu3 %v7483_v59  ;;  %v7480_v5 = vld [vmem:[%s14443_s3 + $0x210] sm:$0xff] }
 0x4f0   :  { %v5154_v20 = vsel %vm3835_vm13, %v11768_v4, %v5153_v52  ;;  %4893 = vmatpush.msrb.mxu2 %v7480_v5 }
 0x4f1   :  { %7570 = vmatmul.msk.f32.gmra.mxu0 %vm3936_vm14, %v5147_v40  ;;  %7587 = vmatmul.msk.f32.gmra.mxu1 %vm3936_vm14, %v5147_v40  ;;  %v5156_v40 = vsel %vm3825_vm8, %v11846_v44, %v5155_v3  ;;  %v4205_v3 = vsel %vm3825_vm8, %v11933_v58, %v4204_v28  ;;  %v12652_v28 = vpop.f32.mrf.mxu1 }
 0x4f2   :  { %v5157_v26 = vsel %vm3827_vm9, %v11910_v37, %v5156_v40  ;;  %v12650_v40 = vpop.f32.mrf.mxu0  ;;  %15422 = vst [vmem:[#allocation40_spill] sm:$0xff] %v12652_v28  ;;  %v3643_v28 = vrot.slane %v3642_v12, 4  ;;  %4958 = vmatpush.msra.mxu3 %v7481_v14 }
 0x4f3   :  { %v5158_v35 = vsel %vm3829_vm10, %v11930_v43, %v5157_v26  ;;  %15421 = vst [vmem:[#allocation19_spill] sm:$0xff] %v12650_v40  ;;  %v4206_v26 = vsel %vm3827_vm9, %v11937_v0, %v4205_v3  ;;  %v4202_v40 = vsel %vm3833_vm12, %v11846_v44, %v4201_v25 }
 0x4f4   :  { %v5159_v52 = vsel %vm3831_vm11, %v11952_v21, %v5158_v35  ;;  %v4207_v43 = vsel %vm3829_vm10, %v11942_v31, %v4206_v26  ;;  %v3644_v46 = vmax.f32 %v3642_v12, %v3643_v28  ;;  %v4734_v26 = vsel %vm3823_vm7, %v15304_v36, %v15309_v11 }
 0x4f5   :  { %7403 = vmatmul.msk.f32.gmra.mxu2 %vm3936_vm14, %v4196_v63  ;;  %7420 = vmatmul.msk.f32.gmra.mxu3 %vm3936_vm14, %v4196_v63  ;;  %v12659_v59 = vpop.f32.mrf.mxu2  ;;  %v12661_v63 = vpop.f32.mrf.mxu3  ;;  %v5160_v3 = vsel %vm3833_vm12, %v11933_v58, %v5159_v52 }
 0x4f6   :  { %15423 = vst [vmem:[#allocation60_spill] sm:$0xff] %v12659_v59  ;;  %v5163_v59 = vsel %vm3825_vm8, %v11985_v39, %v5162_v57  ;;  %v5161_v12 = vsel %vm3835_vm13, %v11937_v0, %v5160_v3 }
 0x4f7   :  { %15424 = vst [vmem:[#allocation55_spill] sm:$0xff] %v12661_v63  ;;  %v3651_v63 = vmax.f32 %v3649_v16, %v3650_v45  ;;  %v5164_v25 = vsel %vm3827_vm9, %v12003_v42, %v5163_v59  ;;  %v4208_v16 = vsel %vm3831_vm11, %v11966_v2, %v4207_v43  ;;  %v3645_v43 = vrot.slane %v3644_v46, 2 }
 0x4f8   :  { %v5165_v35 = vsel %vm3829_vm10, %v11997_v33, %v5164_v25  ;;  %v4209_v57 = vsel %vm3833_vm12, %v11985_v39, %v4208_v16  ;;  %v4735_v16 = vsel %vm3825_vm8, %v15305_v19, %v4734_v26  ;;  %v4741_v26 = vsel %vm3823_vm7, %v15314_v55, %v15316_v17 }
 0x4f9   :  { %7571 = vmatmul.msk.f32.gmra.mxu0 %vm3936_vm14, %v5154_v20  ;;  %7588 = vmatmul.msk.f32.gmra.mxu1 %vm3936_vm14, %v5154_v20  ;;  %v4203_v20 = vsel %vm3835_vm13, %v11910_v37, %v4202_v40  ;;  %v12689_v14 = vpop.f32.mrf.mxu1  ;;  %v3652_v40 = vrot.slane %v3651_v63, 2  ;;  %v5166_v59 = vsel %vm3831_vm11, %v12020_v23, %v5165_v35  ;;  %v3646_v25 = vmax.f32 %v3644_v46, %v3645_v43 }
 0x4fa   :  { %v12687_v5 = vpop.f32.mrf.mxu0  ;;  %v5167_v3 = vsel %vm3833_vm12, %v12044_v24, %v5166_v59  ;;  %v4211_v59 = vsel %vm3823_vm7, %v12020_v23, %v11997_v33 }
 0x4fb   :  { %v3653_v52 = vmax.f32 %v3651_v63, %v3652_v40  ;;  %v5168_v36 = vsel %vm3835_vm13, %v12050_v61, %v5167_v3  ;;  %v4736_v40 = vsel %vm3827_vm9, %v15308_v18, %v4735_v16  ;;  %v3647_v19 = vrot.slane %v3646_v25, 1 }
 0x4fc   :  { %v4742_v16 = vsel %vm3825_vm8, %v15315_v27, %v4741_v26 }
 0x4fd   :  { %7404 = vmatmul.msk.f32.gmra.mxu2 %vm3936_vm14, %v4203_v20  ;;  %7421 = vmatmul.msk.f32.gmra.mxu3 %vm3936_vm14, %v4203_v20  ;;  %v4210_v20 = vsel %vm3835_vm13, %v12003_v42, %v4209_v57  ;;  %v3654_v11 = vrot.slane %v3653_v52, 1  ;;  %v4737_v57 = vsel %vm3829_vm10, %v15310_v10, %v4736_v40  ;;  %v15433_v40 = vld [vmem:[#allocation42_spill] sm:$0xff] }
 0x4fe   :  { %v4738_v18 = vsel %vm3831_vm11, %v15311_v1, %v4737_v57  ;;  %v15435_v57 = vld [vmem:[#allocation54_spill] sm:$0xff] }
 0x4ff   :  { %v3655_v43 = vmax.f32 %v3653_v52, %v3654_v11 }
 0x500   :  { %v12693_v28 = vpop.f32.mrf.mxu2  ;;  %v12695_v45 = vpop.f32.mrf.mxu3 }
 0x501   :  { %15425 = vst [vmem:[#allocation39_spill] sm:$0xff] %v12693_v28  ;;  %7572 = vmatmul.msk.f32.gmra.mxu0 %vm3936_vm14, %v5161_v12  ;;  %7589 = vmatmul.msk.f32.gmra.mxu1 %vm3936_vm14, %v5161_v12  ;;  %v12716_v12 = vpop.f32.mrf.mxu1 }
 0x502   :  { %15426 = vst [vmem:[#allocation73_spill] sm:$0xff] %v12695_v45  ;;  %v12714_v35 = vpop.f32.mrf.mxu0  ;;  %v15477_v45 = vld [vmem:[#allocation65_spill] sm:$0xff] }
 0x505   :  { %7405 = vmatmul.msk.f32.gmra.mxu2 %vm3936_vm14, %v4210_v20  ;;  %7422 = vmatmul.msk.f32.gmra.mxu3 %vm3936_vm14, %v4210_v20  ;;  %v12738_v20 = vmax.f32 %v3646_v25, %v3647_v19  ;;  %v15431_v25 = vld [vmem:[#allocation37_spill] sm:$0xff] }
 0x506   :  { %v4739_v1 = vsel %vm3833_vm12, %v15431_v25, %v4738_v18  ;;  %v15438_v25 = vld [vmem:[#allocation49_spill] sm:$0xff] }
 0x507   :  { %v5169_v3 = vsel %vm3823_vm7, %v3655_v43, %v12738_v20  ;;  %v4740_v19 = vsel %vm3835_vm13, %v15433_v40, %v4739_v1  ;;  %v15434_v43 = vld [vmem:[#allocation64_spill] sm:$0xff]  ;;  %v15439_v40 = vld [vmem:[#allocation69_spill] sm:$0xff] }
 0x508   :  { %v12722_v46 = vpop.f32.mrf.mxu2  ;;  %v12724_v63 = vpop.f32.mrf.mxu3  ;;  %v4748_v27 = vsel %vm3823_vm7, %v15435_v57, %v15434_v43  ;;  %v15440_v57 = vld [vmem:[#allocation57_spill] sm:$0xff] }
 0x509   :  { %7573 = vmatmul.msk.f32.gmra.mxu0 %vm3936_vm14, %v5168_v36  ;;  %7590 = vmatmul.msk.f32.gmra.mxu1 %vm3936_vm14, %v5168_v36  ;;  %15427 = vst [vmem:[#allocation111_spill] sm:$0xff] %v12722_v46  ;;  %v12744_v10 = vpop.f32.mrf.mxu1  ;;  %v15432_v36 = vld [vmem:[#allocation63_spill] sm:$0xff]  ;;  %v15470_v46 = vld [vmem:[#allocation85_spill] sm:$0xff] }
 0x50a   :  { %15428 = vst [vmem:[#allocation75_spill] sm:$0xff] %v12724_v63  ;;  %v12742_v52 = vpop.f32.mrf.mxu0  ;;  %v4743_v11 = vsel %vm3827_vm9, %v15432_v36, %v4742_v16  ;;  %v4749_v16 = vsel %vm3825_vm8, %v15438_v25, %v4748_v27  ;;  %v15443_v27 = vld [vmem:[#allocation52_spill] sm:$0xff]  ;;  %v15444_v25 = vld [vmem:[#allocation81_spill] sm:$0xff] }
 0x50d   :  { %7406 = vmatmul.msk.f32.gmra.mxu2 %vm3936_vm14, %v4211_v59  ;;  %7423 = vmatmul.msk.f32.gmra.mxu3 %vm3936_vm14, %v4211_v59  ;;  %v15436_v59 = vld [vmem:[#allocation58_spill] sm:$0xff] }
 0x50e   :  { %v4744_v26 = vsel %vm3829_vm10, %v15436_v59, %v4743_v11  ;;  %v15442_v59 = vld [vmem:[#allocation61_spill] sm:$0xff] }
 0x510   :  { %v12752_v55 = vpop.f32.mrf.mxu2  ;;  %v12754_v17 = vpop.f32.mrf.mxu3 }
 0x511   :  { %7574 = vmatmul.msk.f32.gmra.mxu0 %vm3936_vm14, %v5169_v3  ;;  %7591 = vmatmul.msk.f32.gmra.mxu1 %vm3936_vm14, %v5169_v3  ;;  %15429 = vst [vmem:[#allocation82_spill] sm:$0xff] %v12752_v55  ;;  %v15437_v3 = vld [vmem:[#allocation66_spill] sm:$0xff] }
 0x512   :  { %15430 = vst [vmem:[#allocation5_spill] sm:$0xff] %v12754_v17  ;;  %v4745_v18 = vsel %vm3831_vm11, %v15437_v3, %v4744_v26  ;;  %v4750_v17 = vsel %vm3827_vm9, %v15440_v57, %v4749_v16 }
 0x513   :  { %v4746_v43 = vsel %vm3833_vm12, %v15439_v40, %v4745_v18  ;;  %v4751_v3 = vsel %vm3829_vm10, %v15443_v27, %v4750_v17  ;;  %v15445_v40 = vld [vmem:[#allocation70_spill] sm:$0xff] }
 0x514   :  { %v4747_v26 = vsel %vm3835_vm13, %v15442_v59, %v4746_v43  ;;  %v4752_v16 = vsel %vm3831_vm11, %v15445_v40, %v4751_v3  ;;  %v15448_v17 = vld [vmem:[#allocation78_spill] sm:$0xff]  ;;  %v15451_v40 = vld [vmem:[#allocation87_spill] sm:$0xff] }
 0x515   :  { %7503 = vmatmul.msk.f32.vlgmr.msrb.gmra.mxu2 %vm3936_vm14, %v4740_v19  ;;  %7520 = vmatmul.msk.f32.vlgmr.msra.gmra.mxu3 %vm3936_vm14, %v4740_v19  ;;  %v15441_v19 = vld [vmem:[#allocation80_spill] sm:$0xff] }
 0x516   :  { %v4755_v11 = vsel %vm3823_vm7, %v15441_v19, %v15331_v51  ;;  %v15446_v51 = vld [vmem:[#allocation76_spill] sm:$0xff]  ;;  %v15447_v19 = vld [vmem:[#allocation3_spill] sm:$0xff] }
 0x517   :  { %v4756_v18 = vsel %vm3825_vm8, %v15444_v25, %v4755_v11  ;;  %v4753_v59 = vsel %vm3833_vm12, %v15447_v19, %v4752_v16  ;;  %v15449_v11 = vld [vmem:[#allocation15_spill] sm:$0xff]  ;;  %v15450_v25 = vld [vmem:[#allocation72_spill] sm:$0xff] }
 0x518   :  { %v12773_v36 = vpop.f32.mrf.mxu2  ;;  %v12775_v1 = vpop.f32.mrf.mxu3  ;;  %v4757_v43 = vsel %vm3827_vm9, %v15446_v51, %v4756_v18  ;;  %v4754_v27 = vsel %vm3835_vm13, %v15448_v17, %v4753_v59  ;;  %v4762_v3 = vsel %vm3823_vm7, %v15449_v11, %v15340_v53  ;;  %v15453_v59 = vld [vmem:[#allocation67_spill] sm:$0xff] }
 0x519   :  { %v4763_v16 = vsel %vm3825_vm8, %v15451_v40, %v4762_v3  ;;  %v15455_v11 = vld [vmem:[#allocation83_spill] sm:$0xff]  ;;  %v15457_v40 = vld [vmem:[#allocation12_spill] sm:$0xff] }
 0x51a   :  { %v4764_v53 = vsel %vm3827_vm9, %v15341_v22, %v4763_v16  ;;  %v15456_v3 = vld [vmem:[#allocation59_spill] sm:$0xff] }
 0x51d   :  { %7504 = vmatmul.msk.f32.gmra.mxu2 %vm3936_vm14, %v4747_v26  ;;  %7521 = vmatmul.msk.f32.gmra.mxu3 %vm3936_vm14, %v4747_v26  ;;  %v4758_v26 = vsel %vm3829_vm10, %v15332_v13, %v4757_v43  ;;  %v15452_v43 = vld [vmem:[#allocation84_spill] sm:$0xff] }
 0x51e   :  { %v4759_v18 = vsel %vm3831_vm11, %v15450_v25, %v4758_v26  ;;  %v4765_v25 = vsel %vm3829_vm10, %v15456_v3, %v4764_v53  ;;  %v15461_v3 = vld [vmem:[#allocation4_spill] sm:$0xff] }
 0x51f   :  { %v4760_v19 = vsel %vm3833_vm12, %v15452_v43, %v4759_v18  ;;  %v4766_v18 = vsel %vm3831_vm11, %v15457_v40, %v4765_v25  ;;  %v15458_v43 = vld [vmem:[#allocation79_spill] sm:$0xff] }
 0x520   :  { %v12794_v57 = vpop.f32.mrf.mxu2  ;;  %v12796_v55 = vpop.f32.mrf.mxu3  ;;  %v4761_v17 = vsel %vm3835_vm13, %v15453_v59, %v4760_v19  ;;  %v15459_v59 = vld [vmem:[#allocation88_spill] sm:$0xff] }
 0x525   :  { %7505 = vmatmul.msk.f32.gmra.mxu2 %vm3936_vm14, %v4754_v27  ;;  %7522 = vmatmul.msk.f32.gmra.mxu3 %vm3936_vm14, %v4754_v27  ;;  %v15454_v27 = vld [vmem:[#allocation89_spill] sm:$0xff] }
 0x526   :  { %v4769_v26 = vsel %vm3823_vm7, %v15455_v11, %v15454_v27  ;;  %v4767_v27 = vsel %vm3833_vm12, %v15459_v59, %v4766_v18  ;;  %v12859_v59 = vpop.f32.mrf.mxu1 }
 0x527   :  { %v4770_v22 = vsel %vm3825_vm8, %v15458_v43, %v4769_v26  ;;  %v4768_v25 = vsel %vm3835_vm13, %v15461_v3, %v4767_v27  ;;  %v15462_v26 = vld [vmem:[#allocation86_spill] sm:$0xff]  ;;  %15464 = vst [vmem:[#allocation114_spill] sm:$0xff] %v12859_v59  ;;  %v15505_v59 = vld [vmem:[#allocation13_spill] sm:$0xff] }
 0x528   :  { %v12815_v51 = vpop.f32.mrf.mxu2  ;;  %v12817_v13 = vpop.f32.mrf.mxu3  ;;  %v4771_v11 = vsel %vm3827_vm9, %v15347_v56, %v4770_v22  ;;  %v15463_v43 = vld [vmem:[#allocation6_spill] sm:$0xff] }
 0x529   :  { %v4772_v40 = vsel %vm3829_vm10, %v15462_v26, %v4771_v11  ;;  %v12857_v22 = vpop.f32.mrf.mxu0 }
 0x52a   :  { %v4773_v56 = vsel %vm3831_vm11, %v15463_v43, %v4772_v40  ;;  %v15468_v40 = vld [vmem:[#allocation25_spill] sm:$0xff]  ;;  %v15469_v43 = vld [vmem:[#allocation99_spill] sm:$0xff] }
 0x52b   :  { %v4783_v63 = vsel %vm3823_vm7, %v15469_v43, %v15468_v40  ;;  %v15475_v43 = vld [vmem:[#allocation23_spill] sm:$0xff] }
 0x52d   :  { %7506 = vmatmul.msk.f32.gmra.mxu2 %vm3936_vm14, %v4761_v17  ;;  %7523 = vmatmul.msk.f32.gmra.mxu3 %vm3936_vm14, %v4761_v17  ;;  %v15460_v17 = vld [vmem:[#allocation20_spill] sm:$0xff] }
 0x52e   :  { %v4776_v53 = vsel %vm3823_vm7, %v15460_v17, %v15357_v54  ;;  %v15465_v17 = vld [vmem:[#allocation94_spill] sm:$0xff] }
 0x52f   :  { %v4777_v18 = vsel %vm3825_vm8, %v15352_v9, %v4776_v53  ;;  %v15467_v53 = vld [vmem:[#allocation90_spill] sm:$0xff] }
 0x530   :  { %v12836_v16 = vpop.f32.mrf.mxu2  ;;  %v12838_v19 = vpop.f32.mrf.mxu3  ;;  %v4778_v3 = vsel %vm3827_vm9, %v15465_v17, %v4777_v18 }
 0x531   :  { %v4779_v9 = vsel %vm3829_vm10, %v15358_v7, %v4778_v3  ;;  %v12880_v17 = vpop.f32.mrf.mxu0 }
 0x532   :  { %v4780_v18 = vsel %vm3831_vm11, %v15470_v46, %v4779_v9  ;;  %15471 = vst [vmem:[#allocation92_spill] sm:$0xff] %v12880_v17  ;;  %v15476_v9 = vld [vmem:[#allocation95_spill] sm:$0xff]  ;;  %v15484_v17 = vld [vmem:[#allocation68_spill] sm:$0xff] }
 0x533   :  { %v4790_v28 = vsel %vm3823_vm7, %v15477_v45, %v15476_v9  ;;  %v15483_v9 = vld [vmem:[#allocation98_spill] sm:$0xff] }
 0x535   :  { %7507 = vmatmul.msk.f32.gmra.mxu2 %vm3936_vm14, %v4768_v25  ;;  %7524 = vmatmul.msk.f32.gmra.mxu3 %vm3936_vm14, %v4768_v25  ;;  %v15466_v25 = vld [vmem:[#allocation62_spill] sm:$0xff] }
 0x536   :  { %v4774_v11 = vsel %vm3833_vm12, %v15466_v25, %v4773_v56  ;;  %v12882_v56 = vpop.f32.mrf.mxu1  ;;  %v15473_v25 = vld [vmem:[#allocation71_spill] sm:$0xff] }
 0x537   :  { %v4775_v26 = vsel %vm3835_vm13, %v15467_v53, %v4774_v11  ;;  %15472 = vst [vmem:[#allocation96_spill] sm:$0xff] %v12882_v56  ;;  %v4784_v7 = vsel %vm3825_vm8, %v15473_v25, %v4783_v63  ;;  %v15474_v53 = vld [vmem:[#allocation22_spill] sm:$0xff]  ;;  %v15479_v56 = vld [vmem:[#allocation93_spill] sm:$0xff] }
 0x538   :  { %v12861_v54 = vpop.f32.mrf.mxu2  ;;  %v12863_v27 = vpop.f32.mrf.mxu3  ;;  %v4781_v40 = vsel %vm3833_vm12, %v15474_v53, %v4780_v18  ;;  %v15478_v63 = vld [vmem:[#allocation74_spill] sm:$0xff] }
 0x539   :  { %v4782_v46 = vsel %vm3835_vm13, %v15475_v43, %v4781_v40  ;;  %v12905_v53 = vpop.f32.mrf.mxu0 }
 0x53a   :  { %15480 = vst [vmem:[#allocation91_spill] sm:$0xff] %v12905_v53  ;;  %v15501_v53 = vld [vmem:[#allocation104_spill] sm:$0xff] }
 0x53d   :  { %7508 = vmatmul.msk.f32.gmra.mxu2 %vm3936_vm14, %v4775_v26  ;;  %7525 = vmatmul.msk.f32.gmra.mxu3 %vm3936_vm14, %v4775_v26  ;;  %v4785_v26 = vsel %vm3827_vm9, %v15365_v34, %v4784_v7  ;;  %v15482_v7 = vld [vmem:[#allocation118_spill] sm:$0xff] }
 0x53e   :  { %v4786_v25 = vsel %vm3829_vm10, %v15478_v63, %v4785_v26  ;;  %v12907_v34 = vpop.f32.mrf.mxu1  ;;  %v4791_v40 = vsel %vm3825_vm8, %v15482_v7, %v4790_v28  ;;  %v15485_v63 = vld [vmem:[#allocation77_spill] sm:$0xff] }
 0x53f   :  { %v4787_v18 = vsel %vm3831_vm11, %v15479_v56, %v4786_v25  ;;  %15481 = vst [vmem:[#allocation18_spill] sm:$0xff] %v12907_v34  ;;  %v4792_v26 = vsel %vm3827_vm9, %v15484_v17, %v4791_v40  ;;  %v4797_v56 = vsel %vm3823_vm7, %v15376_v32, %v15382_v49  ;;  %v15486_v7 = vld [vmem:[#allocation101_spill] sm:$0xff]  ;;  %v15495_v34 = vld [vmem:[#allocation102_spill] sm:$0xff] }
 0x540   :  { %v12886_v3 = vpop.f32.mrf.mxu2  ;;  %v12888_v11 = vpop.f32.mrf.mxu3  ;;  %v4793_v28 = vsel %vm3829_vm10, %v15375_v62, %v4792_v26  ;;  %v15491_v26 = vld [vmem:[#allocation117_spill] sm:$0xff] }
 0x541   :  { %v4794_v17 = vsel %vm3831_vm11, %v15486_v7, %v4793_v28  ;;  %v12932_v40 = vpop.f32.mrf.mxu0  ;;  %v15493_v7 = vld [vmem:[#allocation107_spill] sm:$0xff] }
 0x542   :  { %15487 = vst [vmem:[#allocation115_spill] sm:$0xff] %v12932_v40  ;;  %v15494_v40 = vld [vmem:[#allocation134_spill] sm:$0xff] }
 0x545   :  { %7509 = vmatmul.msk.f32.gmra.mxu2 %vm3936_vm14, %v4782_v46  ;;  %7526 = vmatmul.msk.f32.gmra.mxu3 %vm3936_vm14, %v4782_v46  ;;  %v4788_v46 = vsel %vm3833_vm12, %v15483_v9, %v4787_v18  ;;  %v4798_v18 = vsel %vm3825_vm8, %v15377_v48, %v4797_v56  ;;  %v15492_v56 = vld [vmem:[#allocation110_spill] sm:$0xff] }
 0x546   :  { %v4789_v25 = vsel %vm3835_vm13, %v15485_v63, %v4788_v46  ;;  %v12934_v9 = vpop.f32.mrf.mxu1  ;;  %v15489_v46 = vld [vmem:[#allocation109_spill] sm:$0xff] }
 0x547   :  { %15488 = vst [vmem:[#allocation106_spill] sm:$0xff] %v12934_v9  ;;  %v4799_v63 = vsel %vm3827_vm9, %v15489_v46, %v4798_v18  ;;  %v4804_v9 = vsel %vm3823_vm7, %v15494_v40, %v15493_v7  ;;  %v15500_v7 = vld [vmem:[#allocation29_spill] sm:$0xff] }
 0x548   :  { %v12911_v43 = vpop.f32.mrf.mxu2  ;;  %v12913_v45 = vpop.f32.mrf.mxu3  ;;  %v4800_v48 = vsel %vm3829_vm10, %v15491_v26, %v4799_v63 }
 0x549   :  { %v4801_v18 = vsel %vm3831_vm11, %v15495_v34, %v4800_v48  ;;  %v12955_v46 = vpop.f32.mrf.mxu0  ;;  %v15502_v48 = vld [vmem:[#allocation124_spill] sm:$0xff] }
 0x54a   :  { %15496 = vst [vmem:[#allocation103_spill] sm:$0xff] %v12955_v46  ;;  %v15503_v46 = vld [vmem:[#allocation120_spill] sm:$0xff] }
 0x54d   :  { %7510 = vmatmul.msk.f32.gmra.mxu2 %vm3936_vm14, %v4789_v25  ;;  %7527 = vmatmul.msk.f32.gmra.mxu3 %vm3936_vm14, %v4789_v25  ;;  %v15490_v25 = vld [vmem:[#allocation112_spill] sm:$0xff] }
 0x54e   :  { %v4795_v62 = vsel %vm3833_vm12, %v15490_v25, %v4794_v17  ;;  %v12957_v17 = vpop.f32.mrf.mxu1  ;;  %v15498_v25 = vld [vmem:[#allocation11_spill] sm:$0xff] }
 0x54f   :  { %v4796_v28 = vsel %vm3835_vm13, %v15492_v56, %v4795_v62  ;;  %15497 = vst [vmem:[#allocation44_spill] sm:$0xff] %v12957_v17  ;;  %v4805_v63 = vsel %vm3825_vm8, %v15498_v25, %v4804_v9  ;;  %v15499_v56 = vld [vmem:[#allocation47_spill] sm:$0xff]  ;;  %v4811_v17 = vsel %vm3823_vm7, %v15503_v46, %v15502_v48  ;;  %v15504_v9 = vld [vmem:[#allocation24_spill] sm:$0xff] }
 0x550   :  { %v12936_v49 = vpop.f32.mrf.mxu2  ;;  %v12938_v32 = vpop.f32.mrf.mxu3  ;;  %v4802_v40 = vsel %vm3833_vm12, %v15499_v56, %v4801_v18  ;;  %v15507_v48 = vld [vmem:[#allocation27_spill] sm:$0xff] }
 0x551   :  { %v4803_v34 = vsel %vm3835_vm13, %v15501_v53, %v4802_v40  ;;  %v12980_v56 = vpop.f32.mrf.mxu0 }
 0x555   :  { %7511 = vmatmul.msk.f32.gmra.mxu2 %vm3936_vm14, %v4796_v28  ;;  %7528 = vmatmul.msk.f32.gmra.mxu3 %vm3936_vm14, %v4796_v28  ;;  %v4806_v28 = vsel %vm3827_vm9, %v15500_v7, %v4805_v63  ;;  %v15506_v7 = vld [vmem:[#allocation122_spill] sm:$0xff] }
 0x556   :  { %v4807_v25 = vsel %vm3829_vm10, %v15504_v9, %v4806_v28  ;;  %v12982_v63 = vpop.f32.mrf.mxu1  ;;  %v4812_v53 = vsel %vm3825_vm8, %v15506_v7, %v4811_v17  ;;  %v15508_v9 = vld [vmem:[#allocation32_spill] sm:$0xff]  ;;  %v15509_v7 = vld [vmem:[#allocation126_spill] sm:$0xff] }
 0x557   :  { %v4808_v18 = vsel %vm3831_vm11, %v15505_v59, %v4807_v25  ;;  %v4813_v28 = vsel %vm3827_vm9, %v15399_v30, %v4812_v53  ;;  %v4818_v59 = vsel %vm3823_vm7, %v15403_v38, %v15411_v15 }
 0x558   :  { %v12961_v26 = vpop.f32.mrf.mxu2  ;;  %v12963_v62 = vpop.f32.mrf.mxu3  ;;  %v4814_v17 = vsel %vm3829_vm10, %v15402_v41, %v4813_v28  ;;  %v15513_v28 = vld [vmem:[#allocation100_spill] sm:$0xff] }
 0x559   :  { %v4815_v30 = vsel %vm3831_vm11, %v15509_v7, %v4814_v17  ;;  %v13007_v53 = vpop.f32.mrf.mxu0  ;;  %v15514_v17 = vld [vmem:[#allocation125_spill] sm:$0xff] }
 0x55a   :  { %15510 = vst [vmem:[#allocation119_spill] sm:$0xff] %v13007_v53 }
 0x55d   :  { %7512 = vmatmul.msk.f32.gmra.mxu2 %vm3936_vm14, %v4803_v34  ;;  %7529 = vmatmul.msk.f32.gmra.mxu3 %vm3936_vm14, %v4803_v34  ;;  %v4809_v34 = vsel %vm3833_vm12, %v15507_v48, %v4808_v18  ;;  %v4819_v18 = vsel %vm3825_vm8, %v15404_v60, %v4818_v59 }
 0x55e   :  { %v4810_v25 = vsel %vm3835_vm13, %v15508_v9, %v4809_v34  ;;  %v13009_v48 = vpop.f32.mrf.mxu1  ;;  %v4820_v34 = vsel %vm3827_vm9, %v15410_v47, %v4819_v18  ;;  %v15512_v9 = vld [vmem:[#allocation50_spill] sm:$0xff] }
 0x55f   :  { %15511 = vst [vmem:[#allocation105_spill] sm:$0xff] %v13009_v48  ;;  %v4816_v41 = vsel %vm3833_vm12, %v15512_v9, %v4815_v30  ;;  %v4821_v60 = vsel %vm3829_vm10, %v15412_v6, %v4820_v34  ;;  %v15517_v9 = vld [vmem:[#allocation121_spill] sm:$0xff] }
 0x560   :  { %v12986_v40 = vpop.f32.mrf.mxu2  ;;  %v12988_v46 = vpop.f32.mrf.mxu3  ;;  %v4817_v59 = vsel %vm3835_vm13, %v15513_v28, %v4816_v41  ;;  %v4822_v47 = vsel %vm3831_vm11, %v15514_v17, %v4821_v60  ;;  %v15518_v28 = vld [vmem:[#allocation123_spill] sm:$0xff] }
 0x561   :  { %v13036_v30 = vpop.f32.mrf.mxu0 }
 0x562   :  { %15515 = vst [vmem:[#allocation128_spill] sm:$0xff] %v13036_v30 }
 0x565   :  { %7513 = vmatmul.msk.f32.gmra.mxu2 %vm3936_vm14, %v4810_v25  ;;  %7530 = vmatmul.msk.f32.gmra.mxu3 %vm3936_vm14, %v4810_v25  ;;  %v4825_v25 = vsel %vm3823_vm7, %v11804_v29, %v11768_v4  ;;  %v4823_v4 = vsel %vm3833_vm12, %v15416_v50, %v4822_v47 }
 0x566   :  { %v4826_v18 = vsel %vm3825_vm8, %v11821_v8, %v4825_v25  ;;  %v13038_v34 = vpop.f32.mrf.mxu1  ;;  %v4824_v41 = vsel %vm3835_vm13, %v15517_v9, %v4823_v4  ;;  %v4832_v8 = vsel %vm3823_vm7, %v11942_v31, %v11937_v0 }
 0x567   :  { %15516 = vst [vmem:[#allocation113_spill] sm:$0xff] %v13038_v34  ;;  %v4827_v29 = vsel %vm3827_vm9, %v11846_v44, %v4826_v18  ;;  %v4833_v44 = vsel %vm3825_vm8, %v11966_v2, %v4832_v8 }
 0x568   :  { %v13011_v38 = vpop.f32.mrf.mxu2  ;;  %v13013_v15 = vpop.f32.mrf.mxu3  ;;  %v4828_v60 = vsel %vm3829_vm10, %v11910_v37, %v4827_v29  ;;  %v4834_v31 = vsel %vm3827_vm9, %v11985_v39, %v4833_v44  ;;  %v15523_v44 = vld [vmem:[#allocation127_spill] sm:$0xff] }
 0x569   :  { %v4829_v50 = vsel %vm3831_vm11, %v15518_v28, %v4828_v60  ;;  %v5225_v17 = vpop.f32.mrf.mxu0  ;;  %v4835_v2 = vsel %vm3829_vm10, %v12003_v42, %v4834_v31  ;;  %v15522_v28 = vld [vmem:[#allocation28_spill] sm:$0xff] }
 0x56a   :  { %v4830_v0 = vsel %vm3833_vm12, %v11952_v21, %v4829_v50  ;;  %v4836_v18 = vsel %vm3831_vm11, %v11997_v33, %v4835_v2  ;;  %v4839_v33 = vsel %vm3823_vm7, %v12738_v20, %v12050_v61  ;;  %v4268_v50 = vadd.f32 %v12773_v36, %v15522_v28  ;;  %v5370_v61 = vld [vmem:[%s14444_s4] sm:$0x3]  ;;  %v15524_v20 = vld [vmem:[#allocation35_spill] sm:$0xff]  ;;  %v15526_v28 = vld [vmem:[#allocation129_spill] sm:$0xff]  ;;  %s7739_s4 = smov 48  }
 0x56b   :  { %v4831_v37 = vsel %vm3835_vm13, %v11933_v58, %v4830_v0  ;;  %v4837_v39 = vsel %vm3833_vm12, %v12020_v23, %v4836_v18  ;;  %v4333_v0 = vadd.f32 %v12775_v1, %v15523_v44  ;;  %v13107_v36 = vperm.slane %v5370_v61, 0  ;;  %v15527_v44 = vld [vmem:[#allocation131_spill] sm:$0xff] }
 0x56c   :  { %v4838_v58 = vsel %vm3835_vm13, %v12044_v24, %v4837_v39  ;;  %v4678_v31 = vadd.f32 %v15524_v20, %v4268_v50  ;;  %v4271_v1 = vadd.f32 %v12794_v57, %v15526_v28 }
 0x56d   :  { %7514 = vmatmul.msk.f32.gmra.mxu2 %vm3936_vm14, %v4817_v59  ;;  %7531 = vmatmul.msk.f32.gmra.mxu3 %vm3936_vm14, %v4817_v59 }
 0x56e   :  { %v5290_v47 = vpop.f32.mrf.mxu1 }
 0x570   :  { %v13032_v7 = vpop.f32.mrf.mxu2  ;;  %v13034_v6 = vpop.f32.mrf.mxu3 }
 0x571   :  { %v5228_v29 = vpop.f32.mrf.mxu0 }
 0x575   :  { %7515 = vmatmul.msk.f32.gmra.mxu2 %vm3936_vm14, %v4824_v41  ;;  %7532 = vmatmul.msk.f32.gmra.mxu3 %vm3936_vm14, %v4824_v41 }
 0x576   :  { %v5293_v9 = vpop.f32.mrf.mxu1 }
 0x578   :  { %v13057_v59 = vpop.f32.mrf.mxu2  ;;  %v13059_v25 = vpop.f32.mrf.mxu3 }
 0x579   :  { %v5231_v23 = vpop.f32.mrf.mxu0 }
 0x57d   :  { %7516 = vmatmul.msk.f32.gmra.mxu2 %vm3936_vm14, %v4831_v37  ;;  %7533 = vmatmul.msk.f32.gmra.mxu3 %vm3936_vm14, %v4831_v37  ;;  %v15525_v37 = vld [vmem:[#allocation7_spill] sm:$0xff] }
 0x57e   :  { %v5296_v24 = vpop.f32.mrf.mxu1  ;;  %v4679_v2 = vadd.f32 %v15525_v37, %v4333_v0  ;;  %v15528_v37 = vld [vmem:[#allocation9_spill] sm:$0xff] }
 0x580   :  { %v13073_v4 = vpop.f32.mrf.mxu2  ;;  %v13075_v21 = vpop.f32.mrf.mxu3 }
 0x585   :  { %7517 = vmatmul.msk.f32.gmra.mxu2 %vm3936_vm14, %v4838_v58  ;;  %7534 = vmatmul.msk.f32.gmra.mxu3 %vm3936_vm14, %v4838_v58  ;;  %v5234_v58 = vpop.f32.mrf.mxu0 }
 0x588   :  { %v13083_v42 = vpop.f32.mrf.mxu2  ;;  %v13085_v41 = vpop.f32.mrf.mxu3 }
 0x589   :  { %15519 = vst [vmem:[#allocation133_spill] sm:$0xff] %v13085_v41 }
 0x58d   :  { %7518 = vmatmul.msk.f32.gmra.mxu2 %vm3936_vm14, %v4839_v33  ;;  %7535 = vmatmul.msk.f32.gmra.mxu3 %vm3936_vm14, %v4839_v33  ;;  %v5299_v33 = vpop.f32.mrf.mxu1 }
 0x590   :  { %v13092_v8 = vpop.f32.mrf.mxu2  ;;  %v13094_v60 = vpop.f32.mrf.mxu3 }
 0x591   :  { %15520 = vst [vmem:[#allocation116_spill] sm:$0xff] %v13092_v8  ;;  %v4336_v8 = vadd.f32 %v12796_v55, %v15527_v44  ;;  %v15530_v55 = vld [vmem:[#allocation31_spill] sm:$0xff]  ;;  %v15532_v44 = vld [vmem:[#allocation45_spill] sm:$0xff] }
 0x592   :  { %15521 = vst [vmem:[#allocation2_spill] sm:$0xff] %v13094_v60  ;;  %v13105_v60 = vperm.slane %v5370_v61, 1 }
 0x598   :  { %v4895_v18 = vpop.f32.mrf.mxu2  ;;  %v4960_v39 = vpop.f32.mrf.mxu3 }
 0x599   :  { %v5008_v34 = vadd.f32 %v4895_v18, %v4678_v31  ;;  %v5009_v30 = vadd.f32 %v4960_v39, %v4679_v2  ;;  %v4680_v31 = vadd.f32 %v15528_v37, %v4271_v1  ;;  %v15529_v2 = vld [vmem:[#allocation38_spill] sm:$0xff] }
 0x59a   :  { %v4681_v18 = vadd.f32 %v15529_v2, %v4336_v8 }
 0x59b   :  { %v5338_v48 = vadd.f32 %v5225_v17, %v5008_v34  ;;  %v5339_v50 = vadd.f32 %v5290_v47, %v5009_v30  ;;  %v15531_v30 = vld [vmem:[#allocation130_spill] sm:$0xff]  ;;  %v5237_v17 = vpop.f32.mrf.mxu0  ;;  %v5302_v47 = vpop.f32.mrf.mxu1 }
 0x59c   :  { %v4339_v34 = vadd.f32 %v12817_v13, %v15531_v30 }
 0x59d   :  { %v5377_v0 = vadd.f32 %v13105_v60, %v5339_v50  ;;  %v13115_v20 = vadd.f32 %v13107_v36, %v5338_v48  ;;  %v4274_v48 = vadd.f32 %v12815_v51, %v15530_v55 }
 0x59f   :  { %v5409_v39 = vmax.f32 %v5377_v0, 0.0  ;;  %v5408_v61 = vmax.f32 %v13115_v20, 0.0  ;;  %v4682_v50 = vadd.f32 %v15532_v44, %v4274_v48  ;;  %v15533_v0 = vld [vmem:[#allocation48_spill] sm:$0xff] }
 0x5a0   :  { %v4898_v53 = vpop.f32.mrf.mxu2  ;;  %v4963_v41 = vpop.f32.mrf.mxu3  ;;  %v4683_v37 = vadd.f32 %v15533_v0, %v4339_v34 }
 0x5a1   :  { %v5010_v57 = vadd.f32 %v4898_v53, %v4680_v31  ;;  %v5011_v28 = vadd.f32 %v4963_v41, %v4681_v18  ;;  %5474 = vrot.lane.b32.xlu2 %v5409_v39, %s7739_s4  ;;  %5472 = vrot.lane.b32.xlu1 %v5408_v61, %s7739_s4 }
 0x5a3   :  { %v5340_v8 = vadd.f32 %v5228_v29, %v5010_v57  ;;  %v5341_v1 = vadd.f32 %v5293_v9, %v5011_v28  ;;  %v15534_v29 = vld [vmem:[#allocation53_spill] sm:$0xff]  ;;  %v15535_v57 = vld [vmem:[#allocation26_spill] sm:$0xff]  ;;  %v5240_v30 = vpop.f32.mrf.mxu0  ;;  %v5305_v34 = vpop.f32.mrf.mxu1 }
 0x5a4   :  { %v4277_v9 = vadd.f32 %v12836_v16, %v15534_v29  ;;  %v4342_v28 = vadd.f32 %v12838_v19, %v15535_v57 }
 0x5a5   :  { %v13129_v53 = vadd.f32 %v13107_v36, %v5340_v8  ;;  %v5379_v41 = vadd.f32 %v13105_v60, %v5341_v1 }
 0x5a7   :  { %v5410_v31 = vmax.f32 %v13129_v53, 0.0  ;;  %v5411_v2 = vmax.f32 %v5379_v41, 0.0  ;;  %v15536_v41 = vld [vmem:[#allocation56_spill] sm:$0xff] }
 0x5a8   :  { %v4901_v51 = vpop.f32.mrf.mxu2  ;;  %v4966_v18 = vpop.f32.mrf.mxu3  ;;  %v4684_v44 = vadd.f32 %v15536_v41, %v4277_v9  ;;  %v6120_v53 = vld [vmem:[%s14445_s5 + $0x10] sm:$0xff] }
 0x5a9   :  { %v5012_v39 = vadd.f32 %v4901_v51, %v4682_v50  ;;  %v5013_v13 = vadd.f32 %v4966_v18, %v4683_v37  ;;  %5476 = vrot.lane.b32.xlu0 %v5410_v31, %s7739_s4  ;;  %5478 = vrot.lane.b32.xlu1 %v5411_v2, %s7739_s4  ;;  %v15537_v50 = vld [vmem:[#allocation16_spill] sm:$0xff] }
 0x5aa   :  { %v4685_v0 = vadd.f32 %v15537_v50, %v4342_v28 }
 0x5ab   :  { %v5342_v55 = vadd.f32 %v5231_v23, %v5012_v39  ;;  %v5343_v48 = vadd.f32 %v5296_v24, %v5013_v13  ;;  %v15538_v23 = vld [vmem:[#allocation14_spill] sm:$0xff]  ;;  %v15539_v39 = vld [vmem:[#allocation132_spill] sm:$0xff] }
 0x5ac   :  { %v4280_v24 = vadd.f32 %v12861_v54, %v15538_v23  ;;  %v4345_v13 = vadd.f32 %v12863_v27, %v15539_v39 }
 0x5ad   :  { %v13144_v8 = vadd.f32 %v13107_v36, %v5342_v55  ;;  %v5381_v1 = vadd.f32 %v13105_v60, %v5343_v48  ;;  %v5243_v55 = vpop.f32.mrf.mxu0  ;;  %v5308_v48 = vpop.f32.mrf.mxu1 }
 0x5af   :  { %v5412_v37 = vmax.f32 %v13144_v8, 0.0  ;;  %v5413_v2 = vmax.f32 %v5381_v1, 0.0  ;;  %v15540_v1 = vld [vmem:[#allocation19_spill] sm:$0xff] }
 0x5b0   :  { %v4904_v16 = vpop.f32.mrf.mxu2  ;;  %v4969_v51 = vpop.f32.mrf.mxu3  ;;  %v4686_v41 = vadd.f32 %v15540_v1, %v4280_v24 }
 0x5b1   :  { %v5014_v18 = vadd.f32 %v4904_v16, %v4684_v44  ;;  %v5015_v19 = vadd.f32 %v4969_v51, %v4685_v0  ;;  %5480 = vrot.lane.b32.xlu2 %v5412_v37, %s7739_s4  ;;  %5482 = vrot.lane.b32.xlu0 %v5413_v2, %s7739_s4  ;;  %v15541_v44 = vld [vmem:[#allocation40_spill] sm:$0xff] }
 0x5b2   :  { %v4687_v50 = vadd.f32 %v15541_v44, %v4345_v13 }
 0x5b3   :  { %v5344_v29 = vadd.f32 %v5234_v58, %v5014_v18  ;;  %v5345_v9 = vadd.f32 %v5299_v33, %v5015_v19  ;;  %v15542_v58 = vld [vmem:[#allocation17_spill] sm:$0xff]  ;;  %v15543_v18 = vld [vmem:[#allocation135_spill] sm:$0xff] }
 0x5b4   :  { %v4283_v33 = vadd.f32 %v12886_v3, %v15542_v58  ;;  %v4348_v19 = vadd.f32 %v12888_v11, %v15543_v18 }
 0x5b5   :  { %v5383_v57 = vadd.f32 %v13105_v60, %v5345_v9  ;;  %v13160_v28 = vadd.f32 %v13107_v36, %v5344_v29  ;;  %v5246_v3 = vpop.f32.mrf.mxu0 }
 0x5b6   :  { %v4688_v29 = vadd.f32 %v12687_v5, %v4283_v33  ;;  %v4689_v9 = vadd.f32 %v12689_v14, %v4348_v19 }
 0x5b7   :  { %v5415_v0 = vmax.f32 %v5383_v57, 0.0  ;;  %v5414_v2 = vmax.f32 %v13160_v28, 0.0 }
 0x5b8   :  { %v4907_v54 = vpop.f32.mrf.mxu2  ;;  %v4972_v16 = vpop.f32.mrf.mxu3 }
 0x5b9   :  { %v5016_v51 = vadd.f32 %v4907_v54, %v4686_v41  ;;  %v5017_v27 = vadd.f32 %v4972_v16, %v4687_v50  ;;  %5486 = vrot.lane.b32.xlu2 %v5415_v0, %s7739_s4  ;;  %5484 = vrot.lane.b32.xlu1 %v5414_v2, %s7739_s4  ;;  %v5311_v50 = vpop.f32.mrf.mxu1 }
 0x5bb   :  { %v5346_v23 = vadd.f32 %v5237_v17, %v5016_v51  ;;  %v5347_v24 = vadd.f32 %v5302_v47, %v5017_v27  ;;  %v15544_v17 = vld [vmem:[#allocation36_spill] sm:$0xff]  ;;  %v15545_v47 = vld [vmem:[#allocation97_spill] sm:$0xff] }
 0x5bc   :  { %v4286_v5 = vadd.f32 %v12911_v43, %v15544_v17  ;;  %v4351_v14 = vadd.f32 %v12913_v45, %v15545_v47  ;;  %v15546_v45 = vld [vmem:[#allocation33_spill] sm:$0xff] }
 0x5bd   :  { %v13174_v39 = vadd.f32 %v13107_v36, %v5346_v23  ;;  %v5385_v13 = vadd.f32 %v13105_v60, %v5347_v24 }
 0x5be   :  { %v4690_v58 = vadd.f32 %v12714_v35, %v4286_v5  ;;  %v4691_v33 = vadd.f32 %v12716_v12, %v4351_v14  ;;  %v5249_v12 = vpop.f32.mrf.mxu0 }
 0x5bf   :  { %v5416_v57 = vmax.f32 %v13174_v39, 0.0  ;;  %v5417_v1 = vmax.f32 %v5385_v13, 0.0 }
 0x5c0   :  { %v4910_v41 = vpop.f32.mrf.mxu2  ;;  %v4975_v44 = vpop.f32.mrf.mxu3 }
 0x5c1   :  { %v5018_v0 = vadd.f32 %v4910_v41, %v4688_v29  ;;  %v5019_v11 = vadd.f32 %v4975_v44, %v4689_v9  ;;  %5488 = vrot.lane.b32.xlu0 %v5416_v57, %s7739_s4  ;;  %5490 = vrot.lane.b32.xlu1 %v5417_v1, %s7739_s4  ;;  %v5314_v29 = vpop.f32.mrf.mxu1 }
 0x5c3   :  { %v5348_v54 = vadd.f32 %v5240_v30, %v5018_v0  ;;  %v5349_v16 = vadd.f32 %v5305_v34, %v5019_v11  ;;  %v4289_v30 = vadd.f32 %v12936_v49, %v15546_v45  ;;  %v15547_v34 = vld [vmem:[#allocation21_spill] sm:$0xff] }
 0x5c4   :  { %v4354_v35 = vadd.f32 %v12938_v32, %v15547_v34 }
 0x5c5   :  { %v13189_v51 = vadd.f32 %v13107_v36, %v5348_v54  ;;  %v5387_v27 = vadd.f32 %v13105_v60, %v5349_v16  ;;  %v4692_v0 = vadd.f32 %v12742_v52, %v4289_v30  ;;  %v15549_v54 = vld [vmem:[#allocation10_spill] sm:$0xff] }
 0x5c6   :  { %v4693_v11 = vadd.f32 %v12744_v10, %v4354_v35  ;;  %v4357_v52 = vadd.f32 %v12963_v62, %v15549_v54  ;;  %v15552_v35 = vld [vmem:[#allocation108_spill] sm:$0xff] }
 0x5c7   :  { %v5418_v18 = vmax.f32 %v13189_v51, 0.0  ;;  %v5419_v19 = vmax.f32 %v5387_v27, 0.0  ;;  %v5252_v27 = vpop.f32.mrf.mxu0 }
 0x5c8   :  { %v4913_v23 = vpop.f32.mrf.mxu2  ;;  %v4978_v24 = vpop.f32.mrf.mxu3 }
 0x5c9   :  { %v5020_v43 = vadd.f32 %v4913_v23, %v4690_v58  ;;  %v5021_v13 = vadd.f32 %v4978_v24, %v4691_v33  ;;  %5492 = vrot.lane.b32.xlu2 %v5418_v18, %s7739_s4  ;;  %5494 = vrot.lane.b32.xlu0 %v5419_v19, %s7739_s4  ;;  %v5317_v58 = vpop.f32.mrf.mxu1  ;;  %v15550_v24 = vld [vmem:[#allocation114_spill] sm:$0xff] }
 0x5cb   :  { %v5350_v9 = vadd.f32 %v5243_v55, %v5020_v43  ;;  %v5351_v1 = vadd.f32 %v5308_v48, %v5021_v13  ;;  %v15548_v55 = vld [vmem:[#allocation34_spill] sm:$0xff]  ;;  %v4695_v43 = vadd.f32 %v15550_v24, %v4357_v52 }
 0x5cc   :  { %v4292_v48 = vadd.f32 %v12961_v26, %v15548_v55 }
 0x5cd   :  { %v5389_v41 = vadd.f32 %v13105_v60, %v5351_v1  ;;  %v13205_v44 = vadd.f32 %v13107_v36, %v5350_v9 }
 0x5ce   :  { %v4694_v23 = vadd.f32 %v12857_v22, %v4292_v48  ;;  %v4360_v22 = vadd.f32 %v12988_v46, %v15552_v35 }
 0x5cf   :  { %v5421_v17 = vmax.f32 %v5389_v41, 0.0  ;;  %v5420_v5 = vmax.f32 %v13205_v44, 0.0 }
 0x5d0   :  { %v4916_v49 = vpop.f32.mrf.mxu2  ;;  %v4981_v47 = vpop.f32.mrf.mxu3 }
 0x5d1   :  { %v5022_v14 = vadd.f32 %v4916_v49, %v4692_v0  ;;  %v5023_v32 = vadd.f32 %v4981_v47, %v4693_v11  ;;  %5498 = vrot.lane.b32.xlu2 %v5421_v17, %s7739_s4  ;;  %5496 = vrot.lane.b32.xlu1 %v5420_v5, %s7739_s4  ;;  %v5255_v11 = vpop.f32.mrf.mxu0  ;;  %v5320_v17 = vpop.f32.mrf.mxu1  ;;  %v15553_v49 = vld [vmem:[#allocation92_spill] sm:$0xff] }
 0x5d3   :  { %v5352_v10 = vadd.f32 %v5246_v3, %v5022_v14  ;;  %v5353_v16 = vadd.f32 %v5311_v50, %v5023_v32  ;;  %v15551_v3 = vld [vmem:[#allocation30_spill] sm:$0xff]  ;;  %v15554_v14 = vld [vmem:[#allocation96_spill] sm:$0xff] }
 0x5d4   :  { %v4295_v50 = vadd.f32 %v12986_v40, %v15551_v3  ;;  %v4697_v32 = vadd.f32 %v15554_v14, %v4360_v22 }
 0x5d5   :  { %v13219_v33 = vadd.f32 %v13107_v36, %v5352_v10  ;;  %v5391_v19 = vadd.f32 %v13105_v60, %v5353_v16  ;;  %v15556_v10 = vld [vmem:[#allocation51_spill] sm:$0xff] }
 0x5d6   :  { %v4696_v47 = vadd.f32 %v15553_v49, %v4295_v50  ;;  %v4363_v16 = vadd.f32 %v13013_v15, %v15556_v10 }
 0x5d7   :  { %v5422_v13 = vmax.f32 %v13219_v33, 0.0  ;;  %v5423_v45 = vmax.f32 %v5391_v19, 0.0 }
 0x5d8   :  { %v4919_v26 = vpop.f32.mrf.mxu2  ;;  %v4984_v30 = vpop.f32.mrf.mxu3 }
 0x5d9   :  { %v5024_v34 = vadd.f32 %v4919_v26, %v4694_v23  ;;  %v5025_v62 = vadd.f32 %v4984_v30, %v4695_v43  ;;  %5500 = vrot.lane.b32.xlu0 %v5422_v13, %s7739_s4  ;;  %5502 = vrot.lane.b32.xlu1 %v5423_v45, %s7739_s4  ;;  %v15557_v45 = vld [vmem:[#allocation91_spill] sm:$0xff]  ;;  %v15558_v30 = vld [vmem:[#allocation18_spill] sm:$0xff]  ;;  %v5323_v22 = vpop.f32.mrf.mxu1 }
 0x5db   :  { %v5354_v9 = vadd.f32 %v5249_v12, %v5024_v34  ;;  %v5355_v1 = vadd.f32 %v5314_v29, %v5025_v62  ;;  %v15555_v12 = vld [vmem:[#allocation43_spill] sm:$0xff]  ;;  %v4699_v34 = vadd.f32 %v15558_v30, %v4363_v16 }
 0x5dc   :  { %v4298_v29 = vadd.f32 %v13011_v38, %v15555_v12  ;;  %v5258_v38 = vpop.f32.mrf.mxu0 }
 0x5dd   :  { %v13234_v41 = vadd.f32 %v13107_v36, %v5354_v9  ;;  %v5393_v0 = vadd.f32 %v13105_v60, %v5355_v1  ;;  %v15560_v1 = vld [vmem:[#allocation41_spill] sm:$0xff] }
 0x5de   :  { %v4698_v26 = vadd.f32 %v15557_v45, %v4298_v29 }
 0x5df   :  { %v5424_v55 = vmax.f32 %v13234_v41, 0.0  ;;  %v5425_v48 = vmax.f32 %v5393_v0, 0.0  ;;  %v4366_v0 = vadd.f32 %v13034_v6, %v15560_v1 }
 0x5e0   :  { %v4922_v40 = vpop.f32.mrf.mxu2  ;;  %v4987_v54 = vpop.f32.mrf.mxu3 }
 0x5e1   :  { %v5026_v52 = vadd.f32 %v4922_v40, %v4696_v47  ;;  %v5027_v46 = vadd.f32 %v4987_v54, %v4697_v32  ;;  %5504 = vrot.lane.b32.xlu2 %v5424_v55, %s7739_s4  ;;  %5506 = vrot.lane.b32.xlu0 %v5425_v48, %s7739_s4  ;;  %v15561_v48 = vld [vmem:[#allocation115_spill] sm:$0xff]  ;;  %v15562_v54 = vld [vmem:[#allocation106_spill] sm:$0xff] }
 0x5e3   :  { %v5356_v19 = vadd.f32 %v5252_v27, %v5026_v52  ;;  %v5357_v23 = vadd.f32 %v5317_v58, %v5027_v46  ;;  %v15559_v27 = vld [vmem:[#allocation46_spill] sm:$0xff]  ;;  %v4701_v52 = vadd.f32 %v15562_v54, %v4366_v0 }
 0x5e4   :  { %v4301_v58 = vadd.f32 %v13032_v7, %v15559_v27  ;;  %v5261_v6 = vpop.f32.mrf.mxu0 }
 0x5e5   :  { %v5395_v24 = vadd.f32 %v13105_v60, %v5357_v23  ;;  %v13250_v43 = vadd.f32 %v13107_v36, %v5356_v19  ;;  %v15564_v23 = vld [vmem:[#allocation55_spill] sm:$0xff] }
 0x5e6   :  { %v4700_v40 = vadd.f32 %v15561_v48, %v4301_v58 }
 0x5e7   :  { %v5427_v62 = vmax.f32 %v5395_v24, 0.0  ;;  %v5426_v3 = vmax.f32 %v13250_v43, 0.0  ;;  %v4369_v24 = vadd.f32 %v13059_v25, %v15564_v23  ;;  %v15567_v25 = vld [vmem:[#allocation39_spill] sm:$0xff] }
 0x5e8   :  { %v4925_v50 = vpop.f32.mrf.mxu2  ;;  %v4990_v35 = vpop.f32.mrf.mxu3 }
 0x5e9   :  { %v5028_v9 = vadd.f32 %v4925_v50, %v4698_v26  ;;  %v5029_v15 = vadd.f32 %v4990_v35, %v4699_v34  ;;  %5510 = vrot.lane.b32.xlu2 %v5427_v62, %s7739_s4  ;;  %5508 = vrot.lane.b32.xlu1 %v5426_v3, %s7739_s4  ;;  %v15565_v62 = vld [vmem:[#allocation103_spill] sm:$0xff]  ;;  %v15566_v35 = vld [vmem:[#allocation44_spill] sm:$0xff] }
 0x5eb   :  { %v5358_v49 = vadd.f32 %v5255_v11, %v5028_v9  ;;  %v5359_v47 = vadd.f32 %v5320_v17, %v5029_v15  ;;  %v5326_v11 = vpop.f32.mrf.mxu1  ;;  %v15563_v17 = vld [vmem:[#allocation60_spill] sm:$0xff]  ;;  %v4703_v9 = vadd.f32 %v15566_v35, %v4369_v24  ;;  %v15572_v35 = vld [vmem:[#allocation119_spill] sm:$0xff] }
 0x5ec   :  { %v4304_v19 = vadd.f32 %v13057_v59, %v15563_v17  ;;  %v5264_v48 = vpop.f32.mrf.mxu0 }
 0x5ed   :  { %v13264_v14 = vadd.f32 %v13107_v36, %v5358_v49  ;;  %v5397_v32 = vadd.f32 %v13105_v60, %v5359_v47 }
 0x5ee   :  { %v4702_v50 = vadd.f32 %v15565_v62, %v4304_v19  ;;  %v15570_v19 = vld [vmem:[#allocation75_spill] sm:$0xff] }
 0x5ef   :  { %v5428_v46 = vmax.f32 %v13264_v14, 0.0  ;;  %v5429_v12 = vmax.f32 %v5397_v32, 0.0  ;;  %v6127_v62 = vld [vmem:[%s14445_s5 + $0x48] sm:$0xff] }
 0x5f0   :  { %v4928_v29 = vpop.f32.mrf.mxu2  ;;  %v4993_v10 = vpop.f32.mrf.mxu3  ;;  %6375 = vmatpush.msrb.mxu3 %v6127_v62 }
 0x5f1   :  { %v5030_v7 = vadd.f32 %v4928_v29, %v4700_v40  ;;  %v5031_v16 = vadd.f32 %v4993_v10, %v4701_v52  ;;  %5512 = vrot.lane.b32.xlu0 %v5428_v46, %s7739_s4  ;;  %5514 = vrot.lane.b32.xlu1 %v5429_v12, %s7739_s4 }
 0x5f3   :  { %v5360_v45 = vadd.f32 %v5258_v38, %v5030_v7  ;;  %v5361_v26 = vadd.f32 %v5323_v22, %v5031_v16  ;;  %v4307_v38 = vadd.f32 %v13073_v4, %v15567_v25  ;;  %v15568_v22 = vld [vmem:[#allocation73_spill] sm:$0xff]  ;;  %v5329_v40 = vpop.f32.mrf.mxu1 }
 0x5f4   :  { %v4372_v49 = vadd.f32 %v13075_v21, %v15568_v22 }
 0x5f5   :  { %v13279_v30 = vadd.f32 %v13107_v36, %v5360_v45  ;;  %v5399_v34 = vadd.f32 %v13105_v60, %v5361_v26  ;;  %v4704_v12 = vadd.f32 %v12980_v56, %v4307_v38  ;;  %v15571_v56 = vld [vmem:[#allocation133_spill] sm:$0xff] }
 0x5f6   :  { %v4705_v29 = vadd.f32 %v12982_v63, %v4372_v49  ;;  %v4375_v23 = vadd.f32 %v15571_v56, %v15570_v19  ;;  %v15574_v49 = vld [vmem:[#allocation82_spill] sm:$0xff] }
 0x5f7   :  { %v14755_v15 = vmax.f32 %v13279_v30, 0.0  ;;  %v5431_v27 = vmax.f32 %v5399_v34, 0.0  ;;  %v7601_v34 = vld [vmem:[%s14445_s5 + $0x98] sm:$0xff]  ;;  %v6126_v56 = vld [vmem:[%s14445_s5 + $0x40] sm:$0xff] }
 0x5f8   :  { %v4931_v58 = vpop.f32.mrf.mxu2  ;;  %v4996_v1 = vpop.f32.mrf.mxu3  ;;  %6268 = vmatpush.msra.mxu2 %v7601_v34  ;;  %6376 = vmatpush.msrb.mxu3 %v6126_v56  ;;  %v6122_v56 = vld [vmem:[%s14445_s5 + $0x20] sm:$0xff] }
 0x5f9   :  { %v5032_v59 = vadd.f32 %v4931_v58, %v4702_v50  ;;  %v5033_v0 = vadd.f32 %v4996_v1, %v4703_v9  ;;  %5516 = vrot.lane.b32.xlu2 %v14755_v15, %s7739_s4  ;;  %5518 = vrot.lane.b32.xlu0 %v5431_v27, %s7739_s4  ;;  %v5267_v50 = vpop.f32.mrf.mxu0  ;;  %v15573_v27 = vld [vmem:[#allocation105_spill] sm:$0xff] }
 0x5fa   :  { %v4707_v58 = vadd.f32 %v15573_v27, %v4375_v23  ;;  %v6125_v23 = vld [vmem:[%s14445_s5 + $0x38] sm:$0xff] }
 0x5fb   :  { %v5362_v47 = vadd.f32 %v5261_v6, %v5032_v59  ;;  %v5363_v32 = vadd.f32 %v5326_v11, %v5033_v0  ;;  %v15569_v6 = vld [vmem:[#allocation111_spill] sm:$0xff]  ;;  %6377 = vmatpush.msrb.mxu3 %v6125_v23  ;;  %v7662_v23 = vld [vmem:[%s14445_s5 + $0x180] sm:$0xff] }
 0x5fc   :  { %v4310_v11 = vadd.f32 %v13083_v42, %v15569_v6  ;;  %v5332_v42 = vpop.f32.mrf.mxu1 }
 0x5fd   :  { %v5401_v54 = vadd.f32 %v13105_v60, %v5363_v32  ;;  %v13295_v52 = vadd.f32 %v13107_v36, %v5362_v47  ;;  %v15575_v47 = vld [vmem:[#allocation116_spill] sm:$0xff] }
 0x5fe   :  { %v4706_v9 = vadd.f32 %v15572_v35, %v4310_v11  ;;  %v4313_v32 = vadd.f32 %v15575_v47, %v15574_v49  ;;  %v5475_v35 = vpop.permute.xlu2 %5474 }
 0x5ff   :  { %v5433_v10 = vmax.f32 %v5401_v54, 0.0  ;;  %v14754_v7 = vmax.f32 %v13295_v52, 0.0 }
 0x600   :  { %v4934_v4 = vpop.f32.mrf.mxu2  ;;  %v4999_v16 = vpop.f32.mrf.mxu3 }
 0x601   :  { %v5034_v17 = vadd.f32 %v4934_v4, %v4704_v12  ;;  %v5035_v21 = vadd.f32 %v4999_v16, %v4705_v29  ;;  %5522 = vrot.lane.b32.xlu2 %v5433_v10, %s7739_s4  ;;  %5520 = vrot.lane.b32.xlu1 %v14754_v7, %s7739_s4  ;;  %v15578_v16 = vld [vmem:[#allocation128_spill] sm:$0xff] }
 0x603   :  { %v5364_v63 = vadd.f32 %v5264_v48, %v5034_v17  ;;  %v5365_v24 = vadd.f32 %v5329_v40, %v5035_v21  ;;  %v15576_v48 = vld [vmem:[#allocation5_spill] sm:$0xff]  ;;  %v15577_v40 = vld [vmem:[#allocation2_spill] sm:$0xff]  ;;  %v4708_v17 = vadd.f32 %v15578_v16, %v4313_v32 }
 0x604   :  { %v4378_v54 = vadd.f32 %v15577_v40, %v15576_v48  ;;  %v15579_v21 = vld [vmem:[#allocation113_spill] sm:$0xff]  ;;  %v7598_v16 = vld [vmem:[%s14445_s5 + $0x80] sm:$0xff] }
 0x605   :  { %v13309_v45 = vadd.f32 %v13107_v36, %v5364_v63  ;;  %v5403_v26 = vadd.f32 %v13105_v60, %v5365_v24  ;;  %v7600_v63 = vld [vmem:[%s14445_s5 + $0x90] sm:$0xff] }
 0x606   :  { %v4709_v6 = vadd.f32 %v15579_v21, %v4378_v54  ;;  %6269 = vmatpush.msra.mxu2 %v7600_v63 }
 0x607   :  { %v14753_v1 = vmax.f32 %v13309_v45, 0.0  ;;  %v5435_v59 = vmax.f32 %v5403_v26, 0.0 }
 0x608   :  { %v4937_v0 = vpop.f32.mrf.mxu2  ;;  %v5002_v25 = vpop.f32.mrf.mxu3 }
 0x609   :  { %v5036_v38 = vadd.f32 %v4937_v0, %v4706_v9  ;;  %v5037_v22 = vadd.f32 %v5002_v25, %v4707_v58  ;;  %5524 = vrot.lane.b32.xlu0 %v14753_v1, %s7739_s4  ;;  %5526 = vrot.lane.b32.xlu1 %v5435_v59, %s7739_s4 }
 0x60b   :  { %v5366_v12 = vadd.f32 %v5267_v50, %v5036_v38  ;;  %v5367_v29 = vadd.f32 %v5332_v42, %v5037_v22  ;;  %v5270_v50 = vpop.f32.mrf.mxu0  ;;  %v5335_v42 = vpop.f32.mrf.mxu1 }
 0x60d   :  { %v13330_v10 = vadd.f32 %v13107_v36, %v5366_v12  ;;  %v5405_v4 = vadd.f32 %v13105_v60, %v5367_v29  ;;  %v6124_v12 = vld [vmem:[%s14445_s5 + $0x30] sm:$0xff] }
 0x60e   :  { %6378 = vmatpush.msrb.mxu3 %v6124_v12 }
 0x60f   :  { %v14752_v11 = vmax.f32 %v13330_v10, 0.0  ;;  %v5437_v19 = vmax.f32 %v5405_v4, 0.0  ;;  %v7663_v4 = vld [vmem:[%s14445_s5 + $0x188] sm:$0xff] }
 0x610   :  { %v4940_v24 = vpop.f32.mrf.mxu2  ;;  %v5005_v26 = vpop.f32.mrf.mxu3  ;;  %6745 = vmatpush.msrb.mxu0 %v7663_v4  ;;  %v7660_v4 = vld [vmem:[%s14445_s5 + $0x170] sm:$0xff] }
 0x611   :  { %v5038_v34 = vadd.f32 %v4940_v24, %v4708_v17  ;;  %v5039_v62 = vadd.f32 %v5005_v26, %v4709_v6  ;;  %5528 = vrot.lane.b32.xlu2 %v14752_v11, %s7739_s4  ;;  %5530 = vrot.lane.b32.xlu0 %v5437_v19, %s7739_s4  ;;  %v7597_v26 = vld [vmem:[%s14445_s5 + $0x78] sm:$0xff] }
 0x612   :  { %6746 = vmatpush.msrb.mxu0 %v7662_v23 }
 0x613   :  { %v5368_v9 = vadd.f32 %v5270_v50, %v5038_v34  ;;  %v5369_v27 = vadd.f32 %v5335_v42, %v5039_v62  ;;  %v5473_v58 = vpop.permute.xlu1 %5472 }
 0x614   :  { %v5537_v59 = vsel %vm5536_vm15, %v5473_v58, %v5475_v35  ;;  %v6121_v35 = vld [vmem:[%s14445_s5 + $0x18] sm:$0xff] }
 0x615   :  { %v5569_v0 = vmax.f32 %v5408_v61, %v5537_v59  ;;  %v5407_v25 = vadd.f32 %v13105_v60, %v5369_v27  ;;  %v13354_v38 = vadd.f32 %v13107_v36, %v5368_v9  ;;  %v7599_v60 = vld [vmem:[%s14445_s5 + $0x88] sm:$0xff]  ;;  %v7661_v9 = vld [vmem:[%s14445_s5 + $0x178] sm:$0xff] }
 0x616   :  { %v6123_v36 = vld [vmem:[%s14445_s5 + $0x28] sm:$0xff]  ;;  %6270 = vmatpush.msra.mxu2 %v7599_v60  ;;  %6747 = vmatpush.msrb.mxu0 %v7661_v9  ;;  %v7658_v9 = vld [vmem:[%s14445_s5 + $0x160] sm:$0xff] }
 0x617   :  { %v5600_v22 = vrot.slane %v5569_v0, 2  ;;  %v5601_v49 = vrot.slane %v5569_v0, 4  ;;  %v5602_v47 = vrot.slane %v5569_v0, 6  ;;  %v5691_v32 = vsel %vm5690_vm0, %v5569_v0, -inf  ;;  %6379 = vmatpush.msrb.mxu3 %v6123_v36 }
 0x618   :  { %v5692_v48 = vrot.slane %v5691_v32, 4  ;;  %v5439_v40 = vmax.f32 %v5407_v25, 0.0  ;;  %v14751_v54 = vmax.f32 %v13354_v38, 0.0  ;;  %6271 = vmatpush.msra.mxu2 %v7598_v16  ;;  %v7595_v16 = vld [vmem:[%s14445_s5 + $0x68] sm:$0xff]  ;;  %6748 = vmatpush.msrb.mxu0 %v7660_v4  ;;  %v7592_v4 = vld [vmem:[%s14445_s5 + $0x50] sm:$0xff] }
 0x619   :  { %v5698_v20 = vsel %vm5690_vm0, %v5600_v22, -inf  ;;  %v5705_v61 = vsel %vm5690_vm0, %v5601_v49, -inf  ;;  %v5712_v29 = vsel %vm5690_vm0, %v5602_v47, -inf  ;;  %6380 = vmatpush.msrb.mxu3 %v6122_v56 }
 0x61a   :  { %v5693_v17 = vmax.f32 %v5691_v32, %v5692_v48  ;;  %v5699_v21 = vrot.slane %v5698_v20, 4  ;;  %v5706_v6 = vrot.slane %v5705_v61, 4  ;;  %v5713_v19 = vrot.slane %v5712_v29, 4  ;;  %5534 = vrot.lane.b32.xlu2 %v5439_v40, %s7739_s4  ;;  %5532 = vrot.lane.b32.xlu1 %v14751_v54, %s7739_s4 }
 0x61b   :  { %v5477_v63 = vpop.permute.xlu0 %5476  ;;  %v5479_v24 = vpop.permute.xlu1 %5478  ;;  %6272 = vmatpush.msra.mxu2 %v7597_v26  ;;  %6381 = vmatpush.msrb.mxu3 %v6121_v35  ;;  %v6118_v35 = vld [vmem:[%s14445_s5] sm:$0xff] }
 0x61c   :  { %v5694_v34 = vrot.slane %v5693_v17, 2  ;;  %v5700_v62 = vmax.f32 %v5698_v20, %v5699_v21  ;;  %v5707_v50 = vmax.f32 %v5705_v61, %v5706_v6  ;;  %v5714_v42 = vmax.f32 %v5712_v29, %v5713_v19  ;;  %v7596_v20 = vld [vmem:[%s14445_s5 + $0x70] sm:$0xff]  ;;  %v5481_v26 = vpop.permute.xlu2 %5480 }
 0x61d   :  { %v5538_v27 = vsel %vm5536_vm15, %v5477_v63, %v5479_v24  ;;  %6273 = vmatpush.msra.mxu2 %v7596_v20  ;;  %6382 = vmatpush.msrb.mxu3 %v6120_v53  ;;  %v7659_v63 = vld [vmem:[%s14445_s5 + $0x168] sm:$0xff]  ;;  %v7594_v24 = vld [vmem:[%s14445_s5 + $0x60] sm:$0xff] }
 0x61e   :  { %v5695_v58 = vmax.f32 %v5693_v17, %v5694_v34  ;;  %v5701_v59 = vrot.slane %v5700_v62, 2  ;;  %v5708_v0 = vrot.slane %v5707_v50, 2  ;;  %v5715_v25 = vrot.slane %v5714_v42, 2  ;;  %v6119_v17 = vld [vmem:[%s14445_s5 + $0x8] sm:$0xff]  ;;  %6749 = vmatpush.msrb.mxu0 %v7659_v63 }
 0x61f   :  { %v5570_v22 = vmax.f32 %v5410_v31, %v5538_v27  ;;  %6274 = vmatpush.msra.mxu2 %v7595_v16  ;;  %6383 = vmatpush.msrb.mxu3 %v6119_v17  ;;  %v7656_v16 = vld [vmem:[%s14445_s5 + $0x150] sm:$0xff] }
 0x620   :  { %v5696_v49 = vrot.slane %v5695_v58, 1  ;;  %v5702_v47 = vmax.f32 %v5700_v62, %v5701_v59  ;;  %v5709_v32 = vmax.f32 %v5707_v50, %v5708_v0  ;;  %v5716_v48 = vmax.f32 %v5714_v42, %v5715_v25  ;;  %v7593_v25 = vld [vmem:[%s14445_s5 + $0x58] sm:$0xff]  ;;  %6750 = vmatpush.msrb.mxu0 %v7658_v9 }
 0x621   :  { %v5603_v40 = vrot.slane %v5570_v22, 2  ;;  %v5604_v12 = vrot.slane %v5570_v22, 4  ;;  %v5605_v60 = vrot.slane %v5570_v22, 6  ;;  %v5719_v36 = vsel %vm5690_vm0, %v5570_v22, -inf  ;;  %6275 = vmatpush.msra.mxu2 %v7594_v24  ;;  %6384 = vmatpush.msrb.mxu3 %v6118_v35 }
 0x622   :  { %v5703_v31 = vrot.slane %v5702_v47, 1  ;;  %v5710_v61 = vrot.slane %v5709_v32, 1  ;;  %v5717_v29 = vrot.slane %v5716_v48, 1  ;;  %v5720_v21 = vrot.slane %v5719_v36, 4 }
 0x623   :  { %v5726_v6 = vsel %vm5690_vm0, %v5603_v40, -inf  ;;  %v5733_v19 = vsel %vm5690_vm0, %v5604_v12, -inf  ;;  %v5740_v56 = vsel %vm5690_vm0, %v5605_v60, -inf  ;;  %v5483_v23 = vpop.permute.xlu0 %5482  ;;  %v5697_v34 = vmax.f32 %v5695_v58, %v5696_v49  ;;  %6276 = vmatpush.msra.mxu2 %v7593_v25 }
 0x624   :  { %v13423_v62 = vmax.f32 %v5702_v47, %v5703_v31  ;;  %v13425_v50 = vmax.f32 %v5709_v32, %v5710_v61  ;;  %v5727_v42 = vrot.slane %v5726_v6, 4  ;;  %v5721_v27 = vmax.f32 %v5719_v36, %v5720_v21  ;;  %v7657_v32 = vld [vmem:[%s14445_s5 + $0x158] sm:$0xff] }
 0x625   :  { %v5734_v59 = vrot.slane %v5733_v19, 4  ;;  %v5741_v0 = vrot.slane %v5740_v56, 4  ;;  %v5539_v58 = vsel %vm5536_vm15, %v5481_v26, %v5483_v23  ;;  %v13437_v22 = vmax.f32 %v5716_v48, %v5717_v29  ;;  %6751 = vmatpush.msrb.mxu0 %v7657_v32  ;;  %6277 = vmatpush.msra.mxu2 %v7592_v4 }
 0x626   :  { %v5728_v49 = vmax.f32 %v5726_v6, %v5727_v42  ;;  %v5571_v47 = vmax.f32 %v5412_v37, %v5539_v58  ;;  %v6304_v40 = vsel %vm3823_vm7, %v13423_v62, %v5697_v34  ;;  %v5722_v12 = vrot.slane %v5721_v27, 2 }
 0x627   :  { %v5735_v60 = vmax.f32 %v5733_v19, %v5734_v59  ;;  %v5742_v36 = vmax.f32 %v5740_v56, %v5741_v0  ;;  %v7655_v56 = vld [vmem:[%s14445_s5 + $0x148] sm:$0xff]  ;;  %6752 = vmatpush.msrb.mxu0 %v7656_v16  ;;  %v7654_v59 = vld [vmem:[%s14445_s5 + $0x140] sm:$0xff] }
 0x628   :  { %v5729_v20 = vrot.slane %v5728_v49, 2  ;;  %v5606_v48 = vrot.slane %v5571_v47, 2  ;;  %v5607_v53 = vrot.slane %v5571_v47, 4  ;;  %v5608_v31 = vrot.slane %v5571_v47, 6 }
 0x629   :  { %v5723_v8 = vmax.f32 %v5721_v27, %v5722_v12  ;;  %v5736_v37 = vrot.slane %v5735_v60, 2  ;;  %v5743_v61 = vrot.slane %v5742_v36, 2  ;;  %v5747_v29 = vsel %vm5690_vm0, %v5571_v47, -inf  ;;  %6753 = vmatpush.msrb.mxu0 %v7655_v56  ;;  %v5487_v47 = vpop.permute.xlu2 %5486 }
 0x62a   :  { %v5730_v17 = vmax.f32 %v5728_v49, %v5729_v20  ;;  %v5748_v21 = vrot.slane %v5747_v29, 4  ;;  %v5754_v6 = vsel %vm5690_vm0, %v5606_v48, -inf  ;;  %v5761_v19 = vsel %vm5690_vm0, %v5607_v53, -inf }
 0x62b   :  { %v5724_v23 = vrot.slane %v5723_v8, 1  ;;  %v5737_v63 = vmax.f32 %v5735_v60, %v5736_v37  ;;  %v5744_v24 = vmax.f32 %v5742_v36, %v5743_v61  ;;  %v5755_v26 = vrot.slane %v5754_v6, 4  ;;  %v5485_v34 = vpop.permute.xlu1 %5484  ;;  %6754 = vmatpush.msrb.mxu0 %v7654_v59 }
 0x62c   :  { %v5731_v42 = vrot.slane %v5730_v17, 1  ;;  %v5749_v35 = vmax.f32 %v5747_v29, %v5748_v21  ;;  %v5762_v9 = vrot.slane %v5761_v19, 4  ;;  %v5768_v27 = vsel %vm5690_vm0, %v5608_v31, -inf }
 0x62d   :  { %v5738_v0 = vrot.slane %v5737_v63, 1  ;;  %v5745_v58 = vrot.slane %v5744_v24, 1  ;;  %v5756_v25 = vmax.f32 %v5754_v6, %v5755_v26  ;;  %v6305_v49 = vsel %vm3825_vm8, %v13425_v50, %v6304_v40 }
 0x62e   :  { %v13464_v32 = vmax.f32 %v5723_v8, %v5724_v23  ;;  %v5750_v12 = vrot.slane %v5749_v35, 2  ;;  %v5763_v60 = vmax.f32 %v5761_v19, %v5762_v9  ;;  %v5769_v36 = vrot.slane %v5768_v27, 4 }
 0x62f   :  { %v13466_v20 = vmax.f32 %v5730_v17, %v5731_v42  ;;  %v13468_v48 = vmax.f32 %v5737_v63, %v5738_v0  ;;  %v5757_v53 = vrot.slane %v5756_v25, 2  ;;  %v5540_v31 = vsel %vm5536_vm15, %v5485_v34, %v5487_v47 }
 0x630   :  { %v5751_v37 = vmax.f32 %v5749_v35, %v5750_v12  ;;  %v5764_v61 = vrot.slane %v5763_v60, 2  ;;  %v5770_v29 = vmax.f32 %v5768_v27, %v5769_v36  ;;  %v5572_v40 = vmax.f32 %v5414_v2, %v5540_v31 }
 0x631   :  { %v13473_v8 = vmax.f32 %v5744_v24, %v5745_v58  ;;  %v5758_v4 = vmax.f32 %v5756_v25, %v5757_v53  ;;  %v6306_v16 = vsel %vm3827_vm9, %v13437_v22, %v6305_v49  ;;  %v6196_v17 = vsel %vm3823_vm7, %v13425_v50, %v13423_v62 }
 0x632   :  { %v5752_v21 = vrot.slane %v5751_v37, 1  ;;  %v5765_v6 = vmax.f32 %v5763_v60, %v5764_v61  ;;  %v5771_v19 = vrot.slane %v5770_v29, 2  ;;  %v5609_v56 = vrot.slane %v5572_v40, 2 }
 0x633   :  { %v5759_v23 = vrot.slane %v5758_v4, 1  ;;  %v5610_v63 = vrot.slane %v5572_v40, 4  ;;  %v5611_v26 = vrot.slane %v5572_v40, 6  ;;  %v5775_v28 = vsel %vm5690_vm0, %v5572_v40, -inf  ;;  %v5489_v42 = vpop.permute.xlu0 %5488  ;;  %v5491_v35 = vpop.permute.xlu1 %5490 }
 0x634   :  { %v5766_v2 = vrot.slane %v5765_v6, 1  ;;  %v5772_v24 = vmax.f32 %v5770_v29, %v5771_v19  ;;  %v5776_v34 = vrot.slane %v5775_v28, 4  ;;  %v6674_v9 = vsel %vm3823_vm7, %v13466_v20, %v13464_v32 }
 0x635   :  { %v13484_v27 = vmax.f32 %v5751_v37, %v5752_v21  ;;  %v5782_v62 = vsel %vm5690_vm0, %v5609_v56, -inf  ;;  %v5789_v59 = vsel %vm5690_vm0, %v5610_v63, -inf  ;;  %v5796_v0 = vsel %vm5690_vm0, %v5611_v26, -inf }
 0x636   :  { %v13489_v58 = vmax.f32 %v5758_v4, %v5759_v23  ;;  %v5773_v25 = vrot.slane %v5772_v24, 1  ;;  %v5777_v49 = vmax.f32 %v5775_v28, %v5776_v34  ;;  %v5783_v47 = vrot.slane %v5782_v62, 4 }
 0x637   :  { %v5790_v12 = vrot.slane %v5789_v59, 4  ;;  %v5797_v60 = vrot.slane %v5796_v0, 4  ;;  %v6307_v36 = vsel %vm3829_vm10, %v13464_v32, %v6306_v16  ;;  %v5541_v53 = vsel %vm5536_vm15, %v5489_v42, %v5491_v35 }
 0x638   :  { %v13494_v31 = vmax.f32 %v5765_v6, %v5766_v2  ;;  %v5778_v37 = vrot.slane %v5777_v49, 2  ;;  %v5784_v61 = vmax.f32 %v5782_v62, %v5783_v47  ;;  %v6308_v29 = vsel %vm3831_vm11, %v13466_v20, %v6307_v36 }
 0x639   :  { %v5791_v40 = vmax.f32 %v5789_v59, %v5790_v12  ;;  %v5798_v4 = vmax.f32 %v5796_v0, %v5797_v60  ;;  %v6309_v21 = vsel %vm3833_vm12, %v13468_v48, %v6308_v29  ;;  %v5573_v19 = vmax.f32 %v5416_v57, %v5541_v53 }
 0x63a   :  { %v13502_v56 = vmax.f32 %v5772_v24, %v5773_v25  ;;  %v5779_v16 = vmax.f32 %v5777_v49, %v5778_v37  ;;  %v5785_v23 = vrot.slane %v5784_v61, 2  ;;  %v6310_v6 = vsel %vm3835_vm13, %v13473_v8, %v6309_v21  ;;  %v5493_v21 = vpop.permute.xlu2 %5492 }
 0x63b   :  { %v5792_v63 = vrot.slane %v5791_v40, 2  ;;  %v5799_v26 = vrot.slane %v5798_v4, 2  ;;  %7610 = vmatmul.msk.f32.vlgmr.msrb.gmra.mxu3 %vm6245_vm1, %v6310_v6  ;;  %v5612_v28 = vrot.slane %v5573_v19, 2  ;;  %v5613_v2 = vrot.slane %v5573_v19, 4  ;;  %v5495_v37 = vpop.permute.xlu0 %5494 }
 0x63c   :  { %v5780_v34 = vrot.slane %v5779_v16, 1  ;;  %v5786_v42 = vmax.f32 %v5784_v61, %v5785_v23  ;;  %v5614_v35 = vrot.slane %v5573_v19, 6  ;;  %v5803_v62 = vsel %vm5690_vm0, %v5573_v19, -inf }
 0x63d   :  { %v5793_v39 = vmax.f32 %v5791_v40, %v5792_v63  ;;  %v13508_v57 = vmax.f32 %v5798_v4, %v5799_v26  ;;  %v5804_v24 = vrot.slane %v5803_v62, 4  ;;  %v5810_v59 = vsel %vm5690_vm0, %v5612_v28, -inf }
 0x63e   :  { %v5787_v0 = vrot.slane %v5786_v42, 1  ;;  %v5811_v25 = vrot.slane %v5810_v59, 4  ;;  %v5817_v49 = vsel %vm5690_vm0, %v5613_v2, -inf  ;;  %v6197_v47 = vsel %vm3825_vm8, %v13437_v22, %v6196_v17 }
 0x63f   :  { %v13514_v12 = vmax.f32 %v5779_v16, %v5780_v34  ;;  %v5794_v60 = vrot.slane %v5793_v39, 1  ;;  %v5805_v36 = vmax.f32 %v5803_v62, %v5804_v24  ;;  %v5818_v53 = vrot.slane %v5817_v49, 4 }
 0x640   :  { %v5801_v61 = vrot.slane %v13508_v57, 1  ;;  %v5812_v29 = vmax.f32 %v5810_v59, %v5811_v25  ;;  %v5824_v40 = vsel %vm5690_vm0, %v5614_v35, -inf  ;;  %v6198_v4 = vsel %vm3827_vm9, %v13464_v32, %v6197_v47 }
 0x641   :  { %v13520_v19 = vmax.f32 %v5786_v42, %v5787_v0  ;;  %v5806_v23 = vrot.slane %v5805_v36, 2  ;;  %v5819_v6 = vmax.f32 %v5817_v49, %v5818_v53  ;;  %v5825_v17 = vrot.slane %v5824_v40, 4 }
 0x642   :  { %v5813_v16 = vrot.slane %v5812_v29, 2  ;;  %v6199_v63 = vsel %vm3829_vm10, %v13466_v20, %v6198_v4  ;;  %v6675_v26 = vsel %vm3825_vm8, %v13468_v48, %v6674_v9  ;;  %v5542_v28 = vsel %vm5536_vm15, %v5493_v21, %v5495_v37 }
 0x643   :  { %v5807_v2 = vmax.f32 %v5805_v36, %v5806_v23  ;;  %v5820_v34 = vrot.slane %v5819_v6, 2  ;;  %v5826_v35 = vmax.f32 %v5824_v40, %v5825_v17  ;;  %v6200_v62 = vsel %vm3831_vm11, %v13468_v48, %v6199_v63 }
 0x644   :  { %v5814_v42 = vmax.f32 %v5812_v29, %v5813_v16  ;;  %v6201_v24 = vsel %vm3833_vm12, %v13473_v8, %v6200_v62  ;;  %v6676_v59 = vsel %vm3827_vm9, %v13473_v8, %v6675_v26  ;;  %v5574_v0 = vmax.f32 %v5418_v18, %v5542_v28  ;;  %v5497_v26 = vpop.permute.xlu1 %5496  ;;  %v5499_v62 = vpop.permute.xlu2 %5498 }
 0x645   :  { %v5808_v25 = vrot.slane %v5807_v2, 1  ;;  %v5821_v9 = vmax.f32 %v5819_v6, %v5820_v34  ;;  %v5827_v49 = vrot.slane %v5826_v35, 2  ;;  %v6202_v47 = vsel %vm3835_vm13, %v13484_v27, %v6201_v24 }
 0x646   :  { %v5815_v36 = vrot.slane %v5814_v42, 1  ;;  %7602 = vmatmul.msk.f32.vlgmr.msra.gmra.mxu2 %vm6245_vm1, %v6202_v47  ;;  %v6677_v53 = vsel %vm3829_vm10, %v13484_v27, %v6676_v59  ;;  %v5615_v37 = vrot.slane %v5574_v0, 2  ;;  %v5616_v29 = vrot.slane %v5574_v0, 4 }
 0x647   :  { %v13540_v40 = vmax.f32 %v5793_v39, %v5794_v60  ;;  %v5822_v4 = vrot.slane %v5821_v9, 1  ;;  %v5828_v21 = vmax.f32 %v5826_v35, %v5827_v49  ;;  %v6678_v51 = vsel %vm3831_vm11, %v13489_v58, %v6677_v53 }
 0x648   :  { %v13544_v18 = vmax.f32 %v5807_v2, %v5808_v25  ;;  %v6679_v23 = vsel %vm3833_vm12, %v13494_v31, %v6678_v51  ;;  %v5617_v6 = vrot.slane %v5574_v0, 6  ;;  %v5831_v17 = vsel %vm5690_vm0, %v5574_v0, -inf }
 0x649   :  { %v13549_v16 = vmax.f32 %v5814_v42, %v5815_v36  ;;  %v13551_v63 = vmax.f32 %v5821_v9, %v5822_v4  ;;  %v6680_v39 = vsel %vm3835_vm13, %v13502_v56, %v6679_v23  ;;  %v5832_v60 = vrot.slane %v5831_v17, 4 }
 0x64a   :  { %v5829_v28 = vrot.slane %v5828_v21, 1  ;;  %7664 = vmatmul.msk.f32.vlgmr.msrb.gmra.mxu0 %vm6245_vm1, %v6680_v39  ;;  %v5838_v2 = vsel %vm5690_vm0, %v5615_v37, -inf  ;;  %v5845_v34 = vsel %vm5690_vm0, %v5616_v29, -inf  ;;  %v5852_v35 = vsel %vm5690_vm0, %v5617_v6, -inf }
 0x64b   :  { %v5833_v24 = vmax.f32 %v5831_v17, %v5832_v60  ;;  %v5839_v42 = vrot.slane %v5838_v2, 4  ;;  %v5846_v59 = vrot.slane %v5845_v34, 4  ;;  %v5853_v0 = vrot.slane %v5852_v35, 4 }
 0x64c   :  { %v13560_v25 = vmax.f32 %v13508_v57, %v5801_v61  ;;  %v6311_v9 = vsel %vm3823_vm7, %v13489_v58, %v13484_v27  ;;  %v5543_v49 = vsel %vm5536_vm15, %v5497_v26, %v5499_v62  ;;  %v6203_v47 = vsel %vm3823_vm7, %v13494_v31, %v13489_v58 }
 0x64d   :  { %v5834_v36 = vrot.slane %v5833_v24, 2  ;;  %v5840_v53 = vmax.f32 %v5838_v2, %v5839_v42  ;;  %v5847_v37 = vmax.f32 %v5845_v34, %v5846_v59  ;;  %v5854_v29 = vmax.f32 %v5852_v35, %v5853_v0 }
 0x64e   :  { %v6312_v4 = vsel %vm3825_vm8, %v13494_v31, %v6311_v9  ;;  %v5575_v57 = vmax.f32 %v5420_v5, %v5543_v49  ;;  %v6204_v61 = vsel %vm3825_vm8, %v13502_v56, %v6203_v47  ;;  %v13575_v51 = vmax.f32 %v5828_v21, %v5829_v28 }
 0x64f   :  { %v5835_v23 = vmax.f32 %v5833_v24, %v5834_v36  ;;  %v5841_v6 = vrot.slane %v5840_v53, 2  ;;  %v5848_v17 = vrot.slane %v5847_v37, 2  ;;  %v5855_v39 = vrot.slane %v5854_v29, 2 }
 0x650   :  { %v6313_v60 = vsel %vm3827_vm9, %v13502_v56, %v6312_v4  ;;  %v5618_v26 = vrot.slane %v5575_v57, 2  ;;  %v5619_v2 = vrot.slane %v5575_v57, 4  ;;  %v5620_v34 = vrot.slane %v5575_v57, 6  ;;  %v5503_v4 = vpop.permute.xlu1 %5502 }
 0x651   :  { %v5836_v35 = vrot.slane %v5835_v23, 1  ;;  %v5842_v62 = vmax.f32 %v5840_v53, %v5841_v6  ;;  %v5849_v42 = vmax.f32 %v5847_v37, %v5848_v17  ;;  %v13579_v44 = vmax.f32 %v5854_v29, %v5855_v39  ;;  %v5501_v29 = vpop.permute.xlu0 %5500 }
 0x652   :  { %v6314_v5 = vsel %vm3829_vm10, %v13514_v12, %v6313_v60  ;;  %v5859_v21 = vsel %vm5690_vm0, %v5575_v57, -inf  ;;  %v5866_v28 = vsel %vm5690_vm0, %v5618_v26, -inf  ;;  %v5873_v24 = vsel %vm5690_vm0, %v5619_v2, -inf }
 0x653   :  { %v13586_v59 = vmax.f32 %v5835_v23, %v5836_v35  ;;  %v5843_v0 = vrot.slane %v5842_v62, 1  ;;  %v5850_v9 = vrot.slane %v5849_v42, 1  ;;  %v6681_v49 = vsel %vm3823_vm7, %v13520_v19, %v13514_v12 }
 0x654   :  { %v6315_v47 = vsel %vm3831_vm11, %v13520_v19, %v6314_v5  ;;  %v5860_v36 = vrot.slane %v5859_v21, 4  ;;  %v5867_v53 = vrot.slane %v5866_v28, 4  ;;  %v5874_v37 = vrot.slane %v5873_v24, 4 }
 0x655   :  { %v13593_v57 = vmax.f32 %v5842_v62, %v5843_v0  ;;  %v5857_v6 = vrot.slane %v13579_v44, 1  ;;  %v6316_v23 = vsel %vm3833_vm12, %v13540_v40, %v6315_v47  ;;  %v5880_v17 = vsel %vm5690_vm0, %v5620_v34, -inf }
 0x656   :  { %v6317_v39 = vsel %vm3835_vm13, %v13560_v25, %v6316_v23  ;;  %v5861_v60 = vmax.f32 %v5859_v21, %v5860_v36  ;;  %v5868_v26 = vmax.f32 %v5866_v28, %v5867_v53  ;;  %v5875_v2 = vmax.f32 %v5873_v24, %v5874_v37 }
 0x657   :  { %7611 = vmatmul.msk.f32.gmra.mxu3 %vm6245_vm1, %v6317_v39  ;;  %v5881_v35 = vrot.slane %v5880_v17, 4  ;;  %v6205_v62 = vsel %vm3827_vm9, %v13514_v12, %v6204_v61  ;;  %v6682_v5 = vsel %vm3825_vm8, %v13540_v40, %v6681_v49  ;;  %v5544_v0 = vsel %vm5536_vm15, %v5501_v29, %v5503_v4 }
 0x658   :  { %v5862_v47 = vrot.slane %v5861_v60, 2  ;;  %v5869_v54 = vrot.slane %v5868_v26, 2  ;;  %v5876_v34 = vrot.slane %v5875_v2, 2  ;;  %v6206_v23 = vsel %vm3829_vm10, %v13520_v19, %v6205_v62 }
 0x659   :  { %v5882_v21 = vmax.f32 %v5880_v17, %v5881_v35  ;;  %v6207_v28 = vsel %vm3831_vm11, %v13540_v40, %v6206_v23  ;;  %v6683_v24 = vsel %vm3827_vm9, %v13560_v25, %v6682_v5  ;;  %v5576_v61 = vmax.f32 %v5422_v13, %v5544_v0  ;;  %v5507_v23 = vpop.permute.xlu0 %5506 }
 0x65a   :  { %v5863_v36 = vmax.f32 %v5861_v60, %v5862_v47  ;;  %v5870_v49 = vmax.f32 %v5868_v26, %v5869_v54  ;;  %v5877_v53 = vmax.f32 %v5875_v2, %v5876_v34  ;;  %v6208_v37 = vsel %vm3833_vm12, %v13560_v25, %v6207_v28 }
 0x65b   :  { %v5883_v29 = vrot.slane %v5882_v21, 2  ;;  %v6209_v4 = vsel %vm3835_vm13, %v13544_v18, %v6208_v37  ;;  %v6684_v17 = vsel %vm3829_vm10, %v13544_v18, %v6683_v24  ;;  %v5621_v39 = vrot.slane %v5576_v61, 2  ;;  %v5509_v11 = vpop.permute.xlu1 %5508 }
 0x65c   :  { %v5864_v35 = vrot.slane %v5863_v36, 1  ;;  %v5871_v62 = vrot.slane %v5870_v49, 1  ;;  %v5878_v5 = vrot.slane %v5877_v53, 1  ;;  %7603 = vmatmul.msk.f32.gmra.mxu2 %vm6245_vm1, %v6209_v4  ;;  %v6685_v33 = vsel %vm3831_vm11, %v13549_v16, %v6684_v17 }
 0x65d   :  { %v13624_v13 = vmax.f32 %v5849_v42, %v5850_v9  ;;  %v6686_v54 = vsel %vm3833_vm12, %v13551_v63, %v6685_v33  ;;  %v5622_v60 = vrot.slane %v5576_v61, 4  ;;  %v5623_v26 = vrot.slane %v5576_v61, 6 }
 0x65e   :  { %v13628_v2 = vmax.f32 %v5863_v36, %v5864_v35  ;;  %v13630_v0 = vmax.f32 %v5870_v49, %v5871_v62  ;;  %v13632_v47 = vmax.f32 %v5882_v21, %v5883_v29  ;;  %v6687_v34 = vsel %vm3835_vm13, %v13575_v51, %v6686_v54  ;;  %v5505_v36 = vpop.permute.xlu2 %5504 }
 0x65f   :  { %15580 = vst [vmem:[#allocation8_spill] sm:$0xff] %v13624_v13  ;;  %v13636_v28 = vmax.f32 %v5877_v53, %v5878_v5  ;;  %7665 = vmatmul.msk.f32.gmra.mxu0 %vm6245_vm1, %v6687_v34  ;;  %v5887_v42 = vsel %vm5690_vm0, %v5576_v61, -inf  ;;  %v5894_v9 = vsel %vm5690_vm0, %v5621_v39, -inf  ;;  %v5901_v24 = vsel %vm5690_vm0, %v5622_v60, -inf }
 0x660   :  { %15581 = vst [vmem:[#allocation37_spill] sm:$0xff] %v13628_v2  ;;  %v5888_v37 = vrot.slane %v5887_v42, 4  ;;  %v5895_v49 = vrot.slane %v5894_v9, 4  ;;  %v5902_v4 = vrot.slane %v5901_v24, 4  ;;  %v5908_v21 = vsel %vm5690_vm0, %v5623_v26, -inf }
 0x661   :  { %15582 = vst [vmem:[#allocation63_spill] sm:$0xff] %v13630_v0  ;;  %v5909_v29 = vrot.slane %v5908_v21, 4  ;;  %v13644_v17 = vmax.f32 %v13579_v44, %v5857_v6  ;;  %v6318_v53 = vsel %vm3823_vm7, %v13549_v16, %v13544_v18  ;;  %v5545_v61 = vsel %vm5536_vm15, %v5505_v36, %v5507_v23 }
 0x662   :  { %15583 = vst [vmem:[#allocation42_spill] sm:$0xff] %v13636_v28  ;;  %v5889_v35 = vmax.f32 %v5887_v42, %v5888_v37  ;;  %v5896_v39 = vmax.f32 %v5894_v9, %v5895_v49  ;;  %v5903_v62 = vmax.f32 %v5901_v24, %v5902_v4  ;;  %v6319_v5 = vsel %vm3825_vm8, %v13551_v63, %v6318_v53 }
 0x663   :  { %15584 = vst [vmem:[#allocation64_spill] sm:$0xff] %v13644_v17  ;;  %v5910_v33 = vmax.f32 %v5908_v21, %v5909_v29  ;;  %v6320_v54 = vsel %vm3827_vm9, %v13575_v51, %v6319_v5  ;;  %v5577_v44 = vmax.f32 %v5424_v55, %v5545_v61  ;;  %v6210_v6 = vsel %vm3823_vm7, %v13551_v63, %v13549_v16 }
 0x664   :  { %v5890_v60 = vrot.slane %v5889_v35, 2  ;;  %v5897_v26 = vrot.slane %v5896_v39, 2  ;;  %v5904_v34 = vrot.slane %v5903_v62, 2  ;;  %v6321_v23 = vsel %vm3829_vm10, %v13586_v59, %v6320_v54 }
 0x665   :  { %v5911_v42 = vrot.slane %v5910_v33, 2  ;;  %v6322_v9 = vsel %vm3831_vm11, %v13593_v57, %v6321_v23  ;;  %v5624_v24 = vrot.slane %v5577_v44, 2  ;;  %v5625_v36 = vrot.slane %v5577_v44, 4 }
 0x666   :  { %v5891_v37 = vmax.f32 %v5889_v35, %v5890_v60  ;;  %v5898_v49 = vmax.f32 %v5896_v39, %v5897_v26  ;;  %v5905_v41 = vmax.f32 %v5903_v62, %v5904_v34  ;;  %v6323_v55 = vsel %vm3833_vm12, %v13624_v13, %v6322_v9 }
 0x667   :  { %v13665_v4 = vmax.f32 %v5910_v33, %v5911_v42  ;;  %v6324_v21 = vsel %vm3835_vm13, %v13644_v17, %v6323_v55  ;;  %v5626_v29 = vrot.slane %v5577_v44, 6  ;;  %v5915_v53 = vsel %vm5690_vm0, %v5577_v44, -inf }
 0x668   :  { %v5892_v61 = vrot.slane %v5891_v37, 1  ;;  %v5899_v5 = vrot.slane %v5898_v49, 1  ;;  %v5906_v54 = vrot.slane %v5905_v41, 1  ;;  %7612 = vmatmul.msk.f32.gmra.mxu3 %vm6245_vm1, %v6324_v21  ;;  %v5916_v23 = vrot.slane %v5915_v53, 4 }
 0x669   :  { %v5885_v35 = vrot.slane %v13632_v47, 1  ;;  %v5922_v39 = vsel %vm5690_vm0, %v5624_v24, -inf  ;;  %v5929_v62 = vsel %vm5690_vm0, %v5625_v36, -inf  ;;  %v5936_v33 = vsel %vm5690_vm0, %v5626_v29, -inf }
 0x66a   :  { %v13675_v60 = vmax.f32 %v5891_v37, %v5892_v61  ;;  %v13677_v26 = vmax.f32 %v5898_v49, %v5899_v5  ;;  %v5913_v44 = vrot.slane %v13665_v4, 1  ;;  %v5917_v34 = vmax.f32 %v5915_v53, %v5916_v23  ;;  %v5511_v49 = vpop.permute.xlu2 %5510 }
 0x66b   :  { %v5923_v42 = vrot.slane %v5922_v39, 4  ;;  %v5930_v9 = vrot.slane %v5929_v62, 4  ;;  %v5937_v55 = vrot.slane %v5936_v33, 4  ;;  %v6211_v21 = vsel %vm3825_vm8, %v13575_v51, %v6210_v6 }
 0x66c   :  { %15585 = vst [vmem:[#allocation54_spill] sm:$0xff] %v13675_v60  ;;  %v13682_v1 = vmax.f32 %v5905_v41, %v5906_v54  ;;  %v5918_v24 = vrot.slane %v5917_v34, 2  ;;  %v6212_v36 = vsel %vm3827_vm9, %v13586_v59, %v6211_v21  ;;  %v6688_v37 = vsel %vm3823_vm7, %v13593_v57, %v13586_v59 }
 0x66d   :  { %15586 = vst [vmem:[#allocation58_spill] sm:$0xff] %v13677_v26  ;;  %v5924_v29 = vmax.f32 %v5922_v39, %v5923_v42  ;;  %v5931_v53 = vmax.f32 %v5929_v62, %v5930_v9  ;;  %v5938_v61 = vmax.f32 %v5936_v33, %v5937_v55  ;;  %v6213_v5 = vsel %vm3829_vm10, %v13593_v57, %v6212_v36 }
 0x66e   :  { %15587 = vst [vmem:[#allocation66_spill] sm:$0xff] %v13682_v1  ;;  %v5919_v23 = vmax.f32 %v5917_v34, %v5918_v24  ;;  %v6214_v6 = vsel %vm3831_vm11, %v13624_v13, %v6213_v5  ;;  %v6689_v41 = vsel %vm3825_vm8, %v13624_v13, %v6688_v37  ;;  %v5546_v54 = vsel %vm5536_vm15, %v5509_v11, %v5511_v49 }
 0x66f   :  { %v5925_v21 = vrot.slane %v5924_v29, 2  ;;  %v5932_v7 = vrot.slane %v5931_v53, 2  ;;  %v5939_v15 = vrot.slane %v5938_v61, 2  ;;  %v6215_v39 = vsel %vm3833_vm12, %v13644_v17, %v6214_v6 }
 0x670   :  { %v5920_v62 = vrot.slane %v5919_v23, 1  ;;  %v6216_v33 = vsel %vm3835_vm13, %v13628_v2, %v6215_v39  ;;  %v6690_v34 = vsel %vm3827_vm9, %v13644_v17, %v6689_v41  ;;  %v5578_v42 = vmax.f32 %v5426_v3, %v5546_v54  ;;  %v5513_v54 = vpop.permute.xlu0 %5512 }
 0x671   :  { %v5926_v9 = vmax.f32 %v5924_v29, %v5925_v21  ;;  %v5933_v55 = vmax.f32 %v5931_v53, %v5932_v7  ;;  %v5940_v24 = vmax.f32 %v5938_v61, %v5939_v15  ;;  %7604 = vmatmul.msk.f32.gmra.mxu2 %vm6245_vm1, %v6216_v33  ;;  %v6691_v11 = vsel %vm3829_vm10, %v13628_v2, %v6690_v34  ;;  %v5515_v21 = vpop.permute.xlu1 %5514 }
 0x672   :  { %v13708_v36 = vmax.f32 %v13632_v47, %v5885_v35  ;;  %v6692_v37 = vsel %vm3831_vm11, %v13630_v0, %v6691_v11  ;;  %v5627_v49 = vrot.slane %v5578_v42, 2  ;;  %v5628_v5 = vrot.slane %v5578_v42, 4 }
 0x673   :  { %v13712_v6 = vmax.f32 %v5919_v23, %v5920_v62  ;;  %v5927_v43 = vrot.slane %v5926_v9, 1  ;;  %v5934_v3 = vrot.slane %v5933_v55, 1  ;;  %v6693_v15 = vsel %vm3833_vm12, %v13636_v28, %v6692_v37 }
 0x674   :  { %15588 = vst [vmem:[#allocation49_spill] sm:$0xff] %v13708_v36  ;;  %v6694_v7 = vsel %vm3835_vm13, %v13708_v36, %v6693_v15  ;;  %v5629_v29 = vrot.slane %v5578_v42, 6  ;;  %v5943_v53 = vsel %vm5690_vm0, %v5578_v42, -inf  ;;  %v5950_v47 = vsel %vm5690_vm0, %v5627_v49, -inf }
 0x675   :  { %15589 = vst [vmem:[#allocation69_spill] sm:$0xff] %v13712_v6  ;;  %v13720_v35 = vmax.f32 %v5926_v9, %v5927_v43  ;;  %v5941_v61 = vrot.slane %v5940_v24, 1  ;;  %7666 = vmatmul.msk.f32.gmra.mxu0 %vm6245_vm1, %v6694_v7  ;;  %v5944_v23 = vrot.slane %v5943_v53, 4  ;;  %v5951_v41 = vrot.slane %v5950_v47, 4 }
 0x676   :  { %v13723_v39 = vmax.f32 %v5933_v55, %v5934_v3  ;;  %v5957_v62 = vsel %vm5690_vm0, %v5628_v5, -inf  ;;  %v5964_v33 = vsel %vm5690_vm0, %v5629_v29, -inf  ;;  %v6325_v34 = vsel %vm3823_vm7, %v13630_v0, %v13628_v2 }
 0x677   :  { %15590 = vst [vmem:[#allocation57_spill] sm:$0xff] %v13720_v35  ;;  %v5945_v42 = vmax.f32 %v5943_v53, %v5944_v23  ;;  %v5952_v9 = vmax.f32 %v5950_v47, %v5951_v41  ;;  %v5958_v11 = vrot.slane %v5957_v62, 4  ;;  %v5965_v37 = vrot.slane %v5964_v33, 4 }
 0x678   :  { %v13731_v49 = vmax.f32 %v13665_v4, %v5913_v44  ;;  %v6326_v43 = vsel %vm3825_vm8, %v13636_v28, %v6325_v34  ;;  %v5547_v55 = vsel %vm5536_vm15, %v5513_v54, %v5515_v21  ;;  %v6217_v5 = vsel %vm3823_vm7, %v13636_v28, %v13630_v0 }
 0x679   :  { %v5946_v3 = vrot.slane %v5945_v42, 2  ;;  %v5953_v15 = vrot.slane %v5952_v9, 2  ;;  %v5959_v7 = vmax.f32 %v5957_v62, %v5958_v11  ;;  %v5966_v29 = vmax.f32 %v5964_v33, %v5965_v37 }
 0x67a   :  { %15591 = vst [vmem:[#allocation80_spill] sm:$0xff] %v13731_v49  ;;  %v6327_v53 = vsel %vm3827_vm9, %v13708_v36, %v6326_v43  ;;  %v5579_v4 = vmax.f32 %v5428_v46, %v5547_v55  ;;  %v6218_v44 = vsel %vm3825_vm8, %v13708_v36, %v6217_v5  ;;  %v13745_v47 = vmax.f32 %v5940_v24, %v5941_v61 }
 0x67b   :  { %v5947_v23 = vmax.f32 %v5945_v42, %v5946_v3  ;;  %v5954_v41 = vmax.f32 %v5952_v9, %v5953_v15  ;;  %v5960_v54 = vrot.slane %v5959_v7, 2  ;;  %v5967_v21 = vrot.slane %v5966_v29, 2 }
 0x67c   :  { %v6328_v34 = vsel %vm3829_vm10, %v13675_v60, %v6327_v53  ;;  %v5630_v62 = vrot.slane %v5579_v4, 2  ;;  %v5631_v33 = vrot.slane %v5579_v4, 4  ;;  %v5632_v11 = vrot.slane %v5579_v4, 6 }
 0x67d   :  { %v5948_v37 = vrot.slane %v5947_v23, 1  ;;  %v5955_v43 = vrot.slane %v5954_v41, 1  ;;  %v5961_v0 = vmax.f32 %v5959_v7, %v5960_v54  ;;  %v5968_v14 = vmax.f32 %v5966_v29, %v5967_v21 }
 0x67e   :  { %v6329_v46 = vsel %vm3831_vm11, %v13677_v26, %v6328_v34  ;;  %v5971_v24 = vsel %vm5690_vm0, %v5579_v4, -inf  ;;  %v5978_v61 = vsel %vm5690_vm0, %v5630_v62, -inf  ;;  %v5985_v42 = vsel %vm5690_vm0, %v5631_v33, -inf  ;;  %v5519_v4 = vpop.permute.xlu0 %5518  ;;  %v5517_v34 = vpop.permute.xlu2 %5516 }
 0x67f   :  { %v13754_v9 = vmax.f32 %v5947_v23, %v5948_v37  ;;  %v13756_v55 = vmax.f32 %v5954_v41, %v5955_v43  ;;  %v5962_v5 = vrot.slane %v5961_v0, 1  ;;  %v6695_v3 = vsel %vm3823_vm7, %v13677_v26, %v13675_v60 }
 0x680   :  { %v6330_v15 = vsel %vm3833_vm12, %v13682_v1, %v6329_v46  ;;  %v5972_v7 = vrot.slane %v5971_v24, 4  ;;  %v5979_v29 = vrot.slane %v5978_v61, 4  ;;  %v5986_v53 = vrot.slane %v5985_v42, 4 }
 0x681   :  { %v5969_v54 = vrot.slane %v5968_v14, 1  ;;  %v6331_v21 = vsel %vm3835_vm13, %v13731_v49, %v6330_v15  ;;  %v5992_v23 = vsel %vm5690_vm0, %v5632_v11, -inf  ;;  %v6219_v41 = vsel %vm3827_vm9, %v13675_v60, %v6218_v44 }
 0x682   :  { %7613 = vmatmul.msk.f32.gmra.mxu3 %vm6245_vm1, %v6331_v21  ;;  %v5973_v62 = vmax.f32 %v5971_v24, %v5972_v7  ;;  %v5980_v33 = vmax.f32 %v5978_v61, %v5979_v29  ;;  %v5987_v37 = vmax.f32 %v5985_v42, %v5986_v53  ;;  %v5993_v43 = vrot.slane %v5992_v23, 4 }
 0x683   :  { %v13769_v46 = vmax.f32 %v5961_v0, %v5962_v5  ;;  %v6220_v28 = vsel %vm3829_vm10, %v13677_v26, %v6219_v41  ;;  %v6696_v15 = vsel %vm3825_vm8, %v13682_v1, %v6695_v3  ;;  %v5548_v11 = vsel %vm5536_vm15, %v5517_v34, %v5519_v4 }
 0x684   :  { %v5974_v2 = vrot.slane %v5973_v62, 2  ;;  %v5981_v17 = vrot.slane %v5980_v33, 2  ;;  %v5988_v44 = vrot.slane %v5987_v37, 2  ;;  %v5994_v60 = vmax.f32 %v5992_v23, %v5993_v43 }
 0x685   :  { %v6221_v24 = vsel %vm3831_vm11, %v13682_v1, %v6220_v28  ;;  %v6697_v61 = vsel %vm3827_vm9, %v13731_v49, %v6696_v15  ;;  %v15592_v0 = vmax.f32 %v13279_v30, 0.0  ;;  %v13782_v5 = vmax.f32 %v5968_v14, %v5969_v54 }
 0x686   :  { %v5975_v7 = vmax.f32 %v5973_v62, %v5974_v2  ;;  %v5982_v29 = vmax.f32 %v5980_v33, %v5981_v17  ;;  %v5989_v3 = vmax.f32 %v5987_v37, %v5988_v44  ;;  %v5995_v53 = vrot.slane %v5994_v60, 2 }
 0x687   :  { %v5580_v42 = vmax.f32 %v15592_v0, %v5548_v11  ;;  %v6698_v4 = vsel %vm3829_vm10, %v13712_v6, %v6697_v61  ;;  %v6332_v28 = vsel %vm3823_vm7, %v13720_v35, %v13712_v6  ;;  %v6222_v30 = vsel %vm3833_vm12, %v13731_v49, %v6221_v24  ;;  %v5521_v11 = vpop.permute.xlu1 %5520 }
 0x688   :  { %v5976_v41 = vrot.slane %v5975_v7, 1  ;;  %v5983_v34 = vrot.slane %v5982_v29, 1  ;;  %v5990_v43 = vrot.slane %v5989_v3, 1  ;;  %v6223_v2 = vsel %vm3835_vm13, %v13712_v6, %v6222_v30 }
 0x689   :  { %v5633_v21 = vrot.slane %v5580_v42, 2  ;;  %v5634_v23 = vrot.slane %v5580_v42, 4  ;;  %v6699_v17 = vsel %vm3831_vm11, %v13720_v35, %v6698_v4  ;;  %v5635_v14 = vrot.slane %v5580_v42, 6  ;;  %7605 = vmatmul.msk.f32.gmra.mxu2 %vm6245_vm1, %v6223_v2  ;;  %v5523_v4 = vpop.permute.xlu2 %5522 }
 0x68a   :  { %v5999_v54 = vsel %vm5690_vm0, %v5580_v42, -inf  ;;  %v13796_v62 = vmax.f32 %v5975_v7, %v5976_v41  ;;  %v13798_v33 = vmax.f32 %v5982_v29, %v5983_v34  ;;  %v13800_v37 = vmax.f32 %v5989_v3, %v5990_v43 }
 0x68b   :  { %v5996_v15 = vmax.f32 %v5994_v60, %v5995_v53  ;;  %v6700_v44 = vsel %vm3833_vm12, %v13723_v39, %v6699_v17  ;;  %v6000_v24 = vrot.slane %v5999_v54, 4  ;;  %v6006_v61 = vsel %vm5690_vm0, %v5633_v21, -inf }
 0x68c   :  { %15593 = vst [vmem:[#allocation61_spill] sm:$0xff] %v13796_v62  ;;  %v6013_v0 = vsel %vm5690_vm0, %v5634_v23, -inf  ;;  %v6701_v42 = vsel %vm3835_vm13, %v13745_v47, %v6700_v44  ;;  %v6007_v7 = vrot.slane %v6006_v61, 4  ;;  %v6020_v3 = vsel %vm5690_vm0, %v5635_v14, -inf }
 0x68d   :  { %15594 = vst [vmem:[#allocation52_spill] sm:$0xff] %v13798_v33  ;;  %v6014_v29 = vrot.slane %v6013_v0, 4  ;;  %7667 = vmatmul.msk.f32.gmra.mxu0 %vm6245_vm1, %v6701_v42  ;;  %v6001_v60 = vmax.f32 %v5999_v54, %v6000_v24  ;;  %v6021_v53 = vrot.slane %v6020_v3, 4  ;;  %v6333_v41 = vsel %vm3825_vm8, %v13723_v39, %v6332_v28 }
 0x68e   :  { %15595 = vst [vmem:[#allocation81_spill] sm:$0xff] %v13800_v37  ;;  %v5549_v34 = vsel %vm5536_vm15, %v5521_v11, %v5523_v4  ;;  %v6008_v21 = vmax.f32 %v6006_v61, %v6007_v7  ;;  %v6334_v23 = vsel %vm3827_vm9, %v13745_v47, %v6333_v41  ;;  %v15596_v30 = vmax.f32 %v13295_v52, 0.0 }
 0x68f   :  { %v6015_v43 = vmax.f32 %v6013_v0, %v6014_v29  ;;  %v5997_v17 = vrot.slane %v5996_v15, 1  ;;  %v6002_v44 = vrot.slane %v6001_v60, 2  ;;  %v6022_v14 = vmax.f32 %v6020_v3, %v6021_v53 }
 0x690   :  { %v5581_v2 = vmax.f32 %v15596_v30, %v5549_v34  ;;  %v6335_v54 = vsel %vm3829_vm10, %v13754_v9, %v6334_v23  ;;  %v6009_v24 = vrot.slane %v6008_v21, 2 }
 0x691   :  { %v6016_v42 = vrot.slane %v6015_v43, 2  ;;  %v6336_v28 = vsel %vm3831_vm11, %v13756_v55, %v6335_v54  ;;  %v6003_v61 = vmax.f32 %v6001_v60, %v6002_v44  ;;  %v6023_v0 = vrot.slane %v6022_v14, 2 }
 0x692   :  { %v5636_v11 = vrot.slane %v5581_v2, 2  ;;  %v6337_v4 = vsel %vm3833_vm12, %v13769_v46, %v6336_v28  ;;  %v5637_v7 = vrot.slane %v5581_v2, 4  ;;  %v6010_v52 = vmax.f32 %v6008_v21, %v6009_v24 }
 0x693   :  { %v6017_v29 = vmax.f32 %v6015_v43, %v6016_v42  ;;  %v6338_v3 = vsel %vm3835_vm13, %v13782_v5, %v6337_v4  ;;  %v5638_v53 = vrot.slane %v5581_v2, 6  ;;  %v6004_v41 = vrot.slane %v6003_v61, 1  ;;  %v5525_v43 = vpop.permute.xlu0 %5524 }
 0x694   :  { %v13826_v34 = vmax.f32 %v6022_v14, %v6023_v0  ;;  %7614 = vmatmul.msk.f32.gmra.mxu3 %vm6245_vm1, %v6338_v3  ;;  %v6027_v23 = vsel %vm5690_vm0, %v5581_v2, -inf  ;;  %v6034_v60 = vsel %vm5690_vm0, %v5636_v11, -inf  ;;  %v6011_v30 = vrot.slane %v6010_v52, 1 }
 0x695   :  { %v6028_v44 = vrot.slane %v6027_v23, 4  ;;  %v6035_v54 = vrot.slane %v6034_v60, 4  ;;  %v6224_v21 = vsel %vm3823_vm7, %v13723_v39, %v13720_v35  ;;  %v13834_v24 = vmax.f32 %v6003_v61, %v6004_v41 }
 0x696   :  { %v6018_v42 = vrot.slane %v6017_v29, 1  ;;  %v6041_v14 = vsel %vm5690_vm0, %v5637_v7, -inf  ;;  %v6048_v28 = vsel %vm5690_vm0, %v5638_v53, -inf  ;;  %v13838_v0 = vmax.f32 %v6010_v52, %v6011_v30 }
 0x697   :  { %v6025_v2 = vrot.slane %v13826_v34, 1  ;;  %v6029_v11 = vmax.f32 %v6027_v23, %v6028_v44  ;;  %v6036_v4 = vmax.f32 %v6034_v60, %v6035_v54  ;;  %v6042_v3 = vrot.slane %v6041_v14, 4  ;;  %v5527_v54 = vpop.permute.xlu1 %5526 }
 0x698   :  { %v6049_v6 = vrot.slane %v6048_v28, 4  ;;  %v6225_v49 = vsel %vm3825_vm8, %v13745_v47, %v6224_v21  ;;  %v13843_v35 = vmax.f32 %v5996_v15, %v5997_v17  ;;  %v6702_v52 = vsel %vm3823_vm7, %v13756_v55, %v13754_v9  ;;  %v7645_v21 = vld [vmem:[%s14445_s5 + $0x138] sm:$0xff] }
 0x699   :  { %v6030_v61 = vrot.slane %v6029_v11, 2  ;;  %v6037_v41 = vrot.slane %v6036_v4, 2  ;;  %v6226_v7 = vsel %vm3827_vm9, %v13754_v9, %v6225_v49  ;;  %v6043_v53 = vmax.f32 %v6041_v14, %v6042_v3  ;;  %6619 = vmatpush.msra.mxu3 %v7645_v21  ;;  %v7644_v3 = vld [vmem:[%s14445_s5 + $0x130] sm:$0xff] }
 0x69a   :  { %v6050_v30 = vmax.f32 %v6048_v28, %v6049_v6  ;;  %v6227_v23 = vsel %vm3829_vm10, %v13756_v55, %v6226_v7  ;;  %v6703_v60 = vsel %vm3825_vm8, %v13769_v46, %v6702_v52  ;;  %v7627_v6 = vld [vmem:[%s14445_s5 + $0xe8] sm:$0xff]  ;;  %v5550_v21 = vsel %vm5536_vm15, %v5525_v43, %v5527_v54  ;;  %v7625_v43 = vld [vmem:[%s14445_s5 + $0xd8] sm:$0xff] }
 0x69b   :  { %v6031_v44 = vmax.f32 %v6029_v11, %v6030_v61  ;;  %v6038_v15 = vmax.f32 %v6036_v4, %v6037_v41  ;;  %v6228_v17 = vsel %vm3831_vm11, %v13769_v46, %v6227_v23  ;;  %v6704_v49 = vsel %vm3827_vm9, %v13782_v5, %v6703_v60  ;;  %6493 = vmatpush.msrb.mxu2 %v7627_v6  ;;  %v7626_v23 = vld [vmem:[%s14445_s5 + $0xe0] sm:$0xff]  ;;  %v7643_v6 = vld [vmem:[%s14445_s5 + $0x128] sm:$0xff] }
 0x69c   :  { %v6044_v14 = vrot.slane %v6043_v53, 2  ;;  %v6051_v28 = vrot.slane %v6050_v30, 2  ;;  %v6229_v11 = vsel %vm3833_vm12, %v13782_v5, %v6228_v17  ;;  %v6705_v4 = vsel %vm3829_vm10, %v13796_v62, %v6704_v49  ;;  %6620 = vmatpush.msra.mxu3 %v7644_v3 }
 0x69d   :  { %v6032_v61 = vrot.slane %v6031_v44, 1  ;;  %v6039_v41 = vrot.slane %v6038_v15, 1  ;;  %v6230_v7 = vsel %vm3835_vm13, %v13796_v62, %v6229_v11  ;;  %v6706_v52 = vsel %vm3831_vm11, %v13798_v33, %v6705_v4  ;;  %6494 = vmatpush.msrb.mxu2 %v7626_v23 }
 0x69e   :  { %v6045_v60 = vmax.f32 %v6043_v53, %v6044_v14  ;;  %v13878_v17 = vmax.f32 %v6050_v30, %v6051_v28  ;;  %7606 = vmatmul.msk.f32.gmra.mxu2 %vm6245_vm1, %v6230_v7  ;;  %v6707_v49 = vsel %vm3833_vm12, %v13800_v37, %v6706_v52  ;;  %v13887_v11 = vmax.f32 %v6017_v29, %v6018_v42  ;;  %v5531_v28 = vpop.permute.xlu0 %5530 }
 0x69f   :  { %v13889_v4 = vmax.f32 %v6031_v44, %v6032_v61  ;;  %v6708_v53 = vsel %vm3835_vm13, %v13843_v35, %v6707_v49  ;;  %v15597_v30 = vmax.f32 %v13309_v45, 0.0  ;;  %v13898_v54 = vmax.f32 %v6038_v15, %v6039_v41  ;;  %v7642_v45 = vld [vmem:[%s14445_s5 + $0x120] sm:$0xff]  ;;  %v5529_v44 = vpop.permute.xlu2 %5528  ;;  %6621 = vmatpush.msra.mxu3 %v7643_v6  ;;  %v7624_v41 = vld [vmem:[%s14445_s5 + $0xd0] sm:$0xff]  ;;  %6495 = vmatpush.msrb.mxu2 %v7625_v43 }
 0x6a0   :  { %v6046_v7 = vrot.slane %v6045_v60, 1  ;;  %7668 = vmatmul.msk.f32.gmra.mxu0 %vm6245_vm1, %v6708_v53  ;;  %v6339_v42 = vsel %vm3823_vm7, %v13798_v33, %v13796_v62  ;;  %v5551_v53 = vsel %vm5536_vm15, %v5529_v44, %v5531_v28 }
 0x6a1   :  { %v5582_v14 = vmax.f32 %v15597_v30, %v5550_v21  ;;  %v13913_v21 = vmax.f32 %v13826_v34, %v6025_v2  ;;  %v6340_v23 = vsel %vm3825_vm8, %v13800_v37, %v6339_v42  ;;  %v7641_v30 = vld [vmem:[%s14445_s5 + $0x118] sm:$0xff]  ;;  %6622 = vmatpush.msra.mxu3 %v7642_v45  ;;  %v7623_v2 = vld [vmem:[%s14445_s5 + $0xc8] sm:$0xff]  ;;  %6496 = vmatpush.msrb.mxu2 %v7624_v41  ;;  %v15598_v45 = vmax.f32 %v13330_v10, 0.0  ;;  %v7622_v41 = vld [vmem:[%s14445_s5 + $0xc0] sm:$0xff] }
 0x6a2   :  { %v6341_v34 = vsel %vm3827_vm9, %v13843_v35, %v6340_v23 }
 0x6a3   :  { %v5639_v3 = vrot.slane %v5582_v14, 2  ;;  %v5640_v61 = vrot.slane %v5582_v14, 4  ;;  %v5641_v52 = vrot.slane %v5582_v14, 6  ;;  %v6055_v15 = vsel %vm5690_vm0, %v5582_v14, -inf  ;;  %6623 = vmatpush.msra.mxu3 %v7641_v30  ;;  %6497 = vmatpush.msrb.mxu2 %v7623_v2  ;;  %v7621_v30 = vld [vmem:[%s14445_s5 + $0xb8] sm:$0xff]  ;;  %v7638_v2 = vld [vmem:[%s14445_s5 + $0x100] sm:$0xff] }
 0x6a4   :  { %v6056_v49 = vrot.slane %v6055_v15, 4  ;;  %v5583_v23 = vmax.f32 %v15598_v45, %v5551_v53 }
 0x6a5   :  { %v6062_v6 = vsel %vm5690_vm0, %v5639_v3, -inf  ;;  %v6069_v14 = vsel %vm5690_vm0, %v5640_v61, -inf  ;;  %v6076_v29 = vsel %vm5690_vm0, %v5641_v52, -inf  ;;  %v7640_v3 = vld [vmem:[%s14445_s5 + $0x110] sm:$0xff]  ;;  %v13932_v61 = vmax.f32 %v6045_v60, %v6046_v7  ;;  %v7639_v7 = vld [vmem:[%s14445_s5 + $0x108] sm:$0xff]  ;;  %6498 = vmatpush.msrb.mxu2 %v7622_v41 }
 0x6a6   :  { %v6057_v28 = vmax.f32 %v6055_v15, %v6056_v49  ;;  %v6063_v43 = vrot.slane %v6062_v6, 4  ;;  %v6070_v42 = vrot.slane %v6069_v14, 4  ;;  %v6077_v44 = vrot.slane %v6076_v29, 4  ;;  %6624 = vmatpush.msra.mxu3 %v7640_v3 }
 0x6a7   :  { %v6342_v52 = vsel %vm3829_vm10, %v13834_v24, %v6341_v34  ;;  %v6231_v15 = vsel %vm3823_vm7, %v13800_v37, %v13798_v33  ;;  %v5642_v53 = vrot.slane %v5583_v23, 2  ;;  %v5643_v34 = vrot.slane %v5583_v23, 4  ;;  %6499 = vmatpush.msrb.mxu2 %v7621_v30  ;;  %v5535_v13 = vpop.permute.xlu2 %5534 }
 0x6a8   :  { %v6058_v49 = vrot.slane %v6057_v28, 2  ;;  %v6064_v1 = vmax.f32 %v6062_v6, %v6063_v43  ;;  %v6071_v26 = vmax.f32 %v6069_v14, %v6070_v42  ;;  %v6078_v60 = vmax.f32 %v6076_v29, %v6077_v44  ;;  %6625 = vmatpush.msra.mxu3 %v7639_v7  ;;  %v7619_v7 = vld [vmem:[%s14445_s5 + $0xa8] sm:$0xff] }
 0x6a9   :  { %v6343_v10 = vsel %vm3831_vm11, %v13838_v0, %v6342_v52  ;;  %v5644_v45 = vrot.slane %v5583_v23, 6  ;;  %v6083_v42 = vsel %vm5690_vm0, %v5583_v23, -inf  ;;  %v6090_v44 = vsel %vm5690_vm0, %v5642_v53, -inf }
 0x6aa   :  { %v6059_v37 = vmax.f32 %v6057_v28, %v6058_v49  ;;  %v6065_v6 = vrot.slane %v6064_v1, 2  ;;  %v6072_v14 = vrot.slane %v6071_v26, 2  ;;  %v6079_v29 = vrot.slane %v6078_v60, 2  ;;  %v7620_v28 = vld [vmem:[%s14445_s5 + $0xb0] sm:$0xff]  ;;  %6626 = vmatpush.msra.mxu3 %v7638_v2 }
 0x6ab   :  { %v6344_v43 = vsel %vm3833_vm12, %v13887_v11, %v6343_v10  ;;  %v6097_v3 = vsel %vm5690_vm0, %v5643_v34, -inf  ;;  %v7637_v10 = vld [vmem:[%s14445_s5 + $0xf8] sm:$0xff]  ;;  %v6084_v53 = vrot.slane %v6083_v42, 4  ;;  %v6091_v33 = vrot.slane %v6090_v44, 4  ;;  %6500 = vmatpush.msrb.mxu2 %v7620_v28 }
 0x6ac   :  { %v6060_v52 = vrot.slane %v6059_v37, 1  ;;  %v6066_v41 = vmax.f32 %v6064_v1, %v6065_v6  ;;  %v6073_v49 = vmax.f32 %v6071_v26, %v6072_v14  ;;  %v6080_v36 = vmax.f32 %v6078_v60, %v6079_v29  ;;  %v7636_v6 = vld [vmem:[%s14445_s5 + $0xf0] sm:$0xff]  ;;  %6627 = vmatpush.msra.mxu3 %v7637_v10 }
 0x6ad   :  { %v6345_v23 = vsel %vm3835_vm13, %v13913_v21, %v6344_v43  ;;  %v6098_v34 = vrot.slane %v6097_v3, 4  ;;  %v15599_v60 = vrot.slane %v13878_v17, 1  ;;  %v6085_v29 = vmax.f32 %v6083_v42, %v6084_v53  ;;  %v5533_v43 = vpop.permute.xlu1 %5532  ;;  %6501 = vmatpush.msrb.mxu2 %v7619_v7 }
 0x6ae   :  { %v13971_v62 = vmax.f32 %v6059_v37, %v6060_v52  ;;  %v6067_v1 = vrot.slane %v6066_v41, 1  ;;  %v6074_v26 = vrot.slane %v6073_v49, 1  ;;  %7615 = vmatmul.msk.f32.gmra.mxu3 %vm6245_vm1, %v6345_v23  ;;  %v6081_v14 = vrot.slane %v6080_v36, 1  ;;  %v7618_v52 = vld [vmem:[%s14445_s5 + $0xa0] sm:$0xff] }
 0x6af   :  { %v13977_v30 = vmax.f32 %v13878_v17, %v15599_v60  ;;  %v6092_v2 = vmax.f32 %v6090_v44, %v6091_v33  ;;  %v6104_v37 = vsel %vm5690_vm0, %v5644_v45, -inf  ;;  %v6099_v28 = vmax.f32 %v6097_v3, %v6098_v34  ;;  %6628 = vmatpush.msra.mxu3 %v7636_v6  ;;  %6502 = vmatpush.msrb.mxu2 %v7618_v52 }
 0x6b0   :  { %v13986_v23 = vmax.f32 %v6066_v41, %v6067_v1  ;;  %v13988_v17 = vmax.f32 %v6073_v49, %v6074_v26  ;;  %v6232_v60 = vsel %vm3825_vm8, %v13843_v35, %v6231_v15  ;;  %v6086_v42 = vrot.slane %v6085_v29, 2 }
 0x6b1   :  { %v6093_v33 = vrot.slane %v6092_v2, 2  ;;  %v6233_v45 = vsel %vm3827_vm9, %v13834_v24, %v6232_v60  ;;  %v6709_v44 = vsel %vm3823_vm7, %v13838_v0, %v13834_v24  ;;  %v6105_v41 = vrot.slane %v6104_v37, 4 }
 0x6b2   :  { %v6234_v49 = vsel %vm3829_vm10, %v13838_v0, %v6233_v45  ;;  %v6710_v3 = vsel %vm3825_vm8, %v13887_v11, %v6709_v44  ;;  %v5552_v15 = vsel %vm5536_vm15, %v5533_v43, %v5535_v13  ;;  %v6087_v10 = vmax.f32 %v6085_v29, %v6086_v42 }
 0x6b3   :  { %v6094_v53 = vmax.f32 %v6092_v2, %v6093_v33  ;;  %v6235_v34 = vsel %vm3831_vm11, %v13887_v11, %v6234_v49  ;;  %v6711_v7 = vsel %vm3827_vm9, %v13913_v21, %v6710_v3  ;;  %v15600_v6 = vmax.f32 %v13354_v38, 0.0 }
 0x6b4   :  { %v6236_v1 = vsel %vm3833_vm12, %v13913_v21, %v6235_v34  ;;  %v6712_v26 = vsel %vm3829_vm10, %v13889_v4, %v6711_v7  ;;  %v6346_v13 = vsel %vm3823_vm7, %v13898_v54, %v13889_v4  ;;  %v6088_v29 = vrot.slane %v6087_v10, 1 }
 0x6b5   :  { %v5584_v60 = vmax.f32 %v15600_v6, %v5552_v15  ;;  %v6237_v2 = vsel %vm3835_vm13, %v13889_v4, %v6236_v1  ;;  %v6713_v43 = vsel %vm3831_vm11, %v13898_v54, %v6712_v26  ;;  %v14019_v52 = vmax.f32 %v6080_v36, %v6081_v14 }
 0x6b6   :  { %7607 = vmatmul.msk.f32.gmra.mxu2 %vm6245_vm1, %v6237_v2  ;;  %v6714_v42 = vsel %vm3833_vm12, %v13932_v61, %v6713_v43  ;;  %v6347_v33 = vsel %vm3825_vm8, %v13932_v61, %v6346_v13  ;;  %v6238_v45 = vsel %vm3823_vm7, %v13932_v61, %v13898_v54  ;;  %v6095_v44 = vrot.slane %v6094_v53, 1 }
 0x6b7   :  { %v6111_v38 = vsel %vm5690_vm0, %v5584_v60, -inf  ;;  %v6715_v49 = vsel %vm3835_vm13, %v13977_v30, %v6714_v42  ;;  %v6348_v14 = vsel %vm3827_vm9, %v13977_v30, %v6347_v33  ;;  %v14034_v3 = vmax.f32 %v6087_v10, %v6088_v29 }
 0x6b8   :  { %v6112_v36 = vrot.slane %v6111_v38, 4  ;;  %7669 = vmatmul.msk.f32.gmra.mxu0 %vm6245_vm1, %v6715_v49  ;;  %v6349_v15 = vsel %vm3829_vm10, %v13971_v62, %v6348_v14  ;;  %v6239_v34 = vsel %vm3825_vm8, %v13977_v30, %v6238_v45  ;;  %v6100_v7 = vrot.slane %v6099_v28, 2 }
 0x6b9   :  { %v6350_v26 = vsel %vm3831_vm11, %v13986_v23, %v6349_v15  ;;  %v6240_v6 = vsel %vm3827_vm9, %v13971_v62, %v6239_v34  ;;  %v6106_v60 = vmax.f32 %v6104_v37, %v6105_v41  ;;  %v6716_v2 = vsel %vm3823_vm7, %v13986_v23, %v13971_v62 }
 0x6ba   :  { %v6113_v1 = vmax.f32 %v6111_v38, %v6112_v36  ;;  %v6351_v10 = vsel %vm3833_vm12, %v13988_v17, %v6350_v26  ;;  %v6241_v13 = vsel %vm3829_vm10, %v13986_v23, %v6240_v6  ;;  %v6101_v29 = vmax.f32 %v6099_v28, %v6100_v7 }
 0x6bb   :  { %v6352_v43 = vsel %vm3835_vm13, %v14019_v52, %v6351_v10  ;;  %v6242_v42 = vsel %vm3831_vm11, %v13988_v17, %v6241_v13  ;;  %v14056_v38 = vmax.f32 %v6094_v53, %v6095_v44  ;;  %v6107_v37 = vrot.slane %v6106_v60, 2 }
 0x6bc   :  { %7616 = vmatmul.msk.f32.gmra.mxu3 %vm6245_vm1, %v6352_v43  ;;  %v6243_v41 = vsel %vm3833_vm12, %v14019_v52, %v6242_v42  ;;  %v6102_v33 = vrot.slane %v6101_v29, 1  ;;  %v6717_v28 = vsel %vm3825_vm8, %v13988_v17, %v6716_v2  ;;  %v6548_v45 = vsel %vm3823_vm7, %v13464_v32, %v13437_v22 }
 0x6bd   :  { %v6244_v49 = vsel %vm3835_vm13, %v14034_v3, %v6243_v41  ;;  %v6108_v36 = vmax.f32 %v6106_v60, %v6107_v37  ;;  %v6718_v53 = vsel %vm3827_vm9, %v14019_v52, %v6717_v28  ;;  %v6114_v44 = vrot.slane %v6113_v1, 2 }
 0x6be   :  { %7608 = vmatmul.msk.f32.gmra.mxu2 %vm6245_vm1, %v6244_v49  ;;  %v14071_v14 = vmax.f32 %v6101_v29, %v6102_v33  ;;  %v6719_v15 = vsel %vm3829_vm10, %v14034_v3, %v6718_v53  ;;  %v6549_v34 = vsel %vm3825_vm8, %v13466_v20, %v6548_v45  ;;  %v6422_v6 = vsel %vm3823_vm7, %v13437_v22, %v13425_v50 }
 0x6bf   :  { %v6109_v7 = vrot.slane %v6108_v36, 1  ;;  %v6720_v26 = vsel %vm3831_vm11, %v14056_v38, %v6719_v15  ;;  %v6423_v10 = vsel %vm3825_vm8, %v13464_v32, %v6422_v6  ;;  %v6555_v13 = vsel %vm3823_vm7, %v13514_v12, %v13502_v56 }
 0x6c0   :  { %v6721_v60 = vsel %vm3833_vm12, %v14071_v14, %v6720_v26  ;;  %v6550_v2 = vsel %vm3827_vm9, %v13468_v48, %v6549_v34  ;;  %v6115_v43 = vmax.f32 %v6113_v1, %v6114_v44  ;;  %v6556_v42 = vsel %vm3825_vm8, %v13520_v19, %v6555_v13 }
 0x6c1   :  { %v14089_v29 = vmax.f32 %v6108_v36, %v6109_v7  ;;  %v6424_v22 = vsel %vm3827_vm9, %v13466_v20, %v6423_v10  ;;  %v6551_v32 = vsel %vm3829_vm10, %v13473_v8, %v6550_v2  ;;  %v6557_v1 = vsel %vm3827_vm9, %v13540_v40, %v6556_v42 }
 0x6c2   :  { %v6552_v37 = vsel %vm3831_vm11, %v13484_v27, %v6551_v32  ;;  %v6429_v41 = vsel %vm3823_vm7, %v13502_v56, %v13494_v31  ;;  %v6116_v20 = vrot.slane %v6115_v43, 1  ;;  %v6425_v33 = vsel %vm3829_vm10, %v13468_v48, %v6424_v22 }
 0x6c3   :  { %v6722_v50 = vsel %vm3835_vm13, %v14089_v29, %v6721_v60  ;;  %v6430_v28 = vsel %vm3825_vm8, %v13514_v12, %v6429_v41  ;;  %v6558_v45 = vsel %vm3829_vm10, %v13560_v25, %v6557_v1  ;;  %v6553_v49 = vsel %vm3833_vm12, %v13489_v58, %v6552_v37  ;;  %v15603_v41 = vld [vmem:[#allocation52_spill] sm:$0xff] }
 0x6c4   :  { %7617 = vmatmul.msk.f32.gmra.mxu3 %vm6245_vm1, %v14034_v3  ;;  %7670 = vmatmul.msk.f32.gmra.mxu0 %vm6245_vm1, %v6722_v50  ;;  %v6559_v36 = vsel %vm3831_vm11, %v13544_v18, %v6558_v45  ;;  %v6426_v56 = vsel %vm3831_vm11, %v13473_v8, %v6425_v33  ;;  %v6431_v53 = vsel %vm3827_vm9, %v13520_v19, %v6430_v28  ;;  %v6386_v19 = vpop.f32.mrf.mxu3  ;;  %v15601_v50 = vld [vmem:[#allocation8_spill] sm:$0xff]  ;;  %v15604_v45 = vld [vmem:[#allocation49_spill] sm:$0xff] }
 0x6c5   :  { %v6117_v44 = vmax.f32 %v6115_v43, %v6116_v20  ;;  %v6427_v48 = vsel %vm3833_vm12, %v13484_v27, %v6426_v56  ;;  %v6562_v12 = vsel %vm3823_vm7, %v13586_v59, %v13575_v51  ;;  %v6554_v15 = vsel %vm3835_vm13, %v13494_v31, %v6553_v49 }
 0x6c6   :  { %7609 = vmatmul.msk.f32.gmra.mxu2 %vm6245_vm1, %v14056_v38  ;;  %v6560_v34 = vsel %vm3833_vm12, %v13549_v16, %v6559_v36  ;;  %v6432_v8 = vsel %vm3829_vm10, %v13540_v40, %v6431_v53  ;;  %v6428_v27 = vsel %vm3835_vm13, %v13489_v58, %v6427_v48  ;;  %v6563_v26 = vsel %vm3825_vm8, %v13593_v57, %v6562_v12  ;;  %v15606_v36 = vld [vmem:[#allocation81_spill] sm:$0xff]  ;;  %v15607_v53 = vld [vmem:[#allocation64_spill] sm:$0xff] }
 0x6c7   :  { %v6576_v31 = vsel %vm3823_vm7, %v13754_v9, %v13745_v47  ;;  %v6561_v60 = vsel %vm3835_vm13, %v13551_v63, %v6560_v34  ;;  %v6436_v40 = vsel %vm3823_vm7, %v13575_v51, %v13551_v63  ;;  %v6450_v10 = vsel %vm3823_vm7, %v13745_v47, %v13723_v39  ;;  %v15608_v12 = vld [vmem:[#allocation37_spill] sm:$0xff] }
 0x6c8   :  { %v6577_v58 = vsel %vm3825_vm8, %v13756_v55, %v6576_v31  ;;  %v6433_v13 = vsel %vm3831_vm11, %v13560_v25, %v6432_v8  ;;  %v6451_v43 = vsel %vm3825_vm8, %v13754_v9, %v6450_v10  ;;  %v6583_v63 = vsel %vm3823_vm7, %v13834_v24, %v13843_v35  ;;  %v15602_v9 = vld [vmem:[#allocation61_spill] sm:$0xff]  ;;  %v15611_v31 = vld [vmem:[#allocation63_spill] sm:$0xff] }
 0x6c9   :  { %v6279_v7 = vpop.f32.mrf.mxu2  ;;  %v6578_v2 = vsel %vm3827_vm9, %v13769_v46, %v6577_v58  ;;  %v6437_v51 = vsel %vm3825_vm8, %v13586_v59, %v6436_v40  ;;  %v6452_v47 = vsel %vm3827_vm9, %v13756_v55, %v6451_v43  ;;  %v6584_v25 = vsel %vm3825_vm8, %v13838_v0, %v6583_v63  ;;  %v15613_v63 = vld [vmem:[#allocation80_spill] sm:$0xff] }
 0x6ca   :  { %v14144_v6 = vadd.f32 %v6386_v19, %v6279_v7  ;;  %v6579_v42 = vsel %vm3829_vm10, %v13782_v5, %v6578_v2  ;;  %v6564_v22 = vsel %vm3827_vm9, %v15601_v50, %v6563_v26  ;;  %v6453_v1 = vsel %vm3829_vm10, %v13769_v46, %v6452_v47  ;;  %v15605_v46 = vld [vmem:[#allocation54_spill] sm:$0xff] }
 0x6cb   :  { %v6580_v32 = vsel %vm3831_vm11, %v15602_v9, %v6579_v42  ;;  %v6585_v59 = vsel %vm3827_vm9, %v13887_v11, %v6584_v25  ;;  %v6434_v37 = vsel %vm3833_vm12, %v13544_v18, %v6433_v13  ;;  %v6454_v20 = vsel %vm3831_vm11, %v13782_v5, %v6453_v1  ;;  %v15609_v19 = vld [vmem:[#allocation58_spill] sm:$0xff]  ;;  %v15614_v25 = vld [vmem:[#allocation69_spill] sm:$0xff] }
 0x6cc   :  { %7646 = vmatmul.msk.f32.vlgmr.msra.gmra.mxu3 %vm6245_vm1, %v6554_v15  ;;  %7671 = vmatmul.msk.f32.gmra.mxu0 %vm6245_vm1, %v6117_v44  ;;  %v6581_v55 = vsel %vm3833_vm12, %v15603_v41, %v6580_v32  ;;  %v6586_v33 = vsel %vm3829_vm10, %v13913_v21, %v6585_v59  ;;  %v6438_v28 = vsel %vm3827_vm9, %v13593_v57, %v6437_v51  ;;  %v15615_v59 = vld [vmem:[#allocation57_spill] sm:$0xff] }
 0x6cd   :  { %v6569_v49 = vsel %vm3823_vm7, %v15605_v46, %v15604_v45  ;;  %v6582_v56 = vsel %vm3835_vm13, %v15606_v36, %v6581_v55  ;;  %v6455_v18 = vsel %vm3833_vm12, %v15602_v9, %v6454_v20  ;;  %v6565_v5 = vsel %vm3829_vm10, %v15607_v53, %v6564_v22 }
 0x6ce   :  { %7628 = vmatmul.msk.f32.vlgmr.msrb.gmra.mxu2 %vm6245_vm1, %v6428_v27  ;;  %v6456_v44 = vsel %vm3835_vm13, %v15603_v41, %v6455_v18  ;;  %v6457_v57 = vsel %vm3823_vm7, %v13843_v35, %v15606_v36  ;;  %v6435_v48 = vsel %vm3835_vm13, %v13549_v16, %v6434_v37  ;;  %v6566_v15 = vsel %vm3831_vm11, %v15608_v12, %v6565_v5  ;;  %v15610_v27 = vld [vmem:[#allocation42_spill] sm:$0xff] }
 0x6cf   :  { %v6458_v34 = vsel %vm3825_vm8, %v13834_v24, %v6457_v57  ;;  %v6439_v8 = vsel %vm3829_vm10, %v15601_v50, %v6438_v28  ;;  %v6570_v7 = vsel %vm3825_vm8, %v15609_v19, %v6569_v49  ;;  %v6443_v16 = vsel %vm3823_vm7, %v15604_v45, %v15610_v27 }
 0x6d0   :  { %v6459_v35 = vsel %vm3827_vm9, %v13838_v0, %v6458_v34  ;;  %v6567_v24 = vsel %vm3833_vm12, %v15611_v31, %v6566_v15  ;;  %v6440_v58 = vsel %vm3831_vm11, %v15607_v53, %v6439_v8  ;;  %v15612_v0 = vld [vmem:[#allocation66_spill] sm:$0xff]  ;;  %v6464_v42 = vsel %vm3823_vm7, %v13977_v30, %v13932_v61 }
 0x6d1   :  { %v6460_v26 = vsel %vm3829_vm10, %v13887_v11, %v6459_v35  ;;  %v6571_v10 = vsel %vm3827_vm9, %v15612_v0, %v6570_v7  ;;  %v6441_v11 = vsel %vm3833_vm12, %v15608_v12, %v6440_v58  ;;  %v6568_v43 = vsel %vm3835_vm13, %v15610_v27, %v6567_v24 }
 0x6d2   :  { %v6461_v40 = vsel %vm3831_vm11, %v13913_v21, %v6460_v26  ;;  %v6572_v51 = vsel %vm3829_vm10, %v15613_v63, %v6571_v10  ;;  %v6442_v47 = vsel %vm3835_vm13, %v15611_v31, %v6441_v11  ;;  %v6465_v22 = vsel %vm3825_vm8, %v13971_v62, %v6464_v42 }
 0x6d3   :  { %v6462_v13 = vsel %vm3833_vm12, %v13889_v4, %v6461_v40  ;;  %v6573_v50 = vsel %vm3831_vm11, %v15614_v25, %v6572_v51  ;;  %v6466_v32 = vsel %vm3827_vm9, %v13986_v23, %v6465_v22  ;;  %v6590_v53 = vsel %vm3823_vm7, %v13971_v62, %v13977_v30  ;;  %v6836_v22 = vld [vmem:[%s14447_s8 + $0x70] sm:$0xff] }
 0x6d4   :  { %7647 = vmatmul.msk.f32.gmra.mxu3 %vm6245_vm1, %v6561_v60  ;;  %v6444_v60 = vsel %vm3825_vm8, %v15605_v46, %v6443_v16  ;;  %v6463_v2 = vsel %vm3835_vm13, %v13898_v54, %v6462_v13  ;;  %v6467_v1 = vsel %vm3829_vm10, %v13988_v17, %v6466_v32  ;;  %v6574_v37 = vsel %vm3833_vm12, %v15615_v59, %v6573_v50 }
 0x6d5   :  { %v6445_v21 = vsel %vm3827_vm9, %v15609_v19, %v6444_v60  ;;  %v6468_v41 = vsel %vm3831_vm11, %v14019_v52, %v6467_v1  ;;  %v6575_v49 = vsel %vm3835_vm13, %v13723_v39, %v6574_v37  ;;  %v6587_v5 = vsel %vm3831_vm11, %v13889_v4, %v6586_v33  ;;  %6846 = vmatpush.msra.mxu2 %v6836_v22 }
 0x6d6   :  { %7629 = vmatmul.msk.f32.gmra.mxu2 %vm6245_vm1, %v6435_v48  ;;  %v6446_v9 = vsel %vm3829_vm10, %v15612_v0, %v6445_v21  ;;  %v6469_v20 = vsel %vm3833_vm12, %v14034_v3, %v6468_v41  ;;  %v6591_v39 = vsel %vm3825_vm8, %v13986_v23, %v6590_v53  ;;  %v6588_v57 = vsel %vm3833_vm12, %v13898_v54, %v6587_v5  ;;  %v6833_v41 = vld [vmem:[%s14447_s8 + $0x58] sm:$0xff] }
 0x6d7   :  { %v6447_v55 = vsel %vm3831_vm11, %v15613_v63, %v6446_v9  ;;  %v6592_v48 = vsel %vm3827_vm9, %v13988_v17, %v6591_v39  ;;  %v6589_v12 = vsel %vm3835_vm13, %v13932_v61, %v6588_v57  ;;  %v6470_v17 = vsel %vm3835_vm13, %v14056_v38, %v6469_v20  ;;  %v6835_v9 = vld [vmem:[%s14447_s8 + $0x68] sm:$0xff]  ;;  %v6829_v39 = vld [vmem:[%s14447_s8 + $0x38] sm:$0xff] }
 0x6d8   :  { %v6448_v28 = vsel %vm3833_vm12, %v15614_v25, %v6447_v55  ;;  %v6593_v62 = vsel %vm3829_vm10, %v14019_v52, %v6592_v48  ;;  %6847 = vmatpush.msra.mxu2 %v6835_v9  ;;  %v6832_v55 = vld [vmem:[%s14447_s8 + $0x50] sm:$0xff]  ;;  %v6831_v20 = vld [vmem:[%s14447_s8 + $0x48] sm:$0xff] }
 0x6d9   :  { %v6449_v18 = vsel %vm3835_vm13, %v15615_v59, %v6448_v28  ;;  %v6594_v4 = vsel %vm3831_vm11, %v14034_v3, %v6593_v62  ;;  %v6834_v59 = vld [vmem:[%s14447_s8 + $0x60] sm:$0xff] }
 0x6da   :  { %v6389_v45 = vpop.f32.mrf.mxu3  ;;  %v6595_v54 = vsel %vm3833_vm12, %v14056_v38, %v6594_v4  ;;  %6848 = vmatpush.msra.mxu2 %v6834_v59  ;;  %v6828_v4 = vld [vmem:[%s14447_s8 + $0x30] sm:$0xff] }
 0x6db   :  { %v6596_v61 = vsel %vm3835_vm13, %v14071_v14, %v6595_v54 }
 0x6dc   :  { %7648 = vmatmul.msk.f32.gmra.mxu3 %vm6245_vm1, %v6568_v43  ;;  %6849 = vmatpush.msra.mxu2 %v6833_v41 }
 0x6de   :  { %7630 = vmatmul.msk.f32.gmra.mxu2 %vm6245_vm1, %v6442_v47 }
 0x6df   :  { %v6282_v46 = vpop.f32.mrf.mxu2  ;;  %6850 = vmatpush.msra.mxu2 %v6832_v55 }
 0x6e0   :  { %v14279_v36 = vadd.f32 %v6389_v45, %v6282_v46 }
 0x6e1   :  { %6851 = vmatpush.msra.mxu2 %v6831_v20 }
 0x6e4   :  { %7649 = vmatmul.msk.f32.gmra.mxu3 %vm6245_vm1, %v6575_v49  ;;  %v6830_v49 = vld [vmem:[%s14447_s8 + $0x40] sm:$0xff] }
 0x6e5   :  { %6852 = vmatpush.msra.mxu2 %v6830_v49 }
 0x6e6   :  { %7631 = vmatmul.msk.f32.gmra.mxu2 %vm6245_vm1, %v6449_v18 }
 0x6e7   :  { %6853 = vmatpush.msra.mxu2 %v6829_v39 }
 0x6e9   :  { %6854 = vmatpush.msra.mxu2 %v6828_v4 }
 0x6eb   :  { %v6392_v30 = vpop.f32.mrf.mxu3 }
 0x6ec   :  { %7650 = vmatmul.msk.f32.gmra.mxu3 %vm6245_vm1, %v6582_v56 }
 0x6ee   :  { %7632 = vmatmul.msk.f32.gmra.mxu2 %vm6245_vm1, %v6456_v44 }
 0x6f4   :  { %7651 = vmatmul.msk.f32.gmra.mxu3 %vm6245_vm1, %v6589_v12  ;;  %v6285_v23 = vpop.f32.mrf.mxu2 }
 0x6f5   :  { %v14308_v33 = vadd.f32 %v6392_v30, %v6285_v23 }
 0x6f6   :  { %7633 = vmatmul.msk.f32.gmra.mxu2 %vm6245_vm1, %v6463_v2 }
 0x6fc   :  { %7652 = vmatmul.msk.f32.gmra.mxu3 %vm6245_vm1, %v6596_v61  ;;  %v6827_v61 = vld [vmem:[%s14447_s8 + $0x28] sm:$0xff] }
 0x6fd   :  { %6855 = vmatpush.msra.mxu2 %v6827_v61 }
 0x6fe   :  { %7634 = vmatmul.msk.f32.gmra.mxu2 %vm6245_vm1, %v6470_v17 }
 0x704   :  { %7653 = vmatmul.msk.f32.gmra.mxu3 %vm6245_vm1, %v14089_v29 }
 0x705   :  { %v6395_v52 = vpop.f32.mrf.mxu3 }
 0x706   :  { %7635 = vmatmul.msk.f32.gmra.mxu2 %vm6245_vm1, %v14071_v14  ;;  %v6756_v14 = vpop.f32.mrf.mxu0 }
 0x70c   :  { %v6288_v3 = vpop.f32.mrf.mxu2 }
 0x70d   :  { %v14320_v56 = vadd.f32 %v6395_v52, %v6288_v3 }
 0x70e   :  { %v14325_v0 = vpop.f32.mrf.mxu0 }
 0x716   :  { %v14327_v11 = vpop.f32.mrf.mxu0 }
 0x717   :  { %v6398_v44 = vpop.f32.mrf.mxu3 }
 0x71e   :  { %v14329_v21 = vpop.f32.mrf.mxu0 }
 0x721   :  { %v6291_v15 = vpop.f32.mrf.mxu2 }
 0x722   :  { %v6399_v34 = vadd.f32 %v6398_v44, %v6291_v15  ;;  %v6826_v44 = vld [vmem:[%s14447_s8 + $0x20] sm:$0xff] }
 0x723   :  { %6856 = vmatpush.msra.mxu2 %v6826_v44 }
 0x726   :  { %v6768_v42 = vpop.f32.mrf.mxu0 }
 0x731   :  { %v6401_v8 = vpop.f32.mrf.mxu3 }
 0x735   :  { %v6771_v25 = vpop.f32.mrf.mxu0 }
 0x739   :  { %v6294_v19 = vpop.f32.mrf.mxu2 }
 0x73a   :  { %v6402_v7 = vadd.f32 %v6401_v8, %v6294_v19  ;;  %v6825_v8 = vld [vmem:[%s14447_s8 + $0x18] sm:$0xff] }
 0x73b   :  { %6857 = vmatpush.msra.mxu2 %v6825_v8 }
 0x73f   :  { %v6404_v35 = vpop.f32.mrf.mxu3 }
 0x741   :  { %v6297_v38 = vpop.f32.mrf.mxu2  ;;  %v6774_v37 = vpop.f32.mrf.mxu0 }
 0x742   :  { %v6405_v27 = vadd.f32 %v6404_v35, %v6297_v38  ;;  %v6823_v38 = vld [vmem:[%s14447_s8 + $0x8] sm:$0xff] }
 0x747   :  { %v6407_v16 = vpop.f32.mrf.mxu3 }
 0x749   :  { %v6300_v26 = vpop.f32.mrf.mxu2  ;;  %v6777_v62 = vpop.f32.mrf.mxu0 }
 0x74a   :  { %v6408_v28 = vadd.f32 %v6407_v16, %v6300_v26  ;;  %v6788_v26 = vld [vmem:[%s14448_s7] sm:$0xff] }
 0x74f   :  { %v6630_v31 = vpop.f32.mrf.mxu3 }
 0x751   :  { %v6504_v29 = vpop.f32.mrf.mxu2 }
 0x752   :  { %v6528_v24 = vadd.f32 %v6504_v29, %v14144_v6  ;;  %v6876_v29 = vld [vmem:[%s14450_s10 + $0x50] sm:$0xf] }
 0x754   :  { %v6654_v60 = vadd.f32 %v6630_v31, %v6528_v24  ;;  %v6822_v31 = vld [vmem:[%s14447_s8] sm:$0xff]  ;;  %v6875_v24 = vld [vmem:[%s14450_s10 + $0x48] sm:$0xff] }
 0x756   :  { %v14331_v50 = vadd.f32 %v6756_v14, %v6654_v60  ;;  %v6874_v14 = vld [vmem:[%s14450_s10 + $0x40] sm:$0xff]  ;;  %v6873_v60 = vld [vmem:[%s14450_s10 + $0x38] sm:$0xff] }
 0x757   :  { %v14323_v40 = vpop.f32.mrf.mxu3 }
 0x759   :  { %v6507_v58 = vpop.f32.mrf.mxu2 }
 0x75a   :  { %v6529_v15 = vadd.f32 %v6507_v58, %v14279_v36  ;;  %v6871_v58 = vld [vmem:[%s14450_s10 + $0x28] sm:$0xff] }
 0x75c   :  { %v6655_v35 = vadd.f32 %v14323_v40, %v6529_v15  ;;  %v6872_v40 = vld [vmem:[%s14450_s10 + $0x30] sm:$0xff] }
 0x75e   :  { %v6781_v16 = vadd.f32 %v14325_v0, %v6655_v35  ;;  %v6870_v0 = vld [vmem:[%s14450_s10 + $0x20] sm:$0xff] }
 0x75f   :  { %v6636_v10 = vpop.f32.mrf.mxu3 }
 0x761   :  { %v6510_v13 = vpop.f32.mrf.mxu2 }
 0x762   :  { %v6530_v17 = vadd.f32 %v6510_v13, %v14308_v33  ;;  %v7703_v13 = vld [vmem:[%s14446_s6] ss:$0 sm:$0xff] }
 0x764   :  { %v6656_v19 = vadd.f32 %v6636_v10, %v6530_v17  ;;  %v6869_v10 = vld [vmem:[%s14450_s10 + $0x18] sm:$0xff] }
 0x767   :  { %v6639_v2 = vpop.f32.mrf.mxu3 }
 0x769   :  { %v6513_v43 = vpop.f32.mrf.mxu2 }
 0x76a   :  { %v6531_v30 = vadd.f32 %v6513_v43, %v14320_v56 }
 0x76c   :  { %v6657_v56 = vadd.f32 %v6639_v2, %v6531_v30 }
 0x76e   :  { %v6783_v36 = vadd.f32 %v14329_v21, %v6657_v56  ;;  %v6868_v21 = vld [vmem:[%s14450_s10 + $0x10] sm:$0xff] }
 0x76f   :  { %v6642_v63 = vpop.f32.mrf.mxu3 }
 0x771   :  { %v6516_v51 = vpop.f32.mrf.mxu2 }
 0x772   :  { %v6532_v57 = vadd.f32 %v6516_v51, %v6399_v34  ;;  %v6866_v51 = vld [vmem:[%s14450_s10] sm:$0xff] }
 0x774   :  { %v6658_v52 = vadd.f32 %v6642_v63, %v6532_v57  ;;  %v6867_v63 = vld [vmem:[%s14450_s10 + $0x8] sm:$0xff] }
 0x776   :  { %v6784_v33 = vadd.f32 %v6768_v42, %v6658_v52  ;;  %v7704_v42 = vld [vmem:[%s14449_s9] ss:$0 sm:$0xff] }
 0x777   :  { %v6645_v47 = vpop.f32.mrf.mxu3 }
 0x779   :  { %v6519_v6 = vpop.f32.mrf.mxu2 }
 0x77a   :  { %v6533_v18 = vadd.f32 %v6519_v6, %v6402_v7  ;;  %v6824_v7 = vld [vmem:[%s14447_s8 + $0x10] sm:$0xff] }
 0x77b   :  { %6858 = vmatpush.msra.mxu2 %v6824_v7 }
 0x77c   :  { %v6659_v23 = vadd.f32 %v6645_v47, %v6533_v18 }
 0x77d   :  { %6859 = vmatpush.msra.mxu2 %v6823_v38 }
 0x77e   :  { %v6785_v34 = vadd.f32 %v6771_v25, %v6659_v23 }
 0x77f   :  { %v6648_v32 = vpop.f32.mrf.mxu3  ;;  %6860 = vmatpush.msra.mxu2 %v6822_v31 }
 0x781   :  { %v6522_v1 = vpop.f32.mrf.mxu2 }
 0x782   :  { %v6534_v45 = vadd.f32 %v6522_v1, %v6405_v27  ;;  %v6782_v27 = vadd.f32 %v14327_v11, %v6656_v19 }
 0x784   :  { %v6660_v48 = vadd.f32 %v6648_v32, %v6534_v45 }
 0x786   :  { %v6786_v3 = vadd.f32 %v6774_v37, %v6660_v48 }
 0x787   :  { %v6651_v5 = vpop.f32.mrf.mxu3 }
 0x789   :  { %v6525_v46 = vpop.f32.mrf.mxu2 }
 0x78a   :  { %v6535_v53 = vadd.f32 %v6525_v46, %v6408_v28 }
 0x78c   :  { %v6661_v12 = vadd.f32 %v6651_v5, %v6535_v53 }
 0x78e   :  { %v6787_v54 = vadd.f32 %v6777_v62, %v6661_v12 }
 0x790   :  { %7672 = vmatpush.msk.msrb.mxu3 %vm6797_vm2, %v6787_v54 }
 0x792   :  { %6810 = vmatpush.msrb.mxu3 %v6786_v3 }
 0x794   :  { %6811 = vmatpush.msrb.mxu3 %v6785_v34 }
 0x796   :  { %6812 = vmatpush.msrb.mxu3 %v6784_v33 }
 0x798   :  { %6813 = vmatpush.msrb.mxu3 %v6783_v36 }
 0x79a   :  { %6814 = vmatpush.msrb.mxu3 %v6782_v27 }
 0x79c   :  { %6815 = vmatpush.msrb.mxu3 %v6781_v16 }
 0x79e   :  { %6816 = vmatpush.msrb.mxu3 %v14331_v50  ;;  %v7705_v50 = vld [vmem:[%s14451_s11] ss:$0 sm:$0xff] }
 0x79f   :  { %7673 = vmatmul.msk.f32.vlgmr.msrb.gmra.mxu3 %vm6793_vm3, %v6788_v26 }
 0x7a0   :  { %7675 = vmatpush.msk.msra.mxu3 %vm1712_vm4, %v6876_v29  ;;  %vm6841_vm4 = vcmask 982016  }
 0x7a2   :  { %6893 = vmatpush.msra.mxu3 %v6875_v24 }
 0x7a4   :  { %6894 = vmatpush.msra.mxu3 %v6874_v14 }
 0x7a6   :  { %6895 = vmatpush.msra.mxu3 %v6873_v60 }
 0x7a8   :  { %6896 = vmatpush.msra.mxu3 %v6872_v40 }
 0x7aa   :  { %6897 = vmatpush.msra.mxu3 %v6871_v58 }
 0x7ac   :  { %6898 = vmatpush.msra.mxu3 %v6870_v0 }
 0x7ae   :  { %6899 = vmatpush.msra.mxu3 %v6869_v10 }
 0x7b0   :  { %6900 = vmatpush.msra.mxu3 %v6868_v21 }
 0x7b2   :  { %6901 = vmatpush.msra.mxu3 %v6867_v63 }
 0x7b4   :  { %6902 = vmatpush.msra.mxu3 %v6866_v51 }
 0x822   :  { %v6818_v11 = vpop.f32.mrf.mxu3 }
 0x823   :  { %v6819_v2 = vadd.f32 %v7703_v13, %v6818_v11 }
 0x825   :  { %v6821_v43 = vmax.f32 %v6819_v2, 0.0 }
 0x827   :  { %7674 = vmatmul.msk.f32.vlgmr.msra.gmra.mxu2 %vm6841_vm4, %v6821_v43 }
 0x8aa   :  { %v6862_v47 = vpop.f32.mrf.mxu2 }
 0x8ab   :  { %v6863_v6 = vadd.f32 %v7704_v42, %v6862_v47 }
 0x8ad   :  { %v6865_v25 = vmax.f32 %v6863_v6, 0.0 }
 0x8af   :  { %6907 = vst.msk [vmem:[%s14452_s12] sm:$0xff] %vm3936_vm14, %v6865_v25  ;;  %7676 = vmatmul.msk.f32.vlgmr.msra.gmra.mxu3 %vm3936_vm14, %v6865_v25 }
 0x932   :  { %v6904_v22 = vpop.f32.mrf.mxu3 }
 0x933   :  { %v6905_v9 = vadd.f32 %v7705_v50, %v6904_v22 }
 0x935   :  { %6909 = vst.msk [vmem:[%s14453_s13] sm:$0xff] %vm6908_vm5, %v6905_v9 }

</bundles_post_ra>
